<compile_context>
chip_gen: v7x
topology: tpu7x:2x2x1
jax: 0.10.0
libtpu: 0.0.40
codegen_flags: <defaults>
</compile_context>

<pallas_src>
import numpy as np

import jax
import jax.numpy as jnp
from jax.experimental import pallas as pl
from jax.experimental.pallas import tpu as pltpu


# ----------------------------------------------------------------------------
# Host-side (numpy, weight-only, done once) folding of each conv stage into a
# dense matrix acting on NCHW-flattened activations (lane = c*H*W + y*W + x).
# ----------------------------------------------------------------------------
def _encoder_conv_matrix(w_eff, H, W, stride, pad, ker):
    """Zero-padded strided conv -> dense (Cin*H*W, Cout*Ho*Wo) matrix."""
    cout, cin = w_eff.shape[0], w_eff.shape[1]
    Ho = (H + 2 * pad - ker) // stride + 1
    Wo = (W + 2 * pad - ker) // stride + 1
    M = np.zeros((cin * H * W, cout * Ho * Wo), np.float32)
    rows_c = np.arange(cin)[:, None] * (H * W)      # (Cin, 1)
    cols_c = np.arange(cout)[None, :] * (Ho * Wo)   # (1, Cout)
    for oy in range(Ho):
        for ox in range(Wo):
            for dy in range(ker):
                for dx in range(ker):
                    iy = oy * stride - pad + dy
                    ix = ox * stride - pad + dx
                    if 0 <= iy < H and 0 <= ix < W:
                        M[rows_c + iy * W + ix,
                          cols_c + oy * Wo + ox] += w_eff[:, :, dy, dx].T
    return M, Ho, Wo


def _decoder_conv_matrix(w_eff, h, w, up, pad, ker):
    """UpsamplingNearest2d(up) + ReplicationPad2d(pad) + valid conv, folded into
    a dense (Cin*h*w, Cout*Ho*Wo) matrix acting on the pre-upsample activation."""
    cout, cin = w_eff.shape[0], w_eff.shape[1]
    Hu, Wu = h * up, w * up
    Ho, Wo = Hu + 2 * pad - ker + 1, Wu + 2 * pad - ker + 1
    M = np.zeros((cin * h * w, cout * Ho * Wo), np.float32)
    rows_c = np.arange(cin)[:, None] * (h * w)
    cols_c = np.arange(cout)[None, :] * (Ho * Wo)
    for oy in range(Ho):
        for ox in range(Wo):
            for dy in range(ker):
                for dx in range(ker):
                    uy = min(max(oy + dy - pad, 0), Hu - 1)
                    ux = min(max(ox + dx - pad, 0), Wu - 1)
                    sy, sx = uy // up, ux // up
                    M[rows_c + sy * w + sx,
                      cols_c + oy * Wo + ox] += w_eff[:, :, dy, dx].T
    return M, Ho, Wo


# ----------------------------------------------------------------------------
# Fused Pallas kernel: the whole forward is 8 lane-dense matmuls + epilogues.
# ----------------------------------------------------------------------------
def _act(y, kind):
    if kind == "leaky":                      # nn.LeakyReLU(0.2) in the module
        return jnp.where(y > 0, y, 0.2 * y)
    if kind == "relu":
        return jnp.maximum(y, 0.0)
    if kind == "sigmoid":
        return jax.nn.sigmoid(y)
    return y


def _vae_fused_kernel(x_ref,
                      m1, s1, m2, s2, m3, s3,
                      w12, b12, w3, b3,
                      m4, s4, m5, s5, m6, s6,
                      recon_ref, mulv_ref):
    bf = jnp.bfloat16

    def layer(a, m_ref, shift_ref, kind):
        y = jnp.dot(a, m_ref[...], preferred_element_type=jnp.float32) + shift_ref[...]
        return _act(y, kind)

    # ------------------------------ encoder ------------------------------
    a = layer(x_ref[...], m1, s1, "leaky").astype(bf)   # (B, 16*8*8)  = (B, 1024)
    a = layer(a, m2, s2, "leaky").astype(bf)            # (B, 32*4*4)  = (B, 512)
    a = layer(a, m3, s3, "leaky").astype(bf)            # (B, 64*2*2)  = torch .view(B,-1)

    # fc1 / fc2 merged into one (flat -> 2*hid) matmul (K = 256 fills the MXU).
    mulv = jnp.dot(a, w12[...], preferred_element_type=jnp.float32) + b12[...]
    mulv_ref[...] = mulv                                 # [:, :hid]=mu, [:, hid:]=logvar

    # --------------------- reparameterize (eval mode) --------------------
    # TODO(synk): training-mode sampling (z = mu + eps*exp(0.5*logvar)) not implemented.
    hid = w3.shape[0]
    z = mulv[:, :hid].astype(bf)                         # z = mu

    # ------------------------------ decoder ------------------------------
    d = layer(z, w3, b3, "relu").astype(bf)              # fc3 + ReLU, (B, 64*2*2)
    d = layer(d, m4, s4, "leaky").astype(bf)             # (B, 32*4*4)
    d = layer(d, m5, s5, "leaky").astype(bf)             # (B, 16*8*8)
    recon_ref[...] = layer(d, m6, s6, "sigmoid")         # (B, 3*16*16) lane-dense


# ----------------------------------------------------------------------------
# Parameters: module-style init + one-time, batch-independent preparation
# ----------------------------------------------------------------------------
def init_params(key, nc=3, img=16, hid=32, ker=3, strides=(2, 2, 2)):
    stride_channels = [(s, img * 2 ** (i - 1) if i != 0 else nc, img * 2 ** i)
                       for i, s in enumerate(strides)]
    keys = iter(jax.random.split(key, 64))

    def nrm(shape, scale=0.05):
        return (scale * jax.random.normal(next(keys), shape)).astype(jnp.float32)

    params = {}
    i = 1
    for s, cin, cout in stride_channels:              # encoder convs + BN (eps=1e-5)
        params["conv%d" % i] = {"w": nrm((cout, cin, ker, ker)), "b": nrm((cout,))}
        params["bn%d" % i] = (1.0 + nrm((cout,)), nrm((cout,)),
                              jnp.zeros((cout,), jnp.float32),
                              jnp.ones((cout,), jnp.float32), 1e-5)
        i += 1
    out_ch = stride_channels[-1][2]
    mid = img // 2 ** sum(1 for s in strides if s == 2)
    flat = out_ch * mid * mid
    params["fc1"] = {"w": nrm((hid, flat)), "b": nrm((hid,))}
    params["fc2"] = {"w": nrm((hid, flat)), "b": nrm((hid,))}
    params["fc3"] = {"w": nrm((flat, hid)), "b": nrm((flat,))}
    for s, cout, cin in reversed(stride_channels):    # decoder convs (+ BN eps=0.001)
        params["conv%d" % i] = {"w": nrm((cout, cin, ker, ker)), "b": nrm((cout,))}
        if cout != nc:
            params["bn%d" % i] = (1.0 + nrm((cout,)), nrm((cout,)),
                                  jnp.zeros((cout,), jnp.float32),
                                  jnp.ones((cout,), jnp.float32), 1e-3)
        i += 1
    params["mid_ch"] = mid
    return params


def prepare_kernel_params(params, *, nc=3, img=16, hid=32, ker=3, strides=(2, 2, 2)):
    """One-time, weight-only preparation.  Independent of batch and of x."""
    pad = 1 if ker == 3 else 2 if ker == 5 else 3
    n = len(strides)
    bf = jnp.bfloat16

    def fold(p, bn):
        w = np.asarray(p["w"], np.float32)            # (Cout, Cin, k, k)
        b = np.asarray(p["b"], np.float32)            # (Cout,)
        if bn is None:
            scale, shift = np.ones_like(b), b
        else:
            gamma, beta, rmean, rvar, eps = bn
            gamma, beta = np.asarray(gamma, np.float32), np.asarray(beta, np.float32)
            rmean, rvar = np.asarray(rmean, np.float32), np.asarray(rvar, np.float32)
            scale = gamma / np.sqrt(rvar + eps)
            shift = beta - rmean * scale + b * scale
        return w * scale[:, None, None, None], shift

    ordered = []

    # encoder convs
    H = img
    for i in range(n):
        w_eff, shift = fold(params["conv%d" % (i + 1)], params["bn%d" % (i + 1)])
        M, Ho, _ = _encoder_conv_matrix(w_eff, H, H, strides[i], pad, ker)
        sh = np.repeat(shift, Ho * Ho)[None, :]       # (1, Cout*Ho*Wo), CHW order
        ordered += [jnp.asarray(M, bf), jnp.asarray(sh, jnp.float32)]
        H = Ho
    mid = H

    # fc1 / fc2 merged; fc3.  The in-kernel activation layout *is* torch's
    # .view(B, -1) of the NCHW tensor, so no permutation is needed.
    w12 = np.concatenate([np.asarray(params["fc1"]["w"], np.float32),
                          np.asarray(params["fc2"]["w"], np.float32)], axis=0).T
    b12 = np.concatenate([np.asarray(params["fc1"]["b"], np.float32),
                          np.asarray(params["fc2"]["b"], np.float32)])[None, :]
    w3 = np.asarray(params["fc3"]["w"], np.float32).T                 # (hid, flat)
    b3 = np.asarray(params["fc3"]["b"], np.float32)[None, :]          # (1, flat)
    ordered += [jnp.asarray(w12, bf), jnp.asarray(b12, jnp.float32),
                jnp.asarray(w3, bf), jnp.asarray(b3, jnp.float32)]

    # decoder convs (upsample + replication pad + conv folded together)
    h = mid
    for j in range(n):
        i = n + 1 + j
        w_eff, shift = fold(params["conv%d" % i], params.get("bn%d" % i))
        M, Ho, _ = _decoder_conv_matrix(w_eff, h, h, strides[n - 1 - j], pad, ker)
        sh = np.repeat(shift, Ho * Ho)[None, :]
        ordered += [jnp.asarray(M, bf), jnp.asarray(sh, jnp.float32)]
        h = Ho

    return dict(ordered=ordered, hid=hid, nc=nc, img=img)


# ----------------------------------------------------------------------------
# Forward: one pallas_call, no grid, every operand a single VMEM-resident block
# ----------------------------------------------------------------------------
def adaptive_vae_forward(x, kparams):
    B = x.shape[0]
    nc, img, hid = kparams["nc"], kparams["img"], kparams["hid"]
    x2d = x.reshape(B, nc * img * img).astype(jnp.bfloat16)   # exact NCHW flatten

    operands = [x2d] + list(kparams["ordered"])
    vmem = pl.BlockSpec(memory_space=pltpu.MemorySpace.VMEM)

    recon2d, mulv = pl.pallas_call(
        _vae_fused_kernel,
        out_shape=(jax.ShapeDtypeStruct((B, nc * img * img), jnp.float32),
                   jax.ShapeDtypeStruct((B, 2 * hid), jnp.float32)),
        in_specs=[vmem] * len(operands),
        out_specs=(vmem, vmem),
    )(*operands)

    recon = recon2d.reshape(B, nc, img, img)                   # back to NCHW
    return recon, mulv[:, :hid], mulv[:, hid:]


# ----------------------------------------------------------------------------
# Pure-JAX (XLA) eval-mode reference for correctness checking
# ----------------------------------------------------------------------------
def reference_forward(x, params, strides=(2, 2, 2), ker=3):
    pad = 1 if ker == 3 else 2 if ker == 5 else 3
    n = len(strides)
    leaky = lambda v: jnp.where(v > 0, v, 0.2 * v)

    def conv(v, w, b, stride, padding):
        y = jax.lax.conv_general_dilated(v, w, (stride, stride), padding,
                                         dimension_numbers=("NCHW", "OIHW", "NCHW"))
        return y + b[None, :, None, None]

    def bn(v, p):
        gamma, beta, rmean, rvar, eps = p
        inv = gamma / jnp.sqrt(rvar + eps)
        return (v - rmean[None, :, None, None]) * inv[None, :, None, None] \
               + beta[None, :, None, None]

    h = x
    for i in range(n):
        p = params["conv%d" % (i + 1)]
        h = conv(h, p["w"], p["b"], strides[i], [(pad, pad), (pad, pad)])
        h = leaky(bn(h, params["bn%d" % (i + 1)]))
    B = h.shape[0]
    flat = h.reshape(B, -1)
    mu = flat @ params["fc1"]["w"].T + params["fc1"]["b"]
    logvar = flat @ params["fc2"]["w"].T + params["fc2"]["b"]
    d = jnp.maximum(mu @ params["fc3"]["w"].T + params["fc3"]["b"], 0.0)
    mid = params["mid_ch"]
    d = d.reshape(B, -1, mid, mid)
    for j in range(n):
        i = n + 1 + j
        s = strides[n - 1 - j]
        d = jnp.repeat(jnp.repeat(d, s, axis=2), s, axis=3)
        d = jnp.pad(d, ((0, 0), (0, 0), (pad, pad), (pad, pad)), mode="edge")
        p = params["conv%d" % i]
        d = conv(d, p["w"], p["b"], 1, [(0, 0), (0, 0)])
        if i != 2 * n:
            d = leaky(bn(d, params["bn%d" % i]))
        else:
            d = jax.nn.sigmoid(d)
    return d, mu, logvar


if __name__ == "__main__":
    key = jax.random.PRNGKey(0)
    pkey, xkey = jax.random.split(key)

    NC, IMG, HID, KER = 3, 16, 32, 3
    STRIDES = (2, 2, 2)
    BATCH = 2

    params = init_params(pkey, nc=NC, img=IMG, hid=HID, ker=KER, strides=STRIDES)
    kparams = prepare_kernel_params(params, nc=NC, img=IMG, hid=HID,
                                    ker=KER, strides=STRIDES)
    x = jax.random.normal(xkey, (BATCH, NC, IMG, IMG), dtype=jnp.float32)

    meta = {k: kparams[k] for k in ("hid", "nc", "img")}

    @jax.jit
    def fwd(v, ops):
        return adaptive_vae_forward(v, dict(ordered=ops, **meta))

    recon, mu, logvar = fwd(x, kparams["ordered"])
    jax.block_until_ready((recon, mu, logvar))

    assert recon.shape == (BATCH, NC, IMG, IMG), recon.shape
    assert mu.shape == (BATCH, HID) and logvar.shape == (BATCH, HID)
    assert bool(jnp.all(recon >= 0.0)) and bool(jnp.all(recon <= 1.0))

    # correctness vs. a pure-JAX eval-mode reference of the same module
    r_ref, mu_ref, lv_ref = reference_forward(x, params, strides=STRIDES, ker=KER)
    np.testing.assert_allclose(np.asarray(mu), np.asarray(mu_ref), atol=2e-2, rtol=0)
    np.testing.assert_allclose(np.asarray(logvar), np.asarray(lv_ref), atol=2e-2, rtol=0)
    np.testing.assert_allclose(np.asarray(recon), np.asarray(r_ref), atol=2e-2, rtol=0)

    print("KERNEL_OK")
</pallas_src>

<mosaic_0001>
module attributes {stable_mosaic.version = 11 : i64} {
  func.func @_vae_fused_kernel(%arg0: memref<2x768xbf16, #tpu.memory_space<vmem>>, %arg1: memref<768x1024xbf16, #tpu.memory_space<vmem>>, %arg2: memref<1x1024xf32, #tpu.memory_space<vmem>>, %arg3: memref<1024x512xbf16, #tpu.memory_space<vmem>>, %arg4: memref<1x512xf32, #tpu.memory_space<vmem>>, %arg5: memref<512x256xbf16, #tpu.memory_space<vmem>>, %arg6: memref<1x256xf32, #tpu.memory_space<vmem>>, %arg7: memref<256x64xbf16, #tpu.memory_space<vmem>>, %arg8: memref<1x64xf32, #tpu.memory_space<vmem>>, %arg9: memref<32x256xbf16, #tpu.memory_space<vmem>>, %arg10: memref<1x256xf32, #tpu.memory_space<vmem>>, %arg11: memref<256x512xbf16, #tpu.memory_space<vmem>>, %arg12: memref<1x512xf32, #tpu.memory_space<vmem>>, %arg13: memref<512x1024xbf16, #tpu.memory_space<vmem>>, %arg14: memref<1x1024xf32, #tpu.memory_space<vmem>>, %arg15: memref<1024x768xbf16, #tpu.memory_space<vmem>>, %arg16: memref<1x768xf32, #tpu.memory_space<vmem>>, %arg17: memref<2x768xf32, #tpu.memory_space<vmem>>, %arg18: memref<2x64xf32, #tpu.memory_space<vmem>>) attributes {dimension_semantics = [], scalar_prefetch = 0 : i64, scratch_operands = 0 : i64, tpu.core_type = #tpu.core_type<tc>} {
    %c0 = arith.constant 0 : index
    %c0_0 = arith.constant 0 : index
    %0 = vector.load %arg0[%c0, %c0_0] : memref<2x768xbf16, #tpu.memory_space<vmem>>, vector<2x768xbf16>
    %c0_1 = arith.constant 0 : index
    %c0_2 = arith.constant 0 : index
    %1 = vector.load %arg1[%c0_1, %c0_2] : memref<768x1024xbf16, #tpu.memory_space<vmem>>, vector<768x1024xbf16>
    %cst = arith.constant dense<0.000000e+00> : vector<2x1024xf32>
    %2 = tpu.matmul %0, %1, %cst {dimension_numbers = #tpu.dot_dimension_numbers<[1], [0], [0], [1], [0, 0, 1, 1], [], []>} : vector<2x768xbf16>, vector<768x1024xbf16>, vector<2x1024xf32> -> vector<2x1024xf32>
    %c0_3 = arith.constant 0 : index
    %c0_4 = arith.constant 0 : index
    %3 = vector.load %arg2[%c0_3, %c0_4] : memref<1x1024xf32, #tpu.memory_space<vmem>>, vector<1x1024xf32>
    %4 = vector.broadcast %3 : vector<1x1024xf32> to vector<2x1024xf32>
    %5 = arith.addf %2, %4 : vector<2x1024xf32>
    %cst_5 = arith.constant 0.000000e+00 : f32
    %6 = vector.broadcast %cst_5 : f32 to vector<2x1024xf32>
    %7 = arith.cmpf ogt, %5, %6 : vector<2x1024xf32>
    %cst_6 = arith.constant 2.000000e-01 : f32
    %8 = vector.broadcast %cst_6 : f32 to vector<2x1024xf32>
    %9 = arith.mulf %8, %5 : vector<2x1024xf32>
    %10 = arith.select %7, %5, %9 : vector<2x1024xi1>, vector<2x1024xf32>
    %11 = arith.truncf %10 : vector<2x1024xf32> to vector<2x1024xbf16>
    %c0_7 = arith.constant 0 : index
    %c0_8 = arith.constant 0 : index
    %12 = vector.load %arg3[%c0_7, %c0_8] : memref<1024x512xbf16, #tpu.memory_space<vmem>>, vector<1024x512xbf16>
    %cst_9 = arith.constant dense<0.000000e+00> : vector<2x512xf32>
    %13 = tpu.matmul %11, %12, %cst_9 {dimension_numbers = #tpu.dot_dimension_numbers<[1], [0], [0], [1], [0, 0, 1, 1], [], []>} : vector<2x1024xbf16>, vector<1024x512xbf16>, vector<2x512xf32> -> vector<2x512xf32>
    %c0_10 = arith.constant 0 : index
    %c0_11 = arith.constant 0 : index
    %14 = vector.load %arg4[%c0_10, %c0_11] : memref<1x512xf32, #tpu.memory_space<vmem>>, vector<1x512xf32>
    %15 = vector.broadcast %14 : vector<1x512xf32> to vector<2x512xf32>
    %16 = arith.addf %13, %15 : vector<2x512xf32>
    %cst_12 = arith.constant 0.000000e+00 : f32
    %17 = vector.broadcast %cst_12 : f32 to vector<2x512xf32>
    %18 = arith.cmpf ogt, %16, %17 : vector<2x512xf32>
    %cst_13 = arith.constant 2.000000e-01 : f32
    %19 = vector.broadcast %cst_13 : f32 to vector<2x512xf32>
    %20 = arith.mulf %19, %16 : vector<2x512xf32>
    %21 = arith.select %18, %16, %20 : vector<2x512xi1>, vector<2x512xf32>
    %22 = arith.truncf %21 : vector<2x512xf32> to vector<2x512xbf16>
    %c0_14 = arith.constant 0 : index
    %c0_15 = arith.constant 0 : index
    %23 = vector.load %arg5[%c0_14, %c0_15] : memref<512x256xbf16, #tpu.memory_space<vmem>>, vector<512x256xbf16>
    %cst_16 = arith.constant dense<0.000000e+00> : vector<2x256xf32>
    %24 = tpu.matmul %22, %23, %cst_16 {dimension_numbers = #tpu.dot_dimension_numbers<[1], [0], [0], [1], [0, 0, 1, 1], [], []>} : vector<2x512xbf16>, vector<512x256xbf16>, vector<2x256xf32> -> vector<2x256xf32>
    %c0_17 = arith.constant 0 : index
    %c0_18 = arith.constant 0 : index
    %25 = vector.load %arg6[%c0_17, %c0_18] : memref<1x256xf32, #tpu.memory_space<vmem>>, vector<1x256xf32>
    %26 = vector.broadcast %25 : vector<1x256xf32> to vector<2x256xf32>
    %27 = arith.addf %24, %26 : vector<2x256xf32>
    %cst_19 = arith.constant 0.000000e+00 : f32
    %28 = vector.broadcast %cst_19 : f32 to vector<2x256xf32>
    %29 = arith.cmpf ogt, %27, %28 : vector<2x256xf32>
    %cst_20 = arith.constant 2.000000e-01 : f32
    %30 = vector.broadcast %cst_20 : f32 to vector<2x256xf32>
    %31 = arith.mulf %30, %27 : vector<2x256xf32>
    %32 = arith.select %29, %27, %31 : vector<2x256xi1>, vector<2x256xf32>
    %33 = arith.truncf %32 : vector<2x256xf32> to vector<2x256xbf16>
    %c0_21 = arith.constant 0 : index
    %c0_22 = arith.constant 0 : index
    %34 = vector.load %arg7[%c0_21, %c0_22] : memref<256x64xbf16, #tpu.memory_space<vmem>>, vector<256x64xbf16>
    %cst_23 = arith.constant dense<0.000000e+00> : vector<2x64xf32>
    %35 = tpu.matmul %33, %34, %cst_23 {dimension_numbers = #tpu.dot_dimension_numbers<[1], [0], [0], [1], [0, 0, 1, 1], [], []>} : vector<2x256xbf16>, vector<256x64xbf16>, vector<2x64xf32> -> vector<2x64xf32>
    %c0_24 = arith.constant 0 : index
    %c0_25 = arith.constant 0 : index
    %36 = vector.load %arg8[%c0_24, %c0_25] : memref<1x64xf32, #tpu.memory_space<vmem>>, vector<1x64xf32>
    %37 = vector.broadcast %36 : vector<1x64xf32> to vector<2x64xf32>
    %38 = arith.addf %35, %37 : vector<2x64xf32>
    %c0_26 = arith.constant 0 : index
    %c0_27 = arith.constant 0 : index
    %39 = vector.load %arg18[%c0_26, %c0_27] : memref<2x64xf32, #tpu.memory_space<vmem>>, vector<2x64xf32>
    tpu.vector_store %arg18[%c0_26, %c0_27], %38 {strides = array<i32>} : memref<2x64xf32, #tpu.memory_space<vmem>>, vector<2x64xf32>,
    %40 = vector.extract_strided_slice %38 {offsets = [0, 0], sizes = [2, 32], strides = [1, 1]} : vector<2x64xf32> to vector<2x32xf32>
    %41 = arith.truncf %40 : vector<2x32xf32> to vector<2x32xbf16>
    %c0_28 = arith.constant 0 : index
    %c0_29 = arith.constant 0 : index
    %42 = vector.load %arg9[%c0_28, %c0_29] : memref<32x256xbf16, #tpu.memory_space<vmem>>, vector<32x256xbf16>
    %cst_30 = arith.constant dense<0.000000e+00> : vector<2x256xf32>
    %43 = tpu.matmul %41, %42, %cst_30 {dimension_numbers = #tpu.dot_dimension_numbers<[1], [0], [0], [1], [0, 0, 1, 1], [], []>} : vector<2x32xbf16>, vector<32x256xbf16>, vector<2x256xf32> -> vector<2x256xf32>
    %c0_31 = arith.constant 0 : index
    %c0_32 = arith.constant 0 : index
    %44 = vector.load %arg10[%c0_31, %c0_32] : memref<1x256xf32, #tpu.memory_space<vmem>>, vector<1x256xf32>
    %45 = vector.broadcast %44 : vector<1x256xf32> to vector<2x256xf32>
    %46 = arith.addf %43, %45 : vector<2x256xf32>
    %cst_33 = arith.constant 0.000000e+00 : f32
    %47 = vector.broadcast %cst_33 : f32 to vector<2x256xf32>
    %48 = arith.maximumf %46, %47 : vector<2x256xf32>
    %49 = arith.truncf %48 : vector<2x256xf32> to vector<2x256xbf16>
    %c0_34 = arith.constant 0 : index
    %c0_35 = arith.constant 0 : index
    %50 = vector.load %arg11[%c0_34, %c0_35] : memref<256x512xbf16, #tpu.memory_space<vmem>>, vector<256x512xbf16>
    %cst_36 = arith.constant dense<0.000000e+00> : vector<2x512xf32>
    %51 = tpu.matmul %49, %50, %cst_36 {dimension_numbers = #tpu.dot_dimension_numbers<[1], [0], [0], [1], [0, 0, 1, 1], [], []>} : vector<2x256xbf16>, vector<256x512xbf16>, vector<2x512xf32> -> vector<2x512xf32>
    %c0_37 = arith.constant 0 : index
    %c0_38 = arith.constant 0 : index
    %52 = vector.load %arg12[%c0_37, %c0_38] : memref<1x512xf32, #tpu.memory_space<vmem>>, vector<1x512xf32>
    %53 = vector.broadcast %52 : vector<1x512xf32> to vector<2x512xf32>
    %54 = arith.addf %51, %53 : vector<2x512xf32>
    %cst_39 = arith.constant 0.000000e+00 : f32
    %55 = vector.broadcast %cst_39 : f32 to vector<2x512xf32>
    %56 = arith.cmpf ogt, %54, %55 : vector<2x512xf32>
    %cst_40 = arith.constant 2.000000e-01 : f32
    %57 = vector.broadcast %cst_40 : f32 to vector<2x512xf32>
    %58 = arith.mulf %57, %54 : vector<2x512xf32>
    %59 = arith.select %56, %54, %58 : vector<2x512xi1>, vector<2x512xf32>
    %60 = arith.truncf %59 : vector<2x512xf32> to vector<2x512xbf16>
    %c0_41 = arith.constant 0 : index
    %c0_42 = arith.constant 0 : index
    %61 = vector.load %arg13[%c0_41, %c0_42] : memref<512x1024xbf16, #tpu.memory_space<vmem>>, vector<512x1024xbf16>
    %cst_43 = arith.constant dense<0.000000e+00> : vector<2x1024xf32>
    %62 = tpu.matmul %60, %61, %cst_43 {dimension_numbers = #tpu.dot_dimension_numbers<[1], [0], [0], [1], [0, 0, 1, 1], [], []>} : vector<2x512xbf16>, vector<512x1024xbf16>, vector<2x1024xf32> -> vector<2x1024xf32>
    %c0_44 = arith.constant 0 : index
    %c0_45 = arith.constant 0 : index
    %63 = vector.load %arg14[%c0_44, %c0_45] : memref<1x1024xf32, #tpu.memory_space<vmem>>, vector<1x1024xf32>
    %64 = vector.broadcast %63 : vector<1x1024xf32> to vector<2x1024xf32>
    %65 = arith.addf %62, %64 : vector<2x1024xf32>
    %cst_46 = arith.constant 0.000000e+00 : f32
    %66 = vector.broadcast %cst_46 : f32 to vector<2x1024xf32>
    %67 = arith.cmpf ogt, %65, %66 : vector<2x1024xf32>
    %cst_47 = arith.constant 2.000000e-01 : f32
    %68 = vector.broadcast %cst_47 : f32 to vector<2x1024xf32>
    %69 = arith.mulf %68, %65 : vector<2x1024xf32>
    %70 = arith.select %67, %65, %69 : vector<2x1024xi1>, vector<2x1024xf32>
    %71 = arith.truncf %70 : vector<2x1024xf32> to vector<2x1024xbf16>
    %c0_48 = arith.constant 0 : index
    %c0_49 = arith.constant 0 : index
    %72 = vector.load %arg15[%c0_48, %c0_49] : memref<1024x768xbf16, #tpu.memory_space<vmem>>, vector<1024x768xbf16>
    %cst_50 = arith.constant dense<0.000000e+00> : vector<2x768xf32>
    %73 = tpu.matmul %71, %72, %cst_50 {dimension_numbers = #tpu.dot_dimension_numbers<[1], [0], [0], [1], [0, 0, 1, 1], [], []>} : vector<2x1024xbf16>, vector<1024x768xbf16>, vector<2x768xf32> -> vector<2x768xf32>
    %c0_51 = arith.constant 0 : index
    %c0_52 = arith.constant 0 : index
    %74 = vector.load %arg16[%c0_51, %c0_52] : memref<1x768xf32, #tpu.memory_space<vmem>>, vector<1x768xf32>
    %75 = vector.broadcast %74 : vector<1x768xf32> to vector<2x768xf32>
    %76 = arith.addf %73, %75 : vector<2x768xf32>
    %77 = arith.negf %76 : vector<2x768xf32>
    %78 = math.exp %77 : vector<2x768xf32>
    %cst_53 = arith.constant 1.000000e+00 : f32
    %79 = vector.broadcast %cst_53 : f32 to vector<2x768xf32>
    %80 = arith.addf %79, %78 : vector<2x768xf32>
    %81 = arith.divf %79, %80 : vector<2x768xf32>
    %c0_54 = arith.constant 0 : index
    %c0_55 = arith.constant 0 : index
    %82 = vector.load %arg17[%c0_54, %c0_55] : memref<2x768xf32, #tpu.memory_space<vmem>>, vector<2x768xf32>
    tpu.vector_store %arg17[%c0_54, %c0_55], %81 {strides = array<i32>} : memref<2x768xf32, #tpu.memory_space<vmem>>, vector<2x768xf32>,
    return
  }
}

</mosaic_0001>

<bundles_post_ra>
// kernel: fwd.1
= control target key start
LH: loop header
LB: loop body
LE: loop exit
PB: predicated region body
PF: predicated region fallthrough
CT: control target
= control target key end

     0   :  { %s15021_s0 = inlined_call_operand.vmem [shape: bf16[2,768], index: 0, kind: input, shape index: {}]   ;;  %s15022_s1 = inlined_call_operand.hbm [shape: bf16[768,1024], index: 1, kind: input, shape index: {}]   ;;  %s15023_s2 = inlined_call_operand.hbm [shape: f32[1,1024], index: 2, kind: input, shape index: {}]   ;;  %s15024_s3 = inlined_call_operand.hbm [shape: bf16[1024,512], index: 3, kind: input, shape index: {}]   ;;  %s15025_s4 = inlined_call_operand.hbm [shape: f32[1,512], index: 4, kind: input, shape index: {}]   ;;  %s15026_s5 = inlined_call_operand.hbm [shape: bf16[512,256], index: 5, kind: input, shape index: {}]   ;;  %s15027_s6 = inlined_call_operand.hbm [shape: f32[1,256], index: 6, kind: input, shape index: {}]   ;;  %s15028_s7 = inlined_call_operand.vmem [shape: bf16[256,64], index: 7, kind: input, shape index: {}]   ;;  %s15029_s8 = inlined_call_operand.hbm [shape: f32[1,64], index: 8, kind: input, shape index: {}]   ;;  %s15030_s9 = inlined_call_operand.hbm [shape: bf16[32,256], index: 9, kind: input, shape index: {}]   ;;  %s15031_s10 = inlined_call_operand.hbm [shape: f32[1,256], index: 10, kind: input, shape index: {}]   ;;  %s15032_s11 = inlined_call_operand.hbm [shape: bf16[256,512], index: 11, kind: input, shape index: {}]   ;;  %s15033_s12 = inlined_call_operand.hbm [shape: f32[1,512], index: 12, kind: input, shape index: {}]   ;;  %s15034_s13 = inlined_call_operand.hbm [shape: bf16[512,1024], index: 13, kind: input, shape index: {}]   ;;  %s15035_s14 = inlined_call_operand.hbm [shape: f32[1,1024], index: 14, kind: input, shape index: {}]   ;;  %s15036_s15 = inlined_call_operand.hbm [shape: bf16[1024,768], index: 15, kind: input, shape index: {}]   ;;  %s15037_s16 = inlined_call_operand.hbm [shape: f32[1,768], index: 16, kind: input, shape index: {}]   ;;  %s15038_s17 = inlined_call_operand.vmem [shape: f32[2,768], index: 17, kind: output, shape index: {0}]   ;;  %s15039_s18 = inlined_call_operand.vmem [shape: f32[2,64], index: 18, kind: output, shape index: {1}]  }
   0x1   :  { %15045 = sst [smem:[#allocation33_spill]] %s15021_s0 }
   0x2   :  { %15046 = sst [smem:[#allocation34_spill]] %s15022_s1 }
   0x3   :  { %15047 = sst [smem:[#allocation35_spill]] %s15023_s2 }
   0x4   :  { %24 = vsyncpa [#allocation3], 0 }
   0x5   :  { %25 = vsyncpa [#allocation5], 0 }
   0x6   :  { %26 = vsyncpa [#allocation8], 0 }
   0x7   :  { %27 = vsyncpa [#allocation11], 0 }
   0x8   :  { %28 = vsyncpa [#allocation14], 0 }
   0x9   :  { %29 = vsyncpa [#allocation17], 0 }
   0xa   :  { %30 = vsyncpa [#allocation20], 0 }
   0xb   :  { %31 = vsyncpa [#allocation23], 0  ;;  %s14348_s27 = smov [#allocation4]   ;;  %s14349_s29 = smov [#allocation7]  }
   0xc   :  { %s52_s28 = sshll.u32 %s14348_s27, 4  ;;  %s74_s30 = sshll.u32 %s14349_s29, 4  ;;  %s53_s28 = int_to_ptr.vmem [resolvable:$true] %s52_s28  ;;  %s75_s30 = int_to_ptr.vmem [resolvable:$true] %s74_s30 }
   0xd   :  { %s15048_s1 = sld [smem:[#allocation35_spill]] }
  0x13   :  { %s14002_s20 = scalar_lea.hbm %s15048_s1, 128 }
  0x14   :  { %p14003_p0 = scmp.ne.s32.totalorder %s15048_s1, %s14002_s20  ;;  %p14006_p1 = scmp.lt.u32.totalorder %s14002_s20, %s15048_s1 }
  0x16   :  { %p14008_p2 = pnand %p14006_p1, %p14003_p0 }
  0x18   :  { %14011 = shalt.err (!%p14008_p2)
}
  0x19   :  { %s14012_s24 = scalar_lea.vmem %s53_s28, 128  ;;  %p14017_p4 = scmp.lt.s32.totalorder %s53_s28, %s53_s28 }
  0x1a   :  { %p14013_p3 = scmp.ne.s32.totalorder %s53_s28, %s14012_s24  ;;  %p14018_p5 = scmp.lt.s32.totalorder %s14012_s24, %s14012_s24 }
  0x1c   :  { %p14019_p6 = por %p14018_p5, %p14017_p4 }
  0x1e   :  { %p14020_p7 = pnand %p14019_p6, %p14013_p3 }
  0x20   :  { %14023 = shalt.err (!%p14020_p7)
}
  0x21   :  { %55 = dma.hbm_to_vmem [thread:$0]  %s15048_s1, 128, %s53_s28, [#allocation5]  }
  0x22   :  { %s14024_s0 = scalar_lea.hbm %s15025_s4, 64 }
  0x23   :  { %p14025_p8 = scmp.ne.s32.totalorder %s15025_s4, %s14024_s0  ;;  %p14028_p9 = scmp.lt.u32.totalorder %s14024_s0, %s15025_s4 }
  0x25   :  { %p14030_p10 = pnand %p14028_p9, %p14025_p8 }
  0x27   :  { %14033 = shalt.err (!%p14030_p10)
}
  0x28   :  { %s14034_s2 = scalar_lea.vmem %s75_s30, 64  ;;  %p14039_p12 = scmp.lt.s32.totalorder %s75_s30, %s75_s30 }
  0x29   :  { %p14035_p11 = scmp.ne.s32.totalorder %s75_s30, %s14034_s2  ;;  %p14040_p13 = scmp.lt.s32.totalorder %s14034_s2, %s14034_s2 }
  0x2b   :  { %p14041_p0 = por %p14040_p13, %p14039_p12 }
  0x2d   :  { %p14042_p1 = pnand %p14041_p0, %p14035_p11 }
  0x2f   :  { %14045 = shalt.err (!%p14042_p1)
}
  0x30   :  { %77 = dma.hbm_to_vmem [thread:$0]  %s15025_s4, 64, %s75_s30, [#allocation8]  }
  0x31   :  { %s14350_s23 = smov [#allocation10]   ;;  %s14046_s27 = scalar_lea.hbm %s15027_s6, 32 }
  0x32   :  { %s96_s24 = sshll.u32 %s14350_s23, 4  ;;  %p14047_p2 = scmp.ne.s32.totalorder %s15027_s6, %s14046_s27  ;;  %s97_s24 = int_to_ptr.vmem [resolvable:$true] %s96_s24 }
  0x33   :  { %p14050_p3 = scmp.lt.u32.totalorder %s14046_s27, %s15027_s6 }
  0x35   :  { %p14052_p4 = pnand %p14050_p3, %p14047_p2 }
  0x37   :  { %14055 = shalt.err (!%p14052_p4)
}
  0x38   :  { %s14056_s20 = scalar_lea.vmem %s97_s24, 32  ;;  %p14061_p6 = scmp.lt.s32.totalorder %s97_s24, %s97_s24 }
  0x39   :  { %p14057_p5 = scmp.ne.s32.totalorder %s97_s24, %s14056_s20  ;;  %p14062_p7 = scmp.lt.s32.totalorder %s14056_s20, %s14056_s20 }
  0x3b   :  { %p14063_p8 = por %p14062_p7, %p14061_p6 }
  0x3d   :  { %p14064_p9 = pnand %p14063_p8, %p14057_p5 }
  0x3f   :  { %14067 = shalt.err (!%p14064_p9)
}
  0x40   :  { %99 = dma.hbm_to_vmem [thread:$0]  %s15027_s6, 32, %s97_s24, [#allocation11]  }
  0x41   :  { %s14351_s22 = smov [#allocation13]   ;;  %s14068_s23 = scalar_lea.hbm %s15030_s9, 512 }
  0x42   :  { %s117_s2 = sshll.u32 %s14351_s22, 4  ;;  %p14069_p10 = scmp.ne.s32.totalorder %s15030_s9, %s14068_s23  ;;  %s118_s2 = int_to_ptr.vmem [resolvable:$true] %s117_s2 }
  0x43   :  { %p14072_p11 = scmp.lt.u32.totalorder %s14068_s23, %s15030_s9 }
  0x45   :  { %p14074_p12 = pnand %p14072_p11, %p14069_p10 }
  0x47   :  { %14077 = shalt.err (!%p14074_p12)
}
  0x48   :  { %s14078_s0 = scalar_lea.vmem %s118_s2, 512  ;;  %p14083_p0 = scmp.lt.s32.totalorder %s118_s2, %s118_s2 }
  0x49   :  { %p14079_p13 = scmp.ne.s32.totalorder %s118_s2, %s14078_s0  ;;  %p14084_p1 = scmp.lt.s32.totalorder %s14078_s0, %s14078_s0 }
  0x4b   :  { %p14085_p2 = por %p14084_p1, %p14083_p0 }
  0x4d   :  { %p14086_p3 = pnand %p14085_p2, %p14079_p13 }
  0x4f   :  { %14089 = shalt.err (!%p14086_p3)
}
  0x50   :  { %s15042_s6 = smov 128   ;;  %s15043_s24 = smov 8  }
  0x51   :  { %123 = dma.hbm_to_vmem [thread:$0]  %s15030_s9, 512, %s118_s2, [#allocation14], %s15042_s6, %s15042_s6, %s15043_s24  }
  0x52   :  { %s14354_s20 = smov [#allocation16]   ;;  %s14090_s28 = scalar_lea.hbm %s15032_s11, 8192 }
  0x53   :  { %s139_s4 = sshll.u32 %s14354_s20, 4  ;;  %p14091_p4 = scmp.ne.s32.totalorder %s15032_s11, %s14090_s28  ;;  %s140_s4 = int_to_ptr.vmem [resolvable:$true] %s139_s4 }
  0x54   :  { %p14094_p5 = scmp.lt.u32.totalorder %s14090_s28, %s15032_s11 }
  0x56   :  { %p14096_p6 = pnand %p14094_p5, %p14091_p4 }
  0x58   :  { %14099 = shalt.err (!%p14096_p6)
}
  0x59   :  { %s14100_s27 = scalar_lea.vmem %s140_s4, 8192  ;;  %p14105_p8 = scmp.lt.s32.totalorder %s140_s4, %s140_s4 }
  0x5a   :  { %p14101_p7 = scmp.ne.s32.totalorder %s140_s4, %s14100_s27  ;;  %p14106_p9 = scmp.lt.s32.totalorder %s14100_s27, %s14100_s27 }
  0x5c   :  { %p14107_p10 = por %p14106_p9, %p14105_p8 }
  0x5e   :  { %p14108_p11 = pnand %p14107_p10, %p14101_p7 }
  0x60   :  { %14111 = shalt.err (!%p14108_p11)
}
  0x61   :  { %s15044_s9 = smov 256   ;;  %s14356_s2 = smov 16  }
  0x62   :  { %145 = dma.hbm_to_vmem [thread:$0]  %s15032_s11, 8192, %s140_s4, [#allocation17], %s15044_s9, %s15044_s9, %s14356_s2  }
  0x63   :  { %s14357_s19 = smov [#allocation19]   ;;  %s14358_s20 = smov [#allocation22]  }
  0x64   :  { %s161_s21 = sshll.u32 %s14357_s19, 4  ;;  %s183_s30 = sshll.u32 %s14358_s20, 4  ;;  %s162_s21 = int_to_ptr.vmem [resolvable:$true] %s161_s21  ;;  %s184_s30 = int_to_ptr.vmem [resolvable:$true] %s183_s30 }
  0x65   :  { %s14112_s1 = scalar_lea.hbm %s15034_s13, 32768 }
  0x66   :  { %p14113_p12 = scmp.ne.s32.totalorder %s15034_s13, %s14112_s1  ;;  %p14116_p13 = scmp.lt.u32.totalorder %s14112_s1, %s15034_s13 }
  0x68   :  { %p14118_p0 = pnand %p14116_p13, %p14113_p12 }
  0x6a   :  { %14121 = shalt.err (!%p14118_p0)
}
  0x6b   :  { %s14122_s11 = scalar_lea.vmem %s162_s21, 32768  ;;  %p14127_p2 = scmp.lt.s32.totalorder %s162_s21, %s162_s21 }
  0x6c   :  { %p14123_p1 = scmp.ne.s32.totalorder %s162_s21, %s14122_s11  ;;  %p14128_p3 = scmp.lt.s32.totalorder %s14122_s11, %s14122_s11 }
  0x6e   :  { %p14129_p4 = por %p14128_p3, %p14127_p2 }
  0x70   :  { %p14130_p5 = pnand %p14129_p4, %p14123_p1 }
  0x72   :  { %14133 = shalt.err (!%p14130_p5)
}
  0x73   :  { %s14359_s4 = smov 512   ;;  %s14360_s29 = smov 32  }
  0x74   :  { %167 = dma.hbm_to_vmem [thread:$0]  %s15034_s13, 32768, %s162_s21, [#allocation20], %s14359_s4, %s14359_s4, %s14360_s29  }
  0x75   :  { %s14134_s28 = scalar_lea.hbm %s15036_s15, 49152 }
  0x76   :  { %p14135_p6 = scmp.ne.s32.totalorder %s15036_s15, %s14134_s28  ;;  %p14138_p7 = scmp.lt.u32.totalorder %s14134_s28, %s15036_s15 }
  0x78   :  { %p14140_p8 = pnand %p14138_p7, %p14135_p6 }
  0x7a   :  { %14143 = shalt.err (!%p14140_p8)
}
  0x7b   :  { %s14144_s27 = scalar_lea.vmem %s184_s30, 49152  ;;  %p14149_p10 = scmp.lt.s32.totalorder %s184_s30, %s184_s30 }
  0x7c   :  { %p14145_p9 = scmp.ne.s32.totalorder %s184_s30, %s14144_s27  ;;  %p14150_p11 = scmp.lt.s32.totalorder %s14144_s27, %s14144_s27 }
  0x7e   :  { %p14151_p12 = por %p14150_p11, %p14149_p10 }
  0x80   :  { %p14152_p13 = pnand %p14151_p12, %p14145_p9 }
  0x82   :  { %14155 = shalt.err (!%p14152_p13)
}
  0x83   :  { %s14361_s13 = smov 384   ;;  %s14362_s21 = smov 24  }
  0x84   :  { %189 = dma.hbm_to_vmem [thread:$0]  %s15036_s15, 49152, %s184_s30, [#allocation23], %s14361_s13, %s14361_s13, %s14362_s21  }
  0x85   :  { %s14363_s19 = smov [#allocation2]   ;;  %s14364_s22 = smov [#allocation6]  }
  0x86   :  { %s39_s20 = sshll.u32 %s14363_s19, 4  ;;  %s61_s28 = sshll.u32 %s14364_s22, 4  ;;  %s40_s20 = int_to_ptr.vmem [resolvable:$true] %s39_s20  ;;  %s62_s28 = int_to_ptr.vmem [resolvable:$true] %s61_s28 }
  0x87   :  { %s15049_s25 = sld [smem:[#allocation34_spill]] }
  0x8d   :  { %s14156_s26 = scalar_lea.hbm %s15049_s25, 49152 }
  0x8e   :  { %p14157_p0 = scmp.ne.s32.totalorder %s15049_s25, %s14156_s26  ;;  %p14160_p1 = scmp.lt.u32.totalorder %s14156_s26, %s15049_s25 }
  0x90   :  { %p14162_p2 = pnand %p14160_p1, %p14157_p0 }
  0x92   :  { %14165 = shalt.err (!%p14162_p2)
}
  0x93   :  { %s14166_s15 = scalar_lea.vmem %s40_s20, 49152  ;;  %p14171_p4 = scmp.lt.s32.totalorder %s40_s20, %s40_s20 }
  0x94   :  { %p14167_p3 = scmp.ne.s32.totalorder %s40_s20, %s14166_s15  ;;  %p14172_p5 = scmp.lt.s32.totalorder %s14166_s15, %s14166_s15 }
  0x96   :  { %p14173_p6 = por %p14172_p5, %p14171_p4 }
  0x98   :  { %p14174_p7 = pnand %p14173_p6, %p14167_p3 }
  0x9a   :  { %14177 = shalt.err (!%p14174_p7)
}
  0x9b   :  { %45 = dma.hbm_to_vmem [thread:$0]  %s15049_s25, 49152, %s40_s20, [#allocation3], %s14359_s4, %s14359_s4, %s14360_s29  }
  0x9c   :  { %s14178_s9 = scalar_lea.hbm %s15024_s3, 32768 }
  0x9d   :  { %p14179_p8 = scmp.ne.s32.totalorder %s15024_s3, %s14178_s9  ;;  %p14182_p9 = scmp.lt.u32.totalorder %s14178_s9, %s15024_s3 }
  0x9f   :  { %p14184_p10 = pnand %p14182_p9, %p14179_p8 }
  0xa1   :  { %14187 = shalt.err (!%p14184_p10)
}
  0xa2   :  { %s14188_s22 = scalar_lea.vmem %s62_s28, 32768  ;;  %p14193_p12 = scmp.lt.s32.totalorder %s62_s28, %s62_s28 }
  0xa3   :  { %p14189_p11 = scmp.ne.s32.totalorder %s62_s28, %s14188_s22  ;;  %p14194_p13 = scmp.lt.s32.totalorder %s14188_s22, %s14188_s22 }
  0xa5   :  { %p14195_p0 = por %p14194_p13, %p14193_p12 }
  0xa7   :  { %p14196_p1 = pnand %p14195_p0, %p14189_p11 }
  0xa9   :  { %14199 = shalt.err (!%p14196_p1)
}
  0xaa   :  { %s15050_s4 = smov 256   ;;  %s14365_s1 = smov [#allocation9]  }
  0xab   :  { %67 = dma.hbm_to_vmem [thread:$0]  %s15024_s3, 32768, %s62_s28, [#allocation5], %s15050_s4, %s15050_s4, %s14356_s2  }
  0xac   :  { %s83_s23 = sshll.u32 %s14365_s1, 4  ;;  %s14366_s25 = smov [#allocation12]   ;;  %s84_s23 = int_to_ptr.vmem [resolvable:$true] %s83_s23 }
  0xad   :  { %s108_s26 = sshll.u32 %s14366_s25, 4  ;;  %s14200_s30 = scalar_lea.hbm %s15026_s5, 8192  ;;  %s109_s26 = int_to_ptr.vmem [resolvable:$true] %s108_s26 }
  0xae   :  { %p14201_p2 = scmp.ne.s32.totalorder %s15026_s5, %s14200_s30  ;;  %p14204_p3 = scmp.lt.u32.totalorder %s14200_s30, %s15026_s5 }
  0xb0   :  { %p14206_p4 = pnand %p14204_p3, %p14201_p2 }
  0xb2   :  { %14209 = shalt.err (!%p14206_p4)
}
  0xb3   :  { %s14210_s3 = scalar_lea.vmem %s84_s23, 8192  ;;  %p14215_p6 = scmp.lt.s32.totalorder %s84_s23, %s84_s23 }
  0xb4   :  { %p14211_p5 = scmp.ne.s32.totalorder %s84_s23, %s14210_s3  ;;  %p14216_p7 = scmp.lt.s32.totalorder %s14210_s3, %s14210_s3 }
  0xb6   :  { %p14217_p8 = por %p14216_p7, %p14215_p6 }
  0xb8   :  { %p14218_p9 = pnand %p14217_p8, %p14211_p5 }
  0xba   :  { %14221 = shalt.err (!%p14218_p9)
}
  0xbb   :  { %s15051_s2 = smov 8   ;;  %s15052_s28 = smov 128  }
  0xbc   :  { %89 = dma.hbm_to_vmem [thread:$0]  %s15026_s5, 8192, %s84_s23, [#allocation8], %s15052_s28, %s15052_s28, %s15051_s2  }
  0xbd   :  { %s14222_s22 = scalar_lea.hbm %s15029_s8, 16 }
  0xbe   :  { %p14223_p10 = scmp.ne.s32.totalorder %s15029_s8, %s14222_s22  ;;  %p14226_p11 = scmp.lt.u32.totalorder %s14222_s22, %s15029_s8 }
  0xc0   :  { %p14228_p12 = pnand %p14226_p11, %p14223_p10 }
  0xc2   :  { %14231 = shalt.err (!%p14228_p12)
}
  0xc3   :  { %s14232_s25 = scalar_lea.vmem %s109_s26, 16  ;;  %s14236_s27 = scalar_lea.vmem %s109_s26, 32 }
  0xc4   :  { %p14233_p13 = scmp.ne.s32.totalorder %s109_s26, %s14232_s25  ;;  %p14237_p0 = scmp.lt.s32.totalorder %s109_s26, %s109_s26 }
  0xc5   :  { %p14238_p1 = scmp.lt.s32.totalorder %s14236_s27, %s14232_s25 }
  0xc7   :  { %p14239_p2 = por %p14238_p1, %p14237_p0 }
  0xc9   :  { %p14240_p3 = pnand %p14239_p2, %p14233_p13 }
  0xcb   :  { %14243 = shalt.err (!%p14240_p3)
}
  0xcc   :  { %111 = dma.hbm_to_vmem [thread:$0]  %s15029_s8, 16, %s109_s26, [#allocation11]  }
  0xcd   :  { %s14367_s15 = smov [#allocation15]   ;;  %s14368_s13 = smov [#allocation18]  }
  0xce   :  { %s130_s30 = sshll.u32 %s14367_s15, 4  ;;  %s152_s6 = sshll.u32 %s14368_s13, 4  ;;  %s131_s30 = int_to_ptr.vmem [resolvable:$true] %s130_s30  ;;  %s153_s6 = int_to_ptr.vmem [resolvable:$true] %s152_s6 }
  0xcf   :  { %s14244_s3 = scalar_lea.hbm %s15031_s10, 32 }
  0xd0   :  { %p14245_p4 = scmp.ne.s32.totalorder %s15031_s10, %s14244_s3  ;;  %p14248_p5 = scmp.lt.u32.totalorder %s14244_s3, %s15031_s10 }
  0xd2   :  { %p14250_p6 = pnand %p14248_p5, %p14245_p4 }
  0xd4   :  { %14253 = shalt.err (!%p14250_p6)
}
  0xd5   :  { %s14254_s8 = scalar_lea.vmem %s131_s30, 32  ;;  %p14259_p8 = scmp.lt.s32.totalorder %s131_s30, %s131_s30 }
  0xd6   :  { %p14255_p7 = scmp.ne.s32.totalorder %s131_s30, %s14254_s8  ;;  %p14260_p9 = scmp.lt.s32.totalorder %s14254_s8, %s14254_s8 }
  0xd8   :  { %p14261_p10 = por %p14260_p9, %p14259_p8 }
  0xda   :  { %p14262_p11 = pnand %p14261_p10, %p14255_p7 }
  0xdc   :  { %14265 = shalt.err (!%p14262_p11)
}
  0xdd   :  { %133 = dma.hbm_to_vmem [thread:$0]  %s15031_s10, 32, %s131_s30, [#allocation14]  }
  0xde   :  { %s14266_s4 = scalar_lea.hbm %s15033_s12, 64 }
  0xdf   :  { %p14267_p12 = scmp.ne.s32.totalorder %s15033_s12, %s14266_s4  ;;  %p14270_p13 = scmp.lt.u32.totalorder %s14266_s4, %s15033_s12 }
  0xe1   :  { %p14272_p0 = pnand %p14270_p13, %p14267_p12 }
  0xe3   :  { %14275 = shalt.err (!%p14272_p0)
}
  0xe4   :  { %s14276_s27 = scalar_lea.vmem %s153_s6, 64  ;;  %p14281_p2 = scmp.lt.s32.totalorder %s153_s6, %s153_s6 }
  0xe5   :  { %p14277_p1 = scmp.ne.s32.totalorder %s153_s6, %s14276_s27  ;;  %p14282_p3 = scmp.lt.s32.totalorder %s14276_s27, %s14276_s27 }
  0xe7   :  { %p14283_p4 = por %p14282_p3, %p14281_p2 }
  0xe9   :  { %p14284_p5 = pnand %p14283_p4, %p14277_p1 }
  0xeb   :  { %14287 = shalt.err (!%p14284_p5)
}
  0xec   :  { %155 = dma.hbm_to_vmem [thread:$0]  %s15033_s12, 64, %s153_s6, [#allocation17]  }
  0xed   :  { %s14369_s23 = smov [#allocation21]   ;;  %s14370_s30 = smov [#allocation24]  }
  0xee   :  { %s174_s15 = sshll.u32 %s14369_s23, 4  ;;  %s196_s13 = sshll.u32 %s14370_s30, 4  ;;  %s175_s15 = int_to_ptr.vmem [resolvable:$true] %s174_s15  ;;  %s197_s13 = int_to_ptr.vmem [resolvable:$true] %s196_s13 }
  0xef   :  { %s14288_s3 = scalar_lea.hbm %s15035_s14, 128 }
  0xf0   :  { %p14289_p6 = scmp.ne.s32.totalorder %s15035_s14, %s14288_s3  ;;  %p14292_p7 = scmp.lt.u32.totalorder %s14288_s3, %s15035_s14 }
  0xf2   :  { %p14294_p8 = pnand %p14292_p7, %p14289_p6 }
  0xf4   :  { %14297 = shalt.err (!%p14294_p8)
}
  0xf5   :  { %s14298_s12 = scalar_lea.vmem %s175_s15, 128  ;;  %p14303_p10 = scmp.lt.s32.totalorder %s175_s15, %s175_s15 }
  0xf6   :  { %p14299_p9 = scmp.ne.s32.totalorder %s175_s15, %s14298_s12  ;;  %p14304_p11 = scmp.lt.s32.totalorder %s14298_s12, %s14298_s12 }
  0xf8   :  { %p14305_p12 = por %p14304_p11, %p14303_p10 }
  0xfa   :  { %p14306_p13 = pnand %p14305_p12, %p14299_p9 }
  0xfc   :  { %14309 = shalt.err (!%p14306_p13)
}
  0xfd   :  { %177 = dma.hbm_to_vmem [thread:$0]  %s15035_s14, 128, %s175_s15, [#allocation20]  }
  0xfe   :  { %s14310_s19 = scalar_lea.hbm %s15037_s16, 96 }
  0xff   :  { %p14311_p0 = scmp.ne.s32.totalorder %s15037_s16, %s14310_s19  ;;  %p14314_p1 = scmp.lt.u32.totalorder %s14310_s19, %s15037_s16 }
 0x101   :  { %p14316_p2 = pnand %p14314_p1, %p14311_p0 }
 0x103   :  { %14319 = shalt.err (!%p14316_p2)
}
 0x104   :  { %s14320_s1 = scalar_lea.vmem %s197_s13, 96  ;;  %p14325_p4 = scmp.lt.s32.totalorder %s197_s13, %s197_s13 }
 0x105   :  { %p14321_p3 = scmp.ne.s32.totalorder %s197_s13, %s14320_s1  ;;  %p14326_p5 = scmp.lt.s32.totalorder %s14320_s1, %s14320_s1 }
 0x107   :  { %p14327_p6 = por %p14326_p5, %p14325_p4 }
 0x109   :  { %p14328_p7 = pnand %p14327_p6, %p14321_p3 }
 0x10b   :  { %14331 = shalt.err (!%p14328_p7)
}
 0x10c   :  { %199 = dma.hbm_to_vmem [thread:$0]  %s15037_s16, 96, %s197_s13, [#allocation23]  }
 0x10d   :  { %14332 = dma.done.wait [#allocation3], 49152  }
 0x10e   :  { %14333 = vsyncadd [#allocation3], 4294918144 }
 0x10f   :  { %14334 = dma.done.wait [#allocation5], 32896  }
 0x110   :  { %14335 = vsyncadd [#allocation5], 4294934400 }
 0x111   :  { %14336 = dma.done.wait [#allocation8], 8256  }
 0x112   :  { %14337 = vsyncadd [#allocation8], 4294959040 }
 0x113   :  { %14338 = dma.done.wait [#allocation11], 48  }
 0x114   :  { %14339 = vsyncadd [#allocation11], 4294967248 }
 0x115   :  { %14340 = dma.done.wait [#allocation14], 544  }
 0x116   :  { %14341 = vsyncadd [#allocation14], 4294966752 }
 0x117   :  { %14342 = dma.done.wait [#allocation17], 8256  }
 0x118   :  { %14343 = vsyncadd [#allocation17], 4294959040 }
 0x119   :  { %14344 = dma.done.wait [#allocation20], 32896  }
 0x11a   :  { %14345 = vsyncadd [#allocation20], 4294934400 }
 0x11b   :  { %14346 = dma.done.wait [#allocation23], 49248  }
 0x11c   :  { %14347 = vsyncadd [#allocation23], 4294918048  ;;  %v247_v0 = vld [vmem:[#allocation2] sm:$0xff]  ;;  %v633_v13 = vlaneseq  ;;  %v14371_v14 = vmov 1966171168   ;;  %s15053_s10 = sld [smem:[#allocation33_spill]] }
 0x11d   :  { %v251_v1 = vld [vmem:[#allocation2 + $0x20] sm:$0xff]  ;;  %v676_v15 = vunpack.c.l.s4 %v14371_v14  ;;  %vm5734_vm14 = vcmask 517120   ;;  %vm5773_vm15 = vcmask 261120  }
 0x11e   :  { %v255_v2 = vld [vmem:[#allocation2 + $0x40] sm:$0xff]  ;;  %v11180_v3 = vcombine.high %v247_v0, %v251_v1  ;;  %v11179_v4 = vcombine.low %v247_v0, %v251_v1  ;;  %v14667_v28 = vshrl.u32 %v633_v13, 7 }
 0x11f   :  { %v259_v5 = vld [vmem:[#allocation2 + $0x60] sm:$0xff]  ;;  %v677_v29 = vunpack.c.0.s8 %v676_v15 }
 0x120   :  { %v11188_v6 = vcombine.high %v255_v2, %v259_v5  ;;  %v263_v7 = vld [vmem:[#allocation2 + $0x80] sm:$0xff]  ;;  %2647 = vmatprep.subr.bf16.mxu1 %v11180_v3  ;;  %v11187_v9 = vcombine.low %v255_v2, %v259_v5 }
 0x121   :  { %v267_v8 = vld [vmem:[#allocation2 + $0xa0] sm:$0xff]  ;;  %2648 = vmatpush1.bf16.msra.mxu1 %v11179_v4  ;;  %v14670_v38 = vsub.s32 %v677_v29, %v14667_v28 }
 0x122   :  { %2649 = vmatprep.subr.bf16.mxu1 %v11188_v6  ;;  %v11196_v10 = vcombine.high %v263_v7, %v267_v8  ;;  %v503_v11 = vld [vmem:[#allocation2 + $0x800] sm:$0xff]  ;;  %v11195_v22 = vcombine.low %v263_v7, %v267_v8 }
 0x123   :  { %v507_v12 = vld [vmem:[#allocation2 + $0x820] sm:$0xff] }
 0x124   :  { %v271_v16 = vld [vmem:[#allocation2 + $0xc0] sm:$0xff]  ;;  %v11436_v18 = vcombine.high %v503_v11, %v507_v12  ;;  %v11435_v19 = vcombine.low %v503_v11, %v507_v12 }
 0x125   :  { %v275_v17 = vld [vmem:[#allocation2 + $0xe0] sm:$0xff]  ;;  %2650 = vmatpush1.bf16.msra.mxu1 %v11187_v9 }
 0x126   :  { %v511_v20 = vld [vmem:[#allocation2 + $0x840] sm:$0xff]  ;;  %2729 = vmatprep.subr.bf16.mxu0 %v11436_v18  ;;  %2651 = vmatprep.subr.bf16.mxu1 %v11196_v10  ;;  %v11204_v26 = vcombine.high %v271_v16, %v275_v17  ;;  %v11203_v35 = vcombine.low %v271_v16, %v275_v17 }
 0x127   :  { %v515_v21 = vld [vmem:[#allocation2 + $0x860] sm:$0xff]  ;;  %2730 = vmatpush1.bf16.msra.mxu0 %v11435_v19 }
 0x128   :  { %v11444_v23 = vcombine.high %v511_v20, %v515_v21  ;;  %v519_v24 = vld [vmem:[#allocation2 + $0x880] sm:$0xff]  ;;  %v11443_v27 = vcombine.low %v511_v20, %v515_v21 }
 0x129   :  { %v523_v25 = vld [vmem:[#allocation2 + $0x8a0] sm:$0xff]  ;;  %2652 = vmatpush1.bf16.msra.mxu1 %v11195_v22 }
 0x12a   :  { %v279_v30 = vld [vmem:[#allocation2 + $0x100] sm:$0xff]  ;;  %2731 = vmatprep.subr.bf16.mxu0 %v11444_v23  ;;  %v11452_v32 = vcombine.high %v519_v24, %v523_v25  ;;  %2653 = vmatprep.subr.bf16.mxu1 %v11204_v26  ;;  %v11451_v37 = vcombine.low %v519_v24, %v523_v25 }
 0x12b   :  { %v283_v31 = vld [vmem:[#allocation2 + $0x120] sm:$0xff]  ;;  %2732 = vmatpush1.bf16.msra.mxu0 %v11443_v27 }
 0x12c   :  { %v527_v33 = vld [vmem:[#allocation2 + $0x8c0] sm:$0xff]  ;;  %v11212_v36 = vcombine.high %v279_v30, %v283_v31  ;;  %2733 = vmatprep.subr.bf16.mxu0 %v11452_v32  ;;  %v11211_v44 = vcombine.low %v279_v30, %v283_v31 }
 0x12d   :  { %v531_v34 = vld [vmem:[#allocation2 + $0x8e0] sm:$0xff]  ;;  %2654 = vmatpush1.bf16.msra.mxu1 %v11203_v35 }
 0x12e   :  { %v287_v39 = vld [vmem:[#allocation2 + $0x140] sm:$0xff]  ;;  %v11460_v41 = vcombine.high %v527_v33, %v531_v34  ;;  %2655 = vmatprep.subr.bf16.mxu1 %v11212_v36  ;;  %v11459_v47 = vcombine.low %v527_v33, %v531_v34 }
 0x12f   :  { %v291_v40 = vld [vmem:[#allocation2 + $0x160] sm:$0xff]  ;;  %2734 = vmatpush1.bf16.msra.mxu0 %v11451_v37 }
 0x130   :  { %v535_v42 = vld [vmem:[#allocation2 + $0x900] sm:$0xff]  ;;  %v11220_v46 = vcombine.high %v287_v39, %v291_v40  ;;  %2735 = vmatprep.subr.bf16.mxu0 %v11460_v41  ;;  %v11219_v55 = vcombine.low %v287_v39, %v291_v40 }
 0x131   :  { %v539_v43 = vld [vmem:[#allocation2 + $0x920] sm:$0xff]  ;;  %2656 = vmatpush1.bf16.msra.mxu1 %v11211_v44 }
 0x132   :  { %v246_v45 = vld [vmem:[%s15053_s10] sm:$0x3f]  ;;  %v11468_v51 = vcombine.high %v535_v42, %v539_v43  ;;  %2657 = vmatprep.subr.bf16.mxu1 %v11220_v46  ;;  %v11467_v58 = vcombine.low %v535_v42, %v539_v43 }
 0x133   :  { %v14676_v48 = vrot.slane %v246_v45, %v14670_v38  ;;  %v295_v49 = vld [vmem:[#allocation2 + $0x180] sm:$0xff]  ;;  %v674_v56 = vcombine.high %v246_v45, %v246_v45  ;;  %2736 = vmatpush1.bf16.msra.mxu0 %v11459_v47 }
 0x134   :  { %v299_v50 = vld [vmem:[#allocation2 + $0x1a0] sm:$0xff]  ;;  %2737 = vmatprep.subr.bf16.mxu0 %v11468_v51 }
 0x135   :  { %v543_v52 = vld [vmem:[#allocation2 + $0x940] sm:$0xff]  ;;  %v689_v54 = vcombine.high %v14676_v48, %v14676_v48  ;;  %v11228_v57 = vcombine.high %v295_v49, %v299_v50  ;;  %2658 = vmatpush1.bf16.msra.mxu1 %v11219_v55  ;;  %v11227_v1 = vcombine.low %v295_v49, %v299_v50  ;;  %v14685_v2 = vrot.slane %v674_v56, %v14670_v38 }
 0x136   :  { %v547_v53 = vld [vmem:[#allocation2 + $0x960] sm:$0xff] }
 0x137   :  { %v14681_v59 = vrot.slane %v689_v54, %v14670_v38  ;;  %v303_v60 = vld [vmem:[#allocation2 + $0x1c0] sm:$0xff]  ;;  %v11476_v62 = vcombine.high %v543_v52, %v547_v53  ;;  %2659 = vmatprep.subr.bf16.mxu1 %v11228_v57  ;;  %2738 = vmatpush1.bf16.msra.mxu0 %v11467_v58  ;;  %v11475_v4 = vcombine.low %v543_v52, %v547_v53 }
 0x138   :  { %v307_v61 = vld [vmem:[#allocation2 + $0x1e0] sm:$0xff]  ;;  %v690_v8 = vcombine.high %v14685_v2, %v14685_v2 }
 0x139   :  { %v551_v63 = vld [vmem:[#allocation2 + $0x980] sm:$0xff]  ;;  %2679 = vmatprep.mubr.bf16.mxu1 %v14681_v59  ;;  %v11236_v3 = vcombine.high %v303_v60, %v307_v61  ;;  %2739 = vmatprep.subr.bf16.mxu0 %v11476_v62  ;;  %v11235_v11 = vcombine.low %v303_v60, %v307_v61 }
 0x13a   :  { %v555_v0 = vld [vmem:[#allocation2 + $0x9a0] sm:$0xff]  ;;  %2660 = vmatpush1.bf16.msra.mxu1 %v11227_v1  ;;  %v14690_v12 = vrot.slane %v690_v8, %v14670_v38 }
 0x13b   :  { %v311_v5 = vld [vmem:[#allocation2 + $0x200] sm:$0xff]  ;;  %v11484_v7 = vcombine.high %v551_v63, %v555_v0  ;;  %2661 = vmatprep.subr.bf16.mxu1 %v11236_v3  ;;  %2740 = vmatpush1.bf16.msra.mxu0 %v11475_v4  ;;  %v11483_v14 = vcombine.low %v551_v63, %v555_v0 }
 0x13c   :  { %v315_v6 = vld [vmem:[#allocation2 + $0x220] sm:$0xff]  ;;  %2761 = vmatprep.mubr.bf16.mxu0 %v14690_v12 }
 0x13d   :  { %v559_v9 = vld [vmem:[#allocation2 + $0x9c0] sm:$0xff]  ;;  %v11244_v13 = vcombine.high %v311_v5, %v315_v6  ;;  %2741 = vmatprep.subr.bf16.mxu0 %v11484_v7  ;;  %v11243_v20 = vcombine.low %v311_v5, %v315_v6 }
 0x13e   :  { %v563_v10 = vld [vmem:[#allocation2 + $0x9e0] sm:$0xff]  ;;  %2662 = vmatpush1.bf16.msra.mxu1 %v11235_v11 }
 0x13f   :  { %v319_v15 = vld [vmem:[#allocation2 + $0x240] sm:$0xff]  ;;  %v11492_v17 = vcombine.high %v559_v9, %v563_v10  ;;  %2663 = vmatprep.subr.bf16.mxu1 %v11244_v13  ;;  %2742 = vmatpush1.bf16.msra.mxu0 %v11483_v14  ;;  %v11491_v22 = vcombine.low %v559_v9, %v563_v10 }
 0x140   :  { %v323_v16 = vld [vmem:[#allocation2 + $0x260] sm:$0xff] }
 0x141   :  { %v567_v18 = vld [vmem:[#allocation2 + $0xa00] sm:$0xff]  ;;  %v11252_v21 = vcombine.high %v319_v15, %v323_v16  ;;  %2743 = vmatprep.subr.bf16.mxu0 %v11492_v17  ;;  %v11251_v29 = vcombine.low %v319_v15, %v323_v16 }
 0x142   :  { %v571_v19 = vld [vmem:[#allocation2 + $0xa20] sm:$0xff]  ;;  %2664 = vmatpush1.bf16.msra.mxu1 %v11243_v20 }
 0x143   :  { %v327_v23 = vld [vmem:[#allocation2 + $0x280] sm:$0xff]  ;;  %v11500_v25 = vcombine.high %v567_v18, %v571_v19  ;;  %2665 = vmatprep.subr.bf16.mxu1 %v11252_v21  ;;  %2744 = vmatpush1.bf16.msra.mxu0 %v11491_v22  ;;  %v11499_v31 = vcombine.low %v567_v18, %v571_v19 }
 0x144   :  { %v331_v24 = vld [vmem:[#allocation2 + $0x2a0] sm:$0xff] }
 0x145   :  { %v575_v26 = vld [vmem:[#allocation2 + $0xa40] sm:$0xff]  ;;  %v11260_v30 = vcombine.high %v327_v23, %v331_v24  ;;  %2745 = vmatprep.subr.bf16.mxu0 %v11500_v25  ;;  %v11259_v37 = vcombine.low %v327_v23, %v331_v24  ;;  %v14695_v24 = vrot.slane %v14676_v48, %v14670_v38  ;;  %v249_v25 = vld [vmem:[#allocation2 + $0x10] sm:$0xff] }
 0x146   :  { %v579_v27 = vld [vmem:[#allocation2 + $0xa60] sm:$0xff]  ;;  %2666 = vmatpush1.bf16.msra.mxu1 %v11251_v29  ;;  %v257_v48 = vld [vmem:[#allocation2 + $0x50] sm:$0xff] }
 0x147   :  { %v335_v32 = vld [vmem:[#allocation2 + $0x2c0] sm:$0xff]  ;;  %v11508_v34 = vcombine.high %v575_v26, %v579_v27  ;;  %2667 = vmatprep.subr.bf16.mxu1 %v11260_v30  ;;  %2746 = vmatpush1.bf16.msra.mxu0 %v11499_v31  ;;  %v11507_v40 = vcombine.low %v575_v26, %v579_v27  ;;  %v253_v26 = vld [vmem:[#allocation2 + $0x30] sm:$0xff]  ;;  %v14699_v31 = vcombine.high %v14681_v59, %v14681_v59 }
 0x148   :  { %v339_v33 = vld [vmem:[#allocation2 + $0x2e0] sm:$0xff] }
 0x149   :  { %v583_v35 = vld [vmem:[#allocation2 + $0xa80] sm:$0xff]  ;;  %v11268_v39 = vcombine.high %v335_v32, %v339_v33  ;;  %2747 = vmatprep.subr.bf16.mxu0 %v11508_v34  ;;  %v11267_v46 = vcombine.low %v335_v32, %v339_v33  ;;  %v11184_v34 = vcombine.high %v249_v25, %v253_v26 }
 0x14a   :  { %v587_v36 = vld [vmem:[#allocation2 + $0xaa0] sm:$0xff]  ;;  %2668 = vmatpush1.bf16.msra.mxu1 %v11259_v37 }
 0x14b   :  { %v343_v41 = vld [vmem:[#allocation2 + $0x300] sm:$0xff]  ;;  %v11516_v43 = vcombine.high %v583_v35, %v587_v36  ;;  %2669 = vmatprep.subr.bf16.mxu1 %v11268_v39  ;;  %2748 = vmatpush1.bf16.msra.mxu0 %v11507_v40  ;;  %v11515_v49 = vcombine.low %v583_v35, %v587_v36  ;;  %v261_v35 = vld [vmem:[#allocation2 + $0x70] sm:$0xff]  ;;  %v14704_v40 = vrot.slane %v14685_v2, %v14670_v38 }
 0x14c   :  { %v347_v42 = vld [vmem:[#allocation2 + $0x320] sm:$0xff]  ;;  %v11191_v38 = vcombine.low %v257_v48, %v261_v35 }
 0x14d   :  { %v591_v44 = vld [vmem:[#allocation2 + $0xac0] sm:$0xff]  ;;  %v11276_v47 = vcombine.high %v343_v41, %v347_v42  ;;  %2749 = vmatprep.subr.bf16.mxu0 %v11516_v43  ;;  %v11275_v55 = vcombine.low %v343_v41, %v347_v42  ;;  %v11183_v42 = vcombine.low %v249_v25, %v253_v26  ;;  %v11192_v43 = vcombine.high %v257_v48, %v261_v35 }
 0x14e   :  { %v595_v45 = vld [vmem:[#allocation2 + $0xae0] sm:$0xff]  ;;  %2670 = vmatpush1.bf16.msra.mxu1 %v11267_v46 }
 0x14f   :  { %v351_v50 = vld [vmem:[#allocation2 + $0x340] sm:$0xff]  ;;  %v11524_v52 = vcombine.high %v591_v44, %v595_v45  ;;  %2671 = vmatprep.subr.bf16.mxu1 %v11276_v47  ;;  %2750 = vmatpush1.bf16.msra.mxu0 %v11515_v49  ;;  %v11523_v57 = vcombine.low %v591_v44, %v595_v45  ;;  %v265_v44 = vld [vmem:[#allocation2 + $0x90] sm:$0xff] }
 0x150   :  { %v355_v51 = vld [vmem:[#allocation2 + $0x360] sm:$0xff]  ;;  %v269_v45 = vld [vmem:[#allocation2 + $0xb0] sm:$0xff] }
 0x151   :  { %v599_v53 = vld [vmem:[#allocation2 + $0xb00] sm:$0xff]  ;;  %v11284_v56 = vcombine.high %v351_v50, %v355_v51  ;;  %2751 = vmatprep.subr.bf16.mxu0 %v11524_v52  ;;  %v11283_v0 = vcombine.low %v351_v50, %v355_v51  ;;  %v11200_v2 = vcombine.high %v265_v44, %v269_v45  ;;  %v273_v51 = vld [vmem:[#allocation2 + $0xd0] sm:$0xff] }
 0x152   :  { %v603_v54 = vld [vmem:[#allocation2 + $0xb20] sm:$0xff]  ;;  %2672 = vmatpush1.bf16.msra.mxu1 %v11275_v55  ;;  %v277_v52 = vld [vmem:[#allocation2 + $0xf0] sm:$0xff] }
 0x153   :  { %v359_v58 = vld [vmem:[#allocation2 + $0x380] sm:$0xff]  ;;  %v11532_v61 = vcombine.high %v599_v53, %v603_v54  ;;  %2673 = vmatprep.subr.bf16.mxu1 %v11284_v56  ;;  %2752 = vmatpush1.bf16.msra.mxu0 %v11523_v57  ;;  %v11531_v3 = vcombine.low %v599_v53, %v603_v54  ;;  %v11199_v57 = vcombine.low %v265_v44, %v269_v45 }
 0x154   :  { %v363_v60 = vld [vmem:[#allocation2 + $0x3a0] sm:$0xff] }
 0x155   :  { %v607_v62 = vld [vmem:[#allocation2 + $0xb40] sm:$0xff]  ;;  %v11292_v1 = vcombine.high %v359_v58, %v363_v60  ;;  %2753 = vmatprep.subr.bf16.mxu0 %v11532_v61  ;;  %v11291_v9 = vcombine.low %v359_v58, %v363_v60  ;;  %v11208_v58 = vcombine.high %v273_v51, %v277_v52  ;;  %v281_v60 = vld [vmem:[#allocation2 + $0x110] sm:$0xff] }
 0x156   :  { %v611_v63 = vld [vmem:[#allocation2 + $0xb60] sm:$0xff]  ;;  %2674 = vmatpush1.bf16.msra.mxu1 %v11283_v0  ;;  %v285_v61 = vld [vmem:[#allocation2 + $0x130] sm:$0xff] }
 0x157   :  { %v367_v4 = vld [vmem:[#allocation2 + $0x3c0] sm:$0xff]  ;;  %v11540_v6 = vcombine.high %v607_v62, %v611_v63  ;;  %2675 = vmatprep.subr.bf16.mxu1 %v11292_v1  ;;  %2754 = vmatpush1.bf16.msra.mxu0 %v11531_v3  ;;  %v11539_v14 = vcombine.low %v607_v62, %v611_v63  ;;  %v11207_v3 = vcombine.low %v273_v51, %v277_v52 }
 0x158   :  { %v371_v5 = vld [vmem:[#allocation2 + $0x3e0] sm:$0xff] }
 0x159   :  { %v615_v7 = vld [vmem:[#allocation2 + $0xb80] sm:$0xff]  ;;  %v11300_v10 = vcombine.high %v367_v4, %v371_v5  ;;  %2755 = vmatprep.subr.bf16.mxu0 %v11540_v6  ;;  %v11299_v18 = vcombine.low %v367_v4, %v371_v5  ;;  %v11216_v4 = vcombine.high %v281_v60, %v285_v61  ;;  %v289_v5 = vld [vmem:[#allocation2 + $0x150] sm:$0xff] }
 0x15a   :  { %v619_v8 = vld [vmem:[#allocation2 + $0xba0] sm:$0xff]  ;;  %2676 = vmatpush1.bf16.msra.mxu1 %v11291_v9  ;;  %v293_v6 = vld [vmem:[#allocation2 + $0x170] sm:$0xff] }
 0x15b   :  { %v375_v11 = vld [vmem:[#allocation2 + $0x400] sm:$0xff]  ;;  %v11548_v15 = vcombine.high %v615_v7, %v619_v8  ;;  %2677 = vmatprep.subr.bf16.mxu1 %v11300_v10  ;;  %2756 = vmatpush1.bf16.msra.mxu0 %v11539_v14  ;;  %v11547_v22 = vcombine.low %v615_v7, %v619_v8  ;;  %v297_v14 = vld [vmem:[#allocation2 + $0x190] sm:$0xff] }
 0x15c   :  { %v379_v13 = vld [vmem:[#allocation2 + $0x420] sm:$0xff] }
 0x15d   :  { %v623_v16 = vld [vmem:[#allocation2 + $0xbc0] sm:$0xff]  ;;  %v11308_v21 = vcombine.high %v375_v11, %v379_v13  ;;  %2757 = vmatprep.subr.bf16.mxu0 %v11548_v15  ;;  %v11307_v27 = vcombine.low %v375_v11, %v379_v13  ;;  %v11215_v11 = vcombine.low %v281_v60, %v285_v61  ;;  %v11224_v13 = vcombine.high %v289_v5, %v293_v6  ;;  %v301_v15 = vld [vmem:[#allocation2 + $0x1b0] sm:$0xff] }
 0x15e   :  { %v627_v17 = vld [vmem:[#allocation2 + $0xbe0] sm:$0xff]  ;;  %2678 = vmatpush1.bf16.msra.mxu1 %v11299_v18 }
 0x15f   :  { %v383_v19 = vld [vmem:[#allocation2 + $0x440] sm:$0xff]  ;;  %v11556_v23 = vcombine.high %v623_v16, %v627_v17  ;;  %2688 = vmatprep.subr.bf16.mxu1 %v11308_v21  ;;  %2758 = vmatpush1.bf16.msra.mxu0 %v11547_v22  ;;  %v11555_v33 = vcombine.low %v623_v16, %v627_v17  ;;  %v11232_v21 = vcombine.high %v297_v14, %v301_v15  ;;  %v305_v22 = vld [vmem:[#allocation2 + $0x1d0] sm:$0xff] }
 0x160   :  { %v387_v20 = vld [vmem:[#allocation2 + $0x460] sm:$0xff] }
 0x161   :  { %v391_v29 = vld [vmem:[#allocation2 + $0x480] sm:$0xff]  ;;  %v11316_v32 = vcombine.high %v383_v19, %v387_v20  ;;  %2759 = vmatprep.subr.bf16.mxu0 %v11556_v23  ;;  %2680 = vmatmul.mubr.bf16.vlgmr.msra.gmra.mrb[0].mxu1 %v14695_v24  ;;  %v11315_v36 = vcombine.low %v383_v19, %v387_v20  ;;  %v11223_v20 = vcombine.low %v289_v5, %v293_v6  ;;  %v309_v23 = vld [vmem:[#allocation2 + $0x1f0] sm:$0xff] }
 0x162   :  { %v395_v30 = vld [vmem:[#allocation2 + $0x4a0] sm:$0xff]  ;;  %2689 = vmatpush1.bf16.msra.mxu1 %v11307_v27  ;;  %2720 = vmatprep.mubr.bf16.mxu1 %v14699_v31 }
 0x163   :  { %v399_v37 = vld [vmem:[#allocation2 + $0x4c0] sm:$0xff]  ;;  %2690 = vmatprep.subr.bf16.mxu1 %v11316_v32  ;;  %v11324_v41 = vcombine.high %v391_v29, %v395_v30  ;;  %2760 = vmatpush1.bf16.msra.mxu0 %v11555_v33  ;;  %v11323_v46 = vcombine.low %v391_v29, %v395_v30  ;;  %v11231_v30 = vcombine.low %v297_v14, %v301_v15  ;;  %v313_v33 = vld [vmem:[#allocation2 + $0x210] sm:$0xff] }
 0x164   :  { %v403_v39 = vld [vmem:[#allocation2 + $0x4e0] sm:$0xff]  ;;  %2893 = vmatprep.subr.bf16.mxu0 %v11184_v34  ;;  %v11240_v32 = vcombine.high %v305_v22, %v309_v23  ;;  %v317_v34 = vld [vmem:[#allocation2 + $0x230] sm:$0xff] }
 0x165   :  { %v407_v47 = vld [vmem:[#allocation2 + $0x500] sm:$0xff]  ;;  %v11332_v50 = vcombine.high %v399_v37, %v403_v39  ;;  %v11331_v53 = vcombine.low %v399_v37, %v403_v39  ;;  %v11239_v39 = vcombine.low %v305_v22, %v309_v23  ;;  %v248_v23 = vld [vmem:[#allocation2 + $0x8] sm:$0xff] }
 0x166   :  { %2691 = vmatpush1.bf16.msra.mxu1 %v11315_v36  ;;  %v411_v49 = vld [vmem:[#allocation2 + $0x520] sm:$0xff]  ;;  %2762 = vmatmul.mubr.bf16.vlgmr.msra.gmra.mrb[0].mxu0 %v14704_v40 }
 0x167   :  { %2692 = vmatprep.subr.bf16.mxu1 %v11324_v41  ;;  %2894 = vmatpush1.bf16.msra.mxu0 %v11183_v42  ;;  %v415_v54 = vld [vmem:[#allocation2 + $0x540] sm:$0xff]  ;;  %v11340_v56 = vcombine.high %v407_v47, %v411_v49  ;;  %v11339_v62 = vcombine.low %v407_v47, %v411_v49  ;;  %v11248_v41 = vcombine.high %v313_v33, %v317_v34  ;;  %v321_v42 = vld [vmem:[#allocation2 + $0x250] sm:$0xff] }
 0x168   :  { %2895 = vmatprep.subr.bf16.mxu0 %v11192_v43  ;;  %2925 = vmatprep.mubr.bf16.mxu0 %v14681_v59  ;;  %v419_v55 = vld [vmem:[#allocation2 + $0x560] sm:$0xff]  ;;  %v325_v43 = vld [vmem:[#allocation2 + $0x270] sm:$0xff]  ;;  %v11247_v49 = vcombine.low %v313_v33, %v317_v34  ;;  %v256_v34 = vld [vmem:[#allocation2 + $0x48] sm:$0xff] }
 0x169   :  { %v423_v63 = vld [vmem:[#allocation2 + $0x580] sm:$0xff]  ;;  %v11348_v1 = vcombine.high %v415_v54, %v419_v55  ;;  %v11347_v7 = vcombine.low %v415_v54, %v419_v55  ;;  %v11255_v55 = vcombine.low %v321_v42, %v325_v43 }
 0x16a   :  { %2693 = vmatpush1.bf16.msra.mxu1 %v11323_v46  ;;  %v427_v0 = vld [vmem:[#allocation2 + $0x5a0] sm:$0xff] }
 0x16b   :  { %2694 = vmatprep.subr.bf16.mxu1 %v11332_v50  ;;  %2896 = vmatpush1.bf16.msra.mxu0 %v11191_v38  ;;  %v431_v8 = vld [vmem:[#allocation2 + $0x5c0] sm:$0xff]  ;;  %v11356_v10 = vcombine.high %v423_v63, %v427_v0  ;;  %v11355_v16 = vcombine.low %v423_v63, %v427_v0  ;;  %v11256_v50 = vcombine.high %v321_v42, %v325_v43  ;;  %v329_v38 = vld [vmem:[#allocation2 + $0x290] sm:$0xff] }
 0x16c   :  { %2897 = vmatprep.subr.bf16.mxu0 %v11200_v2  ;;  %v435_v9 = vld [vmem:[#allocation2 + $0x5e0] sm:$0xff]  ;;  %v333_v2 = vld [vmem:[#allocation2 + $0x2b0] sm:$0xff] }
 0x16d   :  { %v439_v17 = vld [vmem:[#allocation2 + $0x600] sm:$0xff]  ;;  %v11364_v19 = vcombine.high %v431_v8, %v435_v9  ;;  %v11363_v25 = vcombine.low %v431_v8, %v435_v9  ;;  %v11263_v0 = vcombine.low %v329_v38, %v333_v2  ;;  %v381_v42 = vld [vmem:[#allocation2 + $0x430] sm:$0xff] }
 0x16e   :  { %2695 = vmatpush1.bf16.msra.mxu1 %v11331_v53  ;;  %v443_v18 = vld [vmem:[#allocation2 + $0x620] sm:$0xff] }
 0x16f   :  { %2696 = vmatprep.subr.bf16.mxu1 %v11340_v56  ;;  %2898 = vmatpush1.bf16.msra.mxu0 %v11199_v57  ;;  %v447_v26 = vld [vmem:[#allocation2 + $0x640] sm:$0xff]  ;;  %v11372_v29 = vcombine.high %v439_v17, %v443_v18  ;;  %v11371_v48 = vcombine.low %v439_v17, %v443_v18  ;;  %v11264_v56 = vcombine.high %v329_v38, %v333_v2  ;;  %v337_v57 = vld [vmem:[#allocation2 + $0x2d0] sm:$0xff] }
 0x170   :  { %2899 = vmatprep.subr.bf16.mxu0 %v11208_v58  ;;  %v451_v27 = vld [vmem:[#allocation2 + $0x660] sm:$0xff]  ;;  %v341_v58 = vld [vmem:[#allocation2 + $0x2f0] sm:$0xff] }
 0x171   :  { %v455_v35 = vld [vmem:[#allocation2 + $0x680] sm:$0xff]  ;;  %v11380_v37 = vcombine.high %v447_v26, %v451_v27  ;;  %v11379_v44 = vcombine.low %v447_v26, %v451_v27  ;;  %v11271_v9 = vcombine.low %v337_v57, %v341_v58  ;;  %v389_v38 = vld [vmem:[#allocation2 + $0x470] sm:$0xff] }
 0x172   :  { %2697 = vmatpush1.bf16.msra.mxu1 %v11339_v62  ;;  %v459_v36 = vld [vmem:[#allocation2 + $0x6a0] sm:$0xff] }
 0x173   :  { %2698 = vmatprep.subr.bf16.mxu1 %v11348_v1  ;;  %2900 = vmatpush1.bf16.msra.mxu0 %v11207_v3  ;;  %v463_v45 = vld [vmem:[#allocation2 + $0x6c0] sm:$0xff]  ;;  %v11388_v47 = vcombine.high %v455_v35, %v459_v36  ;;  %v11387_v51 = vcombine.low %v455_v35, %v459_v36  ;;  %v11272_v1 = vcombine.high %v337_v57, %v341_v58  ;;  %v345_v3 = vld [vmem:[#allocation2 + $0x310] sm:$0xff] }
 0x174   :  { %2901 = vmatprep.subr.bf16.mxu0 %v11216_v4  ;;  %v467_v46 = vld [vmem:[#allocation2 + $0x6e0] sm:$0xff]  ;;  %v349_v4 = vld [vmem:[#allocation2 + $0x330] sm:$0xff] }
 0x175   :  { %v471_v52 = vld [vmem:[#allocation2 + $0x700] sm:$0xff]  ;;  %v11396_v54 = vcombine.high %v463_v45, %v467_v46  ;;  %v11395_v60 = vcombine.low %v463_v45, %v467_v46  ;;  %v11279_v18 = vcombine.low %v345_v3, %v349_v4  ;;  %v268_v45 = vld [vmem:[#allocation2 + $0xa8] sm:$0xff]  ;;  %v397_v57 = vld [vmem:[#allocation2 + $0x4b0] sm:$0xff] }
 0x176   :  { %2699 = vmatpush1.bf16.msra.mxu1 %v11347_v7  ;;  %v475_v53 = vld [vmem:[#allocation2 + $0x720] sm:$0xff] }
 0x177   :  { %2700 = vmatprep.subr.bf16.mxu1 %v11356_v10  ;;  %2902 = vmatpush1.bf16.msra.mxu0 %v11215_v11  ;;  %v479_v61 = vld [vmem:[#allocation2 + $0x740] sm:$0xff]  ;;  %v11404_v63 = vcombine.high %v471_v52, %v475_v53  ;;  %v11403_v5 = vcombine.low %v471_v52, %v475_v53  ;;  %v11280_v10 = vcombine.high %v345_v3, %v349_v4  ;;  %v353_v11 = vld [vmem:[#allocation2 + $0x350] sm:$0xff]  ;;  %v276_v52 = vld [vmem:[#allocation2 + $0xe8] sm:$0xff] }
 0x178   :  { %2903 = vmatprep.subr.bf16.mxu0 %v11224_v13  ;;  %v483_v62 = vld [vmem:[#allocation2 + $0x760] sm:$0xff]  ;;  %v357_v13 = vld [vmem:[#allocation2 + $0x370] sm:$0xff] }
 0x179   :  { %v487_v6 = vld [vmem:[#allocation2 + $0x780] sm:$0xff]  ;;  %v11412_v8 = vcombine.high %v479_v61, %v483_v62  ;;  %v11411_v14 = vcombine.low %v479_v61, %v483_v62  ;;  %v11287_v27 = vcombine.low %v353_v11, %v357_v13  ;;  %v284_v61 = vld [vmem:[#allocation2 + $0x128] sm:$0xff]  ;;  %v405_v3 = vld [vmem:[#allocation2 + $0x4f0] sm:$0xff] }
 0x17a   :  { %2701 = vmatpush1.bf16.msra.mxu1 %v11355_v16  ;;  %v491_v7 = vld [vmem:[#allocation2 + $0x7a0] sm:$0xff] }
 0x17b   :  { %2702 = vmatprep.subr.bf16.mxu1 %v11364_v19  ;;  %2904 = vmatpush1.bf16.msra.mxu0 %v11223_v20  ;;  %v495_v15 = vld [vmem:[#allocation2 + $0x7c0] sm:$0xff]  ;;  %v11420_v17 = vcombine.high %v487_v6, %v491_v7  ;;  %v11288_v19 = vcombine.high %v353_v11, %v357_v13  ;;  %v361_v20 = vld [vmem:[#allocation2 + $0x390] sm:$0xff]  ;;  %v11419_v22 = vcombine.low %v487_v6, %v491_v7  ;;  %v292_v6 = vld [vmem:[#allocation2 + $0x168] sm:$0xff] }
 0x17c   :  { %2905 = vmatprep.subr.bf16.mxu0 %v11232_v21  ;;  %v499_v16 = vld [vmem:[#allocation2 + $0x7e0] sm:$0xff]  ;;  %v365_v21 = vld [vmem:[#allocation2 + $0x3b0] sm:$0xff] }
 0x17d   :  { %v11428_v26 = vcombine.high %v495_v15, %v499_v16  ;;  %v11427_v33 = vcombine.low %v495_v15, %v499_v16  ;;  %v11295_v36 = vcombine.low %v361_v20, %v365_v21  ;;  %v413_v11 = vld [vmem:[#allocation2 + $0x530] sm:$0xff]  ;;  %v300_v15 = vld [vmem:[#allocation2 + $0x1a8] sm:$0xff] }
 0x17e   :  { %2703 = vmatpush1.bf16.msra.mxu1 %v11363_v25  ;;  %v252_v25 = vld [vmem:[#allocation2 + $0x28] sm:$0xff] }
 0x17f   :  { %2704 = vmatprep.subr.bf16.mxu1 %v11372_v29  ;;  %2906 = vmatpush1.bf16.msra.mxu0 %v11231_v30  ;;  %v11296_v29 = vcombine.high %v361_v20, %v365_v21  ;;  %v369_v30 = vld [vmem:[#allocation2 + $0x3d0] sm:$0xff]  ;;  %v11182_v35 = vcombine.high %v248_v23, %v252_v25  ;;  %v11181_v43 = vcombine.low %v248_v23, %v252_v25  ;;  %v308_v23 = vld [vmem:[#allocation2 + $0x1e8] sm:$0xff] }
 0x180   :  { %2907 = vmatprep.subr.bf16.mxu0 %v11240_v32  ;;  %v373_v32 = vld [vmem:[#allocation2 + $0x3f0] sm:$0xff] }
 0x181   :  { %v421_v20 = vld [vmem:[#allocation2 + $0x570] sm:$0xff] }
 0x182   :  { %2705 = vmatpush1.bf16.msra.mxu1 %v11371_v48  ;;  %v260_v48 = vld [vmem:[#allocation2 + $0x68] sm:$0xff] }
 0x183   :  { %2706 = vmatprep.subr.bf16.mxu1 %v11380_v37  ;;  %2908 = vmatpush1.bf16.msra.mxu0 %v11239_v39  ;;  %v11304_v37 = vcombine.high %v369_v30, %v373_v32  ;;  %v14711_v39 = vcombine.high %v14695_v24, %v14695_v24  ;;  %v11190_v46 = vcombine.high %v256_v34, %v260_v48 }
 0x184   :  { %2909 = vmatprep.subr.bf16.mxu0 %v11248_v41  ;;  %v377_v41 = vld [vmem:[#allocation2 + $0x410] sm:$0xff]  ;;  %v11189_v2 = vcombine.low %v256_v34, %v260_v48  ;;  %v316_v34 = vld [vmem:[#allocation2 + $0x228] sm:$0xff] }
 0x186   :  { %2707 = vmatpush1.bf16.msra.mxu1 %v11379_v44  ;;  %v264_v44 = vld [vmem:[#allocation2 + $0x88] sm:$0xff] }
 0x187   :  { %2708 = vmatprep.subr.bf16.mxu1 %v11388_v47  ;;  %2910 = vmatpush1.bf16.msra.mxu0 %v11247_v49  ;;  %v11303_v47 = vcombine.low %v369_v30, %v373_v32  ;;  %v11312_v49 = vcombine.high %v377_v41, %v381_v42  ;;  %v11198_v53 = vcombine.high %v264_v44, %v268_v45  ;;  %v429_v30 = vld [vmem:[#allocation2 + $0x5b0] sm:$0xff] }
 0x188   :  { %2911 = vmatprep.subr.bf16.mxu0 %v11256_v50  ;;  %v385_v50 = vld [vmem:[#allocation2 + $0x450] sm:$0xff]  ;;  %v11197_v58 = vcombine.low %v264_v44, %v268_v45  ;;  %v324_v44 = vld [vmem:[#allocation2 + $0x268] sm:$0xff] }
 0x18a   :  { %2709 = vmatpush1.bf16.msra.mxu1 %v11387_v51  ;;  %v272_v51 = vld [vmem:[#allocation2 + $0xc8] sm:$0xff] }
 0x18b   :  { %2710 = vmatprep.subr.bf16.mxu1 %v11396_v54  ;;  %2912 = vmatpush1.bf16.msra.mxu0 %v11255_v55  ;;  %v11311_v54 = vcombine.low %v377_v41, %v381_v42  ;;  %v11320_v55 = vcombine.high %v385_v50, %v389_v38  ;;  %v11206_v62 = vcombine.high %v272_v51, %v276_v52  ;;  %v437_v41 = vld [vmem:[#allocation2 + $0x5f0] sm:$0xff] }
 0x18c   :  { %2913 = vmatprep.subr.bf16.mxu0 %v11264_v56  ;;  %v393_v56 = vld [vmem:[#allocation2 + $0x490] sm:$0xff]  ;;  %v11205_v4 = vcombine.low %v272_v51, %v276_v52  ;;  %v332_v51 = vld [vmem:[#allocation2 + $0x2a8] sm:$0xff] }
 0x18e   :  { %2711 = vmatpush1.bf16.msra.mxu1 %v11395_v60  ;;  %v280_v60 = vld [vmem:[#allocation2 + $0x108] sm:$0xff] }
 0x18f   :  { %2712 = vmatprep.subr.bf16.mxu1 %v11404_v63  ;;  %2914 = vmatpush1.bf16.msra.mxu0 %v11263_v0  ;;  %v11319_v63 = vcombine.low %v385_v50, %v389_v38  ;;  %v11328_v0 = vcombine.high %v393_v56, %v397_v57  ;;  %v11214_v7 = vcombine.high %v280_v60, %v284_v61 }
 0x190   :  { %2915 = vmatprep.subr.bf16.mxu0 %v11272_v1  ;;  %v401_v1 = vld [vmem:[#allocation2 + $0x4d0] sm:$0xff]  ;;  %v11213_v13 = vcombine.low %v280_v60, %v284_v61  ;;  %v340_v60 = vld [vmem:[#allocation2 + $0x2e8] sm:$0xff] }
 0x192   :  { %2713 = vmatpush1.bf16.msra.mxu1 %v11403_v5  ;;  %v288_v5 = vld [vmem:[#allocation2 + $0x148] sm:$0xff] }
 0x193   :  { %2714 = vmatprep.subr.bf16.mxu1 %v11412_v8  ;;  %2916 = vmatpush1.bf16.msra.mxu0 %v11271_v9  ;;  %v11327_v8 = vcombine.low %v393_v56, %v397_v57  ;;  %v11336_v9 = vcombine.high %v401_v1, %v405_v3  ;;  %v11222_v16 = vcombine.high %v288_v5, %v292_v6 }
 0x194   :  { %2917 = vmatprep.subr.bf16.mxu0 %v11280_v10  ;;  %v409_v10 = vld [vmem:[#allocation2 + $0x510] sm:$0xff]  ;;  %v11221_v21 = vcombine.low %v288_v5, %v292_v6  ;;  %v348_v5 = vld [vmem:[#allocation2 + $0x328] sm:$0xff] }
 0x196   :  { %2715 = vmatpush1.bf16.msra.mxu1 %v11411_v14  ;;  %v296_v14 = vld [vmem:[#allocation2 + $0x188] sm:$0xff] }
 0x197   :  { %2716 = vmatprep.subr.bf16.mxu1 %v11420_v17  ;;  %2918 = vmatpush1.bf16.msra.mxu0 %v11279_v18  ;;  %v11335_v17 = vcombine.low %v401_v1, %v405_v3  ;;  %v11344_v18 = vcombine.high %v409_v10, %v413_v11  ;;  %v11230_v25 = vcombine.high %v296_v14, %v300_v15 }
 0x198   :  { %2919 = vmatprep.subr.bf16.mxu0 %v11288_v19  ;;  %v417_v19 = vld [vmem:[#allocation2 + $0x550] sm:$0xff]  ;;  %v11229_v32 = vcombine.low %v296_v14, %v300_v15  ;;  %v356_v14 = vld [vmem:[#allocation2 + $0x368] sm:$0xff] }
 0x19a   :  { %2717 = vmatpush1.bf16.msra.mxu1 %v11419_v22  ;;  %v304_v22 = vld [vmem:[#allocation2 + $0x1c8] sm:$0xff] }
 0x19b   :  { %2718 = vmatprep.subr.bf16.mxu1 %v11428_v26  ;;  %2920 = vmatpush1.bf16.msra.mxu0 %v11287_v27  ;;  %v11343_v26 = vcombine.low %v409_v10, %v413_v11  ;;  %v11352_v27 = vcombine.high %v417_v19, %v421_v20  ;;  %v11238_v48 = vcombine.high %v304_v22, %v308_v23 }
 0x19c   :  { %2921 = vmatprep.subr.bf16.mxu0 %v11296_v29  ;;  %v425_v29 = vld [vmem:[#allocation2 + $0x590] sm:$0xff]  ;;  %v11237_v42 = vcombine.low %v304_v22, %v308_v23  ;;  %v364_v22 = vld [vmem:[#allocation2 + $0x3a8] sm:$0xff] }
 0x19e   :  { %2719 = vmatpush1.bf16.msra.mxu1 %v11427_v33  ;;  %v312_v33 = vld [vmem:[#allocation2 + $0x208] sm:$0xff] }
 0x19f   :  { %2770 = vmatprep.subr.bf16.mxu1 %v11182_v35  ;;  %2922 = vmatpush1.bf16.msra.mxu0 %v11295_v36  ;;  %v11351_v35 = vcombine.low %v417_v19, %v421_v20  ;;  %v11360_v36 = vcombine.high %v425_v29, %v429_v30  ;;  %v11246_v45 = vcombine.high %v312_v33, %v316_v34 }
 0x1a0   :  { %2923 = vmatprep.subr.bf16.mxu0 %v11304_v37  ;;  %v433_v37 = vld [vmem:[#allocation2 + $0x5d0] sm:$0xff]  ;;  %v11245_v38 = vcombine.low %v312_v33, %v316_v34  ;;  %v372_v33 = vld [vmem:[#allocation2 + $0x3e8] sm:$0xff] }
 0x1a1   :  { %2721 = vmatmul.mubr.bf16.vlgmr.msra.gmra.mrb[0].mxu1 %v14711_v39  ;;  %v11368_v50 = vcombine.high %v433_v37, %v437_v41 }
 0x1a2   :  { %2771 = vmatpush1.bf16.msra.mxu1 %v11181_v43  ;;  %2802 = vmatprep.mubr.bf16.mxu1 %v14681_v59  ;;  %v320_v43 = vld [vmem:[#allocation2 + $0x248] sm:$0xff] }
 0x1a3   :  { %2772 = vmatprep.subr.bf16.mxu1 %v11190_v46  ;;  %2924 = vmatpush1.bf16.msra.mxu0 %v11303_v47  ;;  %v11359_v46 = vcombine.low %v425_v29, %v429_v30  ;;  %v441_v47 = vld [vmem:[#allocation2 + $0x610] sm:$0xff]  ;;  %v11254_v52 = vcombine.high %v320_v43, %v324_v44  ;;  %v11253_v57 = vcombine.low %v320_v43, %v324_v44  ;;  %v380_v43 = vld [vmem:[#allocation2 + $0x428] sm:$0xff] }
 0x1a4   :  { %2934 = vmatprep.subr.bf16.mxu0 %v11312_v49  ;;  %v445_v49 = vld [vmem:[#allocation2 + $0x630] sm:$0xff] }
 0x1a5   :  { %v11376_v56 = vcombine.high %v441_v47, %v445_v49 }
 0x1a6   :  { %2773 = vmatpush1.bf16.msra.mxu1 %v11189_v2  ;;  %2926 = vmatmul.mubr.bf16.vlgmr.msra.gmra.mrb[4].mxu0 %v14695_v24  ;;  %v328_v2 = vld [vmem:[#allocation2 + $0x288] sm:$0xff] }
 0x1a7   :  { %2774 = vmatprep.subr.bf16.mxu1 %v11198_v53  ;;  %2935 = vmatpush1.bf16.msra.mxu0 %v11311_v54  ;;  %v11367_v53 = vcombine.low %v433_v37, %v437_v41  ;;  %v449_v54 = vld [vmem:[#allocation2 + $0x650] sm:$0xff]  ;;  %v11262_v61 = vcombine.high %v328_v2, %v332_v51  ;;  %v11261_v3 = vcombine.low %v328_v2, %v332_v51  ;;  %v388_v2 = vld [vmem:[#allocation2 + $0x468] sm:$0xff] }
 0x1a8   :  { %2936 = vmatprep.subr.bf16.mxu0 %v11320_v55  ;;  %2966 = vmatprep.mubr.bf16.mxu0 %v14699_v31  ;;  %v453_v55 = vld [vmem:[#allocation2 + $0x670] sm:$0xff] }
 0x1a9   :  { %v11384_v1 = vcombine.high %v449_v54, %v453_v55 }
 0x1aa   :  { %2775 = vmatpush1.bf16.msra.mxu1 %v11197_v58  ;;  %v336_v58 = vld [vmem:[#allocation2 + $0x2c8] sm:$0xff] }
 0x1ab   :  { %2776 = vmatprep.subr.bf16.mxu1 %v11206_v62  ;;  %2937 = vmatpush1.bf16.msra.mxu0 %v11319_v63  ;;  %v11375_v62 = vcombine.low %v441_v47, %v445_v49  ;;  %v457_v63 = vld [vmem:[#allocation2 + $0x690] sm:$0xff]  ;;  %v11270_v6 = vcombine.high %v336_v58, %v340_v60  ;;  %v11269_v11 = vcombine.low %v336_v58, %v340_v60  ;;  %v396_v58 = vld [vmem:[#allocation2 + $0x4a8] sm:$0xff] }
 0x1ac   :  { %2938 = vmatprep.subr.bf16.mxu0 %v11328_v0  ;;  %v461_v0 = vld [vmem:[#allocation2 + $0x6b0] sm:$0xff] }
 0x1ad   :  { %v11392_v10 = vcombine.high %v457_v63, %v461_v0  ;;  %v501_v47 = vld [vmem:[#allocation2 + $0x7f0] sm:$0xff] }
 0x1ae   :  { %2777 = vmatpush1.bf16.msra.mxu1 %v11205_v4  ;;  %v344_v4 = vld [vmem:[#allocation2 + $0x308] sm:$0xff] }
 0x1af   :  { %2778 = vmatprep.subr.bf16.mxu1 %v11214_v7  ;;  %2939 = vmatpush1.bf16.msra.mxu0 %v11327_v8  ;;  %v11383_v7 = vcombine.low %v449_v54, %v453_v55  ;;  %v465_v8 = vld [vmem:[#allocation2 + $0x6d0] sm:$0xff]  ;;  %v11278_v15 = vcombine.high %v344_v4, %v348_v5  ;;  %v11277_v20 = vcombine.low %v344_v4, %v348_v5  ;;  %v404_v4 = vld [vmem:[#allocation2 + $0x4e8] sm:$0xff] }
 0x1b0   :  { %2940 = vmatprep.subr.bf16.mxu0 %v11336_v9  ;;  %v469_v9 = vld [vmem:[#allocation2 + $0x6f0] sm:$0xff] }
 0x1b1   :  { %v11400_v19 = vcombine.high %v465_v8, %v469_v9  ;;  %v509_v54 = vld [vmem:[#allocation2 + $0x830] sm:$0xff] }
 0x1b2   :  { %2779 = vmatpush1.bf16.msra.mxu1 %v11213_v13  ;;  %v352_v13 = vld [vmem:[#allocation2 + $0x348] sm:$0xff] }
 0x1b3   :  { %2780 = vmatprep.subr.bf16.mxu1 %v11222_v16  ;;  %2941 = vmatpush1.bf16.msra.mxu0 %v11335_v17  ;;  %v11391_v16 = vcombine.low %v457_v63, %v461_v0  ;;  %v473_v17 = vld [vmem:[#allocation2 + $0x710] sm:$0xff]  ;;  %v11286_v23 = vcombine.high %v352_v13, %v356_v14  ;;  %v11285_v30 = vcombine.low %v352_v13, %v356_v14  ;;  %v412_v13 = vld [vmem:[#allocation2 + $0x528] sm:$0xff] }
 0x1b4   :  { %2942 = vmatprep.subr.bf16.mxu0 %v11344_v18  ;;  %v477_v18 = vld [vmem:[#allocation2 + $0x730] sm:$0xff] }
 0x1b5   :  { %v11408_v29 = vcombine.high %v473_v17, %v477_v18  ;;  %v517_v63 = vld [vmem:[#allocation2 + $0x870] sm:$0xff] }
 0x1b6   :  { %2781 = vmatpush1.bf16.msra.mxu1 %v11221_v21  ;;  %v360_v21 = vld [vmem:[#allocation2 + $0x388] sm:$0xff] }
 0x1b7   :  { %2782 = vmatprep.subr.bf16.mxu1 %v11230_v25  ;;  %2943 = vmatpush1.bf16.msra.mxu0 %v11343_v26  ;;  %v11399_v25 = vcombine.low %v465_v8, %v469_v9  ;;  %v481_v26 = vld [vmem:[#allocation2 + $0x750] sm:$0xff]  ;;  %v11294_v34 = vcombine.high %v360_v21, %v364_v22  ;;  %v11293_v41 = vcombine.low %v360_v21, %v364_v22  ;;  %v420_v21 = vld [vmem:[#allocation2 + $0x568] sm:$0xff] }
 0x1b8   :  { %2944 = vmatprep.subr.bf16.mxu0 %v11352_v27  ;;  %v485_v27 = vld [vmem:[#allocation2 + $0x770] sm:$0xff] }
 0x1b9   :  { %v11416_v37 = vcombine.high %v481_v26, %v485_v27  ;;  %v525_v8 = vld [vmem:[#allocation2 + $0x8b0] sm:$0xff] }
 0x1ba   :  { %2783 = vmatpush1.bf16.msra.mxu1 %v11229_v32  ;;  %v368_v32 = vld [vmem:[#allocation2 + $0x3c8] sm:$0xff] }
 0x1bb   :  { %2784 = vmatprep.subr.bf16.mxu1 %v11238_v48  ;;  %2945 = vmatpush1.bf16.msra.mxu0 %v11351_v35  ;;  %v11407_v48 = vcombine.low %v473_v17, %v477_v18  ;;  %v489_v35 = vld [vmem:[#allocation2 + $0x790] sm:$0xff]  ;;  %v11302_v44 = vcombine.high %v368_v32, %v372_v33 }
 0x1bc   :  { %2946 = vmatprep.subr.bf16.mxu0 %v11360_v36  ;;  %v493_v36 = vld [vmem:[#allocation2 + $0x7b0] sm:$0xff] }
 0x1bd   :  { %v11424_v49 = vcombine.high %v489_v35, %v493_v36  ;;  %v533_v17 = vld [vmem:[#allocation2 + $0x8f0] sm:$0xff] }
 0x1be   :  { %2785 = vmatpush1.bf16.msra.mxu1 %v11237_v42  ;;  %v376_v42 = vld [vmem:[#allocation2 + $0x408] sm:$0xff] }
 0x1bf   :  { %2786 = vmatprep.subr.bf16.mxu1 %v11246_v45  ;;  %2947 = vmatpush1.bf16.msra.mxu0 %v11359_v46  ;;  %v11415_v45 = vcombine.low %v481_v26, %v485_v27  ;;  %v497_v46 = vld [vmem:[#allocation2 + $0x7d0] sm:$0xff]  ;;  %v11310_v51 = vcombine.high %v376_v42, %v380_v43 }
 0x1c0   :  { %2948 = vmatprep.subr.bf16.mxu0 %v11368_v50  ;;  %v11301_v50 = vcombine.low %v368_v32, %v372_v33  ;;  %v11432_v55 = vcombine.high %v497_v46, %v501_v47  ;;  %v541_v26 = vld [vmem:[#allocation2 + $0x930] sm:$0xff]  ;;  %v428_v32 = vld [vmem:[#allocation2 + $0x5a8] sm:$0xff] }
 0x1c2   :  { %2787 = vmatpush1.bf16.msra.mxu1 %v11245_v38  ;;  %v384_v38 = vld [vmem:[#allocation2 + $0x448] sm:$0xff] }
 0x1c3   :  { %2788 = vmatprep.subr.bf16.mxu1 %v11254_v52  ;;  %2949 = vmatpush1.bf16.msra.mxu0 %v11367_v53  ;;  %v11423_v52 = vcombine.low %v489_v35, %v493_v36  ;;  %v505_v53 = vld [vmem:[#allocation2 + $0x810] sm:$0xff]  ;;  %v11318_v60 = vcombine.high %v384_v38, %v388_v2 }
 0x1c4   :  { %2950 = vmatprep.subr.bf16.mxu0 %v11376_v56  ;;  %v11309_v56 = vcombine.low %v376_v42, %v380_v43  ;;  %v11440_v0 = vcombine.high %v505_v53, %v509_v54  ;;  %v549_v35 = vld [vmem:[#allocation2 + $0x970] sm:$0xff]  ;;  %v436_v42 = vld [vmem:[#allocation2 + $0x5e8] sm:$0xff] }
 0x1c6   :  { %2789 = vmatpush1.bf16.msra.mxu1 %v11253_v57  ;;  %v392_v57 = vld [vmem:[#allocation2 + $0x488] sm:$0xff] }
 0x1c7   :  { %2790 = vmatprep.subr.bf16.mxu1 %v11262_v61  ;;  %2951 = vmatpush1.bf16.msra.mxu0 %v11375_v62  ;;  %v11431_v61 = vcombine.low %v497_v46, %v501_v47  ;;  %v513_v62 = vld [vmem:[#allocation2 + $0x850] sm:$0xff]  ;;  %v11326_v5 = vcombine.high %v392_v57, %v396_v58 }
 0x1c8   :  { %2952 = vmatprep.subr.bf16.mxu0 %v11384_v1  ;;  %v11317_v1 = vcombine.low %v384_v38, %v388_v2  ;;  %v11448_v9 = vcombine.high %v513_v62, %v517_v63  ;;  %v557_v46 = vld [vmem:[#allocation2 + $0x9b0] sm:$0xff]  ;;  %v444_v38 = vld [vmem:[#allocation2 + $0x628] sm:$0xff] }
 0x1ca   :  { %2791 = vmatpush1.bf16.msra.mxu1 %v11261_v3  ;;  %v400_v3 = vld [vmem:[#allocation2 + $0x4c8] sm:$0xff] }
 0x1cb   :  { %2792 = vmatprep.subr.bf16.mxu1 %v11270_v6  ;;  %2953 = vmatpush1.bf16.msra.mxu0 %v11383_v7  ;;  %v11439_v6 = vcombine.low %v505_v53, %v509_v54  ;;  %v521_v7 = vld [vmem:[#allocation2 + $0x890] sm:$0xff]  ;;  %v11334_v14 = vcombine.high %v400_v3, %v404_v4 }
 0x1cc   :  { %2954 = vmatprep.subr.bf16.mxu0 %v11392_v10  ;;  %v11325_v10 = vcombine.low %v392_v57, %v396_v58  ;;  %v11456_v18 = vcombine.high %v521_v7, %v525_v8  ;;  %v565_v53 = vld [vmem:[#allocation2 + $0x9f0] sm:$0xff]  ;;  %v452_v57 = vld [vmem:[#allocation2 + $0x668] sm:$0xff] }
 0x1ce   :  { %2793 = vmatpush1.bf16.msra.mxu1 %v11269_v11  ;;  %v408_v11 = vld [vmem:[#allocation2 + $0x508] sm:$0xff] }
 0x1cf   :  { %2794 = vmatprep.subr.bf16.mxu1 %v11278_v15  ;;  %2955 = vmatpush1.bf16.msra.mxu0 %v11391_v16  ;;  %v11447_v15 = vcombine.low %v513_v62, %v517_v63  ;;  %v529_v16 = vld [vmem:[#allocation2 + $0x8d0] sm:$0xff]  ;;  %v11342_v22 = vcombine.high %v408_v11, %v412_v13 }
 0x1d0   :  { %2956 = vmatprep.subr.bf16.mxu0 %v11400_v19  ;;  %v11333_v19 = vcombine.low %v400_v3, %v404_v4  ;;  %v11464_v27 = vcombine.high %v529_v16, %v533_v17  ;;  %v573_v62 = vld [vmem:[#allocation2 + $0xa30] sm:$0xff]  ;;  %v460_v3 = vld [vmem:[#allocation2 + $0x6a8] sm:$0xff] }
 0x1d2   :  { %2795 = vmatpush1.bf16.msra.mxu1 %v11277_v20  ;;  %v416_v20 = vld [vmem:[#allocation2 + $0x548] sm:$0xff] }
 0x1d3   :  { %2796 = vmatprep.subr.bf16.mxu1 %v11286_v23  ;;  %2957 = vmatpush1.bf16.msra.mxu0 %v11399_v25  ;;  %v11455_v23 = vcombine.low %v521_v7, %v525_v8  ;;  %v537_v25 = vld [vmem:[#allocation2 + $0x910] sm:$0xff]  ;;  %v11350_v33 = vcombine.high %v416_v20, %v420_v21 }
 0x1d4   :  { %2958 = vmatprep.subr.bf16.mxu0 %v11408_v29  ;;  %v11341_v29 = vcombine.low %v408_v11, %v412_v13  ;;  %v11472_v36 = vcombine.high %v537_v25, %v541_v26  ;;  %v581_v7 = vld [vmem:[#allocation2 + $0xa70] sm:$0xff]  ;;  %v468_v11 = vld [vmem:[#allocation2 + $0x6e8] sm:$0xff] }
 0x1d6   :  { %2797 = vmatpush1.bf16.msra.mxu1 %v11285_v30  ;;  %v424_v30 = vld [vmem:[#allocation2 + $0x588] sm:$0xff] }
 0x1d7   :  { %2798 = vmatprep.subr.bf16.mxu1 %v11294_v34  ;;  %2959 = vmatpush1.bf16.msra.mxu0 %v11407_v48  ;;  %v11463_v34 = vcombine.low %v529_v16, %v533_v17  ;;  %v545_v48 = vld [vmem:[#allocation2 + $0x950] sm:$0xff]  ;;  %v11358_v43 = vcombine.high %v424_v30, %v428_v32 }
 0x1d8   :  { %2960 = vmatprep.subr.bf16.mxu0 %v11416_v37  ;;  %v11349_v37 = vcombine.low %v416_v20, %v420_v21  ;;  %v11480_v47 = vcombine.high %v545_v48, %v549_v35  ;;  %v589_v16 = vld [vmem:[#allocation2 + $0xab0] sm:$0xff]  ;;  %v476_v20 = vld [vmem:[#allocation2 + $0x728] sm:$0xff] }
 0x1da   :  { %2799 = vmatpush1.bf16.msra.mxu1 %v11293_v41  ;;  %v432_v41 = vld [vmem:[#allocation2 + $0x5c8] sm:$0xff] }
 0x1db   :  { %2800 = vmatprep.subr.bf16.mxu1 %v11302_v44  ;;  %2961 = vmatpush1.bf16.msra.mxu0 %v11415_v45  ;;  %v11471_v44 = vcombine.low %v537_v25, %v541_v26  ;;  %v553_v45 = vld [vmem:[#allocation2 + $0x990] sm:$0xff]  ;;  %v11366_v2 = vcombine.high %v432_v41, %v436_v42 }
 0x1dc   :  { %2962 = vmatprep.subr.bf16.mxu0 %v11424_v49  ;;  %v11357_v49 = vcombine.low %v424_v30, %v428_v32  ;;  %v11488_v54 = vcombine.high %v553_v45, %v557_v46  ;;  %v597_v25 = vld [vmem:[#allocation2 + $0xaf0] sm:$0xff]  ;;  %v484_v30 = vld [vmem:[#allocation2 + $0x768] sm:$0xff] }
 0x1de   :  { %2801 = vmatpush1.bf16.msra.mxu1 %v11301_v50  ;;  %v440_v50 = vld [vmem:[#allocation2 + $0x608] sm:$0xff] }
 0x1df   :  { %2811 = vmatprep.subr.bf16.mxu1 %v11310_v51  ;;  %2963 = vmatpush1.bf16.msra.mxu0 %v11423_v52  ;;  %v11479_v51 = vcombine.low %v545_v48, %v549_v35  ;;  %v561_v52 = vld [vmem:[#allocation2 + $0x9d0] sm:$0xff]  ;;  %v11374_v58 = vcombine.high %v440_v50, %v444_v38 }
 0x1e0   :  { %2964 = vmatprep.subr.bf16.mxu0 %v11432_v55  ;;  %v11365_v55 = vcombine.low %v432_v41, %v436_v42  ;;  %v11496_v63 = vcombine.high %v561_v52, %v565_v53  ;;  %v605_v48 = vld [vmem:[#allocation2 + $0xb30] sm:$0xff]  ;;  %v492_v41 = vld [vmem:[#allocation2 + $0x7a8] sm:$0xff] }
 0x1e1   :  { %2803 = vmatmul.mubr.bf16.vlgmr.msra.gmra.mrb[4].mxu1 %v14695_v24 }
 0x1e2   :  { %2812 = vmatpush1.bf16.msra.mxu1 %v11309_v56  ;;  %2843 = vmatprep.mubr.bf16.mxu1 %v14699_v31  ;;  %v448_v56 = vld [vmem:[#allocation2 + $0x648] sm:$0xff] }
 0x1e3   :  { %2813 = vmatprep.subr.bf16.mxu1 %v11318_v60  ;;  %2965 = vmatpush1.bf16.msra.mxu0 %v11431_v61  ;;  %v11487_v60 = vcombine.low %v553_v45, %v557_v46  ;;  %v569_v61 = vld [vmem:[#allocation2 + $0xa10] sm:$0xff]  ;;  %v11382_v4 = vcombine.high %v448_v56, %v452_v57 }
 0x1e4   :  { %2975 = vmatprep.subr.bf16.mxu0 %v11440_v0  ;;  %v11373_v0 = vcombine.low %v440_v50, %v444_v38  ;;  %v11504_v8 = vcombine.high %v569_v61, %v573_v62  ;;  %v613_v45 = vld [vmem:[#allocation2 + $0xb70] sm:$0xff]  ;;  %v500_v50 = vld [vmem:[#allocation2 + $0x7e8] sm:$0xff] }
 0x1e6   :  { %2814 = vmatpush1.bf16.msra.mxu1 %v11317_v1  ;;  %2967 = vmatmul.mubr.bf16.vlgmr.msra.gmra.mrb[4].mxu0 %v14711_v39  ;;  %v456_v1 = vld [vmem:[#allocation2 + $0x688] sm:$0xff] }
 0x1e7   :  { %2815 = vmatprep.subr.bf16.mxu1 %v11326_v5  ;;  %2976 = vmatpush1.bf16.msra.mxu0 %v11439_v6  ;;  %v11495_v5 = vcombine.low %v561_v52, %v565_v53  ;;  %v577_v6 = vld [vmem:[#allocation2 + $0xa50] sm:$0xff]  ;;  %v11390_v13 = vcombine.high %v456_v1, %v460_v3 }
 0x1e8   :  { %2977 = vmatprep.subr.bf16.mxu0 %v11448_v9  ;;  %3007 = vmatprep.mubr.bf16.mxu0 %v14690_v12  ;;  %v11381_v9 = vcombine.low %v448_v56, %v452_v57  ;;  %v11512_v17 = vcombine.high %v577_v6, %v581_v7  ;;  %v621_v52 = vld [vmem:[#allocation2 + $0xbb0] sm:$0xff]  ;;  %v508_v56 = vld [vmem:[#allocation2 + $0x828] sm:$0xff] }
 0x1ea   :  { %2816 = vmatpush1.bf16.msra.mxu1 %v11325_v10  ;;  %v464_v10 = vld [vmem:[#allocation2 + $0x6c8] sm:$0xff] }
 0x1eb   :  { %2817 = vmatprep.subr.bf16.mxu1 %v11334_v14  ;;  %2978 = vmatpush1.bf16.msra.mxu0 %v11447_v15  ;;  %v11503_v14 = vcombine.low %v569_v61, %v573_v62  ;;  %v585_v15 = vld [vmem:[#allocation2 + $0xa90] sm:$0xff]  ;;  %v11398_v21 = vcombine.high %v464_v10, %v468_v11 }
 0x1ec   :  { %2979 = vmatprep.subr.bf16.mxu0 %v11456_v18  ;;  %v11389_v18 = vcombine.low %v456_v1, %v460_v3  ;;  %v11520_v26 = vcombine.high %v585_v15, %v589_v16  ;;  %v629_v61 = vld [vmem:[#allocation2 + $0xbf0] sm:$0xff]  ;;  %v516_v1 = vld [vmem:[#allocation2 + $0x868] sm:$0xff] }
 0x1ee   :  { %2818 = vmatpush1.bf16.msra.mxu1 %v11333_v19  ;;  %v472_v19 = vld [vmem:[#allocation2 + $0x708] sm:$0xff] }
 0x1ef   :  { %2819 = vmatprep.subr.bf16.mxu1 %v11342_v22  ;;  %2980 = vmatpush1.bf16.msra.mxu0 %v11455_v23  ;;  %v11511_v22 = vcombine.low %v577_v6, %v581_v7  ;;  %v593_v23 = vld [vmem:[#allocation2 + $0xad0] sm:$0xff]  ;;  %v11406_v32 = vcombine.high %v472_v19, %v476_v20  ;;  %v520_v7 = vld [vmem:[#allocation2 + $0x888] sm:$0xff] }
 0x1f0   :  { %2981 = vmatprep.subr.bf16.mxu0 %v11464_v27  ;;  %v11397_v27 = vcombine.low %v464_v10, %v468_v11  ;;  %v11528_v35 = vcombine.high %v593_v23, %v597_v25 }
 0x1f2   :  { %2820 = vmatpush1.bf16.msra.mxu1 %v11341_v29  ;;  %v480_v29 = vld [vmem:[#allocation2 + $0x748] sm:$0xff] }
 0x1f3   :  { %2821 = vmatprep.subr.bf16.mxu1 %v11350_v33  ;;  %2982 = vmatpush1.bf16.msra.mxu0 %v11463_v34  ;;  %v11519_v33 = vcombine.low %v585_v15, %v589_v16  ;;  %v601_v34 = vld [vmem:[#allocation2 + $0xb10] sm:$0xff]  ;;  %v11414_v42 = vcombine.high %v480_v29, %v484_v30  ;;  %v532_v15 = vld [vmem:[#allocation2 + $0x8e8] sm:$0xff] }
 0x1f4   :  { %2983 = vmatprep.subr.bf16.mxu0 %v11472_v36  ;;  %v11405_v36 = vcombine.low %v472_v19, %v476_v20  ;;  %v11536_v46 = vcombine.high %v601_v34, %v605_v48  ;;  %v12803_v16 = vld [vmem:[#allocation6] ss:$16 sps:$4 sm:$0xff]  }
 0x1f5   :  { %v536_v20 = vld [vmem:[#allocation2 + $0x908] sm:$0xff] }
 0x1f6   :  { %2822 = vmatpush1.bf16.msra.mxu1 %v11349_v37  ;;  %v488_v37 = vld [vmem:[#allocation2 + $0x788] sm:$0xff] }
 0x1f7   :  { %2823 = vmatprep.subr.bf16.mxu1 %v11358_v43  ;;  %2984 = vmatpush1.bf16.msra.mxu0 %v11471_v44  ;;  %v11527_v43 = vcombine.low %v593_v23, %v597_v25  ;;  %v609_v44 = vld [vmem:[#allocation2 + $0xb50] sm:$0xff]  ;;  %v11422_v38 = vcombine.high %v488_v37, %v492_v41  ;;  %v12811_v23 = vld [vmem:[#allocation6 + $0x44] ss:$16 sps:$4 sm:$0xff]  }
 0x1f8   :  { %2985 = vmatprep.subr.bf16.mxu0 %v11480_v47  ;;  %v11413_v47 = vcombine.low %v480_v29, %v484_v30  ;;  %v11544_v53 = vcombine.high %v609_v44, %v613_v45  ;;  %v548_v29 = vld [vmem:[#allocation2 + $0x968] sm:$0xff] }
 0x1f9   :  { %v12809_v30 = vld [vmem:[#allocation6 + $0x40] ss:$16 sps:$4 sm:$0xff]  }
 0x1fa   :  { %2824 = vmatpush1.bf16.msra.mxu1 %v11357_v49  ;;  %v496_v49 = vld [vmem:[#allocation2 + $0x7c8] sm:$0xff] }
 0x1fb   :  { %2825 = vmatprep.subr.bf16.mxu1 %v11366_v2  ;;  %2986 = vmatpush1.bf16.msra.mxu0 %v11479_v51  ;;  %v11535_v2 = vcombine.low %v601_v34, %v605_v48  ;;  %v617_v51 = vld [vmem:[#allocation2 + $0xb90] sm:$0xff]  ;;  %v11430_v57 = vcombine.high %v496_v49, %v500_v50  ;;  %v552_v48 = vld [vmem:[#allocation2 + $0x988] sm:$0xff] }
 0x1fc   :  { %2987 = vmatprep.subr.bf16.mxu0 %v11488_v54  ;;  %v11421_v54 = vcombine.low %v488_v37, %v492_v41  ;;  %v11552_v62 = vcombine.high %v617_v51, %v621_v52  ;;  %v12817_v37 = vld [vmem:[#allocation6 + $0x84] ss:$16 sps:$4 sm:$0xff]  }
 0x1fe   :  { %2826 = vmatpush1.bf16.msra.mxu1 %v11365_v55  ;;  %v504_v55 = vld [vmem:[#allocation2 + $0x808] sm:$0xff] }
 0x1ff   :  { %2827 = vmatprep.subr.bf16.mxu1 %v11374_v58  ;;  %2988 = vmatpush1.bf16.msra.mxu0 %v11487_v60  ;;  %v11543_v58 = vcombine.low %v609_v44, %v613_v45  ;;  %v625_v60 = vld [vmem:[#allocation2 + $0xbd0] sm:$0xff]  ;;  %v11438_v3 = vcombine.high %v504_v55, %v508_v56  ;;  %v11437_v6 = vcombine.low %v504_v55, %v508_v56  ;;  %v564_v44 = vld [vmem:[#allocation2 + $0x9e8] sm:$0xff] }
 0x200   :  { %2989 = vmatprep.subr.bf16.mxu0 %v11496_v63  ;;  %v11429_v63 = vcombine.low %v496_v49, %v500_v50  ;;  %v11559_v11 = vcombine.low %v625_v60, %v629_v61  ;;  %v12815_v45 = vld [vmem:[#allocation6 + $0x80] ss:$16 sps:$4 sm:$0xff]  }
 0x201   :  { %v568_v50 = vld [vmem:[#allocation2 + $0xa08] sm:$0xff] }
 0x202   :  { %2828 = vmatpush1.bf16.msra.mxu1 %v11373_v0  ;;  %v512_v0 = vld [vmem:[#allocation2 + $0x848] sm:$0xff] }
 0x203   :  { %2829 = vmatprep.subr.bf16.mxu1 %v11382_v4  ;;  %2990 = vmatpush1.bf16.msra.mxu0 %v11495_v5  ;;  %v11551_v4 = vcombine.low %v617_v51, %v621_v52  ;;  %v11560_v5 = vcombine.high %v625_v60, %v629_v61  ;;  %v11446_v10 = vcombine.high %v512_v0, %v516_v1  ;;  %v12823_v51 = vld [vmem:[#allocation6 + $0xc4] ss:$16 sps:$4 sm:$0xff]  }
 0x204   :  { %2991 = vmatprep.subr.bf16.mxu0 %v11504_v8  ;;  %v524_v8 = vld [vmem:[#allocation2 + $0x8a8] sm:$0xff] }
 0x205   :  { %v11453_v19 = vcombine.low %v520_v7, %v524_v8  ;;  %v576_v55 = vld [vmem:[#allocation2 + $0xa48] sm:$0xff] }
 0x206   :  { %2830 = vmatpush1.bf16.msra.mxu1 %v11381_v9  ;;  %v12805_v9 = vld [vmem:[#allocation6 + $0x4] ss:$16 sps:$4 sm:$0xff]  }
 0x207   :  { %2831 = vmatprep.subr.bf16.mxu1 %v11390_v13  ;;  %2992 = vmatpush1.bf16.msra.mxu0 %v11503_v14  ;;  %v11445_v13 = vcombine.low %v512_v0, %v516_v1  ;;  %v528_v14 = vld [vmem:[#allocation2 + $0x8c8] sm:$0xff] }
 0x208   :  { %2993 = vmatprep.subr.bf16.mxu0 %v11512_v17  ;;  %v12808_v17 = vld [vmem:[#allocation6 + $0x24] ss:$16 sps:$4 sm:$0xff]   ;;  %v11462_v25 = vcombine.high %v528_v14, %v532_v15 }
 0x209   :  { %v580_v56 = vld [vmem:[#allocation2 + $0xa68] sm:$0xff] }
 0x20a   :  { %2832 = vmatpush1.bf16.msra.mxu1 %v11389_v18  ;;  %v11454_v18 = vcombine.high %v520_v7, %v524_v8  ;;  %v584_v1 = vld [vmem:[#allocation2 + $0xa88] sm:$0xff]  ;;  %v11509_v7 = vcombine.low %v576_v55, %v580_v56 }
 0x20b   :  { %2833 = vmatprep.subr.bf16.mxu1 %v11398_v21  ;;  %2994 = vmatpush1.bf16.msra.mxu0 %v11511_v22  ;;  %v540_v21 = vld [vmem:[#allocation2 + $0x928] sm:$0xff] }
 0x20c   :  { %2995 = vmatprep.subr.bf16.mxu0 %v11520_v26  ;;  %v12806_v22 = vld [vmem:[#allocation6 + $0x20] ss:$16 sps:$4 sm:$0xff]   ;;  %v11461_v26 = vcombine.low %v528_v14, %v532_v15  ;;  %v11469_v34 = vcombine.low %v536_v20, %v540_v21 }
 0x20d   :  { %v592_v8 = vld [vmem:[#allocation2 + $0xac8] sm:$0xff] }
 0x20e   :  { %2834 = vmatpush1.bf16.msra.mxu1 %v11397_v27  ;;  %v544_v27 = vld [vmem:[#allocation2 + $0x948] sm:$0xff] }
 0x20f   :  { %2835 = vmatprep.subr.bf16.mxu1 %v11406_v32  ;;  %2996 = vmatpush1.bf16.msra.mxu0 %v11519_v33  ;;  %v12814_v32 = vld [vmem:[#allocation6 + $0x64] ss:$16 sps:$4 sm:$0xff]   ;;  %v11470_v33 = vcombine.high %v536_v20, %v540_v21  ;;  %v11478_v41 = vcombine.high %v544_v27, %v548_v29 }
 0x210   :  { %2997 = vmatprep.subr.bf16.mxu0 %v11528_v35  ;;  %v556_v35 = vld [vmem:[#allocation2 + $0x9a8] sm:$0xff] }
 0x211   :  { %v11485_v49 = vcombine.low %v552_v48, %v556_v35  ;;  %v600_v15 = vld [vmem:[#allocation2 + $0xb08] sm:$0xff] }
 0x212   :  { %2836 = vmatpush1.bf16.msra.mxu1 %v11405_v36  ;;  %v12812_v36 = vld [vmem:[#allocation6 + $0x60] ss:$16 sps:$4 sm:$0xff]  }
 0x213   :  { %2837 = vmatprep.subr.bf16.mxu1 %v11414_v42  ;;  %2998 = vmatpush1.bf16.msra.mxu0 %v11527_v43  ;;  %v11477_v42 = vcombine.low %v544_v27, %v548_v29  ;;  %v560_v43 = vld [vmem:[#allocation2 + $0x9c8] sm:$0xff] }
 0x214   :  { %2999 = vmatprep.subr.bf16.mxu0 %v11536_v46  ;;  %v12820_v46 = vld [vmem:[#allocation6 + $0xa4] ss:$16 sps:$4 sm:$0xff]   ;;  %v11494_v52 = vcombine.high %v560_v43, %v564_v44 }
 0x215   :  { %v608_v21 = vld [vmem:[#allocation2 + $0xb48] sm:$0xff] }
 0x216   :  { %2838 = vmatpush1.bf16.msra.mxu1 %v11413_v47  ;;  %v11486_v47 = vcombine.high %v552_v48, %v556_v35  ;;  %v616_v29 = vld [vmem:[#allocation2 + $0xb88] sm:$0xff] }
 0x217   :  { %2839 = vmatprep.subr.bf16.mxu1 %v11422_v38  ;;  %3000 = vmatpush1.bf16.msra.mxu0 %v11535_v2  ;;  %v572_v38 = vld [vmem:[#allocation2 + $0xa28] sm:$0xff] }
 0x218   :  { %3001 = vmatprep.subr.bf16.mxu0 %v11544_v53  ;;  %v12818_v2 = vld [vmem:[#allocation6 + $0xa0] ss:$16 sps:$4 sm:$0xff]   ;;  %v11502_v61 = vcombine.high %v568_v50, %v572_v38  ;;  %v11501_v0 = vcombine.low %v568_v50, %v572_v38 }
 0x219   :  { %v624_v35 = vld [vmem:[#allocation2 + $0xbc8] sm:$0xff]  ;;  %v258_v38 = vld [vmem:[#allocation2 + $0x58] sm:$0xff] }
 0x21a   :  { %2840 = vmatpush1.bf16.msra.mxu1 %v11421_v54  ;;  %v11493_v54 = vcombine.low %v560_v43, %v564_v44  ;;  %v250_v44 = vld [vmem:[#allocation2 + $0x18] sm:$0xff] }
 0x21b   :  { %2841 = vmatprep.subr.bf16.mxu1 %v11430_v57  ;;  %3002 = vmatpush1.bf16.msra.mxu0 %v11543_v58  ;;  %v12821_v57 = vld [vmem:[#allocation6 + $0xc0] ss:$16 sps:$4 sm:$0xff]   ;;  %v12826_v58 = vld [vmem:[#allocation6 + $0xe4] ss:$16 sps:$4 sm:$0xff]  }
 0x21c   :  { %3003 = vmatprep.subr.bf16.mxu0 %v11552_v62 }
 0x21e   :  { %2842 = vmatpush1.bf16.msra.mxu1 %v11429_v63 }
 0x21f   :  { %2852 = vmatprep.subr.bf16.mxu1 %v11438_v3  ;;  %3004 = vmatpush1.bf16.msra.mxu0 %v11551_v4  ;;  %v588_v3 = vld [vmem:[#allocation2 + $0xaa8] sm:$0xff] }
 0x220   :  { %3005 = vmatprep.subr.bf16.mxu0 %v11560_v5  ;;  %v12824_v4 = vld [vmem:[#allocation6 + $0xe0] ss:$16 sps:$4 sm:$0xff]   ;;  %v12829_v5 = vld [vmem:[#allocation6 + $0x104] ss:$16 sps:$4 sm:$0xff]   ;;  %v11517_v14 = vcombine.low %v584_v1, %v588_v3 }
 0x221   :  { %2844 = vmatmul.mubr.bf16.vlgmr.msra.gmra.mrb[4].mxu1 %v14711_v39 }
 0x222   :  { %2853 = vmatpush1.bf16.msra.mxu1 %v11437_v6  ;;  %2884 = vmatprep.mubr.bf16.mxu1 %v14690_v12  ;;  %v11510_v6 = vcombine.high %v576_v55, %v580_v56  ;;  %v266_v56 = vld [vmem:[#allocation2 + $0x98] sm:$0xff] }
 0x223   :  { %2854 = vmatprep.subr.bf16.mxu1 %v11446_v10  ;;  %3006 = vmatpush1.bf16.msra.mxu0 %v11559_v11  ;;  %v12827_v10 = vld [vmem:[#allocation6 + $0x100] ss:$16 sps:$4 sm:$0xff]   ;;  %v12832_v11 = vld [vmem:[#allocation6 + $0x124] ss:$16 sps:$4 sm:$0xff]  }
 0x224   :  { %4729 = vmatprep.subr.bf16.mxu0 %v12805_v9  ;;  %v596_v9 = vld [vmem:[#allocation2 + $0xae8] sm:$0xff] }
 0x225   :  { %v11525_v20 = vcombine.low %v592_v8, %v596_v9 }
 0x226   :  { %2855 = vmatpush1.bf16.msra.mxu1 %v11445_v13  ;;  %3008 = vmatmul.mubr.bf16.vlgmr.msra.gmra.mrb[4].mxu0 %v14704_v40  ;;  %v11518_v13 = vcombine.high %v584_v1, %v588_v3 }
 0x227   :  { %2856 = vmatprep.subr.bf16.mxu1 %v11454_v18  ;;  %4730 = vmatpush1.bf16.msra.mxu0 %v12803_v16  ;;  %v604_v16 = vld [vmem:[#allocation2 + $0xb28] sm:$0xff] }
 0x228   :  { %4731 = vmatprep.subr.bf16.mxu0 %v12808_v17  ;;  %v12830_v17 = vld [vmem:[#allocation6 + $0x120] ss:$16 sps:$4 sm:$0xff]   ;;  %v12835_v18 = vld [vmem:[#allocation6 + $0x144] ss:$16 sps:$4 sm:$0xff]   ;;  %v11533_v27 = vcombine.low %v600_v15, %v604_v16 }
 0x22a   :  { %2857 = vmatpush1.bf16.msra.mxu1 %v11453_v19  ;;  %v11526_v19 = vcombine.high %v592_v8, %v596_v9  ;;  %v290_v8 = vld [vmem:[#allocation2 + $0x158] sm:$0xff] }
 0x22b   :  { %2858 = vmatprep.subr.bf16.mxu1 %v11462_v25  ;;  %4732 = vmatpush1.bf16.msra.mxu0 %v12806_v22  ;;  %v612_v22 = vld [vmem:[#allocation2 + $0xb68] sm:$0xff]  ;;  %v294_v9 = vld [vmem:[#allocation2 + $0x178] sm:$0xff] }
 0x22c   :  { %4733 = vmatprep.subr.bf16.mxu0 %v12811_v23  ;;  %v12833_v23 = vld [vmem:[#allocation6 + $0x140] ss:$16 sps:$4 sm:$0xff]   ;;  %v12838_v25 = vld [vmem:[#allocation6 + $0x164] ss:$16 sps:$4 sm:$0xff]   ;;  %v11541_v48 = vcombine.low %v608_v21, %v612_v22 }
 0x22e   :  { %2859 = vmatpush1.bf16.msra.mxu1 %v11461_v26  ;;  %v11534_v26 = vcombine.high %v600_v15, %v604_v16  ;;  %v298_v15 = vld [vmem:[#allocation2 + $0x198] sm:$0xff] }
 0x22f   :  { %2860 = vmatprep.subr.bf16.mxu1 %v11470_v33  ;;  %4734 = vmatpush1.bf16.msra.mxu0 %v12809_v30  ;;  %v620_v30 = vld [vmem:[#allocation2 + $0xba8] sm:$0xff]  ;;  %v302_v16 = vld [vmem:[#allocation2 + $0x1b8] sm:$0xff] }
 0x230   :  { %4735 = vmatprep.subr.bf16.mxu0 %v12814_v32  ;;  %v12836_v32 = vld [vmem:[#allocation6 + $0x160] ss:$16 sps:$4 sm:$0xff]   ;;  %v12841_v33 = vld [vmem:[#allocation6 + $0x184] ss:$16 sps:$4 sm:$0xff]   ;;  %v11549_v43 = vcombine.low %v616_v29, %v620_v30 }
 0x232   :  { %2861 = vmatpush1.bf16.msra.mxu1 %v11469_v34  ;;  %v11542_v34 = vcombine.high %v608_v21, %v612_v22  ;;  %v306_v21 = vld [vmem:[#allocation2 + $0x1d8] sm:$0xff] }
 0x233   :  { %2862 = vmatprep.subr.bf16.mxu1 %v11478_v41  ;;  %4736 = vmatpush1.bf16.msra.mxu0 %v12812_v36  ;;  %v628_v36 = vld [vmem:[#allocation2 + $0xbe8] sm:$0xff]  ;;  %v310_v22 = vld [vmem:[#allocation2 + $0x1f8] sm:$0xff] }
 0x234   :  { %4737 = vmatprep.subr.bf16.mxu0 %v12817_v37  ;;  %v12839_v37 = vld [vmem:[#allocation6 + $0x180] ss:$16 sps:$4 sm:$0xff]   ;;  %v12844_v41 = vld [vmem:[#allocation6 + $0x1a4] ss:$16 sps:$4 sm:$0xff]   ;;  %v11557_v50 = vcombine.low %v624_v35, %v628_v36 }
 0x236   :  { %2863 = vmatpush1.bf16.msra.mxu1 %v11477_v42  ;;  %v11550_v42 = vcombine.high %v616_v29, %v620_v30 }
 0x237   :  { %2864 = vmatprep.subr.bf16.mxu1 %v11486_v47  ;;  %4738 = vmatpush1.bf16.msra.mxu0 %v12815_v45  ;;  %v254_v45 = vld [vmem:[#allocation2 + $0x38] sm:$0xff] }
 0x238   :  { %4739 = vmatprep.subr.bf16.mxu0 %v12820_v46  ;;  %v12842_v46 = vld [vmem:[#allocation6 + $0x1a0] ss:$16 sps:$4 sm:$0xff]   ;;  %v12847_v47 = vld [vmem:[#allocation6 + $0x1c4] ss:$16 sps:$4 sm:$0xff]   ;;  %v11185_v55 = vcombine.low %v250_v44, %v254_v45 }
 0x239   :  { %v14724_v53 = vpop.f32.mrb[0].mxu0 }
 0x23a   :  { %2865 = vmatpush1.bf16.msra.mxu1 %v11485_v49  ;;  %v14726_v60 = vpop.f32.mrb[1].mxu0  ;;  %v11558_v49 = vcombine.high %v624_v35, %v628_v36  ;;  %v11242_v36 = vcombine.high %v306_v21, %v310_v22 }
 0x23b   :  { %2866 = vmatprep.subr.bf16.mxu1 %v11494_v52  ;;  %4740 = vmatpush1.bf16.msra.mxu0 %v12818_v2  ;;  %v2767_v62 = vpop.f32.mrb[2].mxu0  ;;  %v262_v2 = vld [vmem:[#allocation2 + $0x78] sm:$0xff] }
 0x23c   :  { %4741 = vmatprep.subr.bf16.mxu0 %v12823_v51  ;;  %v2768_v63 = vpop.f32.mrb[3].mxu0  ;;  %v12845_v51 = vld [vmem:[#allocation6 + $0x1c0] ss:$16 sps:$4 sm:$0xff]   ;;  %v12850_v52 = vld [vmem:[#allocation6 + $0x1e4] ss:$16 sps:$4 sm:$0xff]   ;;  %v11193_v62 = vcombine.low %v258_v38, %v262_v2 }
 0x23d   :  { %v274_v63 = vld [vmem:[#allocation2 + $0xd8] sm:$0xff] }
 0x23e   :  { %2867 = vmatpush1.bf16.msra.mxu1 %v11493_v54  ;;  %v11186_v54 = vcombine.high %v250_v44, %v254_v45  ;;  %v322_v44 = vld [vmem:[#allocation2 + $0x258] sm:$0xff] }
 0x23f   :  { %2868 = vmatprep.subr.bf16.mxu1 %v11502_v61  ;;  %4742 = vmatpush1.bf16.msra.mxu0 %v12821_v57  ;;  %v270_v57 = vld [vmem:[#allocation2 + $0xb8] sm:$0xff]  ;;  %v11194_v61 = vcombine.high %v258_v38, %v262_v2 }
 0x240   :  { %4743 = vmatprep.subr.bf16.mxu0 %v12826_v58  ;;  %v12848_v58 = vld [vmem:[#allocation6 + $0x1e0] ss:$16 sps:$4 sm:$0xff]   ;;  %v11202_v1 = vcombine.high %v266_v56, %v270_v57  ;;  %v11201_v3 = vcombine.low %v266_v56, %v270_v57  ;;  %v12856_v56 = vld [vmem:[#allocation6 + $0x224] ss:$16 sps:$4 sm:$0xff]  }
 0x241   :  { %v326_v45 = vld [vmem:[#allocation2 + $0x278] sm:$0xff] }
 0x242   :  { %2869 = vmatpush1.bf16.msra.mxu1 %v11501_v0  ;;  %v278_v0 = vld [vmem:[#allocation2 + $0xf8] sm:$0xff]  ;;  %v11257_v57 = vcombine.low %v322_v44, %v326_v45 }
 0x243   :  { %2870 = vmatprep.subr.bf16.mxu1 %v11510_v6  ;;  %4744 = vmatpush1.bf16.msra.mxu0 %v12824_v4  ;;  %v282_v4 = vld [vmem:[#allocation2 + $0x118] sm:$0xff]  ;;  %v11210_v6 = vcombine.high %v274_v63, %v278_v0 }
 0x244   :  { %4745 = vmatprep.subr.bf16.mxu0 %v12829_v5  ;;  %v286_v5 = vld [vmem:[#allocation2 + $0x138] sm:$0xff] }
 0x246   :  { %2871 = vmatpush1.bf16.msra.mxu1 %v11509_v7  ;;  %v11209_v7 = vcombine.low %v274_v63, %v278_v0  ;;  %v12857_v63 = vld [vmem:[#allocation6 + $0x240] ss:$16 sps:$4 sm:$0xff]   ;;  %v12859_v0 = vld [vmem:[#allocation6 + $0x244] ss:$16 sps:$4 sm:$0xff]  }
 0x247   :  { %2872 = vmatprep.subr.bf16.mxu1 %v11518_v13  ;;  %4746 = vmatpush1.bf16.msra.mxu0 %v12827_v10  ;;  %v11218_v10 = vcombine.high %v282_v4, %v286_v5  ;;  %v14731_v13 = vsub.s32 0, %v14667_v28 }
 0x248   :  { %4747 = vmatprep.subr.bf16.mxu0 %v12832_v11  ;;  %v631_v11 = vld [vmem:[#allocation4] sm:$0xff] }
 0x24a   :  { %2873 = vmatpush1.bf16.msra.mxu1 %v11517_v14  ;;  %v14734_v14 = vsub.s32 1, %v14667_v28 }
 0x24b   :  { %2874 = vmatprep.subr.bf16.mxu1 %v11526_v19  ;;  %4748 = vmatpush1.bf16.msra.mxu0 %v12830_v17  ;;  %v11226_v17 = vcombine.high %v290_v8, %v294_v9 }
 0x24c   :  { %4749 = vmatprep.subr.bf16.mxu0 %v12835_v18  ;;  %v636_v18 = vrot.slane %v631_v11, %v14731_v13  ;;  %v640_v19 = vrot.slane %v631_v11, %v14734_v14 }
 0x24e   :  { %2875 = vmatpush1.bf16.msra.mxu1 %v11525_v20  ;;  %v11225_v20 = vcombine.low %v290_v8, %v294_v9  ;;  %v354_v9 = vld [vmem:[#allocation2 + $0x358] sm:$0xff] }
 0x24f   :  { %2876 = vmatprep.subr.bf16.mxu1 %v11534_v26  ;;  %4750 = vmatpush1.bf16.msra.mxu0 %v12833_v23  ;;  %v11234_v23 = vcombine.high %v298_v15, %v302_v16 }
 0x250   :  { %4751 = vmatprep.subr.bf16.mxu0 %v12838_v25 }
 0x252   :  { %2877 = vmatpush1.bf16.msra.mxu1 %v11533_v27 }
 0x253   :  { %2878 = vmatprep.subr.bf16.mxu1 %v11542_v34  ;;  %4752 = vmatpush1.bf16.msra.mxu0 %v12836_v32  ;;  %v11233_v32 = vcombine.low %v298_v15, %v302_v16  ;;  %v318_v34 = vld [vmem:[#allocation2 + $0x238] sm:$0xff] }
 0x254   :  { %4753 = vmatprep.subr.bf16.mxu0 %v12841_v33  ;;  %v314_v33 = vld [vmem:[#allocation2 + $0x218] sm:$0xff] }
 0x255   :  { %v12865_v15 = vld [vmem:[#allocation6 + $0x284] ss:$16 sps:$4 sm:$0xff]  }
 0x256   :  { %2879 = vmatpush1.bf16.msra.mxu1 %v11541_v48 }
 0x257   :  { %2880 = vmatprep.subr.bf16.mxu1 %v11550_v42  ;;  %4754 = vmatpush1.bf16.msra.mxu0 %v12839_v37 }
 0x258   :  { %4755 = vmatprep.subr.bf16.mxu0 %v12844_v41 }
 0x25a   :  { %2881 = vmatpush1.bf16.msra.mxu1 %v11549_v43  ;;  %v11241_v43 = vcombine.low %v306_v21, %v310_v22  ;;  %v12868_v21 = vld [vmem:[#allocation6 + $0x2a4] ss:$16 sps:$4 sm:$0xff]  }
 0x25b   :  { %2882 = vmatprep.subr.bf16.mxu1 %v11558_v49  ;;  %4756 = vmatpush1.bf16.msra.mxu0 %v12842_v46  ;;  %v12851_v49 = vld [vmem:[#allocation6 + $0x200] ss:$16 sps:$4 sm:$0xff]  }
 0x25c   :  { %4757 = vmatprep.subr.bf16.mxu0 %v12847_v47  ;;  %v11250_v47 = vcombine.high %v314_v33, %v318_v34 }
 0x25e   :  { %2883 = vmatpush1.bf16.msra.mxu1 %v11557_v50  ;;  %v12853_v50 = vld [vmem:[#allocation6 + $0x204] ss:$16 sps:$4 sm:$0xff]  }
 0x25f   :  { %3016 = vmatprep.subr.bf16.mxu1 %v11186_v54  ;;  %4758 = vmatpush1.bf16.msra.mxu0 %v12845_v51  ;;  %v330_v51 = vld [vmem:[#allocation2 + $0x298] sm:$0xff]  ;;  %v11258_v54 = vcombine.high %v322_v44, %v326_v45 }
 0x260   :  { %4759 = vmatprep.subr.bf16.mxu0 %v12850_v52  ;;  %v334_v52 = vld [vmem:[#allocation2 + $0x2b8] sm:$0xff] }
 0x261   :  { %2885 = vmatmul.mubr.bf16.vlgmr.msra.gmra.mrb[4].mxu1 %v14704_v40  ;;  %v12877_v44 = vld [vmem:[#allocation6 + $0x304] ss:$16 sps:$4 sm:$0xff]  }
 0x262   :  { %3017 = vmatpush1.bf16.msra.mxu1 %v11185_v55  ;;  %3048 = vmatprep.mubr.bf16.mxu1 %v14681_v59  ;;  %v11217_v59 = vcombine.low %v282_v4, %v286_v5  ;;  %v12854_v55 = vld [vmem:[#allocation6 + $0x220] ss:$16 sps:$4 sm:$0xff]  }
 0x263   :  { %3018 = vmatprep.subr.bf16.mxu1 %v11194_v61  ;;  %4760 = vmatpush1.bf16.msra.mxu0 %v12848_v58  ;;  %v338_v58 = vld [vmem:[#allocation2 + $0x2d8] sm:$0xff] }
 0x264   :  { %4770 = vmatprep.subr.bf16.mxu0 %v12853_v50  ;;  %v342_v61 = vld [vmem:[#allocation2 + $0x2f8] sm:$0xff] }
 0x265   :  { %v350_v4 = vld [vmem:[#allocation2 + $0x338] sm:$0xff]  ;;  %v11274_v5 = vcombine.high %v338_v58, %v342_v61  ;;  %v11273_v8 = vcombine.low %v338_v58, %v342_v61 }
 0x266   :  { %3019 = vmatpush1.bf16.msra.mxu1 %v11193_v62  ;;  %v11266_v62 = vcombine.high %v330_v51, %v334_v52  ;;  %v398_v50 = vld [vmem:[#allocation2 + $0x4b8] sm:$0xff] }
 0x267   :  { %3020 = vmatprep.subr.bf16.mxu1 %v11202_v1  ;;  %v11265_v1 = vcombine.low %v330_v51, %v334_v52  ;;  %v402_v51 = vld [vmem:[#allocation2 + $0x4d8] sm:$0xff] }
 0x268   :  { %v406_v52 = vld [vmem:[#allocation2 + $0x4f8] sm:$0xff] }
 0x269   :  { %v410_v58 = vld [vmem:[#allocation2 + $0x518] sm:$0xff] }
 0x26a   :  { %3021 = vmatpush1.bf16.msra.mxu1 %v11201_v3  ;;  %v346_v3 = vld [vmem:[#allocation2 + $0x318] sm:$0xff] }
 0x26b   :  { %3022 = vmatprep.subr.bf16.mxu1 %v11210_v6  ;;  %v12860_v6 = vld [vmem:[#allocation6 + $0x260] ss:$16 sps:$4 sm:$0xff]   ;;  %v11282_v11 = vcombine.high %v346_v3, %v350_v4  ;;  %v11281_v16 = vcombine.low %v346_v3, %v350_v4  ;;  %v12898_v3 = vld [vmem:[#allocation6 + $0x384] ss:$16 sps:$4 sm:$0xff]  }
 0x26c   :  { %v414_v61 = vld [vmem:[#allocation2 + $0x538] sm:$0xff] }
 0x26d   :  { %v11346_v4 = vcombine.high %v410_v58, %v414_v61 }
 0x26e   :  { %3023 = vmatpush1.bf16.msra.mxu1 %v11209_v7  ;;  %v12862_v7 = vld [vmem:[#allocation6 + $0x264] ss:$16 sps:$4 sm:$0xff]  }
 0x26f   :  { %3024 = vmatprep.subr.bf16.mxu1 %v11218_v10  ;;  %v358_v10 = vld [vmem:[#allocation2 + $0x378] sm:$0xff] }
 0x270   :  { %v11289_v22 = vcombine.low %v354_v9, %v358_v10 }
 0x272   :  { %3025 = vmatpush1.bf16.msra.mxu1 %v11217_v59  ;;  %v12863_v59 = vld [vmem:[#allocation6 + $0x280] ss:$16 sps:$4 sm:$0xff]  }
 0x273   :  { %3026 = vmatprep.subr.bf16.mxu1 %v11226_v17  ;;  %v362_v17 = vld [vmem:[#allocation2 + $0x398] sm:$0xff] }
 0x274   :  { %v2722_v25 = vpop.f32.mrb[0].mxu1 }
 0x275   :  { %v12638_v26 = vadd.f32 %v2722_v25, %v636_v18  ;;  %v2724_v27 = vpop.f32.mrb[1].mxu1  ;;  %v366_v18 = vld [vmem:[#allocation2 + $0x3b8] sm:$0xff] }
 0x276   :  { %v12640_v29 = vadd.f32 %v2724_v27, %v640_v19  ;;  %v2726_v30 = vpop.f32.mrb[2].mxu1  ;;  %3027 = vmatpush1.bf16.msra.mxu1 %v11225_v20  ;;  %v11290_v19 = vcombine.high %v354_v9, %v358_v10  ;;  %v12866_v20 = vld [vmem:[#allocation6 + $0x2a0] ss:$16 sps:$4 sm:$0xff]   ;;  %v12904_v9 = vld [vmem:[#allocation6 + $0x3a4] ss:$16 sps:$4 sm:$0xff]  }
 0x277   :  { %v12639_v48 = vadd.f32 %v12638_v26, %v14724_v53  ;;  %v2727_v35 = vpop.f32.mrb[3].mxu1  ;;  %3028 = vmatprep.subr.bf16.mxu1 %v11234_v23  ;;  %v370_v23 = vld [vmem:[#allocation2 + $0x3d8] sm:$0xff]  ;;  %v11298_v26 = vcombine.high %v362_v17, %v366_v18  ;;  %v11297_v30 = vcombine.low %v362_v17, %v366_v18 }
 0x278   :  { %v12641_v37 = vadd.f32 %v12640_v29, %v14726_v60  ;;  %v11249_v60 = vcombine.low %v314_v33, %v318_v34  ;;  %v374_v25 = vld [vmem:[#allocation2 + $0x3f8] sm:$0xff] }
 0x279   :  { %vm3139_vm0 = vcmp.gt.f32.partialorder %v12639_v48, 0.0  ;;  %v3147_v41 = vmul.f32 0.2, %v12639_v48  ;;  %v12869_v27 = vld [vmem:[#allocation6 + $0x2c0] ss:$16 sps:$4 sm:$0xff]   ;;  %v11306_v34 = vcombine.high %v370_v23, %v374_v25 }
 0x27a   :  { %vm3140_vm1 = vcmp.gt.f32.partialorder %v12641_v37, 0.0  ;;  %v3148_v42 = vmul.f32 0.2, %v12641_v37  ;;  %3029 = vmatpush1.bf16.msra.mxu1 %v11233_v32  ;;  %v12871_v29 = vld [vmem:[#allocation6 + $0x2c4] ss:$16 sps:$4 sm:$0xff]  }
 0x27b   :  { %v3155_v46 = vsel %vm3139_vm0, %v12639_v48, %v3147_v41  ;;  %3030 = vmatprep.subr.bf16.mxu1 %v11242_v36  ;;  %v378_v32 = vld [vmem:[#allocation2 + $0x418] sm:$0xff]  ;;  %v11305_v36 = vcombine.low %v370_v23, %v374_v25 }
 0x27c   :  { %v3156_v38 = vsel %vm3140_vm1, %v12641_v37, %v3148_v42  ;;  %v14742_v2 = vpack.c.bf16 %v3155_v46, %v3155_v46  ;;  %v382_v33 = vld [vmem:[#allocation2 + $0x438] sm:$0xff] }
 0x27d   :  { %v14740_v53 = vpack.c.bf16 %v3156_v38, %v3156_v38  ;;  %v12872_v48 = vld [vmem:[#allocation6 + $0x2e0] ss:$16 sps:$4 sm:$0xff]   ;;  %v12874_v35 = vld [vmem:[#allocation6 + $0x2e4] ss:$16 sps:$4 sm:$0xff]   ;;  %v11314_v42 = vcombine.high %v378_v32, %v382_v33  ;;  %v11313_v45 = vcombine.low %v378_v32, %v382_v33 }
 0x27e   :  { %3031 = vmatpush1.bf16.msra.mxu1 %v11241_v43  ;;  %v386_v37 = vld [vmem:[#allocation2 + $0x458] sm:$0xff] }
 0x27f   :  { %4761 = vmatprep.mubr.bf16.mxu0 %v14740_v53  ;;  %3032 = vmatprep.subr.bf16.mxu1 %v11250_v47  ;;  %v390_v41 = vld [vmem:[#allocation2 + $0x478] sm:$0xff] }
 0x280   :  { %4762 = vmatmul.mubr.bf16.vlgmr.msra.gmra.mrb[8].mxu0 %v14742_v2  ;;  %v12875_v43 = vld [vmem:[#allocation6 + $0x300] ss:$16 sps:$4 sm:$0xff]   ;;  %v11322_v46 = vcombine.high %v386_v37, %v390_v41  ;;  %v12910_v17 = vld [vmem:[#allocation6 + $0x3c4] ss:$16 sps:$4 sm:$0xff]  }
 0x281   :  { %4771 = vmatpush1.bf16.msra.mxu0 %v12851_v49  ;;  %v394_v47 = vld [vmem:[#allocation2 + $0x498] sm:$0xff] }
 0x282   :  { %3033 = vmatpush1.bf16.msra.mxu1 %v11249_v60  ;;  %4772 = vmatprep.subr.bf16.mxu0 %v12856_v56  ;;  %v12880_v49 = vld [vmem:[#allocation6 + $0x324] ss:$16 sps:$4 sm:$0xff]   ;;  %v12878_v38 = vld [vmem:[#allocation6 + $0x320] ss:$16 sps:$4 sm:$0xff]   ;;  %v11321_v60 = vcombine.low %v386_v37, %v390_v41 }
 0x283   :  { %3034 = vmatprep.subr.bf16.mxu1 %v11258_v54  ;;  %v12886_v54 = vld [vmem:[#allocation6 + $0x344] ss:$16 sps:$4 sm:$0xff]   ;;  %v12884_v56 = vld [vmem:[#allocation6 + $0x340] ss:$16 sps:$4 sm:$0xff]  }
 0x284   :  { %v438_v18 = vld [vmem:[#allocation2 + $0x5f8] sm:$0xff] }
 0x285   :  { %4773 = vmatpush1.bf16.msra.mxu0 %v12854_v55  ;;  %v11330_v55 = vcombine.high %v394_v47, %v398_v50  ;;  %v12916_v23 = vld [vmem:[#allocation6 + $0x3e4] ss:$16 sps:$4 sm:$0xff]  }
 0x286   :  { %3035 = vmatpush1.bf16.msra.mxu1 %v11257_v57  ;;  %4774 = vmatprep.subr.bf16.mxu0 %v12859_v0  ;;  %v11329_v57 = vcombine.low %v394_v47, %v398_v50  ;;  %v11337_v0 = vcombine.low %v402_v51, %v406_v52  ;;  %v446_v25 = vld [vmem:[#allocation2 + $0x638] sm:$0xff] }
 0x287   :  { %3036 = vmatprep.subr.bf16.mxu1 %v11266_v62  ;;  %v12892_v62 = vld [vmem:[#allocation6 + $0x364] ss:$16 sps:$4 sm:$0xff]  }
 0x288   :  { %v450_v32 = vld [vmem:[#allocation2 + $0x658] sm:$0xff] }
 0x289   :  { %4775 = vmatpush1.bf16.msra.mxu0 %v12857_v63  ;;  %v12890_v63 = vld [vmem:[#allocation6 + $0x360] ss:$16 sps:$4 sm:$0xff]  }
 0x28a   :  { %3037 = vmatpush1.bf16.msra.mxu1 %v11265_v1  ;;  %4776 = vmatprep.subr.bf16.mxu0 %v12862_v7  ;;  %v418_v1 = vld [vmem:[#allocation2 + $0x558] sm:$0xff] }
 0x28b   :  { %3038 = vmatprep.subr.bf16.mxu1 %v11274_v5  ;;  %v12896_v5 = vld [vmem:[#allocation6 + $0x380] ss:$16 sps:$4 sm:$0xff]  }
 0x28c   :  { %v426_v7 = vld [vmem:[#allocation2 + $0x598] sm:$0xff] }
 0x28d   :  { %4777 = vmatpush1.bf16.msra.mxu0 %v12860_v6  ;;  %v11345_v6 = vcombine.low %v410_v58, %v414_v61  ;;  %v454_v33 = vld [vmem:[#allocation2 + $0x678] sm:$0xff] }
 0x28e   :  { %3039 = vmatpush1.bf16.msra.mxu1 %v11273_v8  ;;  %4778 = vmatprep.subr.bf16.mxu0 %v12865_v15  ;;  %v430_v8 = vld [vmem:[#allocation2 + $0x5b8] sm:$0xff]  ;;  %v11385_v37 = vcombine.low %v450_v32, %v454_v33 }
 0x28f   :  { %3040 = vmatprep.subr.bf16.mxu1 %v11282_v11  ;;  %v12902_v11 = vld [vmem:[#allocation6 + $0x3a0] ss:$16 sps:$4 sm:$0xff]   ;;  %v11362_v15 = vcombine.high %v426_v7, %v430_v8 }
 0x290   :  { %v478_v47 = vld [vmem:[#allocation2 + $0x738] sm:$0xff] }
 0x291   :  { %4779 = vmatpush1.bf16.msra.mxu0 %v12863_v59  ;;  %v498_v58 = vld [vmem:[#allocation2 + $0x7d8] sm:$0xff] }
 0x292   :  { %3041 = vmatpush1.bf16.msra.mxu1 %v11281_v16  ;;  %4780 = vmatprep.subr.bf16.mxu0 %v12868_v21  ;;  %v434_v16 = vld [vmem:[#allocation2 + $0x5d8] sm:$0xff] }
 0x293   :  { %3042 = vmatprep.subr.bf16.mxu1 %v11290_v19  ;;  %v12908_v19 = vld [vmem:[#allocation6 + $0x3c0] ss:$16 sps:$4 sm:$0xff]   ;;  %v11370_v21 = vcombine.high %v434_v16, %v438_v18 }
 0x294   :  { %v502_v61 = vld [vmem:[#allocation2 + $0x7f8] sm:$0xff] }
 0x295   :  { %4781 = vmatpush1.bf16.msra.mxu0 %v12866_v20  ;;  %v11361_v20 = vcombine.low %v426_v7, %v430_v8  ;;  %v522_v7 = vld [vmem:[#allocation2 + $0x898] sm:$0xff] }
 0x296   :  { %3043 = vmatpush1.bf16.msra.mxu1 %v11289_v22  ;;  %4782 = vmatprep.subr.bf16.mxu0 %v12871_v29  ;;  %v442_v22 = vld [vmem:[#allocation2 + $0x618] sm:$0xff] }
 0x297   :  { %3044 = vmatprep.subr.bf16.mxu1 %v11298_v26  ;;  %v12914_v26 = vld [vmem:[#allocation6 + $0x3e0] ss:$16 sps:$4 sm:$0xff]   ;;  %v11378_v29 = vcombine.high %v442_v22, %v446_v25 }
 0x298   :  { %v526_v8 = vld [vmem:[#allocation2 + $0x8b8] sm:$0xff] }
 0x299   :  { %4783 = vmatpush1.bf16.msra.mxu0 %v12869_v27  ;;  %v11369_v27 = vcombine.low %v434_v16, %v438_v18  ;;  %v542_v18 = vld [vmem:[#allocation2 + $0x938] sm:$0xff] }
 0x29a   :  { %3045 = vmatpush1.bf16.msra.mxu1 %v11297_v30  ;;  %4784 = vmatprep.subr.bf16.mxu0 %v12874_v35  ;;  %v12922_v30 = vld [vmem:[#allocation6 + $0x404] ss:$16 sps:$4 sm:$0xff]  }
 0x29b   :  { %3046 = vmatprep.subr.bf16.mxu1 %v11306_v34  ;;  %v11377_v34 = vcombine.low %v442_v22, %v446_v25  ;;  %v458_v35 = vld [vmem:[#allocation2 + $0x698] sm:$0xff] }
 0x29c   :  { %v558_v25 = vld [vmem:[#allocation2 + $0x9b8] sm:$0xff] }
 0x29d   :  { %4785 = vmatpush1.bf16.msra.mxu0 %v12872_v48  ;;  %v11386_v48 = vcombine.high %v450_v32, %v454_v33 }
 0x29e   :  { %3047 = vmatpush1.bf16.msra.mxu1 %v11305_v36  ;;  %4786 = vmatprep.subr.bf16.mxu0 %v12877_v44  ;;  %v462_v36 = vld [vmem:[#allocation2 + $0x6b8] sm:$0xff] }
 0x29f   :  { %3057 = vmatprep.subr.bf16.mxu1 %v11314_v42  ;;  %v11394_v41 = vcombine.high %v458_v35, %v462_v36  ;;  %v466_v42 = vld [vmem:[#allocation2 + $0x6d8] sm:$0xff]  ;;  %v11393_v44 = vcombine.low %v458_v35, %v462_v36 }
 0x2a1   :  { %3049 = vmatmul.mubr.bf16.vlgmr.msra.gmra.mrb[8].mxu1 %v14695_v24  ;;  %4787 = vmatpush1.bf16.msra.mxu0 %v12875_v43  ;;  %v11338_v24 = vcombine.high %v402_v51, %v406_v52  ;;  %v470_v43 = vld [vmem:[#allocation2 + $0x6f8] sm:$0xff] }
 0x2a2   :  { %3058 = vmatpush1.bf16.msra.mxu1 %v11313_v45  ;;  %3089 = vmatprep.mubr.bf16.mxu1 %v14699_v31  ;;  %v422_v31 = vld [vmem:[#allocation2 + $0x578] sm:$0xff]  ;;  %v11402_v45 = vcombine.high %v466_v42, %v470_v43 }
 0x2a3   :  { %3059 = vmatprep.subr.bf16.mxu1 %v11322_v46  ;;  %4788 = vmatprep.subr.bf16.mxu0 %v12880_v49  ;;  %v11354_v10 = vcombine.high %v418_v1, %v422_v31  ;;  %v11353_v59 = vcombine.low %v418_v1, %v422_v31  ;;  %v474_v46 = vld [vmem:[#allocation2 + $0x718] sm:$0xff]  ;;  %v11401_v49 = vcombine.low %v466_v42, %v470_v43 }
 0x2a4   :  { %v11410_v50 = vcombine.high %v474_v46, %v478_v47  ;;  %v11409_v51 = vcombine.low %v474_v46, %v478_v47  ;;  %v11433_v1 = vcombine.low %v498_v58, %v502_v61  ;;  %v578_v43 = vld [vmem:[#allocation2 + $0xa58] sm:$0xff] }
 0x2a5   :  { %4789 = vmatpush1.bf16.msra.mxu0 %v12878_v38  ;;  %v482_v38 = vld [vmem:[#allocation2 + $0x758] sm:$0xff] }
 0x2a6   :  { %3060 = vmatpush1.bf16.msra.mxu1 %v11321_v60  ;;  %4790 = vmatprep.subr.bf16.mxu0 %v12886_v54  ;;  %v486_v60 = vld [vmem:[#allocation2 + $0x778] sm:$0xff] }
 0x2a7   :  { %3061 = vmatprep.subr.bf16.mxu1 %v11330_v55  ;;  %v11418_v52 = vcombine.high %v482_v38, %v486_v60  ;;  %v490_v54 = vld [vmem:[#allocation2 + $0x798] sm:$0xff] }
 0x2a8   :  { %v494_v55 = vld [vmem:[#allocation2 + $0x7b8] sm:$0xff] }
 0x2a9   :  { %4791 = vmatpush1.bf16.msra.mxu0 %v12884_v56  ;;  %v11417_v56 = vcombine.low %v482_v38, %v486_v60 }
 0x2aa   :  { %3062 = vmatpush1.bf16.msra.mxu1 %v11329_v57  ;;  %4792 = vmatprep.subr.bf16.mxu0 %v12892_v62  ;;  %v11426_v57 = vcombine.high %v490_v54, %v494_v55  ;;  %v11425_v62 = vcombine.low %v490_v54, %v494_v55 }
 0x2ab   :  { %3063 = vmatprep.subr.bf16.mxu1 %v11338_v24  ;;  %v11434_v24 = vcombine.high %v498_v58, %v502_v61 }
 0x2ad   :  { %4793 = vmatpush1.bf16.msra.mxu0 %v12890_v63  ;;  %v506_v63 = vld [vmem:[#allocation2 + $0x818] sm:$0xff] }
 0x2ae   :  { %3064 = vmatpush1.bf16.msra.mxu1 %v11337_v0  ;;  %4794 = vmatprep.subr.bf16.mxu0 %v12898_v3  ;;  %v510_v0 = vld [vmem:[#allocation2 + $0x838] sm:$0xff] }
 0x2af   :  { %3065 = vmatprep.subr.bf16.mxu1 %v11346_v4  ;;  %v11442_v31 = vcombine.high %v506_v63, %v510_v0  ;;  %v514_v3 = vld [vmem:[#allocation2 + $0x858] sm:$0xff] }
 0x2b0   :  { %v518_v4 = vld [vmem:[#allocation2 + $0x878] sm:$0xff] }
 0x2b1   :  { %4795 = vmatpush1.bf16.msra.mxu0 %v12896_v5  ;;  %v11441_v5 = vcombine.low %v506_v63, %v510_v0 }
 0x2b2   :  { %3066 = vmatpush1.bf16.msra.mxu1 %v11345_v6  ;;  %4796 = vmatprep.subr.bf16.mxu0 %v12904_v9  ;;  %v11450_v6 = vcombine.high %v514_v3, %v518_v4  ;;  %v11449_v9 = vcombine.low %v514_v3, %v518_v4 }
 0x2b3   :  { %3067 = vmatprep.subr.bf16.mxu1 %v11354_v10  ;;  %v11458_v10 = vcombine.high %v522_v7, %v526_v8 }
 0x2b5   :  { %4797 = vmatpush1.bf16.msra.mxu0 %v12902_v11  ;;  %v530_v11 = vld [vmem:[#allocation2 + $0x8d8] sm:$0xff] }
 0x2b6   :  { %3068 = vmatpush1.bf16.msra.mxu1 %v11353_v59  ;;  %4798 = vmatprep.subr.bf16.mxu0 %v12910_v17  ;;  %v534_v59 = vld [vmem:[#allocation2 + $0x8f8] sm:$0xff] }
 0x2b7   :  { %3069 = vmatprep.subr.bf16.mxu1 %v11362_v15  ;;  %v11457_v15 = vcombine.low %v522_v7, %v526_v8  ;;  %v11466_v16 = vcombine.high %v530_v11, %v534_v59  ;;  %v538_v17 = vld [vmem:[#allocation2 + $0x918] sm:$0xff] }
 0x2b8   :  { %v11473_v22 = vcombine.low %v538_v17, %v542_v18 }
 0x2b9   :  { %4799 = vmatpush1.bf16.msra.mxu0 %v12908_v19  ;;  %v11465_v19 = vcombine.low %v530_v11, %v534_v59  ;;  %v12881_v11 = vld [vmem:[#allocation6 + $0x8] ss:$16 sps:$4 sm:$0xff]   ;;  %v12889_v59 = vld [vmem:[#allocation6 + $0x2c] ss:$16 sps:$4 sm:$0xff]  }
 0x2ba   :  { %3070 = vmatpush1.bf16.msra.mxu1 %v11361_v20  ;;  %4800 = vmatprep.subr.bf16.mxu0 %v12916_v23  ;;  %v11474_v20 = vcombine.high %v538_v17, %v542_v18  ;;  %v554_v23 = vld [vmem:[#allocation2 + $0x998] sm:$0xff]  ;;  %v12893_v17 = vld [vmem:[#allocation6 + $0x48] ss:$16 sps:$4 sm:$0xff]   ;;  %v12901_v18 = vld [vmem:[#allocation6 + $0x6c] ss:$16 sps:$4 sm:$0xff]  }
 0x2bb   :  { %3071 = vmatprep.subr.bf16.mxu1 %v11370_v21  ;;  %v546_v21 = vld [vmem:[#allocation2 + $0x958] sm:$0xff]  ;;  %v11489_v32 = vcombine.low %v554_v23, %v558_v25 }
 0x2bd   :  { %4801 = vmatpush1.bf16.msra.mxu0 %v12914_v26 }
 0x2be   :  { %3072 = vmatpush1.bf16.msra.mxu1 %v11369_v27  ;;  %4811 = vmatprep.subr.bf16.mxu0 %v12922_v30  ;;  %v11490_v27 = vcombine.high %v554_v23, %v558_v25  ;;  %v566_v30 = vld [vmem:[#allocation2 + $0x9f8] sm:$0xff]  ;;  %v12913_v23 = vld [vmem:[#allocation6 + $0xac] ss:$16 sps:$4 sm:$0xff]  }
 0x2bf   :  { %3073 = vmatprep.subr.bf16.mxu1 %v11378_v29  ;;  %v562_v29 = vld [vmem:[#allocation2 + $0x9d8] sm:$0xff] }
 0x2c0   :  { %v11498_v33 = vcombine.high %v562_v29, %v566_v30  ;;  %v11497_v36 = vcombine.low %v562_v29, %v566_v30  ;;  %v12911_v29 = vld [vmem:[#allocation6 + $0xa8] ss:$16 sps:$4 sm:$0xff]   ;;  %v12919_v30 = vld [vmem:[#allocation6 + $0xcc] ss:$16 sps:$4 sm:$0xff]  }
 0x2c2   :  { %3074 = vmatpush1.bf16.msra.mxu1 %v11377_v34  ;;  %v570_v34 = vld [vmem:[#allocation2 + $0xa18] sm:$0xff] }
 0x2c3   :  { %3075 = vmatprep.subr.bf16.mxu1 %v11386_v48  ;;  %v574_v48 = vld [vmem:[#allocation2 + $0xa38] sm:$0xff] }
 0x2c4   :  { %v11505_v46 = vcombine.low %v570_v34, %v574_v48 }
 0x2c6   :  { %3076 = vmatpush1.bf16.msra.mxu1 %v11385_v37 }
 0x2c7   :  { %3077 = vmatprep.subr.bf16.mxu1 %v11394_v41  ;;  %v11506_v41 = vcombine.high %v570_v34, %v574_v48  ;;  %v12917_v48 = vld [vmem:[#allocation6 + $0xc8] ss:$16 sps:$4 sm:$0xff]  }
 0x2ca   :  { %3078 = vmatpush1.bf16.msra.mxu1 %v11393_v44  ;;  %v582_v44 = vld [vmem:[#allocation2 + $0xa78] sm:$0xff] }
 0x2cb   :  { %3079 = vmatprep.subr.bf16.mxu1 %v11402_v45  ;;  %v11514_v47 = vcombine.high %v578_v43, %v582_v44  ;;  %v11513_v38 = vcombine.low %v578_v43, %v582_v44  ;;  %v12925_v43 = vld [vmem:[#allocation6 + $0xec] ss:$16 sps:$4 sm:$0xff]  }
 0x2ce   :  { %3080 = vmatpush1.bf16.msra.mxu1 %v11401_v49  ;;  %v586_v49 = vld [vmem:[#allocation2 + $0xa98] sm:$0xff] }
 0x2cf   :  { %3081 = vmatprep.subr.bf16.mxu1 %v11410_v50  ;;  %v590_v50 = vld [vmem:[#allocation2 + $0xab8] sm:$0xff] }
 0x2d0   :  { %v11522_v60 = vcombine.high %v586_v49, %v590_v50  ;;  %v11521_v54 = vcombine.low %v586_v49, %v590_v50  ;;  %v12923_v49 = vld [vmem:[#allocation6 + $0xe8] ss:$16 sps:$4 sm:$0xff]  }
 0x2d2   :  { %3082 = vmatpush1.bf16.msra.mxu1 %v11409_v51  ;;  %v594_v51 = vld [vmem:[#allocation2 + $0xad8] sm:$0xff] }
 0x2d3   :  { %3083 = vmatprep.subr.bf16.mxu1 %v11418_v52  ;;  %v598_v52 = vld [vmem:[#allocation2 + $0xaf8] sm:$0xff] }
 0x2d4   :  { %v11530_v55 = vcombine.high %v594_v51, %v598_v52  ;;  %v11529_v58 = vcombine.low %v594_v51, %v598_v52  ;;  %v12928_v52 = vld [vmem:[#allocation6 + $0x424] ss:$16 sps:$4 sm:$0xff]  }
 0x2d6   :  { %3084 = vmatpush1.bf16.msra.mxu1 %v11417_v56  ;;  %v602_v56 = vld [vmem:[#allocation2 + $0xb18] sm:$0xff] }
 0x2d7   :  { %3085 = vmatprep.subr.bf16.mxu1 %v11426_v57  ;;  %v606_v57 = vld [vmem:[#allocation2 + $0xb38] sm:$0xff] }
 0x2d8   :  { %v11538_v61 = vcombine.high %v602_v56, %v606_v57  ;;  %v11537_v63 = vcombine.low %v602_v56, %v606_v57  ;;  %v12929_v56 = vld [vmem:[#allocation6 + $0x108] ss:$16 sps:$4 sm:$0xff]   ;;  %v12926_v57 = vld [vmem:[#allocation6 + $0x420] ss:$16 sps:$4 sm:$0xff]  }
 0x2da   :  { %3086 = vmatpush1.bf16.msra.mxu1 %v11425_v62  ;;  %v610_v62 = vld [vmem:[#allocation2 + $0xb58] sm:$0xff] }
 0x2db   :  { %3087 = vmatprep.subr.bf16.mxu1 %v11434_v24  ;;  %v614_v24 = vld [vmem:[#allocation2 + $0xb78] sm:$0xff] }
 0x2dc   :  { %v11546_v0 = vcombine.high %v610_v62, %v614_v24  ;;  %v11545_v3 = vcombine.low %v610_v62, %v614_v24  ;;  %v12935_v62 = vld [vmem:[#allocation6 + $0x128] ss:$16 sps:$4 sm:$0xff]   ;;  %v12932_v24 = vld [vmem:[#allocation6 + $0x440] ss:$16 sps:$4 sm:$0xff]  }
 0x2de   :  { %3088 = vmatpush1.bf16.msra.mxu1 %v11433_v1  ;;  %v618_v1 = vld [vmem:[#allocation2 + $0xb98] sm:$0xff] }
 0x2df   :  { %3098 = vmatprep.subr.bf16.mxu1 %v11442_v31  ;;  %v622_v31 = vld [vmem:[#allocation2 + $0xbb8] sm:$0xff] }
 0x2e0   :  { %v11554_v4 = vcombine.high %v618_v1, %v622_v31  ;;  %v11553_v7 = vcombine.low %v618_v1, %v622_v31  ;;  %v12941_v1 = vld [vmem:[#allocation6 + $0x148] ss:$16 sps:$4 sm:$0xff]   ;;  %v12938_v31 = vld [vmem:[#allocation6 + $0x460] ss:$16 sps:$4 sm:$0xff]  }
 0x2e1   :  { %3090 = vmatmul.mubr.bf16.vlgmr.msra.gmra.mrb[8].mxu1 %v14711_v39  ;;  %v550_v39 = vld [vmem:[#allocation2 + $0x978] sm:$0xff] }
 0x2e2   :  { %3099 = vmatpush1.bf16.msra.mxu1 %v11441_v5  ;;  %3130 = vmatprep.mubr.bf16.mxu1 %v14690_v12  ;;  %v11482_v12 = vcombine.high %v546_v21, %v550_v39  ;;  %v11481_v26 = vcombine.low %v546_v21, %v550_v39  ;;  %v626_v5 = vld [vmem:[#allocation2 + $0xbd8] sm:$0xff]  ;;  %v12907_v21 = vld [vmem:[#allocation6 + $0x8c] ss:$16 sps:$4 sm:$0xff]   ;;  %v14760_v39 = vsub.s32 2, %v14667_v28 }
 0x2e3   :  { %3100 = vmatprep.subr.bf16.mxu1 %v11450_v6  ;;  %v630_v6 = vld [vmem:[#allocation2 + $0xbf8] sm:$0xff] }
 0x2e4   :  { %v11562_v8 = vcombine.high %v626_v5, %v630_v6 }
 0x2e6   :  { %3101 = vmatpush1.bf16.msra.mxu1 %v11449_v9  ;;  %v11561_v9 = vcombine.low %v626_v5, %v630_v6  ;;  %v12947_v5 = vld [vmem:[#allocation6 + $0x168] ss:$16 sps:$4 sm:$0xff]   ;;  %v12944_v6 = vld [vmem:[#allocation6 + $0x480] ss:$16 sps:$4 sm:$0xff]  }
 0x2e7   :  { %3102 = vmatprep.subr.bf16.mxu1 %v11458_v10  ;;  %v12883_v10 = vld [vmem:[#allocation6 + $0xc] ss:$16 sps:$4 sm:$0xff]  }
 0x2ea   :  { %3103 = vmatpush1.bf16.msra.mxu1 %v11457_v15  ;;  %v12887_v15 = vld [vmem:[#allocation6 + $0x28] ss:$16 sps:$4 sm:$0xff]  }
 0x2eb   :  { %3104 = vmatprep.subr.bf16.mxu1 %v11466_v16  ;;  %v12895_v16 = vld [vmem:[#allocation6 + $0x4c] ss:$16 sps:$4 sm:$0xff]  }
 0x2ee   :  { %3105 = vmatpush1.bf16.msra.mxu1 %v11465_v19  ;;  %v12899_v19 = vld [vmem:[#allocation6 + $0x68] ss:$16 sps:$4 sm:$0xff]  }
 0x2ef   :  { %3106 = vmatprep.subr.bf16.mxu1 %v11474_v20  ;;  %v14757_v20 = vsub.s32 5, %v14667_v28 }
 0x2f2   :  { %3107 = vmatpush1.bf16.msra.mxu1 %v11473_v22 }
 0x2f3   :  { %3108 = vmatprep.subr.bf16.mxu1 %v11482_v12  ;;  %v14767_v12 = vsub.s32 3, %v14667_v28 }
 0x2f6   :  { %3109 = vmatpush1.bf16.msra.mxu1 %v11481_v26 }
 0x2f7   :  { %3110 = vmatprep.subr.bf16.mxu1 %v11490_v27 }
 0x2f9   :  { %v14750_v35 = vpop.f32.mrb[4].mxu0 }
 0x2fa   :  { %3111 = vmatpush1.bf16.msra.mxu1 %v11489_v32  ;;  %v14752_v37 = vpop.f32.mrb[5].mxu0 }
 0x2fb   :  { %3112 = vmatprep.subr.bf16.mxu1 %v11498_v33  ;;  %v3013_v42 = vpop.f32.mrb[6].mxu0 }
 0x2fc   :  { %v3014_v45 = vpop.f32.mrb[7].mxu0 }
 0x2fe   :  { %3113 = vmatpush1.bf16.msra.mxu1 %v11497_v36 }
 0x2ff   :  { %3114 = vmatprep.subr.bf16.mxu1 %v11506_v41 }
 0x302   :  { %3115 = vmatpush1.bf16.msra.mxu1 %v11505_v46 }
 0x303   :  { %3116 = vmatprep.subr.bf16.mxu1 %v11514_v47 }
 0x306   :  { %3117 = vmatpush1.bf16.msra.mxu1 %v11513_v38 }
 0x307   :  { %3118 = vmatprep.subr.bf16.mxu1 %v11522_v60  ;;  %v12920_v60 = vld [vmem:[#allocation6 + $0x400] ss:$16 sps:$4 sm:$0xff]  }
 0x30a   :  { %3119 = vmatpush1.bf16.msra.mxu1 %v11521_v54  ;;  %v12931_v54 = vld [vmem:[#allocation6 + $0x10c] ss:$16 sps:$4 sm:$0xff]  }
 0x30b   :  { %3120 = vmatprep.subr.bf16.mxu1 %v11530_v55 }
 0x30e   :  { %3121 = vmatpush1.bf16.msra.mxu1 %v11529_v58  ;;  %v12937_v58 = vld [vmem:[#allocation6 + $0x12c] ss:$16 sps:$4 sm:$0xff]  }
 0x30f   :  { %3122 = vmatprep.subr.bf16.mxu1 %v11538_v61  ;;  %v12934_v61 = vld [vmem:[#allocation6 + $0x444] ss:$16 sps:$4 sm:$0xff]  }
 0x312   :  { %3123 = vmatpush1.bf16.msra.mxu1 %v11537_v63  ;;  %v12943_v63 = vld [vmem:[#allocation6 + $0x14c] ss:$16 sps:$4 sm:$0xff]  }
 0x313   :  { %3124 = vmatprep.subr.bf16.mxu1 %v11546_v0  ;;  %v12940_v0 = vld [vmem:[#allocation6 + $0x464] ss:$16 sps:$4 sm:$0xff]  }
 0x316   :  { %3125 = vmatpush1.bf16.msra.mxu1 %v11545_v3  ;;  %v12949_v3 = vld [vmem:[#allocation6 + $0x16c] ss:$16 sps:$4 sm:$0xff]  }
 0x317   :  { %3126 = vmatprep.subr.bf16.mxu1 %v11554_v4  ;;  %v12946_v4 = vld [vmem:[#allocation6 + $0x484] ss:$16 sps:$4 sm:$0xff]  }
 0x31a   :  { %3127 = vmatpush1.bf16.msra.mxu1 %v11553_v7  ;;  %v12955_v7 = vld [vmem:[#allocation6 + $0x18c] ss:$16 sps:$4 sm:$0xff]  }
 0x31b   :  { %3128 = vmatprep.subr.bf16.mxu1 %v11562_v8  ;;  %v12952_v8 = vld [vmem:[#allocation6 + $0x4a4] ss:$16 sps:$4 sm:$0xff]  }
 0x31e   :  { %3129 = vmatpush1.bf16.msra.mxu1 %v11561_v9  ;;  %v12953_v9 = vld [vmem:[#allocation6 + $0x188] ss:$16 sps:$4 sm:$0xff]  }
 0x31f   :  { %4893 = vmatprep.subr.bf16.mxu1 %v12883_v10  ;;  %v12950_v10 = vld [vmem:[#allocation6 + $0x4a0] ss:$16 sps:$4 sm:$0xff]  }
 0x321   :  { %3131 = vmatmul.mubr.bf16.vlgmr.msra.gmra.mrb[8].mxu1 %v14704_v40  ;;  %v12905_v40 = vld [vmem:[#allocation6 + $0x88] ss:$16 sps:$4 sm:$0xff]  }
 0x322   :  { %4894 = vmatpush1.bf16.msra.mxu1 %v12881_v11  ;;  %4925 = vmatprep.mubr.bf16.mxu1 %v14740_v53  ;;  %v14762_v53 = vld [vmem:[#allocation4] sm:$0xff] }
 0x323   :  { %4895 = vmatprep.subr.bf16.mxu1 %v12889_v59  ;;  %v656_v22 = vrot.slane %v14762_v53, %v14757_v20  ;;  %v644_v25 = vrot.slane %v14762_v53, %v14760_v39  ;;  %v648_v27 = vrot.slane %v14762_v53, %v14767_v12  ;;  %v12961_v11 = vld [vmem:[#allocation6 + $0x1ac] ss:$16 sps:$4 sm:$0xff]   ;;  %v12958_v59 = vld [vmem:[#allocation6 + $0x4c4] ss:$16 sps:$4 sm:$0xff]  }
 0x325   :  { %v12645_v26 = vadd.f32 %v14752_v37, %v656_v22  ;;  %v12970_v22 = vld [vmem:[#allocation6 + $0x504] ss:$16 sps:$4 sm:$0xff]  }
 0x326   :  { %4896 = vmatpush1.bf16.msra.mxu1 %v12887_v15  ;;  %v12959_v15 = vld [vmem:[#allocation6 + $0x1a8] ss:$16 sps:$4 sm:$0xff]  }
 0x327   :  { %4897 = vmatprep.subr.bf16.mxu1 %v12895_v16  ;;  %v3152_v36 = vmul.f32 0.2, %v12645_v26  ;;  %vm3144_vm3 = vcmp.gt.f32.partialorder %v12645_v26, 0.0  ;;  %v12956_v16 = vld [vmem:[#allocation6 + $0x4c0] ss:$16 sps:$4 sm:$0xff]  }
 0x329   :  { %v3160_v50 = vsel %vm3144_vm3, %v12645_v26, %v3152_v36  ;;  %v12979_v26 = vld [vmem:[#allocation6 + $0x20c] ss:$16 sps:$4 sm:$0xff]  }
 0x32a   :  { %4898 = vmatpush1.bf16.msra.mxu1 %v12893_v17  ;;  %v14779_v55 = vpack.c.bf16 %v3160_v50, %v3160_v50  ;;  %v12967_v17 = vld [vmem:[#allocation6 + $0x1cc] ss:$16 sps:$4 sm:$0xff]  }
 0x32b   :  { %4899 = vmatprep.subr.bf16.mxu1 %v12901_v18  ;;  %v12964_v18 = vld [vmem:[#allocation6 + $0x4e4] ss:$16 sps:$4 sm:$0xff]   ;;  %v12991_v36 = vld [vmem:[#allocation6 + $0x24c] ss:$16 sps:$4 sm:$0xff]  }
 0x32e   :  { %4900 = vmatpush1.bf16.msra.mxu1 %v12899_v19  ;;  %v12965_v19 = vld [vmem:[#allocation6 + $0x1c8] ss:$16 sps:$4 sm:$0xff]  }
 0x32f   :  { %4901 = vmatprep.subr.bf16.mxu1 %v12907_v21  ;;  %v12962_v21 = vld [vmem:[#allocation6 + $0x4e0] ss:$16 sps:$4 sm:$0xff]  }
 0x332   :  { %4902 = vmatpush1.bf16.msra.mxu1 %v12905_v40  ;;  %v12973_v40 = vld [vmem:[#allocation6 + $0x1ec] ss:$16 sps:$4 sm:$0xff]  }
 0x333   :  { %4903 = vmatprep.subr.bf16.mxu1 %v12913_v23  ;;  %v12971_v23 = vld [vmem:[#allocation6 + $0x1e8] ss:$16 sps:$4 sm:$0xff]  }
 0x334   :  { %v2886_v32 = vpop.f32.mrb[4].mxu1 }
 0x335   :  { %v12642_v33 = vadd.f32 %v2886_v32, %v644_v25  ;;  %v2888_v34 = vpop.f32.mrb[5].mxu1  ;;  %v12968_v25 = vld [vmem:[#allocation6 + $0x500] ss:$16 sps:$4 sm:$0xff]   ;;  %v12985_v32 = vld [vmem:[#allocation6 + $0x22c] ss:$16 sps:$4 sm:$0xff]  }
 0x336   :  { %v12643_v41 = vadd.f32 %v2888_v34, %v648_v27  ;;  %v2890_v42 = vpop.f32.mrb[6].mxu1  ;;  %4904 = vmatpush1.bf16.msra.mxu1 %v12911_v29  ;;  %v12976_v27 = vld [vmem:[#allocation6 + $0x524] ss:$16 sps:$4 sm:$0xff]   ;;  %v12977_v29 = vld [vmem:[#allocation6 + $0x208] ss:$16 sps:$4 sm:$0xff]  }
 0x337   :  { %vm3141_vm2 = vcmp.gt.f32.partialorder %v12642_v33, 0.0  ;;  %v3149_v44 = vmul.f32 0.2, %v12642_v33  ;;  %v2891_v45 = vpop.f32.mrb[7].mxu1  ;;  %4905 = vmatprep.subr.bf16.mxu1 %v12919_v30  ;;  %v12974_v30 = vld [vmem:[#allocation6 + $0x520] ss:$16 sps:$4 sm:$0xff]  }
 0x338   :  { %vm3142_vm4 = vcmp.gt.f32.partialorder %v12643_v41, 0.0  ;;  %v3150_v37 = vmul.f32 0.2, %v12643_v41  ;;  %v12983_v34 = vld [vmem:[#allocation6 + $0x228] ss:$16 sps:$4 sm:$0xff]  }
 0x339   :  { %v3157_v46 = vsel %vm3141_vm2, %v12642_v33, %v3149_v44  ;;  %v12982_v33 = vld [vmem:[#allocation6 + $0x544] ss:$16 sps:$4 sm:$0xff]   ;;  %v12989_v42 = vld [vmem:[#allocation6 + $0x248] ss:$16 sps:$4 sm:$0xff]   ;;  %v12997_v44 = vld [vmem:[#allocation6 + $0x26c] ss:$16 sps:$4 sm:$0xff]  }
 0x33a   :  { %4906 = vmatpush1.bf16.msra.mxu1 %v12917_v48  ;;  %v3158_v47 = vsel %vm3142_vm4, %v12643_v41, %v3150_v37  ;;  %v14776_v51 = vpack.c.bf16 %v3157_v46, %v3157_v46  ;;  %v12980_v48 = vld [vmem:[#allocation6 + $0x540] ss:$16 sps:$4 sm:$0xff]   ;;  %v12988_v41 = vld [vmem:[#allocation6 + $0x564] ss:$16 sps:$4 sm:$0xff]   ;;  %v12995_v37 = vld [vmem:[#allocation6 + $0x268] ss:$16 sps:$4 sm:$0xff]  }
 0x33b   :  { %v14774_v38 = vpack.c.bf16 %v3158_v47, %v3158_v47  ;;  %4907 = vmatprep.subr.bf16.mxu1 %v12925_v43  ;;  %v12986_v43 = vld [vmem:[#allocation6 + $0x560] ss:$16 sps:$4 sm:$0xff]   ;;  %v12994_v45 = vld [vmem:[#allocation6 + $0x584] ss:$16 sps:$4 sm:$0xff]   ;;  %v13003_v47 = vld [vmem:[#allocation6 + $0x28c] ss:$16 sps:$4 sm:$0xff]  }
 0x33c   :  { %v12992_v46 = vld [vmem:[#allocation6 + $0x580] ss:$16 sps:$4 sm:$0xff]  }
 0x33d   :  { %4802 = vmatprep.mubr.bf16.mxu0 %v14774_v38 }
 0x33e   :  { %4803 = vmatmul.mubr.bf16.vlgmr.msra.gmra.mrb[8].mxu0 %v14776_v51  ;;  %4908 = vmatpush1.bf16.msra.mxu1 %v12923_v49  ;;  %v13000_v49 = vld [vmem:[#allocation6 + $0x5a4] ss:$16 sps:$4 sm:$0xff]  }
 0x33f   :  { %4812 = vmatpush1.bf16.msra.mxu0 %v12920_v60  ;;  %4843 = vmatprep.mubr.bf16.mxu0 %v14779_v55  ;;  %v12998_v60 = vld [vmem:[#allocation6 + $0x5a0] ss:$16 sps:$4 sm:$0xff]  }
 0x340   :  { %4813 = vmatprep.subr.bf16.mxu0 %v12928_v52  ;;  %4909 = vmatprep.subr.bf16.mxu1 %v12931_v54  ;;  %v13009_v52 = vld [vmem:[#allocation6 + $0x2ac] ss:$16 sps:$4 sm:$0xff]   ;;  %v13006_v54 = vld [vmem:[#allocation6 + $0x5c4] ss:$16 sps:$4 sm:$0xff]  }
 0x342   :  { %4910 = vmatpush1.bf16.msra.mxu1 %v12929_v56 }
 0x343   :  { %4814 = vmatpush1.bf16.msra.mxu0 %v12926_v57  ;;  %4911 = vmatprep.subr.bf16.mxu1 %v12937_v58  ;;  %v13007_v57 = vld [vmem:[#allocation6 + $0x2a8] ss:$16 sps:$4 sm:$0xff]   ;;  %v13004_v58 = vld [vmem:[#allocation6 + $0x5c0] ss:$16 sps:$4 sm:$0xff]  }
 0x344   :  { %4815 = vmatprep.subr.bf16.mxu0 %v12934_v61  ;;  %v13015_v61 = vld [vmem:[#allocation6 + $0x2cc] ss:$16 sps:$4 sm:$0xff]  }
 0x346   :  { %4912 = vmatpush1.bf16.msra.mxu1 %v12935_v62  ;;  %v13012_v62 = vld [vmem:[#allocation6 + $0x5e4] ss:$16 sps:$4 sm:$0xff]  }
 0x347   :  { %4816 = vmatpush1.bf16.msra.mxu0 %v12932_v24  ;;  %4913 = vmatprep.subr.bf16.mxu1 %v12943_v63  ;;  %v13013_v63 = vld [vmem:[#allocation6 + $0x2c8] ss:$16 sps:$4 sm:$0xff]  }
 0x348   :  { %4817 = vmatprep.subr.bf16.mxu0 %v12940_v0  ;;  %v13010_v0 = vld [vmem:[#allocation6 + $0x5e0] ss:$16 sps:$4 sm:$0xff]  }
 0x34a   :  { %4914 = vmatpush1.bf16.msra.mxu1 %v12941_v1  ;;  %v13018_v1 = vld [vmem:[#allocation6 + $0x2ec] ss:$16 sps:$4 sm:$0xff]  }
 0x34b   :  { %4818 = vmatpush1.bf16.msra.mxu0 %v12938_v31  ;;  %4915 = vmatprep.subr.bf16.mxu1 %v12949_v3  ;;  %v13069_v31 = vld [vmem:[#allocation6 + $0x604] ss:$16 sps:$4 sm:$0xff]  }
 0x34c   :  { %4819 = vmatprep.subr.bf16.mxu0 %v12946_v4  ;;  %v13021_v4 = vld [vmem:[#allocation6 + $0x30c] ss:$16 sps:$4 sm:$0xff]  }
 0x34e   :  { %4916 = vmatpush1.bf16.msra.mxu1 %v12947_v5  ;;  %v13067_v5 = vld [vmem:[#allocation6 + $0x600] ss:$16 sps:$4 sm:$0xff]  }
 0x34f   :  { %4820 = vmatpush1.bf16.msra.mxu0 %v12944_v6  ;;  %4917 = vmatprep.subr.bf16.mxu1 %v12955_v7  ;;  %v13075_v7 = vld [vmem:[#allocation6 + $0x624] ss:$16 sps:$4 sm:$0xff]  }
 0x350   :  { %4821 = vmatprep.subr.bf16.mxu0 %v12952_v8  ;;  %v13019_v8 = vld [vmem:[#allocation6 + $0x308] ss:$16 sps:$4 sm:$0xff]  }
 0x352   :  { %4918 = vmatpush1.bf16.msra.mxu1 %v12953_v9  ;;  %v13024_v9 = vld [vmem:[#allocation6 + $0x32c] ss:$16 sps:$4 sm:$0xff]  }
 0x353   :  { %4822 = vmatpush1.bf16.msra.mxu0 %v12950_v10  ;;  %4919 = vmatprep.subr.bf16.mxu1 %v12961_v11  ;;  %v13073_v10 = vld [vmem:[#allocation6 + $0x620] ss:$16 sps:$4 sm:$0xff]   ;;  %v13081_v11 = vld [vmem:[#allocation6 + $0x644] ss:$16 sps:$4 sm:$0xff]  }
 0x354   :  { %4823 = vmatprep.subr.bf16.mxu0 %v12958_v59  ;;  %v13022_v59 = vld [vmem:[#allocation6 + $0x328] ss:$16 sps:$4 sm:$0xff]  }
 0x356   :  { %4920 = vmatpush1.bf16.msra.mxu1 %v12959_v15  ;;  %v13027_v15 = vld [vmem:[#allocation6 + $0x34c] ss:$16 sps:$4 sm:$0xff]  }
 0x357   :  { %4824 = vmatpush1.bf16.msra.mxu0 %v12956_v16  ;;  %4921 = vmatprep.subr.bf16.mxu1 %v12967_v17  ;;  %v13079_v16 = vld [vmem:[#allocation6 + $0x640] ss:$16 sps:$4 sm:$0xff]   ;;  %v13087_v17 = vld [vmem:[#allocation6 + $0x664] ss:$16 sps:$4 sm:$0xff]  }
 0x358   :  { %4825 = vmatprep.subr.bf16.mxu0 %v12964_v18  ;;  %v13025_v18 = vld [vmem:[#allocation6 + $0x348] ss:$16 sps:$4 sm:$0xff]  }
 0x35a   :  { %4922 = vmatpush1.bf16.msra.mxu1 %v12965_v19  ;;  %v13030_v19 = vld [vmem:[#allocation6 + $0x36c] ss:$16 sps:$4 sm:$0xff]  }
 0x35b   :  { %4826 = vmatpush1.bf16.msra.mxu0 %v12962_v21  ;;  %4923 = vmatprep.subr.bf16.mxu1 %v12973_v40  ;;  %v13085_v21 = vld [vmem:[#allocation6 + $0x660] ss:$16 sps:$4 sm:$0xff]   ;;  %v13093_v40 = vld [vmem:[#allocation6 + $0x684] ss:$16 sps:$4 sm:$0xff]  }
 0x35c   :  { %4827 = vmatprep.subr.bf16.mxu0 %v12970_v22  ;;  %v13028_v22 = vld [vmem:[#allocation6 + $0x368] ss:$16 sps:$4 sm:$0xff]  }
 0x35e   :  { %4924 = vmatpush1.bf16.msra.mxu1 %v12971_v23  ;;  %v13033_v23 = vld [vmem:[#allocation6 + $0x38c] ss:$16 sps:$4 sm:$0xff]  }
 0x35f   :  { %4828 = vmatpush1.bf16.msra.mxu0 %v12968_v25  ;;  %4934 = vmatprep.subr.bf16.mxu1 %v12979_v26  ;;  %v13091_v25 = vld [vmem:[#allocation6 + $0x680] ss:$16 sps:$4 sm:$0xff]   ;;  %v13099_v26 = vld [vmem:[#allocation6 + $0x6a4] ss:$16 sps:$4 sm:$0xff]  }
 0x360   :  { %4829 = vmatprep.subr.bf16.mxu0 %v12976_v27  ;;  %v13031_v27 = vld [vmem:[#allocation6 + $0x388] ss:$16 sps:$4 sm:$0xff]  }
 0x361   :  { %4926 = vmatmul.mubr.bf16.vlgmr.msra.gmra.mrb[12].mxu1 %v14742_v2  ;;  %v14786_v2 = vsub.s32 4, %v14667_v28 }
 0x362   :  { %4935 = vmatpush1.bf16.msra.mxu1 %v12977_v29  ;;  %4966 = vmatprep.mubr.bf16.mxu1 %v14774_v38  ;;  %v13001_v38 = vld [vmem:[#allocation6 + $0x288] ss:$16 sps:$4 sm:$0xff]   ;;  %v13036_v29 = vld [vmem:[#allocation6 + $0x3ac] ss:$16 sps:$4 sm:$0xff]  }
 0x363   :  { %4830 = vmatpush1.bf16.msra.mxu0 %v12974_v30  ;;  %4936 = vmatprep.subr.bf16.mxu1 %v12985_v32  ;;  %v652_v50 = vrot.slane %v14762_v53, %v14786_v2  ;;  %v13097_v30 = vld [vmem:[#allocation6 + $0x6a0] ss:$16 sps:$4 sm:$0xff]   ;;  %v13105_v32 = vld [vmem:[#allocation6 + $0x6c4] ss:$16 sps:$4 sm:$0xff]  }
 0x364   :  { %4831 = vmatprep.subr.bf16.mxu0 %v12982_v33  ;;  %v13034_v33 = vld [vmem:[#allocation6 + $0x3a8] ss:$16 sps:$4 sm:$0xff]  }
 0x365   :  { %v12644_v56 = vadd.f32 %v14750_v35, %v652_v50  ;;  %v13016_v35 = vld [vmem:[#allocation6 + $0x2e8] ss:$16 sps:$4 sm:$0xff]   ;;  %v13048_v50 = vld [vmem:[#allocation6 + $0x42c] ss:$16 sps:$4 sm:$0xff]  }
 0x366   :  { %4937 = vmatpush1.bf16.msra.mxu1 %v12983_v34  ;;  %v13039_v34 = vld [vmem:[#allocation6 + $0x3cc] ss:$16 sps:$4 sm:$0xff]  }
 0x367   :  { %4832 = vmatpush1.bf16.msra.mxu0 %v12980_v48  ;;  %4938 = vmatprep.subr.bf16.mxu1 %v12991_v36  ;;  %v3151_v24 = vmul.f32 0.2, %v12644_v56  ;;  %vm3143_vm5 = vcmp.gt.f32.partialorder %v12644_v56, 0.0  ;;  %v13103_v48 = vld [vmem:[#allocation6 + $0x6c0] ss:$16 sps:$4 sm:$0xff]  }
 0x368   :  { %4833 = vmatprep.subr.bf16.mxu0 %v12988_v41  ;;  %v13111_v36 = vld [vmem:[#allocation6 + $0x6e4] ss:$16 sps:$4 sm:$0xff]   ;;  %v13037_v41 = vld [vmem:[#allocation6 + $0x3c8] ss:$16 sps:$4 sm:$0xff]  }
 0x369   :  { %v3159_v3 = vsel %vm3143_vm5, %v12644_v56, %v3151_v24  ;;  %v13127_v56 = vld [vmem:[#allocation6 + $0x740] ss:$16 sps:$4 sm:$0xff]   ;;  %v13141_v24 = vld [vmem:[#allocation6 + $0x784] ss:$16 sps:$4 sm:$0xff]  }
 0x36a   :  { %4939 = vmatpush1.bf16.msra.mxu1 %v12989_v42  ;;  %v14791_v6 = vpack.c.bf16 %v3159_v3, %v3159_v3  ;;  %v13042_v42 = vld [vmem:[#allocation6 + $0x3ec] ss:$16 sps:$4 sm:$0xff]   ;;  %v13145_v3 = vld [vmem:[#allocation6 + $0x7a0] ss:$16 sps:$4 sm:$0xff]  }
 0x36b   :  { %4834 = vmatpush1.bf16.msra.mxu0 %v12986_v43  ;;  %4940 = vmatprep.subr.bf16.mxu1 %v12997_v44  ;;  %v13109_v43 = vld [vmem:[#allocation6 + $0x6e0] ss:$16 sps:$4 sm:$0xff]   ;;  %v13117_v44 = vld [vmem:[#allocation6 + $0x704] ss:$16 sps:$4 sm:$0xff]  }
 0x36c   :  { %4835 = vmatprep.subr.bf16.mxu0 %v12994_v45  ;;  %v13040_v45 = vld [vmem:[#allocation6 + $0x3e8] ss:$16 sps:$4 sm:$0xff]  }
 0x36e   :  { %4941 = vmatpush1.bf16.msra.mxu1 %v12995_v37  ;;  %v13045_v37 = vld [vmem:[#allocation6 + $0x40c] ss:$16 sps:$4 sm:$0xff]  }
 0x36f   :  { %4836 = vmatpush1.bf16.msra.mxu0 %v12992_v46  ;;  %4942 = vmatprep.subr.bf16.mxu1 %v13003_v47  ;;  %v13115_v46 = vld [vmem:[#allocation6 + $0x700] ss:$16 sps:$4 sm:$0xff]   ;;  %v13123_v47 = vld [vmem:[#allocation6 + $0x724] ss:$16 sps:$4 sm:$0xff]  }
 0x370   :  { %4837 = vmatprep.subr.bf16.mxu0 %v13000_v49  ;;  %v13043_v49 = vld [vmem:[#allocation6 + $0x408] ss:$16 sps:$4 sm:$0xff]  }
 0x372   :  { %4943 = vmatpush1.bf16.msra.mxu1 %v13001_v38  ;;  %v13121_v38 = vld [vmem:[#allocation6 + $0x720] ss:$16 sps:$4 sm:$0xff]  }
 0x373   :  { %4838 = vmatpush1.bf16.msra.mxu0 %v12998_v60  ;;  %4944 = vmatprep.subr.bf16.mxu1 %v13009_v52  ;;  %v13129_v60 = vld [vmem:[#allocation6 + $0x744] ss:$16 sps:$4 sm:$0xff]   ;;  %v13046_v52 = vld [vmem:[#allocation6 + $0x428] ss:$16 sps:$4 sm:$0xff]  }
 0x374   :  { %4839 = vmatprep.subr.bf16.mxu0 %v13006_v54  ;;  %v13051_v54 = vld [vmem:[#allocation6 + $0x44c] ss:$16 sps:$4 sm:$0xff]  }
 0x376   :  { %4945 = vmatpush1.bf16.msra.mxu1 %v13007_v57  ;;  %v13135_v57 = vld [vmem:[#allocation6 + $0x764] ss:$16 sps:$4 sm:$0xff]  }
 0x377   :  { %4840 = vmatpush1.bf16.msra.mxu0 %v13004_v58  ;;  %4946 = vmatprep.subr.bf16.mxu1 %v13015_v61  ;;  %v13049_v58 = vld [vmem:[#allocation6 + $0x448] ss:$16 sps:$4 sm:$0xff]   ;;  %v13054_v61 = vld [vmem:[#allocation6 + $0x46c] ss:$16 sps:$4 sm:$0xff]  }
 0x378   :  { %4841 = vmatprep.subr.bf16.mxu0 %v13012_v62  ;;  %v13133_v62 = vld [vmem:[#allocation6 + $0x760] ss:$16 sps:$4 sm:$0xff]  }
 0x37a   :  { %4947 = vmatpush1.bf16.msra.mxu1 %v13013_v63  ;;  %v13057_v63 = vld [vmem:[#allocation6 + $0x48c] ss:$16 sps:$4 sm:$0xff]  }
 0x37b   :  { %4842 = vmatpush1.bf16.msra.mxu0 %v13010_v0  ;;  %4948 = vmatprep.subr.bf16.mxu1 %v13018_v1  ;;  %v13147_v0 = vld [vmem:[#allocation6 + $0x7a4] ss:$16 sps:$4 sm:$0xff]   ;;  %v13055_v1 = vld [vmem:[#allocation6 + $0x488] ss:$16 sps:$4 sm:$0xff]  }
 0x37c   :  { %4852 = vmatprep.subr.bf16.mxu0 %v13069_v31  ;;  %v13060_v31 = vld [vmem:[#allocation6 + $0x4ac] ss:$16 sps:$4 sm:$0xff]  }
 0x37e   :  { %4844 = vmatmul.mubr.bf16.vlgmr.msra.gmra.mrb[8].mxu0 %v14791_v6  ;;  %4949 = vmatpush1.bf16.msra.mxu1 %v13016_v35  ;;  %v13153_v35 = vld [vmem:[#allocation6 + $0x7c4] ss:$16 sps:$4 sm:$0xff]  }
 0x37f   :  { %4950 = vmatprep.subr.bf16.mxu1 %v13021_v4  ;;  %4853 = vmatpush1.bf16.msra.mxu0 %v13067_v5  ;;  %v13058_v4 = vld [vmem:[#allocation6 + $0x4a8] ss:$16 sps:$4 sm:$0xff]   ;;  %v13063_v5 = vld [vmem:[#allocation6 + $0x4cc] ss:$16 sps:$4 sm:$0xff]  }
 0x380   :  { %4854 = vmatprep.subr.bf16.mxu0 %v13075_v7  ;;  %v13151_v7 = vld [vmem:[#allocation6 + $0x7c0] ss:$16 sps:$4 sm:$0xff]  }
 0x382   :  { %4951 = vmatpush1.bf16.msra.mxu1 %v13019_v8  ;;  %v13159_v8 = vld [vmem:[#allocation6 + $0x7e4] ss:$16 sps:$4 sm:$0xff]  }
 0x383   :  { %4952 = vmatprep.subr.bf16.mxu1 %v13024_v9  ;;  %4855 = vmatpush1.bf16.msra.mxu0 %v13073_v10  ;;  %v13061_v9 = vld [vmem:[#allocation6 + $0x4c8] ss:$16 sps:$4 sm:$0xff]   ;;  %v13066_v10 = vld [vmem:[#allocation6 + $0x4ec] ss:$16 sps:$4 sm:$0xff]  }
 0x384   :  { %4856 = vmatprep.subr.bf16.mxu0 %v13081_v11  ;;  %v13157_v11 = vld [vmem:[#allocation6 + $0x7e0] ss:$16 sps:$4 sm:$0xff]  }
 0x386   :  { %4953 = vmatpush1.bf16.msra.mxu1 %v13022_v59  ;;  %v13189_v59 = vld [vmem:[#allocation9 + $0x4] ss:$8 sps:$4 sm:$0xff]  }
 0x387   :  { %4954 = vmatprep.subr.bf16.mxu1 %v13027_v15  ;;  %4857 = vmatpush1.bf16.msra.mxu0 %v13079_v16  ;;  %v13064_v15 = vld [vmem:[#allocation6 + $0x4e8] ss:$16 sps:$4 sm:$0xff]   ;;  %v13072_v16 = vld [vmem:[#allocation6 + $0x50c] ss:$16 sps:$4 sm:$0xff]  }
 0x388   :  { %4858 = vmatprep.subr.bf16.mxu0 %v13087_v17  ;;  %v13070_v17 = vld [vmem:[#allocation6 + $0x508] ss:$16 sps:$4 sm:$0xff]  }
 0x38a   :  { %4955 = vmatpush1.bf16.msra.mxu1 %v13025_v18  ;;  %v13078_v18 = vld [vmem:[#allocation6 + $0x52c] ss:$16 sps:$4 sm:$0xff]  }
 0x38b   :  { %4956 = vmatprep.subr.bf16.mxu1 %v13030_v19  ;;  %4859 = vmatpush1.bf16.msra.mxu0 %v13085_v21  ;;  %v13076_v19 = vld [vmem:[#allocation6 + $0x528] ss:$16 sps:$4 sm:$0xff]   ;;  %v13084_v21 = vld [vmem:[#allocation6 + $0x54c] ss:$16 sps:$4 sm:$0xff]  }
 0x38c   :  { %4860 = vmatprep.subr.bf16.mxu0 %v13093_v40  ;;  %v13082_v40 = vld [vmem:[#allocation6 + $0x548] ss:$16 sps:$4 sm:$0xff]  }
 0x38e   :  { %4957 = vmatpush1.bf16.msra.mxu1 %v13028_v22  ;;  %v13090_v22 = vld [vmem:[#allocation6 + $0x56c] ss:$16 sps:$4 sm:$0xff]  }
 0x38f   :  { %4958 = vmatprep.subr.bf16.mxu1 %v13033_v23  ;;  %4861 = vmatpush1.bf16.msra.mxu0 %v13091_v25  ;;  %v13088_v23 = vld [vmem:[#allocation6 + $0x568] ss:$16 sps:$4 sm:$0xff]   ;;  %v13096_v25 = vld [vmem:[#allocation6 + $0x58c] ss:$16 sps:$4 sm:$0xff]  }
 0x390   :  { %4862 = vmatprep.subr.bf16.mxu0 %v13099_v26  ;;  %v13094_v26 = vld [vmem:[#allocation6 + $0x588] ss:$16 sps:$4 sm:$0xff]  }
 0x392   :  { %4959 = vmatpush1.bf16.msra.mxu1 %v13031_v27  ;;  %v13102_v27 = vld [vmem:[#allocation6 + $0x5ac] ss:$16 sps:$4 sm:$0xff]  }
 0x393   :  { %4960 = vmatprep.subr.bf16.mxu1 %v13036_v29  ;;  %4863 = vmatpush1.bf16.msra.mxu0 %v13097_v30  ;;  %v13100_v29 = vld [vmem:[#allocation6 + $0x5a8] ss:$16 sps:$4 sm:$0xff]   ;;  %v13108_v30 = vld [vmem:[#allocation6 + $0x5cc] ss:$16 sps:$4 sm:$0xff]  }
 0x394   :  { %4864 = vmatprep.subr.bf16.mxu0 %v13105_v32  ;;  %v13106_v32 = vld [vmem:[#allocation6 + $0x5c8] ss:$16 sps:$4 sm:$0xff]  }
 0x396   :  { %4961 = vmatpush1.bf16.msra.mxu1 %v13034_v33  ;;  %v13114_v33 = vld [vmem:[#allocation6 + $0x5ec] ss:$16 sps:$4 sm:$0xff]  }
 0x397   :  { %4962 = vmatprep.subr.bf16.mxu1 %v13039_v34  ;;  %4865 = vmatpush1.bf16.msra.mxu0 %v13103_v48  ;;  %v13112_v34 = vld [vmem:[#allocation6 + $0x5e8] ss:$16 sps:$4 sm:$0xff]   ;;  %v13120_v48 = vld [vmem:[#allocation6 + $0x60c] ss:$16 sps:$4 sm:$0xff]  }
 0x398   :  { %4866 = vmatprep.subr.bf16.mxu0 %v13111_v36  ;;  %v13118_v36 = vld [vmem:[#allocation6 + $0x608] ss:$16 sps:$4 sm:$0xff]  }
 0x39a   :  { %4963 = vmatpush1.bf16.msra.mxu1 %v13037_v41  ;;  %v13126_v41 = vld [vmem:[#allocation6 + $0x62c] ss:$16 sps:$4 sm:$0xff]  }
 0x39b   :  { %4964 = vmatprep.subr.bf16.mxu1 %v13042_v42  ;;  %4867 = vmatpush1.bf16.msra.mxu0 %v13109_v43  ;;  %v13124_v42 = vld [vmem:[#allocation6 + $0x628] ss:$16 sps:$4 sm:$0xff]   ;;  %v13132_v43 = vld [vmem:[#allocation6 + $0x64c] ss:$16 sps:$4 sm:$0xff]  }
 0x39c   :  { %4868 = vmatprep.subr.bf16.mxu0 %v13117_v44  ;;  %v13130_v44 = vld [vmem:[#allocation6 + $0x648] ss:$16 sps:$4 sm:$0xff]  }
 0x39e   :  { %4965 = vmatpush1.bf16.msra.mxu1 %v13040_v45  ;;  %v13138_v45 = vld [vmem:[#allocation6 + $0x66c] ss:$16 sps:$4 sm:$0xff]  }
 0x39f   :  { %4975 = vmatprep.subr.bf16.mxu1 %v13045_v37  ;;  %4869 = vmatpush1.bf16.msra.mxu0 %v13115_v46  ;;  %v13136_v37 = vld [vmem:[#allocation6 + $0x668] ss:$16 sps:$4 sm:$0xff]   ;;  %v13144_v46 = vld [vmem:[#allocation6 + $0x68c] ss:$16 sps:$4 sm:$0xff]  }
 0x3a0   :  { %4870 = vmatprep.subr.bf16.mxu0 %v13123_v47  ;;  %v659_v47 = vsub.s32 6, %v14667_v28 }
 0x3a1   :  { %4967 = vmatmul.mubr.bf16.vlgmr.msra.gmra.mrb[12].mxu1 %v14776_v51  ;;  %v13052_v51 = vld [vmem:[#allocation6 + $0x468] ss:$16 sps:$4 sm:$0xff]  }
 0x3a2   :  { %4976 = vmatpush1.bf16.msra.mxu1 %v13043_v49  ;;  %5007 = vmatprep.mubr.bf16.mxu1 %v14779_v55  ;;  %v13139_v55 = vld [vmem:[#allocation6 + $0x780] ss:$16 sps:$4 sm:$0xff]   ;;  %v13142_v49 = vld [vmem:[#allocation6 + $0x688] ss:$16 sps:$4 sm:$0xff]  }
 0x3a3   :  { %4977 = vmatprep.subr.bf16.mxu1 %v13048_v50  ;;  %4871 = vmatpush1.bf16.msra.mxu0 %v13121_v38  ;;  %v663_v50 = vsub.s32 7, %v14667_v28  ;;  %v660_v38 = vrot.slane %v14762_v53, %v659_v47 }
 0x3a4   :  { %4872 = vmatprep.subr.bf16.mxu0 %v13129_v60 }
 0x3a5   :  { %v664_v60 = vrot.slane %v14762_v53, %v663_v50 }
 0x3a6   :  { %4978 = vmatpush1.bf16.msra.mxu1 %v13046_v52  ;;  %v13148_v52 = vld [vmem:[#allocation6 + $0x6a8] ss:$16 sps:$4 sm:$0xff]  }
 0x3a7   :  { %4979 = vmatprep.subr.bf16.mxu1 %v13051_v54  ;;  %4873 = vmatpush1.bf16.msra.mxu0 %v13127_v56  ;;  %v13156_v54 = vld [vmem:[#allocation6 + $0x6cc] ss:$16 sps:$4 sm:$0xff]  }
 0x3a8   :  { %4874 = vmatprep.subr.bf16.mxu0 %v13135_v57 }
 0x3aa   :  { %4980 = vmatpush1.bf16.msra.mxu1 %v13049_v58 }
 0x3ab   :  { %4981 = vmatprep.subr.bf16.mxu1 %v13054_v61  ;;  %4875 = vmatpush1.bf16.msra.mxu0 %v13133_v62 }
 0x3ac   :  { %4876 = vmatprep.subr.bf16.mxu0 %v13141_v24  ;;  %v13154_v24 = vld [vmem:[#allocation6 + $0x6c8] ss:$16 sps:$4 sm:$0xff]  }
 0x3ae   :  { %4982 = vmatpush1.bf16.msra.mxu1 %v13052_v51 }
 0x3af   :  { %4983 = vmatprep.subr.bf16.mxu1 %v13057_v63  ;;  %4877 = vmatpush1.bf16.msra.mxu0 %v13139_v55  ;;  %v13162_v55 = vld [vmem:[#allocation6 + $0x6ec] ss:$16 sps:$4 sm:$0xff]  }
 0x3b0   :  { %4878 = vmatprep.subr.bf16.mxu0 %v13147_v0 }
 0x3b2   :  { %4984 = vmatpush1.bf16.msra.mxu1 %v13055_v1 }
 0x3b3   :  { %4985 = vmatprep.subr.bf16.mxu1 %v13060_v31  ;;  %4879 = vmatpush1.bf16.msra.mxu0 %v13145_v3  ;;  %v13160_v31 = vld [vmem:[#allocation6 + $0x6e8] ss:$16 sps:$4 sm:$0xff]  }
 0x3b4   :  { %4880 = vmatprep.subr.bf16.mxu0 %v13153_v35  ;;  %v13165_v35 = vld [vmem:[#allocation6 + $0x70c] ss:$16 sps:$4 sm:$0xff]  }
 0x3b6   :  { %4986 = vmatpush1.bf16.msra.mxu1 %v13058_v4  ;;  %v13187_v4 = vld [vmem:[#allocation9] ss:$8 sps:$4 sm:$0xff]  }
 0x3b7   :  { %4987 = vmatprep.subr.bf16.mxu1 %v13063_v5  ;;  %4881 = vmatpush1.bf16.msra.mxu0 %v13151_v7  ;;  %v13192_v7 = vld [vmem:[#allocation9 + $0x14] ss:$8 sps:$4 sm:$0xff]  }
 0x3b8   :  { %4882 = vmatprep.subr.bf16.mxu0 %v13159_v8  ;;  %v13163_v8 = vld [vmem:[#allocation6 + $0x708] ss:$16 sps:$4 sm:$0xff]  }
 0x3ba   :  { %4988 = vmatpush1.bf16.msra.mxu1 %v13061_v9  ;;  %v13168_v9 = vld [vmem:[#allocation6 + $0x72c] ss:$16 sps:$4 sm:$0xff]  }
 0x3bb   :  { %4989 = vmatprep.subr.bf16.mxu1 %v13066_v10  ;;  %4883 = vmatpush1.bf16.msra.mxu0 %v13157_v11  ;;  %v13190_v10 = vld [vmem:[#allocation9 + $0x10] ss:$8 sps:$4 sm:$0xff]   ;;  %v13195_v11 = vld [vmem:[#allocation9 + $0x24] ss:$8 sps:$4 sm:$0xff]  }
 0x3bc   :  { %5469 = vmatprep.subr.bf16.mxu0 %v13189_v59  ;;  %v13166_v59 = vld [vmem:[#allocation6 + $0x728] ss:$16 sps:$4 sm:$0xff]  }
 0x3be   :  { %4990 = vmatpush1.bf16.msra.mxu1 %v13064_v15  ;;  %v13171_v15 = vld [vmem:[#allocation6 + $0x74c] ss:$16 sps:$4 sm:$0xff]  }
 0x3bf   :  { %4991 = vmatprep.subr.bf16.mxu1 %v13072_v16  ;;  %v13193_v16 = vld [vmem:[#allocation9 + $0x20] ss:$8 sps:$4 sm:$0xff]  }
 0x3c2   :  { %4992 = vmatpush1.bf16.msra.mxu1 %v13070_v17  ;;  %v13198_v17 = vld [vmem:[#allocation9 + $0x34] ss:$8 sps:$4 sm:$0xff]  }
 0x3c3   :  { %4993 = vmatprep.subr.bf16.mxu1 %v13078_v18  ;;  %v13169_v18 = vld [vmem:[#allocation6 + $0x748] ss:$16 sps:$4 sm:$0xff]  }
 0x3c6   :  { %4994 = vmatpush1.bf16.msra.mxu1 %v13076_v19  ;;  %v13174_v19 = vld [vmem:[#allocation6 + $0x76c] ss:$16 sps:$4 sm:$0xff]  }
 0x3c7   :  { %4995 = vmatprep.subr.bf16.mxu1 %v13084_v21  ;;  %v13196_v21 = vld [vmem:[#allocation9 + $0x30] ss:$8 sps:$4 sm:$0xff]  }
 0x3ca   :  { %4996 = vmatpush1.bf16.msra.mxu1 %v13082_v40  ;;  %v13201_v40 = vld [vmem:[#allocation9 + $0x44] ss:$8 sps:$4 sm:$0xff]  }
 0x3cb   :  { %4997 = vmatprep.subr.bf16.mxu1 %v13090_v22  ;;  %v13172_v22 = vld [vmem:[#allocation6 + $0x768] ss:$16 sps:$4 sm:$0xff]  }
 0x3ce   :  { %4998 = vmatpush1.bf16.msra.mxu1 %v13088_v23  ;;  %v13177_v23 = vld [vmem:[#allocation6 + $0x78c] ss:$16 sps:$4 sm:$0xff]  }
 0x3cf   :  { %4999 = vmatprep.subr.bf16.mxu1 %v13096_v25  ;;  %v13199_v25 = vld [vmem:[#allocation9 + $0x40] ss:$8 sps:$4 sm:$0xff]  }
 0x3d2   :  { %5000 = vmatpush1.bf16.msra.mxu1 %v13094_v26  ;;  %v13204_v26 = vld [vmem:[#allocation9 + $0x54] ss:$8 sps:$4 sm:$0xff]  }
 0x3d3   :  { %5001 = vmatprep.subr.bf16.mxu1 %v13102_v27  ;;  %v13175_v27 = vld [vmem:[#allocation6 + $0x788] ss:$16 sps:$4 sm:$0xff]  }
 0x3d6   :  { %5002 = vmatpush1.bf16.msra.mxu1 %v13100_v29  ;;  %v13180_v29 = vld [vmem:[#allocation6 + $0x7ac] ss:$16 sps:$4 sm:$0xff]  }
 0x3d7   :  { %5003 = vmatprep.subr.bf16.mxu1 %v13108_v30  ;;  %v13202_v30 = vld [vmem:[#allocation9 + $0x50] ss:$8 sps:$4 sm:$0xff]  }
 0x3da   :  { %5004 = vmatpush1.bf16.msra.mxu1 %v13106_v32  ;;  %v13207_v32 = vld [vmem:[#allocation9 + $0x64] ss:$8 sps:$4 sm:$0xff]  }
 0x3db   :  { %5005 = vmatprep.subr.bf16.mxu1 %v13114_v33  ;;  %v13178_v33 = vld [vmem:[#allocation6 + $0x7a8] ss:$16 sps:$4 sm:$0xff]  }
 0x3de   :  { %5006 = vmatpush1.bf16.msra.mxu1 %v13112_v34  ;;  %v13183_v34 = vld [vmem:[#allocation6 + $0x7cc] ss:$16 sps:$4 sm:$0xff]  }
 0x3df   :  { %5016 = vmatprep.subr.bf16.mxu1 %v13120_v48  ;;  %v13205_v48 = vld [vmem:[#allocation9 + $0x60] ss:$8 sps:$4 sm:$0xff]  }
 0x3e1   :  { %5008 = vmatmul.mubr.bf16.vlgmr.msra.gmra.mrb[12].mxu1 %v14791_v6  ;;  %v13150_v6 = vld [vmem:[#allocation6 + $0x6ac] ss:$16 sps:$4 sm:$0xff]  }
 0x3e2   :  { %5017 = vmatpush1.bf16.msra.mxu1 %v13118_v36  ;;  %v13210_v36 = vld [vmem:[#allocation9 + $0x74] ss:$8 sps:$4 sm:$0xff]  }
 0x3e3   :  { %5018 = vmatprep.subr.bf16.mxu1 %v13126_v41  ;;  %v13181_v41 = vld [vmem:[#allocation6 + $0x7c8] ss:$16 sps:$4 sm:$0xff]  }
 0x3e6   :  { %5019 = vmatpush1.bf16.msra.mxu1 %v13124_v42  ;;  %v13186_v42 = vld [vmem:[#allocation6 + $0x7ec] ss:$16 sps:$4 sm:$0xff]  }
 0x3e7   :  { %5020 = vmatprep.subr.bf16.mxu1 %v13132_v43  ;;  %v13208_v43 = vld [vmem:[#allocation9 + $0x70] ss:$8 sps:$4 sm:$0xff]  }
 0x3ea   :  { %5021 = vmatpush1.bf16.msra.mxu1 %v13130_v44  ;;  %v13213_v44 = vld [vmem:[#allocation9 + $0x84] ss:$8 sps:$4 sm:$0xff]  }
 0x3eb   :  { %5022 = vmatprep.subr.bf16.mxu1 %v13138_v45  ;;  %v13184_v45 = vld [vmem:[#allocation6 + $0x7e8] ss:$16 sps:$4 sm:$0xff]  }
 0x3ee   :  { %5023 = vmatpush1.bf16.msra.mxu1 %v13136_v37  ;;  %v13211_v37 = vld [vmem:[#allocation9 + $0x80] ss:$8 sps:$4 sm:$0xff]  }
 0x3ef   :  { %5024 = vmatprep.subr.bf16.mxu1 %v13144_v46  ;;  %v13216_v46 = vld [vmem:[#allocation9 + $0x94] ss:$8 sps:$4 sm:$0xff]  }
 0x3f2   :  { %5025 = vmatpush1.bf16.msra.mxu1 %v13142_v49  ;;  %v13214_v49 = vld [vmem:[#allocation9 + $0x90] ss:$8 sps:$4 sm:$0xff]  }
 0x3f3   :  { %5026 = vmatprep.subr.bf16.mxu1 %v13150_v6  ;;  %v13219_v6 = vld [vmem:[#allocation9 + $0xa4] ss:$8 sps:$4 sm:$0xff]  }
 0x3f4   :  { %v3132_v56 = vpop.f32.mrb[8].mxu1 }
 0x3f5   :  { %v12646_v57 = vadd.f32 %v3132_v56, %v660_v38  ;;  %v3134_v58 = vpop.f32.mrb[9].mxu1  ;;  %v13217_v38 = vld [vmem:[#allocation9 + $0xa0] ss:$8 sps:$4 sm:$0xff]  }
 0x3f6   :  { %v12647_v61 = vadd.f32 %v3134_v58, %v664_v60  ;;  %v3136_v62 = vpop.f32.mrb[10].mxu1  ;;  %5027 = vmatpush1.bf16.msra.mxu1 %v13148_v52  ;;  %v13222_v60 = vld [vmem:[#allocation9 + $0xb4] ss:$8 sps:$4 sm:$0xff]   ;;  %v13220_v52 = vld [vmem:[#allocation9 + $0xb0] ss:$8 sps:$4 sm:$0xff]  }
 0x3f7   :  { %vm3145_vm6 = vcmp.gt.f32.partialorder %v12646_v57, 0.0  ;;  %v3153_v51 = vmul.f32 0.2, %v12646_v57  ;;  %v3137_v63 = vpop.f32.mrb[11].mxu1  ;;  %5028 = vmatprep.subr.bf16.mxu1 %v13156_v54  ;;  %v13225_v54 = vld [vmem:[#allocation9 + $0xc4] ss:$8 sps:$4 sm:$0xff]  }
 0x3f8   :  { %vm3146_vm7 = vcmp.gt.f32.partialorder %v12647_v61, 0.0  ;;  %v3154_v0 = vmul.f32 0.2, %v12647_v61  ;;  %v13223_v56 = vld [vmem:[#allocation9 + $0xc0] ss:$8 sps:$4 sm:$0xff]  }
 0x3f9   :  { %v3161_v1 = vsel %vm3145_vm6, %v12646_v57, %v3153_v51  ;;  %v13228_v57 = vld [vmem:[#allocation9 + $0xd4] ss:$8 sps:$4 sm:$0xff]   ;;  %v13226_v58 = vld [vmem:[#allocation9 + $0xd0] ss:$8 sps:$4 sm:$0xff]   ;;  %v13229_v62 = vld [vmem:[#allocation9 + $0xe0] ss:$8 sps:$4 sm:$0xff]  }
 0x3fa   :  { %5029 = vmatpush1.bf16.msra.mxu1 %v13154_v24  ;;  %v3162_v53 = vsel %vm3146_vm7, %v12647_v61, %v3154_v0  ;;  %v14805_v5 = vpack.c.bf16 %v3161_v1, %v3161_v1  ;;  %v13231_v61 = vld [vmem:[#allocation9 + $0xe4] ss:$8 sps:$4 sm:$0xff]   ;;  %v13234_v24 = vld [vmem:[#allocation9 + $0xf4] ss:$8 sps:$4 sm:$0xff]   ;;  %v13232_v51 = vld [vmem:[#allocation9 + $0xf0] ss:$8 sps:$4 sm:$0xff]  }
 0x3fb   :  { %v3170_v3 = vpack.c.bf16 %v3162_v53, %v3162_v53  ;;  %5030 = vmatprep.subr.bf16.mxu1 %v13162_v55  ;;  %v13237_v63 = vld [vmem:[#allocation9 + $0x104] ss:$8 sps:$4 sm:$0xff]   ;;  %v14809_v55 = vld [vmem:[#allocation7] sm:$0xf] }
 0x3fc   :  { %v3432_v0 = vrot.slane %v14809_v55, %v14731_v13  ;;  %v3436_v1 = vrot.slane %v14809_v55, %v14734_v14 }
 0x3fd   :  { %4884 = vmatprep.mubr.bf16.mxu0 %v3170_v3  ;;  %5048 = vmatprep.mubr.bf16.mxu1 %v3170_v3 }
 0x3fe   :  { %4885 = vmatmul.mubr.bf16.vlgmr.msra.gmra.mrb[8].mxu0 %v14805_v5  ;;  %5031 = vmatpush1.bf16.msra.mxu1 %v13160_v31 }
 0x3ff   :  { %5032 = vmatprep.subr.bf16.mxu1 %v13165_v35  ;;  %5470 = vmatpush1.bf16.msra.mxu0 %v13187_v4 }
 0x400   :  { %5471 = vmatprep.subr.bf16.mxu0 %v13192_v7 }
 0x402   :  { %5033 = vmatpush1.bf16.msra.mxu1 %v13163_v8 }
 0x403   :  { %5034 = vmatprep.subr.bf16.mxu1 %v13168_v9  ;;  %5472 = vmatpush1.bf16.msra.mxu0 %v13190_v10 }
 0x404   :  { %5473 = vmatprep.subr.bf16.mxu0 %v13195_v11 }
 0x406   :  { %5035 = vmatpush1.bf16.msra.mxu1 %v13166_v59  ;;  %v13235_v59 = vld [vmem:[#allocation9 + $0x100] ss:$8 sps:$4 sm:$0xff]  }
 0x407   :  { %5036 = vmatprep.subr.bf16.mxu1 %v13171_v15  ;;  %5474 = vmatpush1.bf16.msra.mxu0 %v13193_v16  ;;  %v13240_v16 = vld [vmem:[#allocation9 + $0x114] ss:$8 sps:$4 sm:$0xff]  }
 0x408   :  { %5475 = vmatprep.subr.bf16.mxu0 %v13198_v17  ;;  %v13238_v17 = vld [vmem:[#allocation9 + $0x110] ss:$8 sps:$4 sm:$0xff]  }
 0x40a   :  { %5037 = vmatpush1.bf16.msra.mxu1 %v13169_v18  ;;  %v13243_v18 = vld [vmem:[#allocation9 + $0x124] ss:$8 sps:$4 sm:$0xff]  }
 0x40b   :  { %5038 = vmatprep.subr.bf16.mxu1 %v13174_v19  ;;  %5476 = vmatpush1.bf16.msra.mxu0 %v13196_v21  ;;  %v13241_v19 = vld [vmem:[#allocation9 + $0x120] ss:$8 sps:$4 sm:$0xff]   ;;  %v13246_v21 = vld [vmem:[#allocation9 + $0x134] ss:$8 sps:$4 sm:$0xff]  }
 0x40c   :  { %5477 = vmatprep.subr.bf16.mxu0 %v13201_v40  ;;  %v13244_v40 = vld [vmem:[#allocation9 + $0x130] ss:$8 sps:$4 sm:$0xff]  }
 0x40e   :  { %5039 = vmatpush1.bf16.msra.mxu1 %v13172_v22  ;;  %v13249_v22 = vld [vmem:[#allocation9 + $0x144] ss:$8 sps:$4 sm:$0xff]  }
 0x40f   :  { %5040 = vmatprep.subr.bf16.mxu1 %v13177_v23  ;;  %5478 = vmatpush1.bf16.msra.mxu0 %v13199_v25  ;;  %v13247_v23 = vld [vmem:[#allocation9 + $0x140] ss:$8 sps:$4 sm:$0xff]   ;;  %v13252_v25 = vld [vmem:[#allocation9 + $0x154] ss:$8 sps:$4 sm:$0xff]  }
 0x410   :  { %5479 = vmatprep.subr.bf16.mxu0 %v13204_v26  ;;  %v13250_v26 = vld [vmem:[#allocation9 + $0x150] ss:$8 sps:$4 sm:$0xff]  }
 0x412   :  { %5041 = vmatpush1.bf16.msra.mxu1 %v13175_v27  ;;  %v13255_v27 = vld [vmem:[#allocation9 + $0x164] ss:$8 sps:$4 sm:$0xff]  }
 0x413   :  { %5042 = vmatprep.subr.bf16.mxu1 %v13180_v29  ;;  %5480 = vmatpush1.bf16.msra.mxu0 %v13202_v30  ;;  %v13253_v29 = vld [vmem:[#allocation9 + $0x160] ss:$8 sps:$4 sm:$0xff]   ;;  %v13258_v30 = vld [vmem:[#allocation9 + $0x174] ss:$8 sps:$4 sm:$0xff]  }
 0x414   :  { %5481 = vmatprep.subr.bf16.mxu0 %v13207_v32  ;;  %v3444_v32 = vrot.slane %v14809_v55, %v14767_v12 }
 0x416   :  { %5043 = vmatpush1.bf16.msra.mxu1 %v13178_v33 }
 0x417   :  { %5044 = vmatprep.subr.bf16.mxu1 %v13183_v34  ;;  %5482 = vmatpush1.bf16.msra.mxu0 %v13205_v48  ;;  %v13256_v34 = vld [vmem:[#allocation9 + $0x170] ss:$8 sps:$4 sm:$0xff]  }
 0x418   :  { %5483 = vmatprep.subr.bf16.mxu0 %v13210_v36  ;;  %v13261_v36 = vld [vmem:[#allocation9 + $0x184] ss:$8 sps:$4 sm:$0xff]  }
 0x41a   :  { %5045 = vmatpush1.bf16.msra.mxu1 %v13181_v41 }
 0x41b   :  { %5046 = vmatprep.subr.bf16.mxu1 %v13186_v42  ;;  %5484 = vmatpush1.bf16.msra.mxu0 %v13208_v43 }
 0x41c   :  { %5485 = vmatprep.subr.bf16.mxu0 %v13213_v44 }
 0x41e   :  { %5047 = vmatpush1.bf16.msra.mxu1 %v13184_v45  ;;  %v13259_v45 = vld [vmem:[#allocation9 + $0x180] ss:$8 sps:$4 sm:$0xff]  }
 0x41f   :  { %5486 = vmatpush1.bf16.msra.mxu0 %v13211_v37  ;;  %v13264_v37 = vld [vmem:[#allocation9 + $0x194] ss:$8 sps:$4 sm:$0xff]  }
 0x420   :  { %5487 = vmatprep.subr.bf16.mxu0 %v13216_v46 }
 0x421   :  { %5049 = vmatmul.mubr.bf16.vlgmr.msra.gmra.mrb[12].mxu1 %v14805_v5 }
 0x423   :  { %5488 = vmatpush1.bf16.msra.mxu0 %v13214_v49 }
 0x424   :  { %5489 = vmatprep.subr.bf16.mxu0 %v13219_v6  ;;  %v13262_v6 = vld [vmem:[#allocation9 + $0x190] ss:$8 sps:$4 sm:$0xff]  }
 0x427   :  { %5490 = vmatpush1.bf16.msra.mxu0 %v13217_v38  ;;  %v13267_v38 = vld [vmem:[#allocation9 + $0x1a4] ss:$8 sps:$4 sm:$0xff]  }
 0x428   :  { %5491 = vmatprep.subr.bf16.mxu0 %v13222_v60  ;;  %v13265_v60 = vld [vmem:[#allocation9 + $0x1a0] ss:$8 sps:$4 sm:$0xff]  }
 0x42b   :  { %5492 = vmatpush1.bf16.msra.mxu0 %v13220_v52  ;;  %v13270_v52 = vld [vmem:[#allocation9 + $0x1b4] ss:$8 sps:$4 sm:$0xff]  }
 0x42c   :  { %5493 = vmatprep.subr.bf16.mxu0 %v13225_v54  ;;  %v13268_v54 = vld [vmem:[#allocation9 + $0x1b0] ss:$8 sps:$4 sm:$0xff]  }
 0x42f   :  { %5494 = vmatpush1.bf16.msra.mxu0 %v13223_v56  ;;  %v13273_v56 = vld [vmem:[#allocation9 + $0x1c4] ss:$8 sps:$4 sm:$0xff]  }
 0x430   :  { %5495 = vmatprep.subr.bf16.mxu0 %v13228_v57  ;;  %v13271_v57 = vld [vmem:[#allocation9 + $0x1c0] ss:$8 sps:$4 sm:$0xff]  }
 0x433   :  { %5496 = vmatpush1.bf16.msra.mxu0 %v13226_v58  ;;  %v13276_v58 = vld [vmem:[#allocation9 + $0x1d4] ss:$8 sps:$4 sm:$0xff]  }
 0x434   :  { %5497 = vmatprep.subr.bf16.mxu0 %v13231_v61  ;;  %v3440_v61 = vrot.slane %v14809_v55, %v14760_v39  ;;  %v13284_v55 = vld [vmem:[%s15028_s7] sm:$0xff]  }
 0x437   :  { %5498 = vmatpush1.bf16.msra.mxu0 %v13229_v62  ;;  %v13274_v62 = vld [vmem:[#allocation9 + $0x1d0] ss:$8 sps:$4 sm:$0xff]  }
 0x438   :  { %5499 = vmatprep.subr.bf16.mxu0 %v13234_v24  ;;  %v13279_v24 = vld [vmem:[#allocation9 + $0x1e4] ss:$8 sps:$4 sm:$0xff]  }
 0x43b   :  { %5500 = vmatpush1.bf16.msra.mxu0 %v13232_v51 }
 0x43c   :  { %5510 = vmatprep.subr.bf16.mxu0 %v13237_v63  ;;  %v13277_v63 = vld [vmem:[#allocation9 + $0x1e0] ss:$8 sps:$4 sm:$0xff]  }
 0x4d1   :  { %v4886_v53 = vpop.f32.mrb[8].mxu0 }
 0x4d2   :  { %v12648_v31 = vadd.f32 %v4886_v53, %v3432_v0  ;;  %v4888_v3 = vpop.f32.mrb[9].mxu0  ;;  %v13282_v0 = vld [vmem:[#allocation9 + $0x1f4] ss:$8 sps:$4 sm:$0xff]   ;;  %v13280_v53 = vld [vmem:[#allocation9 + $0x1f0] ss:$8 sps:$4 sm:$0xff]  }
 0x4d3   :  { %v12649_v35 = vadd.f32 %v4888_v3, %v3436_v1  ;;  %v4890_v4 = vpop.f32.mrb[10].mxu0 }
 0x4d4   :  { %vm5057_vm8 = vcmp.gt.f32.partialorder %v12648_v31, 0.0  ;;  %v5061_v5 = vmul.f32 0.2, %v12648_v31  ;;  %v4891_v7 = vpop.f32.mrb[11].mxu0  ;;  %v13285_v4 = vld [vmem:[%s15028_s7 + $0x48] sm:$0xff]  }
 0x4d5   :  { %vm5058_vm9 = vcmp.gt.f32.partialorder %v12649_v35, 0.0  ;;  %v5062_v8 = vmul.f32 0.2, %v12649_v35  ;;  %v13287_v7 = vld [vmem:[%s15028_s7 + $0x50] sm:$0xff]  }
 0x4d6   :  { %v5065_v9 = vsel %vm5057_vm8, %v12648_v31, %v5061_v5  ;;  %v13283_v31 = vld [vmem:[%s15028_s7 + $0x40] sm:$0xff]   ;;  %v13286_v5 = vld [vmem:[%s15028_s7 + $0x8] sm:$0xff]  }
 0x4d7   :  { %v5066_v10 = vsel %vm5058_vm9, %v12649_v35, %v5062_v8  ;;  %v5069_v15 = vpack.c.bf16 %v5065_v9, %v5065_v9  ;;  %v13288_v8 = vld [vmem:[%s15028_s7 + $0x10] sm:$0xff]   ;;  %v13289_v9 = vld [vmem:[%s15028_s7 + $0x58] sm:$0xff]  }
 0x4d8   :  { %v5070_v11 = vpack.c.bf16 %v5066_v10, %v5066_v10  ;;  %v13290_v10 = vld [vmem:[%s15028_s7 + $0x18] sm:$0xff]  }
 0x4da   :  { %5501 = vmatprep.mubr.bf16.mxu0 %v5070_v11  ;;  %v13291_v11 = vld [vmem:[%s15028_s7 + $0x60] sm:$0xff]  }
 0x4db   :  { %5502 = vmatmul.mubr.bf16.vlgmr.msra.gmra.mrb[12].mxu0 %v5069_v15  ;;  %v13293_v15 = vld [vmem:[%s15028_s7 + $0x68] sm:$0xff]  }
 0x4dc   :  { %5511 = vmatpush1.bf16.msra.mxu0 %v13235_v59  ;;  %v13292_v59 = vld [vmem:[%s15028_s7 + $0x20] sm:$0xff]  }
 0x4dd   :  { %5512 = vmatprep.subr.bf16.mxu0 %v13240_v16  ;;  %v13294_v16 = vld [vmem:[%s15028_s7 + $0x28] sm:$0xff]  }
 0x4e0   :  { %5513 = vmatpush1.bf16.msra.mxu0 %v13238_v17  ;;  %v13295_v17 = vld [vmem:[%s15028_s7 + $0x70] sm:$0xff]  }
 0x4e1   :  { %5514 = vmatprep.subr.bf16.mxu0 %v13243_v18  ;;  %v13296_v18 = vld [vmem:[%s15028_s7 + $0x30] sm:$0xff]  }
 0x4e4   :  { %5515 = vmatpush1.bf16.msra.mxu0 %v13241_v19  ;;  %v13297_v19 = vld [vmem:[%s15028_s7 + $0x78] sm:$0xff]  }
 0x4e5   :  { %5516 = vmatprep.subr.bf16.mxu0 %v13246_v21  ;;  %v13298_v21 = vld [vmem:[%s15028_s7 + $0x38] sm:$0xff]  }
 0x4e8   :  { %5517 = vmatpush1.bf16.msra.mxu0 %v13244_v40  ;;  %v13299_v40 = vld [vmem:[#allocation13] ss:$8 sps:$4 sm:$0xff]  }
 0x4e9   :  { %5518 = vmatprep.subr.bf16.mxu0 %v13249_v22  ;;  %v13301_v22 = vld [vmem:[#allocation13 + $0x4] ss:$8 sps:$4 sm:$0xff]  }
 0x4ea   :  { %5777 = vmatprep.subr.bf16.mxu1 %v13301_v22  ;;  %v13349_v22 = vld [vmem:[#allocation16 + $0x1c4] ss:$16 sps:$4 sm:$0xff]  }
 0x4eb   :  { %5778 = vmatpush1.bf16.msra.mxu1 %v13299_v40  ;;  %v13344_v40 = vld [vmem:[#allocation16 + $0x1a0] ss:$16 sps:$4 sm:$0xff]  }
 0x4ec   :  { %5519 = vmatpush1.bf16.msra.mxu0 %v13247_v23  ;;  %v5137_v23 = vld [vmem:[#allocation10] sm:$0x3] }
 0x4ed   :  { %5520 = vmatprep.subr.bf16.mxu0 %v13252_v25  ;;  %v5142_v25 = vrot.slane %v5137_v23, %v14731_v13 }
 0x4f0   :  { %5521 = vmatpush1.bf16.msra.mxu0 %v13250_v26  ;;  %v5146_v26 = vrot.slane %v5137_v23, %v14734_v14  ;;  %v13347_v23 = vld [vmem:[#allocation16 + $0x1c0] ss:$16 sps:$4 sm:$0xff]  }
 0x4f1   :  { %5522 = vmatprep.subr.bf16.mxu0 %v13255_v27 }
 0x4f4   :  { %5523 = vmatpush1.bf16.msra.mxu0 %v13253_v29  ;;  %v5050_v33 = vpop.f32.mrb[12].mxu1 }
 0x4f5   :  { %v5052_v48 = vpop.f32.mrb[13].mxu1  ;;  %5524 = vmatprep.subr.bf16.mxu0 %v13258_v30  ;;  %v12650_v51 = vadd.f32 %v5050_v33, %v3440_v61 }
 0x4f6   :  { %v12651_v41 = vadd.f32 %v5052_v48, %v3444_v32  ;;  %v5054_v42 = vpop.f32.mrb[14].mxu1 }
 0x4f7   :  { %v5055_v43 = vpop.f32.mrb[15].mxu1  ;;  %v5063_v1 = vmul.f32 0.2, %v12650_v51  ;;  %vm5059_vm11 = vcmp.gt.f32.partialorder %v12650_v51, 0.0 }
 0x4f8   :  { %vm5060_vm10 = vcmp.gt.f32.partialorder %v12651_v41, 0.0  ;;  %v5064_v44 = vmul.f32 0.2, %v12651_v41  ;;  %5525 = vmatpush1.bf16.msra.mxu0 %v13256_v34 }
 0x4f9   :  { %5526 = vmatprep.subr.bf16.mxu0 %v13261_v36  ;;  %v5067_v3 = vsel %vm5059_vm11, %v12650_v51, %v5063_v1  ;;  %v13313_v51 = vld [vmem:[#allocation16 + $0x44] ss:$16 sps:$4 sm:$0xff]   ;;  %v13314_v1 = vld [vmem:[#allocation16 + $0x60] ss:$16 sps:$4 sm:$0xff]  }
 0x4fa   :  { %v5068_v46 = vsel %vm5060_vm10, %v12651_v41, %v5064_v44  ;;  %v5071_v35 = vpack.c.bf16 %v5067_v3, %v5067_v3  ;;  %v13322_v3 = vld [vmem:[#allocation16 + $0xa4] ss:$16 sps:$4 sm:$0xff]  }
 0x4fb   :  { %v5072_v49 = vpack.c.bf16 %v5068_v46, %v5068_v46  ;;  %v14372_v46 = vmov 0  }
 0x4fc   :  { %5527 = vmatpush1.bf16.msra.mxu0 %v13259_v45  ;;  %v13304_v45 = vld [vmem:[#allocation13 + $0x14] ss:$8 sps:$4 sm:$0xff]   ;;  %5809 = vmatprep.mubr.bf16.mxu1 %v14372_v46  ;;  %v6354_v46 = vld [vmem:[#allocation19 + $0xe0] sm:$0xff] }
 0x4fd   :  { %5542 = vmatprep.mubr.bf16.mxu0 %v5072_v49  ;;  %5528 = vmatprep.subr.bf16.mxu0 %v13264_v37  ;;  %v13302_v37 = vld [vmem:[#allocation13 + $0x10] ss:$8 sps:$4 sm:$0xff]  }
 0x4fe   :  { %5779 = vmatprep.subr.bf16.mxu1 %v13304_v45  ;;  %v13307_v49 = vld [vmem:[#allocation16 + $0x4] ss:$16 sps:$4 sm:$0xff]  }
 0x4ff   :  { %5780 = vmatpush1.bf16.msra.mxu1 %v13302_v37  ;;  %v6350_v37 = vld [vmem:[#allocation19 + $0xc0] sm:$0xff] }
 0x500   :  { %5529 = vmatpush1.bf16.msra.mxu0 %v13262_v6  ;;  %6228 = vmatprep.subr.bf16.mxu1 %v13307_v49  ;;  %v11994_v49 = vcombine.high %v6350_v37, %v6354_v46 }
 0x501   :  { %5530 = vmatprep.subr.bf16.mxu0 %v13267_v38  ;;  %v11883_v38 = vld [vmem:[#allocation12] ss:$0 sm:$0xff] }
 0x504   :  { %5531 = vmatpush1.bf16.msra.mxu0 %v13265_v60 }
 0x505   :  { %5532 = vmatprep.subr.bf16.mxu0 %v13270_v52 }
 0x508   :  { %5533 = vmatpush1.bf16.msra.mxu0 %v13268_v54 }
 0x509   :  { %5534 = vmatprep.subr.bf16.mxu0 %v13273_v56 }
 0x50c   :  { %5535 = vmatpush1.bf16.msra.mxu0 %v13271_v57 }
 0x50d   :  { %5536 = vmatprep.subr.bf16.mxu0 %v13276_v58  ;;  %v13305_v58 = vld [vmem:[#allocation16] ss:$16 sps:$4 sm:$0xff]  }
 0x510   :  { %5537 = vmatpush1.bf16.msra.mxu0 %v13274_v62  ;;  %v13310_v62 = vld [vmem:[#allocation16 + $0x24] ss:$16 sps:$4 sm:$0xff]  }
 0x511   :  { %5538 = vmatprep.subr.bf16.mxu0 %v13279_v24  ;;  %v13308_v24 = vld [vmem:[#allocation16 + $0x20] ss:$16 sps:$4 sm:$0xff]  }
 0x514   :  { %5539 = vmatpush1.bf16.msra.mxu0 %v13277_v63  ;;  %v13311_v63 = vld [vmem:[#allocation16 + $0x40] ss:$16 sps:$4 sm:$0xff]  }
 0x515   :  { %5540 = vmatprep.subr.bf16.mxu0 %v13282_v0  ;;  %v13316_v0 = vld [vmem:[#allocation16 + $0x64] ss:$16 sps:$4 sm:$0xff]  }
 0x518   :  { %5541 = vmatpush1.bf16.msra.mxu0 %v13280_v53  ;;  %v13319_v53 = vld [vmem:[#allocation16 + $0x84] ss:$16 sps:$4 sm:$0xff]  }
 0x519   :  { %12616 = vmatprep.subr.bf16.mxu0 %v13283_v31  ;;  %v13317_v31 = vld [vmem:[#allocation16 + $0x80] ss:$16 sps:$4 sm:$0xff]  }
 0x51b   :  { %5543 = vmatmul.mubr.bf16.vlgmr.msra.gmra.mrb[12].mxu0 %v5071_v35  ;;  %v13325_v35 = vld [vmem:[#allocation16 + $0xc4] ss:$16 sps:$4 sm:$0xff]  }
 0x51c   :  { %12617 = vmatpush3.bf16.msra.mxu0 %v13284_v55  ;;  %v13320_v55 = vld [vmem:[#allocation16 + $0xa0] ss:$16 sps:$4 sm:$0xff]  }
 0x51d   :  { %12618 = vmatprep.subr.bf16.mxu0 %v13285_v4  ;;  %v13323_v4 = vld [vmem:[#allocation16 + $0xc0] ss:$16 sps:$4 sm:$0xff]  }
 0x520   :  { %12619 = vmatpush3.bf16.msra.mxu0 %v13286_v5  ;;  %v13328_v5 = vld [vmem:[#allocation16 + $0xe4] ss:$16 sps:$4 sm:$0xff]  }
 0x521   :  { %12620 = vmatprep.subr.bf16.mxu0 %v13287_v7  ;;  %v13326_v7 = vld [vmem:[#allocation16 + $0xe0] ss:$16 sps:$4 sm:$0xff]  }
 0x524   :  { %12621 = vmatpush3.bf16.msra.mxu0 %v13288_v8  ;;  %v13331_v8 = vld [vmem:[#allocation16 + $0x104] ss:$16 sps:$4 sm:$0xff]  }
 0x525   :  { %12622 = vmatprep.subr.bf16.mxu0 %v13289_v9  ;;  %v13329_v9 = vld [vmem:[#allocation16 + $0x100] ss:$16 sps:$4 sm:$0xff]  }
 0x528   :  { %12623 = vmatpush3.bf16.msra.mxu0 %v13290_v10  ;;  %v13334_v10 = vld [vmem:[#allocation16 + $0x124] ss:$16 sps:$4 sm:$0xff]  }
 0x529   :  { %12624 = vmatprep.subr.bf16.mxu0 %v13291_v11  ;;  %v13332_v11 = vld [vmem:[#allocation16 + $0x120] ss:$16 sps:$4 sm:$0xff]  }
 0x52c   :  { %12625 = vmatpush3.bf16.msra.mxu0 %v13292_v59  ;;  %v13337_v59 = vld [vmem:[#allocation16 + $0x144] ss:$16 sps:$4 sm:$0xff]  }
 0x52d   :  { %12626 = vmatprep.subr.bf16.mxu0 %v13293_v15  ;;  %v13335_v15 = vld [vmem:[#allocation16 + $0x140] ss:$16 sps:$4 sm:$0xff]  }
 0x530   :  { %12627 = vmatpush3.bf16.msra.mxu0 %v13294_v16  ;;  %v13340_v16 = vld [vmem:[#allocation16 + $0x164] ss:$16 sps:$4 sm:$0xff]  }
 0x531   :  { %12628 = vmatprep.subr.bf16.mxu0 %v13295_v17  ;;  %v13338_v17 = vld [vmem:[#allocation16 + $0x160] ss:$16 sps:$4 sm:$0xff]  }
 0x534   :  { %12629 = vmatpush3.bf16.msra.mxu0 %v13296_v18  ;;  %v13343_v18 = vld [vmem:[#allocation16 + $0x184] ss:$16 sps:$4 sm:$0xff]  }
 0x535   :  { %12630 = vmatprep.subr.bf16.mxu0 %v13297_v19  ;;  %v13341_v19 = vld [vmem:[#allocation16 + $0x180] ss:$16 sps:$4 sm:$0xff]  }
 0x538   :  { %12631 = vmatpush3.bf16.msra.mxu0 %v13298_v21  ;;  %v13346_v21 = vld [vmem:[#allocation16 + $0x1a4] ss:$16 sps:$4 sm:$0xff]  }
 0x5ee   :  { %v5544_v27 = vpop.f32.mrb[12].mxu0 }
 0x5ef   :  { %v12652_v29 = vadd.f32 %v5544_v27, %v5142_v25  ;;  %v5546_v30 = vpop.f32.mrb[13].mxu0  ;;  %v13352_v25 = vld [vmem:[#allocation16 + $0x1e4] ss:$16 sps:$4 sm:$0xff]   ;;  %v13355_v27 = vld [vmem:[#allocation16 + $0xc] ss:$16 sps:$4 sm:$0xff]  }
 0x5f0   :  { %v12653_v32 = vadd.f32 %v5546_v30, %v5146_v26  ;;  %v5548_v33 = vpop.f32.mrb[14].mxu0  ;;  %v13350_v26 = vld [vmem:[#allocation16 + $0x1e0] ss:$16 sps:$4 sm:$0xff]   ;;  %v6330_v30 = vld [vmem:[#allocation19 + $0x20] sm:$0xff] }
 0x5f1   :  { %vm5551_vm12 = vcmp.gt.f32.partialorder %v12652_v29, 0.0  ;;  %v5553_v34 = vmul.f32 0.2, %v12652_v29  ;;  %v5549_v48 = vpop.f32.mrb[15].mxu0 }
 0x5f2   :  { %vm5552_vm13 = vcmp.gt.f32.partialorder %v12653_v32, 0.0  ;;  %v5554_v36 = vmul.f32 0.2, %v12653_v32  ;;  %v6338_v48 = vld [vmem:[#allocation19 + $0x60] sm:$0xff] }
 0x5f3   :  { %v5555_v41 = vsel %vm5551_vm12, %v12652_v29, %v5553_v34  ;;  %v6326_v29 = vld [vmem:[#allocation19] sm:$0xff] }
 0x5f4   :  { %v5556_v42 = vsel %vm5552_vm13, %v12653_v32, %v5554_v36  ;;  %v5557_v44 = vpack.c.bf16 %v5555_v41, %v5555_v41  ;;  %v11969_v32 = vcombine.low %v6326_v29, %v6330_v30  ;;  %v11970_v33 = vcombine.high %v6326_v29, %v6330_v30  ;;  %v6334_v34 = vld [vmem:[#allocation19 + $0x40] sm:$0xff] }
 0x5f5   :  { %v5558_v43 = vpack.c.bf16 %v5556_v42, %v5556_v42  ;;  %v11978_v36 = vcombine.high %v6334_v34, %v6338_v48  ;;  %v11977_v41 = vcombine.low %v6334_v34, %v6338_v48  ;;  %v6342_v42 = vld [vmem:[#allocation19 + $0x80] sm:$0xff] }
 0x5f6   :  { %7904 = vmatprep.subr.bf16.mxu0 %v11970_v33 }
 0x5f7   :  { %5726 = vmatprep.mubr.bf16.mxu0 %v5558_v43  ;;  %v6346_v43 = vld [vmem:[#allocation19 + $0xa0] sm:$0xff] }
 0x5f8   :  { %5727 = vmatmul.mubr.bf16.vlgmr.msra.gmra.mrb[16].mxu0 %v5557_v44  ;;  %v11986_v44 = vcombine.high %v6342_v42, %v6346_v43  ;;  %v11985_v45 = vcombine.low %v6342_v42, %v6346_v43 }
 0x5f9   :  { %7905 = vmatpush1.bf16.msra.mxu0 %v11969_v32 }
 0x5fa   :  { %7906 = vmatprep.subr.bf16.mxu0 %v11978_v36 }
 0x5fd   :  { %7907 = vmatpush1.bf16.msra.mxu0 %v11977_v41 }
 0x5fe   :  { %7908 = vmatprep.subr.bf16.mxu0 %v11986_v44 }
 0x601   :  { %7909 = vmatpush1.bf16.msra.mxu0 %v11985_v45 }
 0x602   :  { %7910 = vmatprep.subr.bf16.mxu0 %v11994_v49 }
 0x6cb   :  { %v12632_v6 = vpop.f32.mrb[16].mxu0 }
 0x6cc   :  { %v12633_v60 = vpop.f32.mrb[17].mxu0 }
 0x6cd   :  { %v12634_v52 = vadd.f32 %v12633_v60, %v12632_v6  ;;  %v12635_v54 = vpop.f32.mrb[18].mxu0  ;;  %v11993_v6 = vcombine.low %v6350_v37, %v6354_v46  ;;  %v6362_v60 = vld [vmem:[#allocation19 + $0x120] sm:$0xff] }
 0x6ce   :  { %v12636_v56 = vpop.f32.mrb[19].mxu0  ;;  %v13353_v46 = vld [vmem:[#allocation16 + $0x8] ss:$16 sps:$4 sm:$0xff]  }
 0x6cf   :  { %v5729_v57 = vadd.f32 %v12634_v52, %v11883_v38  ;;  %v6358_v38 = vld [vmem:[#allocation19 + $0x100] sm:$0xff]  ;;  %7911 = vmatpush1.bf16.msra.mxu0 %v11993_v6  ;;  %v13358_v6 = vld [vmem:[#allocation16 + $0x2c] ss:$16 sps:$4 sm:$0xff]  }
 0x6d0   :  { %v12002_v52 = vcombine.high %v6358_v38, %v6362_v60  ;;  %v12001_v54 = vcombine.low %v6358_v38, %v6362_v60  ;;  %v6366_v56 = vld [vmem:[#allocation19 + $0x140] sm:$0xff]  ;;  %v13361_v60 = vld [vmem:[#allocation16 + $0x4c] ss:$16 sps:$4 sm:$0xff]  }
 0x6d1   :  { %5735 = vst.msk [vmem:[%s15039_s18] sm:$0x3] %vm5734_vm14, %v5729_v57  ;;  %v5736_v61 = vpack.c.bf16 %v5729_v57, %v5729_v57  ;;  %v6370_v57 = vld [vmem:[#allocation19 + $0x160] sm:$0xff] }
 0x6d2   :  { %7912 = vmatprep.subr.bf16.mxu0 %v12002_v52  ;;  %v13356_v38 = vld [vmem:[#allocation16 + $0x28] ss:$16 sps:$4 sm:$0xff]  }
 0x6d3   :  { %11904 = vmatmul.mubr.msk.bf16.vlgmr.msra.gmra.mrb[16].mxu1 %vm5773_vm15, %v5736_v61  ;;  %7913 = vmatpush1.bf16.msra.mxu0 %v12001_v54  ;;  %v12009_v61 = vcombine.low %v6366_v56, %v6370_v57  ;;  %v13359_v52 = vld [vmem:[#allocation16 + $0x48] ss:$16 sps:$4 sm:$0xff]   ;;  %v13364_v54 = vld [vmem:[#allocation16 + $0x6c] ss:$16 sps:$4 sm:$0xff]  }
 0x6d4   :  { %6229 = vmatpush1.bf16.msra.mxu1 %v13305_v58  ;;  %v12010_v58 = vcombine.high %v6366_v56, %v6370_v57  ;;  %v13362_v56 = vld [vmem:[#allocation16 + $0x68] ss:$16 sps:$4 sm:$0xff]   ;;  %v13367_v57 = vld [vmem:[#allocation16 + $0x8c] ss:$16 sps:$4 sm:$0xff]  }
 0x6d5   :  { %6230 = vmatprep.subr.bf16.mxu1 %v13310_v62  ;;  %v6374_v62 = vld [vmem:[#allocation19 + $0x180] sm:$0xff] }
 0x6d6   :  { %7914 = vmatprep.subr.bf16.mxu0 %v12010_v58  ;;  %v13365_v58 = vld [vmem:[#allocation16 + $0x88] ss:$16 sps:$4 sm:$0xff]  }
 0x6d7   :  { %7915 = vmatpush1.bf16.msra.mxu0 %v12009_v61  ;;  %v13370_v61 = vld [vmem:[#allocation16 + $0xac] ss:$16 sps:$4 sm:$0xff]  }
 0x6d8   :  { %6231 = vmatpush1.bf16.msra.mxu1 %v13308_v24  ;;  %v6378_v24 = vld [vmem:[#allocation19 + $0x1a0] sm:$0xff] }
 0x6d9   :  { %6232 = vmatprep.subr.bf16.mxu1 %v13313_v51  ;;  %v12018_v51 = vcombine.high %v6374_v62, %v6378_v24 }
 0x6db   :  { %7916 = vmatprep.subr.bf16.mxu0 %v12018_v51  ;;  %v13371_v51 = vld [vmem:[#allocation16 + $0xc8] ss:$16 sps:$4 sm:$0xff]  }
 0x6dc   :  { %6233 = vmatpush1.bf16.msra.mxu1 %v13311_v63  ;;  %v12017_v63 = vcombine.low %v6374_v62, %v6378_v24  ;;  %v13368_v62 = vld [vmem:[#allocation16 + $0xa8] ss:$16 sps:$4 sm:$0xff]   ;;  %v13373_v24 = vld [vmem:[#allocation16 + $0xcc] ss:$16 sps:$4 sm:$0xff]  }
 0x6dd   :  { %6234 = vmatprep.subr.bf16.mxu1 %v13316_v0  ;;  %v6382_v0 = vld [vmem:[#allocation19 + $0x1c0] sm:$0xff] }
 0x6de   :  { %7917 = vmatpush1.bf16.msra.mxu0 %v12017_v63  ;;  %v13376_v63 = vld [vmem:[#allocation16 + $0xec] ss:$16 sps:$4 sm:$0xff]  }
 0x6e0   :  { %6235 = vmatpush1.bf16.msra.mxu1 %v13314_v1  ;;  %v6386_v1 = vld [vmem:[#allocation19 + $0x1e0] sm:$0xff] }
 0x6e1   :  { %6236 = vmatprep.subr.bf16.mxu1 %v13319_v53  ;;  %v12026_v53 = vcombine.high %v6382_v0, %v6386_v1 }
 0x6e3   :  { %7918 = vmatprep.subr.bf16.mxu0 %v12026_v53  ;;  %v13377_v53 = vld [vmem:[#allocation16 + $0x108] ss:$16 sps:$4 sm:$0xff]  }
 0x6e4   :  { %6237 = vmatpush1.bf16.msra.mxu1 %v13317_v31  ;;  %v12025_v31 = vcombine.low %v6382_v0, %v6386_v1  ;;  %v13374_v0 = vld [vmem:[#allocation16 + $0xe8] ss:$16 sps:$4 sm:$0xff]   ;;  %v13379_v1 = vld [vmem:[#allocation16 + $0x10c] ss:$16 sps:$4 sm:$0xff]  }
 0x6e5   :  { %6238 = vmatprep.subr.bf16.mxu1 %v13322_v3  ;;  %v6390_v3 = vld [vmem:[#allocation19 + $0x200] sm:$0xff] }
 0x6e6   :  { %7919 = vmatpush1.bf16.msra.mxu0 %v12025_v31  ;;  %v13382_v31 = vld [vmem:[#allocation16 + $0x12c] ss:$16 sps:$4 sm:$0xff]  }
 0x6e8   :  { %6239 = vmatpush1.bf16.msra.mxu1 %v13320_v55  ;;  %v6394_v55 = vld [vmem:[#allocation19 + $0x220] sm:$0xff] }
 0x6e9   :  { %6240 = vmatprep.subr.bf16.mxu1 %v13325_v35  ;;  %v12034_v35 = vcombine.high %v6390_v3, %v6394_v55 }
 0x6eb   :  { %7920 = vmatprep.subr.bf16.mxu0 %v12034_v35  ;;  %v13383_v35 = vld [vmem:[#allocation16 + $0x148] ss:$16 sps:$4 sm:$0xff]  }
 0x6ec   :  { %6241 = vmatpush1.bf16.msra.mxu1 %v13323_v4  ;;  %v12033_v4 = vcombine.low %v6390_v3, %v6394_v55  ;;  %v13380_v3 = vld [vmem:[#allocation16 + $0x128] ss:$16 sps:$4 sm:$0xff]   ;;  %v13385_v55 = vld [vmem:[#allocation16 + $0x14c] ss:$16 sps:$4 sm:$0xff]  }
 0x6ed   :  { %6242 = vmatprep.subr.bf16.mxu1 %v13328_v5  ;;  %v6398_v5 = vld [vmem:[#allocation19 + $0x240] sm:$0xff] }
 0x6ee   :  { %7921 = vmatpush1.bf16.msra.mxu0 %v12033_v4  ;;  %v13388_v4 = vld [vmem:[#allocation16 + $0x16c] ss:$16 sps:$4 sm:$0xff]  }
 0x6f0   :  { %6243 = vmatpush1.bf16.msra.mxu1 %v13326_v7  ;;  %v6402_v7 = vld [vmem:[#allocation19 + $0x260] sm:$0xff] }
 0x6f1   :  { %6244 = vmatprep.subr.bf16.mxu1 %v13331_v8  ;;  %v12042_v8 = vcombine.high %v6398_v5, %v6402_v7 }
 0x6f3   :  { %7922 = vmatprep.subr.bf16.mxu0 %v12042_v8  ;;  %v13389_v8 = vld [vmem:[#allocation16 + $0x188] ss:$16 sps:$4 sm:$0xff]  }
 0x6f4   :  { %6245 = vmatpush1.bf16.msra.mxu1 %v13329_v9  ;;  %v12041_v9 = vcombine.low %v6398_v5, %v6402_v7  ;;  %v13386_v5 = vld [vmem:[#allocation16 + $0x168] ss:$16 sps:$4 sm:$0xff]   ;;  %v13391_v7 = vld [vmem:[#allocation16 + $0x18c] ss:$16 sps:$4 sm:$0xff]  }
 0x6f5   :  { %6246 = vmatprep.subr.bf16.mxu1 %v13334_v10  ;;  %v6406_v10 = vld [vmem:[#allocation19 + $0x280] sm:$0xff] }
 0x6f6   :  { %7923 = vmatpush1.bf16.msra.mxu0 %v12041_v9  ;;  %v13394_v9 = vld [vmem:[#allocation16 + $0x1ac] ss:$16 sps:$4 sm:$0xff]  }
 0x6f8   :  { %6247 = vmatpush1.bf16.msra.mxu1 %v13332_v11  ;;  %v6410_v11 = vld [vmem:[#allocation19 + $0x2a0] sm:$0xff] }
 0x6f9   :  { %6248 = vmatprep.subr.bf16.mxu1 %v13337_v59  ;;  %v12050_v59 = vcombine.high %v6406_v10, %v6410_v11 }
 0x6fb   :  { %7924 = vmatprep.subr.bf16.mxu0 %v12050_v59  ;;  %v13395_v59 = vld [vmem:[#allocation16 + $0x1c8] ss:$16 sps:$4 sm:$0xff]  }
 0x6fc   :  { %6249 = vmatpush1.bf16.msra.mxu1 %v13335_v15  ;;  %v12049_v15 = vcombine.low %v6406_v10, %v6410_v11  ;;  %v13392_v10 = vld [vmem:[#allocation16 + $0x1a8] ss:$16 sps:$4 sm:$0xff]   ;;  %v13397_v11 = vld [vmem:[#allocation16 + $0x1cc] ss:$16 sps:$4 sm:$0xff]  }
 0x6fd   :  { %6250 = vmatprep.subr.bf16.mxu1 %v13340_v16  ;;  %v6414_v16 = vld [vmem:[#allocation19 + $0x2c0] sm:$0xff] }
 0x6fe   :  { %7925 = vmatpush1.bf16.msra.mxu0 %v12049_v15  ;;  %v13400_v15 = vld [vmem:[#allocation16 + $0x1ec] ss:$16 sps:$4 sm:$0xff]  }
 0x700   :  { %6251 = vmatpush1.bf16.msra.mxu1 %v13338_v17  ;;  %v6418_v17 = vld [vmem:[#allocation19 + $0x2e0] sm:$0xff] }
 0x701   :  { %6252 = vmatprep.subr.bf16.mxu1 %v13343_v18  ;;  %v12058_v18 = vcombine.high %v6414_v16, %v6418_v17 }
 0x703   :  { %7926 = vmatprep.subr.bf16.mxu0 %v12058_v18  ;;  %v13398_v18 = vld [vmem:[#allocation16 + $0x1e8] ss:$16 sps:$4 sm:$0xff]  }
 0x704   :  { %6253 = vmatpush1.bf16.msra.mxu1 %v13341_v19  ;;  %v12057_v19 = vcombine.low %v6414_v16, %v6418_v17  ;;  %v6327_v16 = vld [vmem:[#allocation19 + $0x8] sm:$0xff] }
 0x705   :  { %6254 = vmatprep.subr.bf16.mxu1 %v13346_v21  ;;  %v6422_v21 = vld [vmem:[#allocation19 + $0x300] sm:$0xff]  ;;  %v6331_v17 = vld [vmem:[#allocation19 + $0x28] sm:$0xff] }
 0x706   :  { %7927 = vmatpush1.bf16.msra.mxu0 %v12057_v19  ;;  %v11972_v19 = vcombine.high %v6327_v16, %v6331_v17 }
 0x708   :  { %6255 = vmatpush1.bf16.msra.mxu1 %v13344_v40  ;;  %v6426_v40 = vld [vmem:[#allocation19 + $0x320] sm:$0xff] }
 0x709   :  { %6256 = vmatprep.subr.bf16.mxu1 %v13349_v22  ;;  %v12066_v22 = vcombine.high %v6422_v21, %v6426_v40 }
 0x70b   :  { %7928 = vmatprep.subr.bf16.mxu0 %v12066_v22  ;;  %v11971_v22 = vcombine.low %v6327_v16, %v6331_v17  ;;  %v6407_v16 = vld [vmem:[#allocation19 + $0x288] sm:$0xff] }
 0x70c   :  { %6257 = vmatpush1.bf16.msra.mxu1 %v13347_v23  ;;  %v12065_v23 = vcombine.low %v6422_v21, %v6426_v40  ;;  %v6335_v21 = vld [vmem:[#allocation19 + $0x48] sm:$0xff] }
 0x70d   :  { %6258 = vmatprep.subr.bf16.mxu1 %v13352_v25  ;;  %v5741_v25 = vld [vmem:[#allocation15] sm:$0x3]  ;;  %v6339_v40 = vld [vmem:[#allocation19 + $0x68] sm:$0xff] }
 0x70e   :  { %v5746_v30 = vrot.slane %v5741_v25, %v14731_v13  ;;  %7929 = vmatpush1.bf16.msra.mxu0 %v12065_v23  ;;  %v5750_v33 = vrot.slane %v5741_v25, %v14734_v14  ;;  %v11980_v23 = vcombine.high %v6335_v21, %v6339_v40  ;;  %v6343_v25 = vld [vmem:[#allocation19 + $0x88] sm:$0xff] }
 0x70f   :  { %v6411_v17 = vld [vmem:[#allocation19 + $0x2a8] sm:$0xff] }
 0x710   :  { %6259 = vmatpush1.bf16.msra.mxu1 %v13350_v26  ;;  %v6430_v26 = vld [vmem:[#allocation19 + $0x340] sm:$0xff] }
 0x711   :  { %6269 = vmatprep.subr.bf16.mxu1 %v13355_v27  ;;  %v6434_v27 = vld [vmem:[#allocation19 + $0x360] sm:$0xff] }
 0x712   :  { %v12074_v29 = vcombine.high %v6430_v26, %v6434_v27  ;;  %v12073_v32 = vcombine.low %v6430_v26, %v6434_v27  ;;  %v6347_v26 = vld [vmem:[#allocation19 + $0xa8] sm:$0xff]  ;;  %v11979_v27 = vcombine.low %v6335_v21, %v6339_v40 }
 0x713   :  { %v6415_v21 = vld [vmem:[#allocation19 + $0x2c8] sm:$0xff] }
 0x714   :  { %7930 = vmatprep.subr.bf16.mxu0 %v12074_v29  ;;  %v11988_v29 = vcombine.high %v6343_v25, %v6347_v26  ;;  %v6419_v40 = vld [vmem:[#allocation19 + $0x2e8] sm:$0xff] }
 0x715   :  { %7931 = vmatpush1.bf16.msra.mxu0 %v12073_v32  ;;  %v6355_v32 = vld [vmem:[#allocation19 + $0xe8] sm:$0xff] }
 0x7a6   :  { %v5811_v34 = vpop.f32.mrb[16].mxu1 }
 0x7a7   :  { %v5812_v48 = vadd.f32 %v5811_v34, %v5746_v30  ;;  %v5813_v36 = vpop.f32.mrb[17].mxu1  ;;  %v6351_v30 = vld [vmem:[#allocation19 + $0xc8] sm:$0xff] }
 0x7a8   :  { %v5814_v41 = vadd.f32 %v5813_v36, %v5750_v33  ;;  %v5815_v42 = vpop.f32.mrb[18].mxu1  ;;  %v11987_v33 = vcombine.low %v6343_v25, %v6347_v26  ;;  %v11996_v34 = vcombine.high %v6351_v30, %v6355_v32  ;;  %v6363_v36 = vld [vmem:[#allocation19 + $0x128] sm:$0xff] }
 0x7a9   :  { %v5818_v43 = vmax.f32 %v5812_v48, 0.0  ;;  %v5816_v44 = vpop.f32.mrb[19].mxu1  ;;  %v6359_v48 = vld [vmem:[#allocation19 + $0x108] sm:$0xff] }
 0x7aa   :  { %v5819_v45 = vmax.f32 %v5814_v41, 0.0  ;;  %v11995_v41 = vcombine.low %v6351_v30, %v6355_v32  ;;  %v12004_v42 = vcombine.high %v6359_v48, %v6363_v36  ;;  %v6371_v44 = vld [vmem:[#allocation19 + $0x168] sm:$0xff] }
 0x7ab   :  { %v14874_v49 = vpack.c.bf16 %v5818_v43, %v5818_v43  ;;  %v6367_v43 = vld [vmem:[#allocation19 + $0x148] sm:$0xff] }
 0x7ac   :  { %v5821_v37 = vpack.c.bf16 %v5819_v45, %v5819_v45  ;;  %v12003_v45 = vcombine.low %v6359_v48, %v6363_v36  ;;  %v6423_v25 = vld [vmem:[#allocation19 + $0x308] sm:$0xff] }
 0x7ad   :  { %v6427_v26 = vld [vmem:[#allocation19 + $0x328] sm:$0xff] }
 0x7ae   :  { %6260 = vmatprep.mubr.bf16.mxu1 %v5821_v37  ;;  %v6431_v30 = vld [vmem:[#allocation19 + $0x348] sm:$0xff] }
 0x7af   :  { %6261 = vmatmul.mubr.bf16.vlgmr.msra.gmra.mrb[20].mxu1 %v14874_v49  ;;  %v6435_v32 = vld [vmem:[#allocation19 + $0x368] sm:$0xff] }
 0x7b0   :  { %6270 = vmatpush1.bf16.msra.mxu1 %v13353_v46  ;;  %6301 = vmatprep.mubr.bf16.mxu1 %v5821_v37  ;;  %v12012_v37 = vcombine.high %v6367_v43, %v6371_v44  ;;  %v6375_v46 = vld [vmem:[#allocation19 + $0x188] sm:$0xff] }
 0x7b1   :  { %6271 = vmatprep.subr.bf16.mxu1 %v13358_v6  ;;  %v12011_v6 = vcombine.low %v6367_v43, %v6371_v44  ;;  %v6439_v48 = vld [vmem:[#allocation19 + $0x388] sm:$0xff] }
 0x7b2   :  { %v6443_v36 = vld [vmem:[#allocation19 + $0x3a8] sm:$0xff] }
 0x7b3   :  { %v6447_v43 = vld [vmem:[#allocation19 + $0x3c8] sm:$0xff] }
 0x7b4   :  { %6272 = vmatpush1.bf16.msra.mxu1 %v13356_v38  ;;  %v6451_v44 = vld [vmem:[#allocation19 + $0x3e8] sm:$0xff] }
 0x7b5   :  { %6273 = vmatprep.subr.bf16.mxu1 %v13361_v60  ;;  %v6438_v60 = vld [vmem:[#allocation19 + $0x380] sm:$0xff] }
 0x7b8   :  { %6274 = vmatpush1.bf16.msra.mxu1 %v13359_v52  ;;  %v6442_v52 = vld [vmem:[#allocation19 + $0x3a0] sm:$0xff] }
 0x7b9   :  { %6275 = vmatprep.subr.bf16.mxu1 %v13364_v54  ;;  %v6383_v54 = vld [vmem:[#allocation19 + $0x1c8] sm:$0xff] }
 0x7bc   :  { %6276 = vmatpush1.bf16.msra.mxu1 %v13362_v56  ;;  %v6387_v56 = vld [vmem:[#allocation19 + $0x1e8] sm:$0xff] }
 0x7bd   :  { %6277 = vmatprep.subr.bf16.mxu1 %v13367_v57  ;;  %v12082_v57 = vcombine.high %v6438_v60, %v6442_v52 }
 0x7bf   :  { %7932 = vmatprep.subr.bf16.mxu0 %v12082_v57 }
 0x7c0   :  { %6278 = vmatpush1.bf16.msra.mxu1 %v13365_v58  ;;  %v12081_v58 = vcombine.low %v6438_v60, %v6442_v52 }
 0x7c1   :  { %6279 = vmatprep.subr.bf16.mxu1 %v13370_v61 }
 0x7c2   :  { %7933 = vmatpush1.bf16.msra.mxu0 %v12081_v58 }
 0x7c4   :  { %6280 = vmatpush1.bf16.msra.mxu1 %v13368_v62  ;;  %v12028_v62 = vcombine.high %v6383_v54, %v6387_v56 }
 0x7c5   :  { %6281 = vmatprep.subr.bf16.mxu1 %v13373_v24  ;;  %v6446_v24 = vld [vmem:[#allocation19 + $0x3c0] sm:$0xff] }
 0x7c8   :  { %6282 = vmatpush1.bf16.msra.mxu1 %v13371_v51  ;;  %v6450_v51 = vld [vmem:[#allocation19 + $0x3e0] sm:$0xff] }
 0x7c9   :  { %6283 = vmatprep.subr.bf16.mxu1 %v13376_v63  ;;  %v6391_v63 = vld [vmem:[#allocation19 + $0x208] sm:$0xff] }
 0x7cc   :  { %6284 = vmatpush1.bf16.msra.mxu1 %v13374_v0  ;;  %v6395_v0 = vld [vmem:[#allocation19 + $0x228] sm:$0xff] }
 0x7cd   :  { %6285 = vmatprep.subr.bf16.mxu1 %v13379_v1  ;;  %v12090_v1 = vcombine.high %v6446_v24, %v6450_v51 }
 0x7cf   :  { %7934 = vmatprep.subr.bf16.mxu0 %v12090_v1  ;;  %v6463_v1 = vld [vmem:[#allocation19 + $0x448] sm:$0xff] }
 0x7d0   :  { %6286 = vmatpush1.bf16.msra.mxu1 %v13377_v53  ;;  %v12089_v53 = vcombine.low %v6446_v24, %v6450_v51  ;;  %v6462_v51 = vld [vmem:[#allocation19 + $0x440] sm:$0xff] }
 0x7d1   :  { %6287 = vmatprep.subr.bf16.mxu1 %v13382_v31  ;;  %v12027_v31 = vcombine.low %v6383_v54, %v6387_v56 }
 0x7d2   :  { %7935 = vmatpush1.bf16.msra.mxu0 %v12089_v53  ;;  %v6467_v53 = vld [vmem:[#allocation19 + $0x468] sm:$0xff] }
 0x7d4   :  { %6288 = vmatpush1.bf16.msra.mxu1 %v13380_v3  ;;  %v12036_v3 = vcombine.high %v6391_v63, %v6395_v0 }
 0x7d5   :  { %6289 = vmatprep.subr.bf16.mxu1 %v13385_v55  ;;  %v14878_v55 = vld [vmem:[#allocation19 + $0x400] sm:$0xff] }
 0x7d8   :  { %6290 = vmatpush1.bf16.msra.mxu1 %v13383_v35  ;;  %v14880_v35 = vld [vmem:[#allocation19 + $0x420] sm:$0xff] }
 0x7d9   :  { %6291 = vmatprep.subr.bf16.mxu1 %v13388_v4  ;;  %v14882_v4 = vld [vmem:[#allocation19 + $0x408] sm:$0xff] }
 0x7dc   :  { %6292 = vmatpush1.bf16.msra.mxu1 %v13386_v5  ;;  %v6399_v5 = vld [vmem:[#allocation19 + $0x248] sm:$0xff] }
 0x7dd   :  { %6293 = vmatprep.subr.bf16.mxu1 %v13391_v7  ;;  %v6403_v7 = vld [vmem:[#allocation19 + $0x268] sm:$0xff] }
 0x7e0   :  { %6294 = vmatpush1.bf16.msra.mxu1 %v13389_v8  ;;  %v12098_v8 = vcombine.high %v14878_v55, %v14880_v35 }
 0x7e1   :  { %6295 = vmatprep.subr.bf16.mxu1 %v13394_v9  ;;  %v14886_v9 = vld [vmem:[#allocation19 + $0x428] sm:$0xff] }
 0x7e2   :  { %7945 = vmatprep.subr.bf16.mxu0 %v12098_v8  ;;  %v12108_v8 = vcombine.high %v6463_v1, %v6467_v53 }
 0x7e4   :  { %6296 = vmatpush1.bf16.msra.mxu1 %v13392_v10  ;;  %v12097_v10 = vcombine.low %v14878_v55, %v14880_v35 }
 0x7e5   :  { %6297 = vmatprep.subr.bf16.mxu1 %v13397_v11  ;;  %v12099_v11 = vcombine.low %v14882_v4, %v14886_v9 }
 0x7e8   :  { %6298 = vmatpush1.bf16.msra.mxu1 %v13395_v59  ;;  %v12035_v59 = vcombine.low %v6391_v63, %v6395_v0  ;;  %v6466_v0 = vld [vmem:[#allocation19 + $0x460] sm:$0xff] }
 0x7e9   :  { %6299 = vmatprep.subr.bf16.mxu1 %v13400_v15  ;;  %v12044_v15 = vcombine.high %v6399_v5, %v6403_v7 }
 0x7ec   :  { %6300 = vmatpush1.bf16.msra.mxu1 %v13398_v18  ;;  %v12043_v18 = vcombine.low %v6399_v5, %v6403_v7  ;;  %v12106_v7 = vcombine.high %v6462_v51, %v6466_v0 }
 0x7ed   :  { %7986 = vmatprep.subr.bf16.mxu1 %v11972_v19  ;;  %v12052_v19 = vcombine.high %v6407_v16, %v6411_v17 }
 0x7ef   :  { %6302 = vmatmul.mubr.bf16.vlgmr.msra.gmra.mrb[24].mxu1 %v14874_v49  ;;  %v6379_v49 = vld [vmem:[#allocation19 + $0x1a8] sm:$0xff] }
 0x7f0   :  { %7987 = vmatpush1.bf16.msra.mxu1 %v11971_v22  ;;  %v12020_v38 = vcombine.high %v6375_v46, %v6379_v49  ;;  %v12019_v61 = vcombine.low %v6375_v46, %v6379_v49  ;;  %v12051_v22 = vcombine.low %v6407_v16, %v6411_v17  ;;  %v12091_v46 = vcombine.low %v6447_v43, %v6451_v44  ;;  %v6471_v16 = vld [vmem:[#allocation19 + $0x488] sm:$0xff] }
 0x7f1   :  { %7988 = vmatprep.subr.bf16.mxu1 %v11980_v23  ;;  %v12060_v23 = vcombine.high %v6415_v21, %v6419_v40  ;;  %v12100_v49 = vcombine.high %v14882_v4, %v14886_v9  ;;  %v6475_v17 = vld [vmem:[#allocation19 + $0x4a8] sm:$0xff]  ;;  %v6486_v4 = vld [vmem:[#allocation19 + $0x500] sm:$0xff] }
 0x7f2   :  { %v6490_v9 = vld [vmem:[#allocation19 + $0x520] sm:$0xff] }
 0x7f4   :  { %7989 = vmatpush1.bf16.msra.mxu1 %v11979_v27  ;;  %v12059_v27 = vcombine.low %v6415_v21, %v6419_v40  ;;  %v12116_v40 = vcombine.high %v6471_v16, %v6475_v17 }
 0x7f5   :  { %7990 = vmatprep.subr.bf16.mxu1 %v11988_v29  ;;  %v12068_v29 = vcombine.high %v6423_v25, %v6427_v26 }
 0x7f8   :  { %7991 = vmatpush1.bf16.msra.mxu1 %v11987_v33  ;;  %v12067_v33 = vcombine.low %v6423_v25, %v6427_v26  ;;  %v6479_v25 = vld [vmem:[#allocation19 + $0x4c8] sm:$0xff] }
 0x7f9   :  { %7992 = vmatprep.subr.bf16.mxu1 %v11996_v34  ;;  %v12076_v34 = vcombine.high %v6431_v30, %v6435_v32  ;;  %v6483_v26 = vld [vmem:[#allocation19 + $0x4e8] sm:$0xff] }
 0x7fa   :  { %v12124_v35 = vcombine.high %v6479_v25, %v6483_v26 }
 0x7fc   :  { %7993 = vmatpush1.bf16.msra.mxu1 %v11995_v41  ;;  %v12075_v41 = vcombine.low %v6431_v30, %v6435_v32  ;;  %v12123_v32 = vcombine.low %v6479_v25, %v6483_v26 }
 0x7fd   :  { %7994 = vmatprep.subr.bf16.mxu1 %v12004_v42  ;;  %v12084_v42 = vcombine.high %v6439_v48, %v6443_v36 }
 0x800   :  { %7995 = vmatpush1.bf16.msra.mxu1 %v12003_v45  ;;  %v12083_v45 = vcombine.low %v6439_v48, %v6443_v36  ;;  %v6494_v48 = vld [vmem:[#allocation19 + $0x540] sm:$0xff] }
 0x801   :  { %7996 = vmatprep.subr.bf16.mxu1 %v12012_v37  ;;  %v12092_v37 = vcombine.high %v6447_v43, %v6451_v44  ;;  %v6498_v36 = vld [vmem:[#allocation19 + $0x560] sm:$0xff]  ;;  %v12129_v43 = vcombine.low %v6486_v4, %v6490_v9 }
 0x804   :  { %7997 = vmatpush1.bf16.msra.mxu1 %v12011_v6  ;;  %v14894_v6 = vld [vmem:[#allocation18] sm:$0xf] }
 0x805   :  { %7998 = vmatprep.subr.bf16.mxu1 %v12020_v38  ;;  %v5891_v38 = vrot.slane %v14894_v6, %v14731_v13  ;;  %v5895_v60 = vrot.slane %v14894_v6, %v14734_v14 }
 0x808   :  { %7999 = vmatpush1.bf16.msra.mxu1 %v12019_v61 }
 0x809   :  { %8000 = vmatprep.subr.bf16.mxu1 %v12028_v62 }
 0x80c   :  { %8001 = vmatpush1.bf16.msra.mxu1 %v12027_v31 }
 0x80d   :  { %8002 = vmatprep.subr.bf16.mxu1 %v12036_v3 }
 0x810   :  { %8003 = vmatpush1.bf16.msra.mxu1 %v12035_v59  ;;  %v6470_v59 = vld [vmem:[#allocation19 + $0x480] sm:$0xff] }
 0x811   :  { %8004 = vmatprep.subr.bf16.mxu1 %v12044_v15  ;;  %v6474_v15 = vld [vmem:[#allocation19 + $0x4a0] sm:$0xff] }
 0x812   :  { %v12114_v21 = vcombine.high %v6470_v59, %v6474_v15 }
 0x814   :  { %8005 = vmatpush1.bf16.msra.mxu1 %v12043_v18  ;;  %v12105_v18 = vcombine.low %v6462_v51, %v6466_v0 }
 0x815   :  { %8006 = vmatprep.subr.bf16.mxu1 %v12052_v19  ;;  %v12107_v19 = vcombine.low %v6463_v1, %v6467_v53  ;;  %v6518_v53 = vld [vmem:[#allocation19 + $0x600] sm:$0xff] }
 0x818   :  { %8007 = vmatpush1.bf16.msra.mxu1 %v12051_v22  ;;  %v6478_v22 = vld [vmem:[#allocation19 + $0x4c0] sm:$0xff] }
 0x819   :  { %8008 = vmatprep.subr.bf16.mxu1 %v12060_v23  ;;  %v6482_v23 = vld [vmem:[#allocation19 + $0x4e0] sm:$0xff] }
 0x81a   :  { %v12122_v55 = vcombine.high %v6478_v22, %v6482_v23  ;;  %v12121_v30 = vcombine.low %v6478_v22, %v6482_v23 }
 0x81c   :  { %8009 = vmatpush1.bf16.msra.mxu1 %v12059_v27  ;;  %v12113_v27 = vcombine.low %v6470_v59, %v6474_v15 }
 0x81d   :  { %8010 = vmatprep.subr.bf16.mxu1 %v12068_v29  ;;  %v12115_v29 = vcombine.low %v6471_v16, %v6475_v17 }
 0x820   :  { %8011 = vmatpush1.bf16.msra.mxu1 %v12067_v33  ;;  %v12130_v33 = vcombine.high %v6486_v4, %v6490_v9 }
 0x821   :  { %8012 = vmatprep.subr.bf16.mxu1 %v12076_v34 }
 0x824   :  { %8013 = vmatpush1.bf16.msra.mxu1 %v12075_v41  ;;  %v6495_v41 = vld [vmem:[#allocation19 + $0x548] sm:$0xff] }
 0x825   :  { %8014 = vmatprep.subr.bf16.mxu1 %v12084_v42  ;;  %v6499_v42 = vld [vmem:[#allocation19 + $0x568] sm:$0xff] }
 0x828   :  { %8015 = vmatpush1.bf16.msra.mxu1 %v12083_v45  ;;  %v12138_v45 = vcombine.high %v6494_v48, %v6498_v36 }
 0x829   :  { %8016 = vmatprep.subr.bf16.mxu1 %v12092_v37  ;;  %v12140_v37 = vcombine.high %v6495_v41, %v6499_v42 }
 0x82c   :  { %8017 = vmatpush1.bf16.msra.mxu1 %v12091_v46  ;;  %v6502_v46 = vld [vmem:[#allocation19 + $0x580] sm:$0xff] }
 0x82d   :  { %8027 = vmatprep.subr.bf16.mxu1 %v12100_v49  ;;  %v6506_v49 = vld [vmem:[#allocation19 + $0x5a0] sm:$0xff] }
 0x82e   :  { %v12145_v51 = vcombine.low %v6502_v46, %v6506_v49 }
 0x882   :  { %v6262_v52 = vpop.f32.mrb[20].mxu1 }
 0x883   :  { %v6263_v54 = vadd.f32 %v6262_v52, %v5891_v38  ;;  %v6264_v56 = vpop.f32.mrb[21].mxu1  ;;  %v6503_v38 = vld [vmem:[#allocation19 + $0x588] sm:$0xff]  ;;  %v12137_v52 = vcombine.low %v6494_v48, %v6498_v36 }
 0x884   :  { %v6265_v57 = vadd.f32 %v6264_v56, %v5895_v60  ;;  %v6266_v58 = vpop.f32.mrb[22].mxu1  ;;  %v6507_v60 = vld [vmem:[#allocation19 + $0x5a8] sm:$0xff]  ;;  %v12146_v56 = vcombine.high %v6502_v46, %v6506_v49 }
 0x885   :  { %vm6310_vm0 = vcmp.gt.f32.partialorder %v6263_v54, 0.0  ;;  %v6314_v61 = vmul.f32 0.2, %v6263_v54  ;;  %v6267_v62 = vpop.f32.mrb[23].mxu1  ;;  %v6510_v58 = vld [vmem:[#allocation19 + $0x5c0] sm:$0xff] }
 0x886   :  { %vm6311_vm1 = vcmp.gt.f32.partialorder %v6265_v57, 0.0  ;;  %v6315_v24 = vmul.f32 0.2, %v6265_v57  ;;  %v6511_v62 = vld [vmem:[#allocation19 + $0x5c8] sm:$0xff] }
 0x887   :  { %v6318_v63 = vsel %vm6310_vm0, %v6263_v54, %v6314_v61  ;;  %v12139_v54 = vcombine.low %v6495_v41, %v6499_v42  ;;  %v6514_v61 = vld [vmem:[#allocation19 + $0x5e0] sm:$0xff] }
 0x888   :  { %v6319_v31 = vsel %vm6311_vm1, %v6265_v57, %v6315_v24  ;;  %v14902_v5 = vpack.c.bf16 %v6318_v63, %v6318_v63  ;;  %v12148_v57 = vcombine.high %v6503_v38, %v6507_v60  ;;  %v6515_v24 = vld [vmem:[#allocation19 + $0x5e8] sm:$0xff]  ;;  %v12147_v63 = vcombine.low %v6503_v38, %v6507_v60 }
 0x889   :  { %v14900_v3 = vpack.c.bf16 %v6319_v31, %v6319_v31  ;;  %v12154_v0 = vcombine.high %v6510_v58, %v6514_v61  ;;  %v12156_v1 = vcombine.high %v6511_v62, %v6515_v24  ;;  %v6522_v31 = vld [vmem:[#allocation19 + $0x620] sm:$0xff]  ;;  %v12153_v59 = vcombine.low %v6510_v58, %v6514_v61 }
 0x88a   :  { %v12155_v15 = vcombine.low %v6511_v62, %v6515_v24  ;;  %v12162_v16 = vcombine.high %v6518_v53, %v6522_v31  ;;  %v12161_v22 = vcombine.low %v6518_v53, %v6522_v31 }
 0x88b   :  { %7936 = vmatprep.mubr.bf16.mxu0 %v14900_v3  ;;  %8018 = vmatprep.mubr.bf16.mxu1 %v14900_v3 }
 0x88c   :  { %7937 = vmatmul.mubr.bf16.vlgmr.msra.gmra.mrb[20].mxu0 %v14902_v5  ;;  %8019 = vmatmul.mubr.bf16.vlgmr.msra.gmra.mrb[28].mxu1 %v14902_v5 }
 0x88d   :  { %7946 = vmatpush1.bf16.msra.mxu0 %v12097_v10  ;;  %8028 = vmatpush1.bf16.msra.mxu1 %v12099_v11  ;;  %v6487_v10 = vld [vmem:[#allocation19 + $0x508] sm:$0xff] }
 0x88e   :  { %7947 = vmatprep.subr.bf16.mxu0 %v12106_v7  ;;  %8029 = vmatprep.subr.bf16.mxu1 %v12108_v8  ;;  %v6491_v11 = vld [vmem:[#allocation19 + $0x528] sm:$0xff] }
 0x88f   :  { %v12132_v34 = vcombine.high %v6487_v10, %v6491_v11  ;;  %v12131_v44 = vcombine.low %v6487_v10, %v6491_v11  ;;  %v6519_v7 = vld [vmem:[#allocation19 + $0x608] sm:$0xff] }
 0x890   :  { %v6523_v8 = vld [vmem:[#allocation19 + $0x628] sm:$0xff] }
 0x891   :  { %7948 = vmatpush1.bf16.msra.mxu0 %v12105_v18  ;;  %8030 = vmatpush1.bf16.msra.mxu1 %v12107_v19  ;;  %v12164_v17 = vcombine.high %v6519_v7, %v6523_v8  ;;  %v6526_v18 = vld [vmem:[#allocation19 + $0x640] sm:$0xff]  ;;  %v12163_v23 = vcombine.low %v6519_v7, %v6523_v8 }
 0x892   :  { %7949 = vmatprep.subr.bf16.mxu0 %v12114_v21  ;;  %8031 = vmatprep.subr.bf16.mxu1 %v12116_v40  ;;  %v6530_v19 = vld [vmem:[#allocation19 + $0x660] sm:$0xff]  ;;  %v6527_v21 = vld [vmem:[#allocation19 + $0x648] sm:$0xff] }
 0x893   :  { %v6531_v40 = vld [vmem:[#allocation19 + $0x668] sm:$0xff]  ;;  %v12170_v25 = vcombine.high %v6526_v18, %v6530_v19  ;;  %v12169_v4 = vcombine.low %v6526_v18, %v6530_v19  ;;  %v5903_v19 = vrot.slane %v14894_v6, %v14767_v12 }
 0x894   :  { %v12172_v26 = vcombine.high %v6527_v21, %v6531_v40  ;;  %v12171_v9 = vcombine.low %v6527_v21, %v6531_v40  ;;  %v6579_v18 = vld [vmem:[#allocation19 + $0x7e8] sm:$0xff] }
 0x895   :  { %7950 = vmatpush1.bf16.msra.mxu0 %v12113_v27  ;;  %8032 = vmatpush1.bf16.msra.mxu1 %v12115_v29  ;;  %v6534_v27 = vld [vmem:[#allocation19 + $0x680] sm:$0xff] }
 0x896   :  { %7951 = vmatprep.subr.bf16.mxu0 %v12122_v55  ;;  %8033 = vmatprep.subr.bf16.mxu1 %v12124_v35  ;;  %v6538_v29 = vld [vmem:[#allocation19 + $0x6a0] sm:$0xff]  ;;  %v6535_v55 = vld [vmem:[#allocation19 + $0x688] sm:$0xff] }
 0x897   :  { %v6539_v35 = vld [vmem:[#allocation19 + $0x6a8] sm:$0xff]  ;;  %v12178_v10 = vcombine.high %v6534_v27, %v6538_v29  ;;  %v12177_v48 = vcombine.low %v6534_v27, %v6538_v29 }
 0x898   :  { %v12180_v11 = vcombine.high %v6535_v55, %v6539_v35  ;;  %v12179_v36 = vcombine.low %v6535_v55, %v6539_v35  ;;  %v6332_v55 = vld [vmem:[#allocation19 + $0x30] sm:$0xff]  ;;  %v6329_v35 = vld [vmem:[#allocation19 + $0x18] sm:$0xff] }
 0x899   :  { %7952 = vmatpush1.bf16.msra.mxu0 %v12121_v30  ;;  %8034 = vmatpush1.bf16.msra.mxu1 %v12123_v32  ;;  %v6542_v30 = vld [vmem:[#allocation19 + $0x6c0] sm:$0xff] }
 0x89a   :  { %7953 = vmatprep.subr.bf16.mxu0 %v12130_v33  ;;  %8035 = vmatprep.subr.bf16.mxu1 %v12132_v34  ;;  %v6546_v32 = vld [vmem:[#allocation19 + $0x6e0] sm:$0xff]  ;;  %v6543_v33 = vld [vmem:[#allocation19 + $0x6c8] sm:$0xff] }
 0x89b   :  { %v6547_v34 = vld [vmem:[#allocation19 + $0x6e8] sm:$0xff]  ;;  %v12186_v41 = vcombine.high %v6542_v30, %v6546_v32  ;;  %v12185_v46 = vcombine.low %v6542_v30, %v6546_v32 }
 0x89c   :  { %v12188_v42 = vcombine.high %v6543_v33, %v6547_v34  ;;  %v12187_v49 = vcombine.low %v6543_v33, %v6547_v34 }
 0x89d   :  { %7954 = vmatpush1.bf16.msra.mxu0 %v12129_v43  ;;  %8036 = vmatpush1.bf16.msra.mxu1 %v12131_v44  ;;  %v6550_v43 = vld [vmem:[#allocation19 + $0x700] sm:$0xff] }
 0x89e   :  { %7955 = vmatprep.subr.bf16.mxu0 %v12138_v45  ;;  %8037 = vmatprep.subr.bf16.mxu1 %v12140_v37  ;;  %v6554_v44 = vld [vmem:[#allocation19 + $0x720] sm:$0xff]  ;;  %v6551_v45 = vld [vmem:[#allocation19 + $0x708] sm:$0xff] }
 0x89f   :  { %v6555_v37 = vld [vmem:[#allocation19 + $0x728] sm:$0xff]  ;;  %v12194_v38 = vcombine.high %v6550_v43, %v6554_v44  ;;  %v12193_v58 = vcombine.low %v6550_v43, %v6554_v44  ;;  %v6340_v43 = vld [vmem:[#allocation19 + $0x70] sm:$0xff]  ;;  %v6337_v44 = vld [vmem:[#allocation19 + $0x58] sm:$0xff] }
 0x8a0   :  { %v12196_v60 = vcombine.high %v6551_v45, %v6555_v37  ;;  %v12195_v61 = vcombine.low %v6551_v45, %v6555_v37  ;;  %v6341_v45 = vld [vmem:[#allocation19 + $0x78] sm:$0xff] }
 0x8a1   :  { %7956 = vmatpush1.bf16.msra.mxu0 %v12137_v52  ;;  %8038 = vmatpush1.bf16.msra.mxu1 %v12139_v54  ;;  %v6558_v52 = vld [vmem:[#allocation19 + $0x740] sm:$0xff] }
 0x8a2   :  { %7957 = vmatprep.subr.bf16.mxu0 %v12146_v56  ;;  %8039 = vmatprep.subr.bf16.mxu1 %v12148_v57  ;;  %v6562_v54 = vld [vmem:[#allocation19 + $0x760] sm:$0xff]  ;;  %v6559_v56 = vld [vmem:[#allocation19 + $0x748] sm:$0xff] }
 0x8a3   :  { %v6563_v57 = vld [vmem:[#allocation19 + $0x768] sm:$0xff]  ;;  %v12202_v62 = vcombine.high %v6558_v52, %v6562_v54  ;;  %v12201_v53 = vcombine.low %v6558_v52, %v6562_v54  ;;  %v11984_v52 = vcombine.high %v6337_v44, %v6341_v45  ;;  %v6344_v54 = vld [vmem:[#allocation19 + $0x90] sm:$0xff] }
 0x8a4   :  { %v12204_v24 = vcombine.high %v6559_v56, %v6563_v57  ;;  %v12203_v31 = vcombine.low %v6559_v56, %v6563_v57  ;;  %v6348_v56 = vld [vmem:[#allocation19 + $0xb0] sm:$0xff]  ;;  %v6345_v57 = vld [vmem:[#allocation19 + $0x98] sm:$0xff] }
 0x8a5   :  { %7958 = vmatpush1.bf16.msra.mxu0 %v12145_v51  ;;  %8040 = vmatpush1.bf16.msra.mxu1 %v12147_v63  ;;  %v6566_v51 = vld [vmem:[#allocation19 + $0x780] sm:$0xff] }
 0x8a6   :  { %7959 = vmatprep.subr.bf16.mxu0 %v12154_v0  ;;  %8041 = vmatprep.subr.bf16.mxu1 %v12156_v1  ;;  %v6570_v63 = vld [vmem:[#allocation19 + $0x7a0] sm:$0xff]  ;;  %v6567_v0 = vld [vmem:[#allocation19 + $0x788] sm:$0xff] }
 0x8a7   :  { %v6571_v1 = vld [vmem:[#allocation19 + $0x7a8] sm:$0xff]  ;;  %v12210_v7 = vcombine.high %v6566_v51, %v6570_v63  ;;  %v12209_v21 = vcombine.low %v6566_v51, %v6570_v63  ;;  %v6352_v63 = vld [vmem:[#allocation19 + $0xd0] sm:$0xff] }
 0x8a8   :  { %v12212_v8 = vcombine.high %v6567_v0, %v6571_v1  ;;  %v12211_v40 = vcombine.low %v6567_v0, %v6571_v1  ;;  %v6356_v0 = vld [vmem:[#allocation19 + $0xf0] sm:$0xff]  ;;  %v6353_v1 = vld [vmem:[#allocation19 + $0xd8] sm:$0xff] }
 0x8a9   :  { %7960 = vmatpush1.bf16.msra.mxu0 %v12153_v59  ;;  %8042 = vmatpush1.bf16.msra.mxu1 %v12155_v15  ;;  %v6574_v59 = vld [vmem:[#allocation19 + $0x7c0] sm:$0xff]  ;;  %v5899_v15 = vrot.slane %v14894_v6, %v14760_v39 }
 0x8aa   :  { %7961 = vmatprep.subr.bf16.mxu0 %v12162_v16  ;;  %8043 = vmatprep.subr.bf16.mxu1 %v12164_v17  ;;  %v6578_v16 = vld [vmem:[#allocation19 + $0x7e0] sm:$0xff]  ;;  %v6575_v17 = vld [vmem:[#allocation19 + $0x7c8] sm:$0xff] }
 0x8ab   :  { %v12217_v30 = vcombine.low %v6574_v59, %v6578_v16  ;;  %v12219_v32 = vcombine.low %v6575_v17, %v6579_v18 }
 0x8ad   :  { %7962 = vmatpush1.bf16.msra.mxu0 %v12161_v22  ;;  %8044 = vmatpush1.bf16.msra.mxu1 %v12163_v23  ;;  %v12218_v23 = vcombine.high %v6574_v59, %v6578_v16  ;;  %v6364_v16 = vld [vmem:[#allocation19 + $0x130] sm:$0xff] }
 0x8ae   :  { %7963 = vmatprep.subr.bf16.mxu0 %v12170_v25  ;;  %8045 = vmatprep.subr.bf16.mxu1 %v12172_v26  ;;  %v12220_v25 = vcombine.high %v6575_v17, %v6579_v18  ;;  %v6328_v26 = vld [vmem:[#allocation19 + $0x10] sm:$0xff]  ;;  %v6365_v17 = vld [vmem:[#allocation19 + $0x138] sm:$0xff]  ;;  %v11997_v18 = vcombine.low %v6352_v63, %v6356_v0 }
 0x8af   :  { %v11974_v34 = vcombine.high %v6328_v26, %v6332_v55 }
 0x8b1   :  { %7964 = vmatpush1.bf16.msra.mxu0 %v12169_v4  ;;  %8046 = vmatpush1.bf16.msra.mxu1 %v12171_v9  ;;  %v6333_v4 = vld [vmem:[#allocation19 + $0x38] sm:$0xff] }
 0x8b2   :  { %7965 = vmatprep.subr.bf16.mxu0 %v12178_v10  ;;  %8047 = vmatprep.subr.bf16.mxu1 %v12180_v11 }
 0x8b5   :  { %7966 = vmatpush1.bf16.msra.mxu0 %v12177_v48  ;;  %8048 = vmatpush1.bf16.msra.mxu1 %v12179_v36  ;;  %v11976_v48 = vcombine.high %v6329_v35, %v6333_v4 }
 0x8b6   :  { %7967 = vmatprep.subr.bf16.mxu0 %v12186_v41  ;;  %8049 = vmatprep.subr.bf16.mxu1 %v12188_v42  ;;  %v6336_v41 = vld [vmem:[#allocation19 + $0x50] sm:$0xff] }
 0x8b9   :  { %7968 = vmatpush1.bf16.msra.mxu0 %v12185_v46  ;;  %8050 = vmatpush1.bf16.msra.mxu1 %v12187_v49  ;;  %v11973_v46 = vcombine.low %v6328_v26, %v6332_v55  ;;  %v6373_v26 = vld [vmem:[#allocation19 + $0x178] sm:$0xff] }
 0x8ba   :  { %7969 = vmatprep.subr.bf16.mxu0 %v12194_v38  ;;  %8051 = vmatprep.subr.bf16.mxu1 %v12196_v60  ;;  %v11975_v38 = vcombine.low %v6329_v35, %v6333_v4  ;;  %v11982_v60 = vcombine.high %v6336_v41, %v6340_v43  ;;  %v6376_v4 = vld [vmem:[#allocation19 + $0x190] sm:$0xff] }
 0x8bd   :  { %7970 = vmatpush1.bf16.msra.mxu0 %v12193_v58  ;;  %8052 = vmatpush1.bf16.msra.mxu1 %v12195_v61  ;;  %v6349_v58 = vld [vmem:[#allocation19 + $0xb8] sm:$0xff]  ;;  %v11981_v61 = vcombine.low %v6336_v41, %v6340_v43 }
 0x8be   :  { %7971 = vmatprep.subr.bf16.mxu0 %v12202_v62  ;;  %8053 = vmatprep.subr.bf16.mxu1 %v12204_v24  ;;  %v11983_v62 = vcombine.low %v6337_v44, %v6341_v45  ;;  %v11990_v24 = vcombine.high %v6344_v54, %v6348_v56  ;;  %v11992_v51 = vcombine.high %v6345_v57, %v6349_v58  ;;  %v6389_v41 = vld [vmem:[#allocation19 + $0x1f8] sm:$0xff] }
 0x8c1   :  { %7972 = vmatpush1.bf16.msra.mxu0 %v12201_v53  ;;  %8054 = vmatpush1.bf16.msra.mxu1 %v12203_v31  ;;  %v6357_v53 = vld [vmem:[#allocation19 + $0xf8] sm:$0xff]  ;;  %v11989_v31 = vcombine.low %v6344_v54, %v6348_v56 }
 0x8c2   :  { %v6303_v22 = vpop.f32.mrb[24].mxu1  ;;  %7973 = vmatprep.subr.bf16.mxu0 %v12210_v7  ;;  %8055 = vmatprep.subr.bf16.mxu1 %v12212_v8  ;;  %v11991_v7 = vcombine.low %v6345_v57, %v6349_v58  ;;  %v11998_v8 = vcombine.high %v6352_v63, %v6356_v0  ;;  %v12000_v59 = vcombine.high %v6353_v1, %v6357_v53 }
 0x8c3   :  { %v6304_v27 = vadd.f32 %v6303_v22, %v5899_v15  ;;  %v6305_v29 = vpop.f32.mrb[25].mxu1  ;;  %v6360_v15 = vld [vmem:[#allocation19 + $0x110] sm:$0xff] }
 0x8c4   :  { %v6306_v9 = vadd.f32 %v6305_v29, %v5903_v19  ;;  %v6307_v10 = vpop.f32.mrb[26].mxu1  ;;  %v11999_v19 = vcombine.low %v6353_v1, %v6357_v53  ;;  %v6368_v22 = vld [vmem:[#allocation19 + $0x150] sm:$0xff] }
 0x8c5   :  { %vm6312_vm2 = vcmp.gt.f32.partialorder %v6304_v27, 0.0  ;;  %v6316_v11 = vmul.f32 0.2, %v6304_v27  ;;  %v6308_v6 = vpop.f32.mrb[27].mxu1  ;;  %7974 = vmatpush1.bf16.msra.mxu0 %v12209_v21  ;;  %8056 = vmatpush1.bf16.msra.mxu1 %v12211_v40  ;;  %v12006_v21 = vcombine.high %v6360_v15, %v6364_v16  ;;  %v6377_v10 = vld [vmem:[#allocation19 + $0x198] sm:$0xff] }
 0x8c6   :  { %vm6313_vm3 = vcmp.gt.f32.partialorder %v6306_v9, 0.0  ;;  %v6317_v33 = vmul.f32 0.2, %v6306_v9  ;;  %7975 = vmatprep.subr.bf16.mxu0 %v12218_v23  ;;  %8057 = vmatprep.subr.bf16.mxu1 %v12220_v25  ;;  %v6372_v23 = vld [vmem:[#allocation19 + $0x170] sm:$0xff]  ;;  %v6369_v25 = vld [vmem:[#allocation19 + $0x158] sm:$0xff] }
 0x8c7   :  { %v6320_v36 = vsel %vm6312_vm2, %v6304_v27, %v6316_v11  ;;  %v12005_v27 = vcombine.low %v6360_v15, %v6364_v16  ;;  %v12014_v55 = vcombine.high %v6368_v22, %v6372_v23  ;;  %v12016_v35 = vcombine.high %v6369_v25, %v6373_v26  ;;  %v6381_v11 = vld [vmem:[#allocation19 + $0x1b8] sm:$0xff] }
 0x8c8   :  { %v6321_v42 = vsel %vm6313_vm3, %v6306_v9, %v6317_v33  ;;  %v14920_v49 = vpack.c.bf16 %v6320_v36, %v6320_v36  ;;  %v6380_v9 = vld [vmem:[#allocation19 + $0x1b0] sm:$0xff]  ;;  %v12013_v6 = vcombine.low %v6368_v22, %v6372_v23  ;;  %v12024_v33 = vcombine.high %v6377_v10, %v6381_v11  ;;  %v6385_v36 = vld [vmem:[#allocation19 + $0x1d8] sm:$0xff] }
 0x8c9   :  { %v14918_v37 = vpack.c.bf16 %v6321_v42, %v6321_v42  ;;  %7976 = vmatpush1.bf16.msra.mxu0 %v12217_v30  ;;  %8058 = vmatpush1.bf16.msra.mxu1 %v12219_v32  ;;  %v12015_v30 = vcombine.low %v6369_v25, %v6373_v26  ;;  %v12022_v32 = vcombine.high %v6376_v4, %v6380_v9 }
 0x8ca   :  { %8068 = vmatprep.subr.bf16.mxu0 %v11974_v34  ;;  %8150 = vmatprep.subr.bf16.mxu1 %v11976_v48  ;;  %v6384_v34 = vld [vmem:[#allocation19 + $0x1d0] sm:$0xff]  ;;  %v12021_v42 = vcombine.low %v6376_v4, %v6380_v9  ;;  %v12023_v43 = vcombine.low %v6377_v10, %v6381_v11  ;;  %v12032_v45 = vcombine.high %v6385_v36, %v6389_v41 }
 0x8cb   :  { %7977 = vmatprep.mubr.bf16.mxu0 %v14918_v37  ;;  %8059 = vmatprep.mubr.bf16.mxu1 %v14918_v37  ;;  %v6388_v48 = vld [vmem:[#allocation19 + $0x1f0] sm:$0xff]  ;;  %v12031_v56 = vcombine.low %v6385_v36, %v6389_v41 }
 0x8cc   :  { %7978 = vmatmul.mubr.bf16.vlgmr.msra.gmra.mrb[20].mxu0 %v14920_v49  ;;  %8060 = vmatmul.mubr.bf16.vlgmr.msra.gmra.mrb[28].mxu1 %v14920_v49  ;;  %v12030_v44 = vcombine.high %v6384_v34, %v6388_v48  ;;  %v12029_v54 = vcombine.low %v6384_v34, %v6388_v48 }
 0x8cd   :  { %8069 = vmatpush1.bf16.msra.mxu0 %v11973_v46  ;;  %8100 = vmatprep.mubr.bf16.mxu0 %v14900_v3  ;;  %v6392_v46 = vld [vmem:[#allocation19 + $0x210] sm:$0xff] }
 0x8ce   :  { %8151 = vmatpush1.bf16.msra.mxu1 %v11975_v38  ;;  %8182 = vmatprep.mubr.bf16.mxu1 %v14900_v3  ;;  %v6361_v3 = vld [vmem:[#allocation19 + $0x118] sm:$0xff]  ;;  %v6396_v38 = vld [vmem:[#allocation19 + $0x230] sm:$0xff] }
 0x8cf   :  { %8070 = vmatprep.subr.bf16.mxu0 %v11982_v60  ;;  %8152 = vmatprep.subr.bf16.mxu1 %v11984_v52  ;;  %v12008_v40 = vcombine.high %v6361_v3, %v6365_v17  ;;  %v12007_v29 = vcombine.low %v6361_v3, %v6365_v17  ;;  %v6393_v60 = vld [vmem:[#allocation19 + $0x218] sm:$0xff]  ;;  %v12038_v57 = vcombine.high %v6392_v46, %v6396_v38 }
 0x8d0   :  { %v6397_v52 = vld [vmem:[#allocation19 + $0x238] sm:$0xff]  ;;  %v12037_v63 = vcombine.low %v6392_v46, %v6396_v38 }
 0x8d1   :  { %8071 = vmatpush1.bf16.msra.mxu0 %v11981_v61  ;;  %v12040_v58 = vcombine.high %v6393_v60, %v6397_v52  ;;  %v6400_v61 = vld [vmem:[#allocation19 + $0x250] sm:$0xff]  ;;  %v12039_v0 = vcombine.low %v6393_v60, %v6397_v52 }
 0x8d2   :  { %8153 = vmatpush1.bf16.msra.mxu1 %v11983_v62  ;;  %8072 = vmatprep.subr.bf16.mxu0 %v11990_v24  ;;  %v6404_v62 = vld [vmem:[#allocation19 + $0x270] sm:$0xff]  ;;  %v6401_v24 = vld [vmem:[#allocation19 + $0x258] sm:$0xff] }
 0x8d3   :  { %8154 = vmatprep.subr.bf16.mxu1 %v11992_v51  ;;  %v6405_v51 = vld [vmem:[#allocation19 + $0x278] sm:$0xff]  ;;  %v12046_v1 = vcombine.high %v6400_v61, %v6404_v62  ;;  %v12045_v15 = vcombine.low %v6400_v61, %v6404_v62 }
 0x8d4   :  { %v12048_v53 = vcombine.high %v6401_v24, %v6405_v51  ;;  %v12047_v16 = vcombine.low %v6401_v24, %v6405_v51 }
 0x8d5   :  { %8073 = vmatpush1.bf16.msra.mxu0 %v11989_v31  ;;  %v6408_v31 = vld [vmem:[#allocation19 + $0x290] sm:$0xff] }
 0x8d6   :  { %8155 = vmatpush1.bf16.msra.mxu1 %v11991_v7  ;;  %8074 = vmatprep.subr.bf16.mxu0 %v11998_v8  ;;  %v6412_v7 = vld [vmem:[#allocation19 + $0x2b0] sm:$0xff]  ;;  %v6409_v8 = vld [vmem:[#allocation19 + $0x298] sm:$0xff] }
 0x8d7   :  { %8156 = vmatprep.subr.bf16.mxu1 %v12000_v59  ;;  %v6413_v59 = vld [vmem:[#allocation19 + $0x2b8] sm:$0xff]  ;;  %v12054_v3 = vcombine.high %v6408_v31, %v6412_v7  ;;  %v12053_v22 = vcombine.low %v6408_v31, %v6412_v7 }
 0x8d8   :  { %v12056_v17 = vcombine.high %v6409_v8, %v6413_v59  ;;  %v12055_v23 = vcombine.low %v6409_v8, %v6413_v59 }
 0x8d9   :  { %8075 = vmatpush1.bf16.msra.mxu0 %v11997_v18  ;;  %v6416_v18 = vld [vmem:[#allocation19 + $0x2d0] sm:$0xff] }
 0x8da   :  { %8157 = vmatpush1.bf16.msra.mxu1 %v11999_v19  ;;  %8076 = vmatprep.subr.bf16.mxu0 %v12006_v21  ;;  %v6420_v19 = vld [vmem:[#allocation19 + $0x2f0] sm:$0xff]  ;;  %v6417_v21 = vld [vmem:[#allocation19 + $0x2d8] sm:$0xff] }
 0x8db   :  { %8158 = vmatprep.subr.bf16.mxu1 %v12008_v40  ;;  %v6421_v40 = vld [vmem:[#allocation19 + $0x2f8] sm:$0xff]  ;;  %v12062_v25 = vcombine.high %v6416_v18, %v6420_v19  ;;  %v12061_v4 = vcombine.low %v6416_v18, %v6420_v19 }
 0x8dc   :  { %v12064_v26 = vcombine.high %v6417_v21, %v6421_v40  ;;  %v12063_v9 = vcombine.low %v6417_v21, %v6421_v40  ;;  %v6469_v18 = vld [vmem:[#allocation19 + $0x478] sm:$0xff]  ;;  %v6472_v40 = vld [vmem:[#allocation19 + $0x490] sm:$0xff] }
 0x8dd   :  { %8077 = vmatpush1.bf16.msra.mxu0 %v12005_v27  ;;  %v6424_v27 = vld [vmem:[#allocation19 + $0x310] sm:$0xff] }
 0x8de   :  { %8159 = vmatpush1.bf16.msra.mxu1 %v12007_v29  ;;  %8078 = vmatprep.subr.bf16.mxu0 %v12014_v55  ;;  %v6428_v29 = vld [vmem:[#allocation19 + $0x330] sm:$0xff]  ;;  %v6425_v55 = vld [vmem:[#allocation19 + $0x318] sm:$0xff] }
 0x8df   :  { %8160 = vmatprep.subr.bf16.mxu1 %v12016_v35  ;;  %v6429_v35 = vld [vmem:[#allocation19 + $0x338] sm:$0xff]  ;;  %v12070_v10 = vcombine.high %v6424_v27, %v6428_v29  ;;  %v12069_v34 = vcombine.low %v6424_v27, %v6428_v29 }
 0x8e0   :  { %v12072_v11 = vcombine.high %v6425_v55, %v6429_v35  ;;  %v12071_v48 = vcombine.low %v6425_v55, %v6429_v35 }
 0x8e1   :  { %8079 = vmatpush1.bf16.msra.mxu0 %v12013_v6  ;;  %v6432_v6 = vld [vmem:[#allocation19 + $0x350] sm:$0xff] }
 0x8e2   :  { %8161 = vmatpush1.bf16.msra.mxu1 %v12015_v30  ;;  %8080 = vmatprep.subr.bf16.mxu0 %v12022_v32  ;;  %v6436_v30 = vld [vmem:[#allocation19 + $0x370] sm:$0xff]  ;;  %v6433_v32 = vld [vmem:[#allocation19 + $0x358] sm:$0xff] }
 0x8e3   :  { %8162 = vmatprep.subr.bf16.mxu1 %v12024_v33  ;;  %v6437_v33 = vld [vmem:[#allocation19 + $0x378] sm:$0xff]  ;;  %v12078_v36 = vcombine.high %v6432_v6, %v6436_v30  ;;  %v12077_v46 = vcombine.low %v6432_v6, %v6436_v30 }
 0x8e4   :  { %v12080_v41 = vcombine.high %v6433_v32, %v6437_v33  ;;  %v12079_v38 = vcombine.low %v6433_v32, %v6437_v33  ;;  %v6488_v33 = vld [vmem:[#allocation19 + $0x510] sm:$0xff] }
 0x8e5   :  { %8081 = vmatpush1.bf16.msra.mxu0 %v12021_v42  ;;  %v6440_v42 = vld [vmem:[#allocation19 + $0x390] sm:$0xff] }
 0x8e6   :  { %8163 = vmatpush1.bf16.msra.mxu1 %v12023_v43  ;;  %8082 = vmatprep.subr.bf16.mxu0 %v12030_v44  ;;  %v6444_v43 = vld [vmem:[#allocation19 + $0x3b0] sm:$0xff]  ;;  %v6441_v44 = vld [vmem:[#allocation19 + $0x398] sm:$0xff] }
 0x8e7   :  { %8164 = vmatprep.subr.bf16.mxu1 %v12032_v45  ;;  %v6445_v45 = vld [vmem:[#allocation19 + $0x3b8] sm:$0xff]  ;;  %v12086_v60 = vcombine.high %v6440_v42, %v6444_v43  ;;  %v12085_v61 = vcombine.low %v6440_v42, %v6444_v43 }
 0x8e8   :  { %v12088_v52 = vcombine.high %v6441_v44, %v6445_v45  ;;  %v12087_v62 = vcombine.low %v6441_v44, %v6445_v45  ;;  %v6496_v44 = vld [vmem:[#allocation19 + $0x550] sm:$0xff] }
 0x8e9   :  { %8083 = vmatpush1.bf16.msra.mxu0 %v12029_v54  ;;  %v6448_v54 = vld [vmem:[#allocation19 + $0x3d0] sm:$0xff] }
 0x8ea   :  { %8165 = vmatpush1.bf16.msra.mxu1 %v12031_v56  ;;  %8084 = vmatprep.subr.bf16.mxu0 %v12038_v57  ;;  %v6452_v56 = vld [vmem:[#allocation19 + $0x3f0] sm:$0xff]  ;;  %v6449_v57 = vld [vmem:[#allocation19 + $0x3d8] sm:$0xff] }
 0x8eb   :  { %8166 = vmatprep.subr.bf16.mxu1 %v12040_v58  ;;  %v6453_v58 = vld [vmem:[#allocation19 + $0x3f8] sm:$0xff]  ;;  %v12094_v24 = vcombine.high %v6448_v54, %v6452_v56  ;;  %v12093_v31 = vcombine.low %v6448_v54, %v6452_v56  ;;  %v6500_v45 = vld [vmem:[#allocation19 + $0x570] sm:$0xff] }
 0x8ec   :  { %v12096_v51 = vcombine.high %v6449_v57, %v6453_v58  ;;  %v12095_v7 = vcombine.low %v6449_v57, %v6453_v58  ;;  %v12142_v54 = vcombine.high %v6496_v44, %v6500_v45  ;;  %v6504_v57 = vld [vmem:[#allocation19 + $0x590] sm:$0xff] }
 0x8ed   :  { %8085 = vmatpush1.bf16.msra.mxu0 %v12037_v63  ;;  %v6456_v63 = vld [vmem:[#allocation19 + $0x410] sm:$0xff] }
 0x8ee   :  { %8167 = vmatpush1.bf16.msra.mxu1 %v12039_v0  ;;  %8086 = vmatprep.subr.bf16.mxu0 %v12046_v1  ;;  %v6460_v0 = vld [vmem:[#allocation19 + $0x430] sm:$0xff]  ;;  %v6457_v1 = vld [vmem:[#allocation19 + $0x418] sm:$0xff] }
 0x8ef   :  { %8168 = vmatprep.subr.bf16.mxu1 %v12048_v53  ;;  %v6461_v53 = vld [vmem:[#allocation19 + $0x438] sm:$0xff]  ;;  %v12102_v8 = vcombine.high %v6456_v63, %v6460_v0  ;;  %v6508_v58 = vld [vmem:[#allocation19 + $0x5b0] sm:$0xff] }
 0x8f0   :  { %v12104_v59 = vcombine.high %v6457_v1, %v6461_v53  ;;  %v12103_v19 = vcombine.low %v6457_v1, %v6461_v53  ;;  %v6512_v1 = vld [vmem:[#allocation19 + $0x5d0] sm:$0xff] }
 0x8f1   :  { %8087 = vmatpush1.bf16.msra.mxu0 %v12045_v15  ;;  %v6464_v15 = vld [vmem:[#allocation19 + $0x450] sm:$0xff] }
 0x8f2   :  { %8169 = vmatpush1.bf16.msra.mxu1 %v12047_v16  ;;  %8088 = vmatprep.subr.bf16.mxu0 %v12054_v3  ;;  %v6468_v16 = vld [vmem:[#allocation19 + $0x470] sm:$0xff]  ;;  %v12101_v3 = vcombine.low %v6456_v63, %v6460_v0  ;;  %v12150_v63 = vcombine.high %v6504_v57, %v6508_v58 }
 0x8f3   :  { %8170 = vmatprep.subr.bf16.mxu1 %v12056_v17  ;;  %v6465_v17 = vld [vmem:[#allocation19 + $0x458] sm:$0xff]  ;;  %v12110_v21 = vcombine.high %v6464_v15, %v6468_v16  ;;  %v12109_v27 = vcombine.low %v6464_v15, %v6468_v16  ;;  %v6516_v53 = vld [vmem:[#allocation19 + $0x5f0] sm:$0xff] }
 0x8f4   :  { %v12111_v29 = vcombine.low %v6465_v17, %v6469_v18  ;;  %v12158_v15 = vcombine.high %v6512_v1, %v6516_v53 }
 0x8f5   :  { %8089 = vmatpush1.bf16.msra.mxu0 %v12053_v22  ;;  %v6476_v22 = vld [vmem:[#allocation19 + $0x4b0] sm:$0xff] }
 0x8f6   :  { %8171 = vmatpush1.bf16.msra.mxu1 %v12055_v23  ;;  %8090 = vmatprep.subr.bf16.mxu0 %v12062_v25  ;;  %v12112_v23 = vcombine.high %v6465_v17, %v6469_v18  ;;  %v6473_v25 = vld [vmem:[#allocation19 + $0x498] sm:$0xff]  ;;  %v12118_v55 = vcombine.high %v6472_v40, %v6476_v22  ;;  %v12117_v6 = vcombine.low %v6472_v40, %v6476_v22  ;;  %v6524_v17 = vld [vmem:[#allocation19 + $0x630] sm:$0xff] }
 0x8f7   :  { %8172 = vmatprep.subr.bf16.mxu1 %v12064_v26  ;;  %v6477_v26 = vld [vmem:[#allocation19 + $0x4b8] sm:$0xff] }
 0x8f8   :  { %v12120_v35 = vcombine.high %v6473_v25, %v6477_v26  ;;  %v6521_v18 = vld [vmem:[#allocation19 + $0x618] sm:$0xff] }
 0x8f9   :  { %8091 = vmatpush1.bf16.msra.mxu0 %v12061_v4  ;;  %v6480_v4 = vld [vmem:[#allocation19 + $0x4d0] sm:$0xff] }
 0x8fa   :  { %8173 = vmatpush1.bf16.msra.mxu1 %v12063_v9  ;;  %8092 = vmatprep.subr.bf16.mxu0 %v12070_v10  ;;  %v6484_v9 = vld [vmem:[#allocation19 + $0x4f0] sm:$0xff]  ;;  %v6481_v10 = vld [vmem:[#allocation19 + $0x4d8] sm:$0xff] }
 0x8fb   :  { %8174 = vmatprep.subr.bf16.mxu1 %v12072_v11  ;;  %v6485_v11 = vld [vmem:[#allocation19 + $0x4f8] sm:$0xff]  ;;  %v12126_v30 = vcombine.high %v6480_v4, %v6484_v9 }
 0x8fc   :  { %v12128_v32 = vcombine.high %v6481_v10, %v6485_v11 }
 0x8fd   :  { %8093 = vmatpush1.bf16.msra.mxu0 %v12069_v34  ;;  %v6492_v34 = vld [vmem:[#allocation19 + $0x530] sm:$0xff] }
 0x8fe   :  { %8175 = vmatpush1.bf16.msra.mxu1 %v12071_v48  ;;  %8094 = vmatprep.subr.bf16.mxu0 %v12078_v36  ;;  %v6489_v48 = vld [vmem:[#allocation19 + $0x518] sm:$0xff]  ;;  %v12134_v42 = vcombine.high %v6488_v33, %v6492_v34 }
 0x8ff   :  { %8176 = vmatprep.subr.bf16.mxu1 %v12080_v41  ;;  %v6493_v36 = vld [vmem:[#allocation19 + $0x538] sm:$0xff]  ;;  %v12127_v41 = vcombine.low %v6481_v10, %v6485_v11  ;;  %v6536_v10 = vld [vmem:[#allocation19 + $0x690] sm:$0xff] }
 0x900   :  { %v12136_v43 = vcombine.high %v6489_v48, %v6493_v36  ;;  %v6540_v11 = vld [vmem:[#allocation19 + $0x6b0] sm:$0xff] }
 0x901   :  { %8095 = vmatpush1.bf16.msra.mxu0 %v12077_v46  ;;  %v6497_v46 = vld [vmem:[#allocation19 + $0x558] sm:$0xff] }
 0x902   :  { %8177 = vmatpush1.bf16.msra.mxu1 %v12079_v38  ;;  %8096 = vmatprep.subr.bf16.mxu0 %v12086_v60  ;;  %v6501_v38 = vld [vmem:[#allocation19 + $0x578] sm:$0xff]  ;;  %v12133_v60 = vcombine.low %v6488_v33, %v6492_v34  ;;  %v12182_v33 = vcombine.high %v6536_v10, %v6540_v11 }
 0x903   :  { %8178 = vmatprep.subr.bf16.mxu1 %v12088_v52  ;;  %v12135_v52 = vcombine.low %v6489_v48, %v6493_v36  ;;  %v12144_v56 = vcombine.high %v6497_v46, %v6501_v38  ;;  %v6544_v48 = vld [vmem:[#allocation19 + $0x6d0] sm:$0xff] }
 0x904   :  { %v6548_v36 = vld [vmem:[#allocation19 + $0x6f0] sm:$0xff] }
 0x905   :  { %8097 = vmatpush1.bf16.msra.mxu0 %v12085_v61  ;;  %v6505_v61 = vld [vmem:[#allocation19 + $0x598] sm:$0xff] }
 0x906   :  { %8179 = vmatpush1.bf16.msra.mxu1 %v12087_v62  ;;  %8098 = vmatprep.subr.bf16.mxu0 %v12094_v24  ;;  %v6509_v62 = vld [vmem:[#allocation19 + $0x5b8] sm:$0xff]  ;;  %v12141_v24 = vcombine.low %v6496_v44, %v6500_v45  ;;  %v12190_v44 = vcombine.high %v6544_v48, %v6548_v36 }
 0x907   :  { %8180 = vmatprep.subr.bf16.mxu1 %v12096_v51  ;;  %v12143_v51 = vcombine.low %v6497_v46, %v6501_v38  ;;  %v12152_v0 = vcombine.high %v6505_v61, %v6509_v62  ;;  %v6552_v46 = vld [vmem:[#allocation19 + $0x710] sm:$0xff] }
 0x908   :  { %v6556_v38 = vld [vmem:[#allocation19 + $0x730] sm:$0xff] }
 0x909   :  { %8099 = vmatpush1.bf16.msra.mxu0 %v12093_v31  ;;  %v6513_v31 = vld [vmem:[#allocation19 + $0x5d8] sm:$0xff] }
 0x90a   :  { %8181 = vmatpush1.bf16.msra.mxu1 %v12095_v7  ;;  %8109 = vmatprep.subr.bf16.mxu0 %v12102_v8  ;;  %v6517_v7 = vld [vmem:[#allocation19 + $0x5f8] sm:$0xff]  ;;  %v12149_v8 = vcombine.low %v6504_v57, %v6508_v58  ;;  %v12198_v57 = vcombine.high %v6552_v46, %v6556_v38 }
 0x90b   :  { %8191 = vmatprep.subr.bf16.mxu1 %v12104_v59  ;;  %v12151_v59 = vcombine.low %v6505_v61, %v6509_v62  ;;  %v12160_v16 = vcombine.high %v6513_v31, %v6517_v7  ;;  %v12159_v40 = vcombine.low %v6513_v31, %v6517_v7  ;;  %v6560_v61 = vld [vmem:[#allocation19 + $0x750] sm:$0xff] }
 0x90c   :  { %8101 = vmatmul.mubr.bf16.vlgmr.msra.gmra.mrb[24].mxu0 %v14902_v5  ;;  %v6564_v62 = vld [vmem:[#allocation19 + $0x770] sm:$0xff] }
 0x90d   :  { %8183 = vmatmul.mubr.bf16.vlgmr.msra.gmra.mrb[32].mxu1 %v14902_v5  ;;  %8110 = vmatpush1.bf16.msra.mxu0 %v12101_v3  ;;  %v12119_v5 = vcombine.low %v6473_v25, %v6477_v26  ;;  %v6520_v3 = vld [vmem:[#allocation19 + $0x610] sm:$0xff] }
 0x90e   :  { %8141 = vmatprep.mubr.bf16.mxu0 %v14918_v37  ;;  %8192 = vmatpush1.bf16.msra.mxu1 %v12103_v19  ;;  %v6525_v19 = vld [vmem:[#allocation19 + $0x638] sm:$0xff]  ;;  %v12166_v22 = vcombine.high %v6520_v3, %v6524_v17  ;;  %v6528_v25 = vld [vmem:[#allocation19 + $0x650] sm:$0xff] }
 0x90f   :  { %8223 = vmatprep.mubr.bf16.mxu1 %v14918_v37  ;;  %8111 = vmatprep.subr.bf16.mxu0 %v12110_v21  ;;  %v12125_v37 = vcombine.low %v6480_v4, %v6484_v9  ;;  %v12157_v21 = vcombine.low %v6512_v1, %v6516_v53  ;;  %v6532_v26 = vld [vmem:[#allocation19 + $0x670] sm:$0xff]  ;;  %v12206_v1 = vcombine.high %v6560_v61, %v6564_v62 }
 0x910   :  { %8193 = vmatprep.subr.bf16.mxu1 %v12112_v23  ;;  %v12168_v23 = vcombine.high %v6521_v18, %v6525_v19  ;;  %v12174_v4 = vcombine.high %v6528_v25, %v6532_v26  ;;  %v6568_v31 = vld [vmem:[#allocation19 + $0x790] sm:$0xff] }
 0x911   :  { %8112 = vmatpush1.bf16.msra.mxu0 %v12109_v27  ;;  %v6529_v27 = vld [vmem:[#allocation19 + $0x658] sm:$0xff]  ;;  %v6572_v7 = vld [vmem:[#allocation19 + $0x7b0] sm:$0xff] }
 0x912   :  { %8194 = vmatpush1.bf16.msra.mxu1 %v12111_v29  ;;  %8113 = vmatprep.subr.bf16.mxu0 %v12118_v55  ;;  %v6533_v29 = vld [vmem:[#allocation19 + $0x678] sm:$0xff]  ;;  %v12165_v55 = vcombine.low %v6520_v3, %v6524_v17  ;;  %v12214_v3 = vcombine.high %v6568_v31, %v6572_v7 }
 0x913   :  { %8195 = vmatprep.subr.bf16.mxu1 %v12120_v35  ;;  %v12167_v35 = vcombine.low %v6521_v18, %v6525_v19  ;;  %v12176_v9 = vcombine.high %v6529_v27, %v6533_v29  ;;  %v6576_v18 = vld [vmem:[#allocation19 + $0x7d0] sm:$0xff] }
 0x914   :  { %v6580_v19 = vld [vmem:[#allocation19 + $0x7f0] sm:$0xff] }
 0x915   :  { %8114 = vmatpush1.bf16.msra.mxu0 %v12117_v6  ;;  %v6537_v6 = vld [vmem:[#allocation19 + $0x698] sm:$0xff] }
 0x916   :  { %8196 = vmatpush1.bf16.msra.mxu1 %v12119_v5  ;;  %8115 = vmatprep.subr.bf16.mxu0 %v12126_v30  ;;  %v6541_v5 = vld [vmem:[#allocation19 + $0x6b8] sm:$0xff]  ;;  %v12173_v30 = vcombine.low %v6528_v25, %v6532_v26  ;;  %v12222_v25 = vcombine.high %v6576_v18, %v6580_v19 }
 0x917   :  { %8197 = vmatprep.subr.bf16.mxu1 %v12128_v32  ;;  %v12175_v32 = vcombine.low %v6529_v27, %v6533_v29  ;;  %v12184_v34 = vcombine.high %v6537_v6, %v6541_v5  ;;  %v12221_v27 = vcombine.low %v6576_v18, %v6580_v19  ;;  %v13472_v18 = vld [vmem:[#allocation22 + $0x21c] ss:$24 sps:$4 sm:$0xff]   ;;  %v13467_v19 = vld [vmem:[#allocation22 + $0x210] ss:$24 sps:$4 sm:$0xff]  }
 0x919   :  { %8116 = vmatpush1.bf16.msra.mxu0 %v12125_v37  ;;  %v6545_v37 = vld [vmem:[#allocation19 + $0x6d8] sm:$0xff] }
 0x91a   :  { %8198 = vmatpush1.bf16.msra.mxu1 %v12127_v41  ;;  %8117 = vmatprep.subr.bf16.mxu0 %v12134_v42  ;;  %v6549_v41 = vld [vmem:[#allocation19 + $0x6f8] sm:$0xff]  ;;  %v12181_v42 = vcombine.low %v6536_v10, %v6540_v11 }
 0x91b   :  { %8199 = vmatprep.subr.bf16.mxu1 %v12136_v43  ;;  %v12183_v43 = vcombine.low %v6537_v6, %v6541_v5  ;;  %v12192_v45 = vcombine.high %v6545_v37, %v6549_v41  ;;  %v13409_v10 = vld [vmem:[#allocation22 + $0x34] ss:$24 sps:$4 sm:$0xff]   ;;  %v13407_v6 = vld [vmem:[#allocation22 + $0x30] ss:$24 sps:$4 sm:$0xff]  }
 0x91c   :  { %v13412_v11 = vld [vmem:[#allocation22 + $0x3c] ss:$24 sps:$4 sm:$0xff]   ;;  %v13410_v5 = vld [vmem:[#allocation22 + $0x38] ss:$24 sps:$4 sm:$0xff]  }
 0x91d   :  { %8118 = vmatpush1.bf16.msra.mxu0 %v12133_v60  ;;  %v6553_v60 = vld [vmem:[#allocation19 + $0x718] sm:$0xff] }
 0x91e   :  { %8200 = vmatpush1.bf16.msra.mxu1 %v12135_v52  ;;  %8119 = vmatprep.subr.bf16.mxu0 %v12142_v54  ;;  %v6557_v52 = vld [vmem:[#allocation19 + $0x738] sm:$0xff]  ;;  %v12189_v54 = vcombine.low %v6544_v48, %v6548_v36 }
 0x91f   :  { %8201 = vmatprep.subr.bf16.mxu1 %v12144_v56  ;;  %v12191_v56 = vcombine.low %v6545_v37, %v6549_v41  ;;  %v12200_v58 = vcombine.high %v6553_v60, %v6557_v52  ;;  %v13421_v48 = vld [vmem:[#allocation22 + $0x94] ss:$24 sps:$4 sm:$0xff]   ;;  %v13419_v37 = vld [vmem:[#allocation22 + $0x90] ss:$24 sps:$4 sm:$0xff]   ;;  %v13427_v41 = vld [vmem:[#allocation22 + $0xc4] ss:$24 sps:$4 sm:$0xff]  }
 0x920   :  { %v13424_v36 = vld [vmem:[#allocation22 + $0x9c] ss:$24 sps:$4 sm:$0xff]  }
 0x921   :  { %8120 = vmatpush1.bf16.msra.mxu0 %v12141_v24  ;;  %v6561_v24 = vld [vmem:[#allocation19 + $0x758] sm:$0xff] }
 0x922   :  { %8202 = vmatpush1.bf16.msra.mxu1 %v12143_v51  ;;  %8121 = vmatprep.subr.bf16.mxu0 %v12150_v63  ;;  %v6565_v51 = vld [vmem:[#allocation19 + $0x778] sm:$0xff]  ;;  %v12197_v63 = vcombine.low %v6552_v46, %v6556_v38 }
 0x923   :  { %8203 = vmatprep.subr.bf16.mxu1 %v12152_v0  ;;  %v12199_v0 = vcombine.low %v6553_v60, %v6557_v52  ;;  %v12208_v53 = vcombine.high %v6561_v24, %v6565_v51  ;;  %v13436_v46 = vld [vmem:[#allocation22 + $0xfc] ss:$24 sps:$4 sm:$0xff]   ;;  %v13431_v38 = vld [vmem:[#allocation22 + $0xf0] ss:$24 sps:$4 sm:$0xff]  }
 0x924   :  { %v13434_v60 = vld [vmem:[#allocation22 + $0xf8] ss:$24 sps:$4 sm:$0xff]   ;;  %v13439_v52 = vld [vmem:[#allocation22 + $0x124] ss:$24 sps:$4 sm:$0xff]  }
 0x925   :  { %8122 = vmatpush1.bf16.msra.mxu0 %v12149_v8  ;;  %v6569_v8 = vld [vmem:[#allocation19 + $0x798] sm:$0xff] }
 0x926   :  { %8204 = vmatpush1.bf16.msra.mxu1 %v12151_v59  ;;  %8123 = vmatprep.subr.bf16.mxu0 %v12158_v15  ;;  %v6573_v59 = vld [vmem:[#allocation19 + $0x7b8] sm:$0xff]  ;;  %v12205_v15 = vcombine.low %v6560_v61, %v6564_v62 }
 0x927   :  { %8205 = vmatprep.subr.bf16.mxu1 %v12160_v16  ;;  %v12207_v16 = vcombine.low %v6561_v24, %v6565_v51  ;;  %v12216_v17 = vcombine.high %v6569_v8, %v6573_v59  ;;  %v13448_v61 = vld [vmem:[#allocation22 + $0x15c] ss:$24 sps:$4 sm:$0xff]   ;;  %v13443_v62 = vld [vmem:[#allocation22 + $0x150] ss:$24 sps:$4 sm:$0xff]  }
 0x928   :  { %v13446_v24 = vld [vmem:[#allocation22 + $0x158] ss:$24 sps:$4 sm:$0xff]   ;;  %v13451_v51 = vld [vmem:[#allocation22 + $0x184] ss:$24 sps:$4 sm:$0xff]  }
 0x929   :  { %8124 = vmatpush1.bf16.msra.mxu0 %v12157_v21  ;;  %v6577_v21 = vld [vmem:[#allocation19 + $0x7d8] sm:$0xff] }
 0x92a   :  { %8206 = vmatpush1.bf16.msra.mxu1 %v12159_v40  ;;  %8125 = vmatprep.subr.bf16.mxu0 %v12166_v22  ;;  %v6581_v40 = vld [vmem:[#allocation19 + $0x7f8] sm:$0xff]  ;;  %v12213_v22 = vcombine.low %v6568_v31, %v6572_v7 }
 0x92b   :  { %8207 = vmatprep.subr.bf16.mxu1 %v12168_v23  ;;  %v12215_v23 = vcombine.low %v6569_v8, %v6573_v59  ;;  %v12224_v26 = vcombine.high %v6577_v21, %v6581_v40  ;;  %v12223_v29 = vcombine.low %v6577_v21, %v6581_v40  ;;  %v13460_v31 = vld [vmem:[#allocation22 + $0x1bc] ss:$24 sps:$4 sm:$0xff]   ;;  %v13455_v7 = vld [vmem:[#allocation22 + $0x1b0] ss:$24 sps:$4 sm:$0xff]  }
 0x92c   :  { %v13458_v8 = vld [vmem:[#allocation22 + $0x1b8] ss:$24 sps:$4 sm:$0xff]   ;;  %v13463_v59 = vld [vmem:[#allocation22 + $0x1e4] ss:$24 sps:$4 sm:$0xff]  }
 0x92d   :  { %8126 = vmatpush1.bf16.msra.mxu0 %v12165_v55  ;;  %v13403_v55 = vld [vmem:[#allocation22 + $0x4] ss:$24 sps:$4 sm:$0xff]   ;;  %v13470_v21 = vld [vmem:[#allocation22 + $0x218] ss:$24 sps:$4 sm:$0xff]  }
 0x92e   :  { %8208 = vmatpush1.bf16.msra.mxu1 %v12167_v35  ;;  %8127 = vmatprep.subr.bf16.mxu0 %v12174_v4  ;;  %v13406_v35 = vld [vmem:[#allocation22 + $0xc] ss:$24 sps:$4 sm:$0xff]   ;;  %v13401_v4 = vld [vmem:[#allocation22] ss:$24 sps:$4 sm:$0xff]  }
 0x92f   :  { %8209 = vmatprep.subr.bf16.mxu1 %v12176_v9  ;;  %v13404_v9 = vld [vmem:[#allocation22 + $0x8] ss:$24 sps:$4 sm:$0xff]   ;;  %v13475_v40 = vld [vmem:[#allocation22 + $0x244] ss:$24 sps:$4 sm:$0xff]  }
 0x931   :  { %8128 = vmatpush1.bf16.msra.mxu0 %v12173_v30  ;;  %v13415_v30 = vld [vmem:[#allocation22 + $0x64] ss:$24 sps:$4 sm:$0xff]  }
 0x932   :  { %8210 = vmatpush1.bf16.msra.mxu1 %v12175_v32  ;;  %8129 = vmatprep.subr.bf16.mxu0 %v12182_v33  ;;  %v13418_v32 = vld [vmem:[#allocation22 + $0x6c] ss:$24 sps:$4 sm:$0xff]   ;;  %v13413_v33 = vld [vmem:[#allocation22 + $0x60] ss:$24 sps:$4 sm:$0xff]  }
 0x933   :  { %8211 = vmatprep.subr.bf16.mxu1 %v12184_v34  ;;  %v13416_v34 = vld [vmem:[#allocation22 + $0x68] ss:$24 sps:$4 sm:$0xff]  }
 0x935   :  { %8130 = vmatpush1.bf16.msra.mxu0 %v12181_v42  ;;  %v13430_v42 = vld [vmem:[#allocation22 + $0xcc] ss:$24 sps:$4 sm:$0xff]  }
 0x936   :  { %8212 = vmatpush1.bf16.msra.mxu1 %v12183_v43  ;;  %8131 = vmatprep.subr.bf16.mxu0 %v12190_v44  ;;  %v13425_v43 = vld [vmem:[#allocation22 + $0xc0] ss:$24 sps:$4 sm:$0xff]  }
 0x937   :  { %8213 = vmatprep.subr.bf16.mxu1 %v12192_v45  ;;  %v13428_v44 = vld [vmem:[#allocation22 + $0xc8] ss:$24 sps:$4 sm:$0xff]   ;;  %v13433_v45 = vld [vmem:[#allocation22 + $0xf4] ss:$24 sps:$4 sm:$0xff]  }
 0x939   :  { %8132 = vmatpush1.bf16.msra.mxu0 %v12189_v54  ;;  %v13442_v54 = vld [vmem:[#allocation22 + $0x12c] ss:$24 sps:$4 sm:$0xff]  }
 0x93a   :  { %8214 = vmatpush1.bf16.msra.mxu1 %v12191_v56  ;;  %8133 = vmatprep.subr.bf16.mxu0 %v12198_v57  ;;  %v13437_v56 = vld [vmem:[#allocation22 + $0x120] ss:$24 sps:$4 sm:$0xff]  }
 0x93b   :  { %8215 = vmatprep.subr.bf16.mxu1 %v12200_v58  ;;  %v13440_v57 = vld [vmem:[#allocation22 + $0x128] ss:$24 sps:$4 sm:$0xff]   ;;  %v13445_v58 = vld [vmem:[#allocation22 + $0x154] ss:$24 sps:$4 sm:$0xff]  }
 0x93d   :  { %8134 = vmatpush1.bf16.msra.mxu0 %v12197_v63  ;;  %v13454_v63 = vld [vmem:[#allocation22 + $0x18c] ss:$24 sps:$4 sm:$0xff]  }
 0x93e   :  { %8216 = vmatpush1.bf16.msra.mxu1 %v12199_v0  ;;  %8135 = vmatprep.subr.bf16.mxu0 %v12206_v1  ;;  %v13449_v0 = vld [vmem:[#allocation22 + $0x180] ss:$24 sps:$4 sm:$0xff]  }
 0x93f   :  { %8217 = vmatprep.subr.bf16.mxu1 %v12208_v53  ;;  %v13452_v1 = vld [vmem:[#allocation22 + $0x188] ss:$24 sps:$4 sm:$0xff]   ;;  %v13457_v53 = vld [vmem:[#allocation22 + $0x1b4] ss:$24 sps:$4 sm:$0xff]  }
 0x941   :  { %8136 = vmatpush1.bf16.msra.mxu0 %v12205_v15  ;;  %v13466_v15 = vld [vmem:[#allocation22 + $0x1ec] ss:$24 sps:$4 sm:$0xff]  }
 0x942   :  { %8218 = vmatpush1.bf16.msra.mxu1 %v12207_v16  ;;  %8137 = vmatprep.subr.bf16.mxu0 %v12214_v3  ;;  %v13461_v16 = vld [vmem:[#allocation22 + $0x1e0] ss:$24 sps:$4 sm:$0xff]  }
 0x943   :  { %8219 = vmatprep.subr.bf16.mxu1 %v12216_v17  ;;  %v13464_v3 = vld [vmem:[#allocation22 + $0x1e8] ss:$24 sps:$4 sm:$0xff]   ;;  %v13469_v17 = vld [vmem:[#allocation22 + $0x214] ss:$24 sps:$4 sm:$0xff]  }
 0x945   :  { %8138 = vmatpush1.bf16.msra.mxu0 %v12213_v22  ;;  %v13478_v22 = vld [vmem:[#allocation22 + $0x24c] ss:$24 sps:$4 sm:$0xff]  }
 0x946   :  { %8220 = vmatpush1.bf16.msra.mxu1 %v12215_v23  ;;  %8139 = vmatprep.subr.bf16.mxu0 %v12222_v25  ;;  %v13473_v23 = vld [vmem:[#allocation22 + $0x240] ss:$24 sps:$4 sm:$0xff]  }
 0x947   :  { %8221 = vmatprep.subr.bf16.mxu1 %v12224_v26  ;;  %v13476_v25 = vld [vmem:[#allocation22 + $0x248] ss:$24 sps:$4 sm:$0xff]   ;;  %v13481_v26 = vld [vmem:[#allocation22 + $0x274] ss:$24 sps:$4 sm:$0xff]  }
 0x949   :  { %8140 = vmatpush1.bf16.msra.mxu0 %v12221_v27  ;;  %v13484_v27 = vld [vmem:[#allocation22 + $0x27c] ss:$24 sps:$4 sm:$0xff]  }
 0x94a   :  { %8222 = vmatpush1.bf16.msra.mxu1 %v12223_v29  ;;  %10600 = vmatprep.subr.bf16.mxu0 %v13403_v55  ;;  %v13479_v29 = vld [vmem:[#allocation22 + $0x270] ss:$24 sps:$4 sm:$0xff]  }
 0x94b   :  { %10764 = vmatprep.subr.bf16.mxu1 %v13406_v35  ;;  %v13482_v55 = vld [vmem:[#allocation22 + $0x278] ss:$24 sps:$4 sm:$0xff]   ;;  %v13487_v35 = vld [vmem:[#allocation22 + $0x2a4] ss:$24 sps:$4 sm:$0xff]  }
 0x94c   :  { %8142 = vmatmul.mubr.bf16.vlgmr.msra.gmra.mrb[24].mxu0 %v14920_v49 }
 0x94d   :  { %8224 = vmatmul.mubr.bf16.vlgmr.msra.gmra.mrb[32].mxu1 %v14920_v49  ;;  %10601 = vmatpush1.bf16.msra.mxu0 %v13401_v4  ;;  %v13422_v49 = vld [vmem:[#allocation22 + $0x98] ss:$24 sps:$4 sm:$0xff]   ;;  %v13490_v4 = vld [vmem:[#allocation22 + $0x2ac] ss:$24 sps:$4 sm:$0xff]  }
 0x94e   :  { %10765 = vmatpush1.bf16.msra.mxu1 %v13404_v9  ;;  %10602 = vmatprep.subr.bf16.mxu0 %v13409_v10  ;;  %v13485_v9 = vld [vmem:[#allocation22 + $0x2a0] ss:$24 sps:$4 sm:$0xff]  }
 0x94f   :  { %10766 = vmatprep.subr.bf16.mxu1 %v13412_v11  ;;  %v13488_v10 = vld [vmem:[#allocation22 + $0x2a8] ss:$24 sps:$4 sm:$0xff]   ;;  %v13493_v11 = vld [vmem:[#allocation22 + $0x2d4] ss:$24 sps:$4 sm:$0xff]  }
 0x951   :  { %10603 = vmatpush1.bf16.msra.mxu0 %v13407_v6  ;;  %v13496_v6 = vld [vmem:[#allocation22 + $0x2dc] ss:$24 sps:$4 sm:$0xff]  }
 0x952   :  { %10767 = vmatpush1.bf16.msra.mxu1 %v13410_v5  ;;  %10604 = vmatprep.subr.bf16.mxu0 %v13415_v30  ;;  %v13491_v5 = vld [vmem:[#allocation22 + $0x2d0] ss:$24 sps:$4 sm:$0xff]  }
 0x953   :  { %10768 = vmatprep.subr.bf16.mxu1 %v13418_v32  ;;  %v13494_v30 = vld [vmem:[#allocation22 + $0x2d8] ss:$24 sps:$4 sm:$0xff]   ;;  %v13499_v32 = vld [vmem:[#allocation22 + $0x304] ss:$24 sps:$4 sm:$0xff]  }
 0x955   :  { %10605 = vmatpush1.bf16.msra.mxu0 %v13413_v33  ;;  %v13502_v33 = vld [vmem:[#allocation22 + $0x30c] ss:$24 sps:$4 sm:$0xff]  }
 0x956   :  { %10769 = vmatpush1.bf16.msra.mxu1 %v13416_v34  ;;  %10606 = vmatprep.subr.bf16.mxu0 %v13421_v48  ;;  %v14934_v34 = vld [vmem:[#allocation21] sm:$0xff] }
 0x957   :  { %10770 = vmatprep.subr.bf16.mxu1 %v13424_v36  ;;  %v6587_v48 = vrot.slane %v14934_v34, %v14731_v13  ;;  %v6591_v36 = vrot.slane %v14934_v34, %v14734_v14 }
 0x959   :  { %10607 = vmatpush1.bf16.msra.mxu0 %v13419_v37  ;;  %v6599_v37 = vrot.slane %v14934_v34, %v14767_v12 }
 0x95a   :  { %10771 = vmatpush1.bf16.msra.mxu1 %v13422_v49  ;;  %10608 = vmatprep.subr.bf16.mxu0 %v13427_v41 }
 0x95b   :  { %10772 = vmatprep.subr.bf16.mxu1 %v13430_v42 }
 0x95d   :  { %10609 = vmatpush1.bf16.msra.mxu0 %v13425_v43 }
 0x95e   :  { %10773 = vmatpush1.bf16.msra.mxu1 %v13428_v44  ;;  %10610 = vmatprep.subr.bf16.mxu0 %v13433_v45 }
 0x95f   :  { %10774 = vmatprep.subr.bf16.mxu1 %v13436_v46 }
 0x961   :  { %10611 = vmatpush1.bf16.msra.mxu0 %v13431_v38 }
 0x962   :  { %10775 = vmatpush1.bf16.msra.mxu1 %v13434_v60  ;;  %10612 = vmatprep.subr.bf16.mxu0 %v13439_v52 }
 0x963   :  { %10776 = vmatprep.subr.bf16.mxu1 %v13442_v54 }
 0x965   :  { %10613 = vmatpush1.bf16.msra.mxu0 %v13437_v56 }
 0x966   :  { %10777 = vmatpush1.bf16.msra.mxu1 %v13440_v57  ;;  %10614 = vmatprep.subr.bf16.mxu0 %v13445_v58 }
 0x967   :  { %10778 = vmatprep.subr.bf16.mxu1 %v13448_v61 }
 0x969   :  { %10615 = vmatpush1.bf16.msra.mxu0 %v13443_v62 }
 0x96a   :  { %10779 = vmatpush1.bf16.msra.mxu1 %v13446_v24  ;;  %10616 = vmatprep.subr.bf16.mxu0 %v13451_v51  ;;  %v13497_v51 = vld [vmem:[#allocation22 + $0x300] ss:$24 sps:$4 sm:$0xff]  }
 0x96b   :  { %10780 = vmatprep.subr.bf16.mxu1 %v13454_v63  ;;  %v13500_v63 = vld [vmem:[#allocation22 + $0x308] ss:$24 sps:$4 sm:$0xff]  }
 0x96d   :  { %10617 = vmatpush1.bf16.msra.mxu0 %v13449_v0 }
 0x96e   :  { %10781 = vmatpush1.bf16.msra.mxu1 %v13452_v1  ;;  %10618 = vmatprep.subr.bf16.mxu0 %v13457_v53  ;;  %v13505_v53 = vld [vmem:[#allocation22 + $0x334] ss:$24 sps:$4 sm:$0xff]  }
 0x96f   :  { %10782 = vmatprep.subr.bf16.mxu1 %v13460_v31  ;;  %v13508_v31 = vld [vmem:[#allocation22 + $0x33c] ss:$24 sps:$4 sm:$0xff]  }
 0x971   :  { %10619 = vmatpush1.bf16.msra.mxu0 %v13455_v7 }
 0x972   :  { %10783 = vmatpush1.bf16.msra.mxu1 %v13458_v8  ;;  %10620 = vmatprep.subr.bf16.mxu0 %v13463_v59  ;;  %v13503_v8 = vld [vmem:[#allocation22 + $0x330] ss:$24 sps:$4 sm:$0xff]  }
 0x973   :  { %10784 = vmatprep.subr.bf16.mxu1 %v13466_v15  ;;  %v13506_v59 = vld [vmem:[#allocation22 + $0x338] ss:$24 sps:$4 sm:$0xff]   ;;  %v13511_v15 = vld [vmem:[#allocation22 + $0x364] ss:$24 sps:$4 sm:$0xff]  }
 0x975   :  { %10621 = vmatpush1.bf16.msra.mxu0 %v13461_v16  ;;  %v13514_v16 = vld [vmem:[#allocation22 + $0x36c] ss:$24 sps:$4 sm:$0xff]  }
 0x976   :  { %10785 = vmatpush1.bf16.msra.mxu1 %v13464_v3  ;;  %10622 = vmatprep.subr.bf16.mxu0 %v13469_v17  ;;  %v13509_v3 = vld [vmem:[#allocation22 + $0x360] ss:$24 sps:$4 sm:$0xff]  }
 0x977   :  { %10786 = vmatprep.subr.bf16.mxu1 %v13472_v18  ;;  %v13512_v17 = vld [vmem:[#allocation22 + $0x368] ss:$24 sps:$4 sm:$0xff]   ;;  %v13517_v18 = vld [vmem:[#allocation22 + $0x394] ss:$24 sps:$4 sm:$0xff]  }
 0x979   :  { %10623 = vmatpush1.bf16.msra.mxu0 %v13467_v19  ;;  %v13520_v19 = vld [vmem:[#allocation22 + $0x39c] ss:$24 sps:$4 sm:$0xff]  }
 0x97a   :  { %10787 = vmatpush1.bf16.msra.mxu1 %v13470_v21  ;;  %10624 = vmatprep.subr.bf16.mxu0 %v13475_v40  ;;  %v13515_v21 = vld [vmem:[#allocation22 + $0x390] ss:$24 sps:$4 sm:$0xff]  }
 0x97b   :  { %10788 = vmatprep.subr.bf16.mxu1 %v13478_v22  ;;  %v13518_v40 = vld [vmem:[#allocation22 + $0x398] ss:$24 sps:$4 sm:$0xff]   ;;  %v13523_v22 = vld [vmem:[#allocation22 + $0x3c4] ss:$24 sps:$4 sm:$0xff]  }
 0x97d   :  { %10625 = vmatpush1.bf16.msra.mxu0 %v13473_v23  ;;  %v13526_v23 = vld [vmem:[#allocation22 + $0x3cc] ss:$24 sps:$4 sm:$0xff]  }
 0x97e   :  { %10789 = vmatpush1.bf16.msra.mxu1 %v13476_v25  ;;  %10626 = vmatprep.subr.bf16.mxu0 %v13481_v26  ;;  %v13521_v25 = vld [vmem:[#allocation22 + $0x3c0] ss:$24 sps:$4 sm:$0xff]  }
 0x97f   :  { %10790 = vmatprep.subr.bf16.mxu1 %v13484_v27  ;;  %v13524_v26 = vld [vmem:[#allocation22 + $0x3c8] ss:$24 sps:$4 sm:$0xff]   ;;  %v13529_v27 = vld [vmem:[#allocation22 + $0x3f4] ss:$24 sps:$4 sm:$0xff]  }
 0x981   :  { %10627 = vmatpush1.bf16.msra.mxu0 %v13479_v29  ;;  %v13532_v29 = vld [vmem:[#allocation22 + $0x3fc] ss:$24 sps:$4 sm:$0xff]  }
 0x982   :  { %10791 = vmatpush1.bf16.msra.mxu1 %v13482_v55  ;;  %10628 = vmatprep.subr.bf16.mxu0 %v13487_v35  ;;  %v13527_v55 = vld [vmem:[#allocation22 + $0x3f0] ss:$24 sps:$4 sm:$0xff]  }
 0x983   :  { %10792 = vmatprep.subr.bf16.mxu1 %v13490_v4  ;;  %v13530_v35 = vld [vmem:[#allocation22 + $0x3f8] ss:$24 sps:$4 sm:$0xff]   ;;  %v13535_v4 = vld [vmem:[#allocation22 + $0x424] ss:$24 sps:$4 sm:$0xff]  }
 0x985   :  { %10629 = vmatpush1.bf16.msra.mxu0 %v13485_v9  ;;  %v13538_v9 = vld [vmem:[#allocation22 + $0x42c] ss:$24 sps:$4 sm:$0xff]  }
 0x986   :  { %10793 = vmatpush1.bf16.msra.mxu1 %v13488_v10  ;;  %10630 = vmatprep.subr.bf16.mxu0 %v13493_v11  ;;  %v13533_v10 = vld [vmem:[#allocation22 + $0x420] ss:$24 sps:$4 sm:$0xff]  }
 0x987   :  { %10794 = vmatprep.subr.bf16.mxu1 %v13496_v6  ;;  %v13536_v11 = vld [vmem:[#allocation22 + $0x428] ss:$24 sps:$4 sm:$0xff]   ;;  %v13541_v6 = vld [vmem:[#allocation22 + $0x454] ss:$24 sps:$4 sm:$0xff]  }
 0x989   :  { %10631 = vmatpush1.bf16.msra.mxu0 %v13491_v5  ;;  %v13544_v5 = vld [vmem:[#allocation22 + $0x45c] ss:$24 sps:$4 sm:$0xff]  }
 0x98a   :  { %10795 = vmatpush1.bf16.msra.mxu1 %v13494_v30  ;;  %10641 = vmatprep.subr.bf16.mxu0 %v13499_v32  ;;  %v13539_v30 = vld [vmem:[#allocation22 + $0x450] ss:$24 sps:$4 sm:$0xff]  }
 0x98b   :  { %10805 = vmatprep.subr.bf16.mxu1 %v13502_v33  ;;  %v13542_v32 = vld [vmem:[#allocation22 + $0x458] ss:$24 sps:$4 sm:$0xff]   ;;  %v13547_v33 = vld [vmem:[#allocation22 + $0x484] ss:$24 sps:$4 sm:$0xff]  }
 0x99f   :  { %v7979_v49 = vpop.f32.mrb[20].mxu0  ;;  %v14942_v41 = vpop.f32.mrb[28].mxu1 }
 0x9a0   :  { %v12654_v42 = vadd.f32 %v7979_v49, %v6587_v48  ;;  %v7981_v43 = vpop.f32.mrb[21].mxu0  ;;  %v8063_v44 = vpop.f32.mrb[29].mxu1  ;;  %v13550_v48 = vld [vmem:[#allocation22 + $0x48c] ss:$24 sps:$4 sm:$0xff]  }
 0x9a1   :  { %v12655_v45 = vadd.f32 %v7981_v43, %v6591_v36  ;;  %v12657_v46 = vadd.f32 %v8063_v44, %v6599_v37  ;;  %v7983_v38 = vpop.f32.mrb[22].mxu0  ;;  %v8065_v60 = vpop.f32.mrb[30].mxu1  ;;  %v13545_v36 = vld [vmem:[#allocation22 + $0x480] ss:$24 sps:$4 sm:$0xff]   ;;  %v13553_v49 = vld [vmem:[#allocation22 + $0x4b4] ss:$24 sps:$4 sm:$0xff]  }
 0x9a2   :  { %vm8232_vm4 = vcmp.gt.f32.partialorder %v12654_v42, 0.0  ;;  %v8240_v52 = vmul.f32 0.2, %v12654_v42  ;;  %v7984_v58 = vpop.f32.mrb[23].mxu0  ;;  %v8066_v61 = vpop.f32.mrb[31].mxu1 }
 0x9a3   :  { %vm8233_vm5 = vcmp.gt.f32.partialorder %v12655_v45, 0.0  ;;  %v8241_v54 = vmul.f32 0.2, %v12655_v45  ;;  %vm8235_vm6 = vcmp.gt.f32.partialorder %v12657_v46, 0.0  ;;  %v8243_v56 = vmul.f32 0.2, %v12657_v46 }
 0x9a4   :  { %v8248_v57 = vsel %vm8232_vm4, %v12654_v42, %v8240_v52  ;;  %v13548_v37 = vld [vmem:[#allocation22 + $0x488] ss:$24 sps:$4 sm:$0xff]   ;;  %v13556_v42 = vld [vmem:[#allocation22 + $0x4bc] ss:$24 sps:$4 sm:$0xff]   ;;  %v13554_v44 = vld [vmem:[#allocation22 + $0x4b8] ss:$24 sps:$4 sm:$0xff]  }
 0x9a5   :  { %v8249_v62 = vsel %vm8233_vm5, %v12655_v45, %v8241_v54  ;;  %v8251_v0 = vsel %vm8235_vm6, %v12657_v46, %v8243_v56  ;;  %v14946_v1 = vpack.c.bf16 %v8248_v57, %v8248_v57  ;;  %v13551_v43 = vld [vmem:[#allocation22 + $0x4b0] ss:$24 sps:$4 sm:$0xff]   ;;  %v13559_v45 = vld [vmem:[#allocation22 + $0x4e4] ss:$24 sps:$4 sm:$0xff]   ;;  %v13557_v38 = vld [vmem:[#allocation22 + $0x4e0] ss:$24 sps:$4 sm:$0xff]  }
 0x9a6   :  { %v14944_v24 = vpack.c.bf16 %v8249_v62, %v8249_v62  ;;  %v14952_v7 = vpack.c.bf16 %v8251_v0, %v8251_v0  ;;  %v13562_v46 = vld [vmem:[#allocation22 + $0x4ec] ss:$24 sps:$4 sm:$0xff]   ;;  %v13560_v60 = vld [vmem:[#allocation22 + $0x4e8] ss:$24 sps:$4 sm:$0xff]   ;;  %v13568_v54 = vld [vmem:[#allocation22 + $0x51c] ss:$24 sps:$4 sm:$0xff]  }
 0x9a7   :  { %v13565_v52 = vld [vmem:[#allocation22 + $0x514] ss:$24 sps:$4 sm:$0xff]   ;;  %v13563_v56 = vld [vmem:[#allocation22 + $0x510] ss:$24 sps:$4 sm:$0xff]   ;;  %v13571_v58 = vld [vmem:[#allocation22 + $0x544] ss:$24 sps:$4 sm:$0xff]  }
 0x9a8   :  { %10632 = vmatprep.mubr.bf16.mxu0 %v14944_v24  ;;  %10796 = vmatprep.mubr.bf16.mxu1 %v14944_v24  ;;  %v13566_v57 = vld [vmem:[#allocation22 + $0x518] ss:$24 sps:$4 sm:$0xff]   ;;  %v13574_v61 = vld [vmem:[#allocation22 + $0x54c] ss:$24 sps:$4 sm:$0xff]   ;;  %v13580_v0 = vld [vmem:[#allocation22 + $0x57c] ss:$24 sps:$4 sm:$0xff]  }
 0x9a9   :  { %10633 = vmatmul.mubr.bf16.vlgmr.msra.gmra.mrb[28].mxu0 %v14946_v1  ;;  %10797 = vmatmul.mubr.bf16.vlgmr.msra.gmra.mrb[36].mxu1 %v14946_v1  ;;  %v13569_v62 = vld [vmem:[#allocation22 + $0x540] ss:$24 sps:$4 sm:$0xff]  }
 0x9aa   :  { %10642 = vmatpush1.bf16.msra.mxu0 %v13497_v51  ;;  %10806 = vmatpush1.bf16.msra.mxu1 %v13500_v63  ;;  %v13572_v51 = vld [vmem:[#allocation22 + $0x548] ss:$24 sps:$4 sm:$0xff]   ;;  %v13577_v63 = vld [vmem:[#allocation22 + $0x574] ss:$24 sps:$4 sm:$0xff]  }
 0x9ab   :  { %10673 = vmatprep.mubr.bf16.mxu0 %v14952_v7  ;;  %10837 = vmatprep.mubr.bf16.mxu1 %v14952_v7 }
 0x9ac   :  { %10643 = vmatprep.subr.bf16.mxu0 %v13505_v53  ;;  %10807 = vmatprep.subr.bf16.mxu1 %v13508_v31  ;;  %v6595_v53 = vrot.slane %v14934_v34, %v14760_v39  ;;  %v13575_v31 = vld [vmem:[#allocation22 + $0x570] ss:$24 sps:$4 sm:$0xff]  }
 0x9ae   :  { %10644 = vmatpush1.bf16.msra.mxu0 %v13503_v8  ;;  %10808 = vmatpush1.bf16.msra.mxu1 %v13506_v59  ;;  %v13578_v8 = vld [vmem:[#allocation22 + $0x578] ss:$24 sps:$4 sm:$0xff]   ;;  %v13583_v59 = vld [vmem:[#allocation22 + $0x5a4] ss:$24 sps:$4 sm:$0xff]  }
 0x9af   :  { %10645 = vmatprep.subr.bf16.mxu0 %v13511_v15  ;;  %10809 = vmatprep.subr.bf16.mxu1 %v13514_v16  ;;  %v13586_v15 = vld [vmem:[#allocation22 + $0x5ac] ss:$24 sps:$4 sm:$0xff]   ;;  %v12656_v16 = vadd.f32 %v14942_v41, %v6595_v53  ;;  %v13593_v41 = vld [vmem:[#allocation22 + $0x600] ss:$24 sps:$4 sm:$0xff]  }
 0x9b0   :  { %v13649_v53 = vld [vmem:[#allocation22 + $0x7b4] ss:$24 sps:$4 sm:$0xff]  }
 0x9b1   :  { %vm8234_vm7 = vcmp.gt.f32.partialorder %v12656_v16, 0.0 }
 0x9b2   :  { %10646 = vmatpush1.bf16.msra.mxu0 %v13509_v3  ;;  %10810 = vmatpush1.bf16.msra.mxu1 %v13512_v17  ;;  %v13581_v3 = vld [vmem:[#allocation22 + $0x5a0] ss:$24 sps:$4 sm:$0xff]  }
 0x9b3   :  { %10647 = vmatprep.subr.bf16.mxu0 %v13517_v18  ;;  %10811 = vmatprep.subr.bf16.mxu1 %v13520_v19  ;;  %v13584_v17 = vld [vmem:[#allocation22 + $0x5a8] ss:$24 sps:$4 sm:$0xff]   ;;  %v13589_v18 = vld [vmem:[#allocation22 + $0x5d4] ss:$24 sps:$4 sm:$0xff]  }
 0x9b4   :  { %v13592_v19 = vld [vmem:[#allocation22 + $0x5dc] ss:$24 sps:$4 sm:$0xff]  }
 0x9b6   :  { %10648 = vmatpush1.bf16.msra.mxu0 %v13515_v21  ;;  %10812 = vmatpush1.bf16.msra.mxu1 %v13518_v40  ;;  %v8242_v21 = vmul.f32 0.2, %v12656_v16  ;;  %v13587_v40 = vld [vmem:[#allocation22 + $0x5d0] ss:$24 sps:$4 sm:$0xff]  }
 0x9b7   :  { %10649 = vmatprep.subr.bf16.mxu0 %v13523_v22  ;;  %10813 = vmatprep.subr.bf16.mxu1 %v13526_v23  ;;  %v13590_v22 = vld [vmem:[#allocation22 + $0x5d8] ss:$24 sps:$4 sm:$0xff]   ;;  %v13595_v23 = vld [vmem:[#allocation22 + $0x604] ss:$24 sps:$4 sm:$0xff]  }
 0x9ba   :  { %10650 = vmatpush1.bf16.msra.mxu0 %v13521_v25  ;;  %10814 = vmatpush1.bf16.msra.mxu1 %v13524_v26  ;;  %v13598_v25 = vld [vmem:[#allocation22 + $0x60c] ss:$24 sps:$4 sm:$0xff]   ;;  %v8250_v26 = vsel %vm8234_vm7, %v12656_v16, %v8242_v21  ;;  %v13659_v21 = vld [vmem:[#allocation22 + $0x810] ss:$24 sps:$4 sm:$0xff]  }
 0x9bb   :  { %10651 = vmatprep.subr.bf16.mxu0 %v13529_v27  ;;  %10815 = vmatprep.subr.bf16.mxu1 %v13532_v29  ;;  %v13596_v27 = vld [vmem:[#allocation22 + $0x608] ss:$24 sps:$4 sm:$0xff]   ;;  %v14959_v29 = vpack.c.bf16 %v8250_v26, %v8250_v26  ;;  %v13658_v16 = vld [vmem:[#allocation22 + $0x7ec] ss:$24 sps:$4 sm:$0xff]  }
 0x9bc   :  { %v13668_v26 = vld [vmem:[#allocation22 + $0x848] ss:$24 sps:$4 sm:$0xff]  }
 0x9be   :  { %10652 = vmatpush1.bf16.msra.mxu0 %v13527_v55  ;;  %10816 = vmatpush1.bf16.msra.mxu1 %v13530_v35  ;;  %v13601_v55 = vld [vmem:[#allocation22 + $0x634] ss:$24 sps:$4 sm:$0xff]  }
 0x9bf   :  { %10653 = vmatprep.subr.bf16.mxu0 %v13535_v4  ;;  %10817 = vmatprep.subr.bf16.mxu1 %v13538_v9  ;;  %v13604_v35 = vld [vmem:[#allocation22 + $0x63c] ss:$24 sps:$4 sm:$0xff]   ;;  %v13599_v4 = vld [vmem:[#allocation22 + $0x630] ss:$24 sps:$4 sm:$0xff]  }
 0x9c0   :  { %v13602_v9 = vld [vmem:[#allocation22 + $0x638] ss:$24 sps:$4 sm:$0xff]  }
 0x9c2   :  { %10654 = vmatpush1.bf16.msra.mxu0 %v13533_v10  ;;  %10818 = vmatpush1.bf16.msra.mxu1 %v13536_v11  ;;  %v13607_v10 = vld [vmem:[#allocation22 + $0x664] ss:$24 sps:$4 sm:$0xff]  }
 0x9c3   :  { %10655 = vmatprep.subr.bf16.mxu0 %v13541_v6  ;;  %10819 = vmatprep.subr.bf16.mxu1 %v13544_v5  ;;  %v13610_v11 = vld [vmem:[#allocation22 + $0x66c] ss:$24 sps:$4 sm:$0xff]   ;;  %v13605_v6 = vld [vmem:[#allocation22 + $0x660] ss:$24 sps:$4 sm:$0xff]  }
 0x9c4   :  { %v13608_v5 = vld [vmem:[#allocation22 + $0x668] ss:$24 sps:$4 sm:$0xff]  }
 0x9c6   :  { %10656 = vmatpush1.bf16.msra.mxu0 %v13539_v30  ;;  %10820 = vmatpush1.bf16.msra.mxu1 %v13542_v32  ;;  %v13613_v30 = vld [vmem:[#allocation22 + $0x694] ss:$24 sps:$4 sm:$0xff]  }
 0x9c7   :  { %10657 = vmatprep.subr.bf16.mxu0 %v13547_v33  ;;  %10821 = vmatprep.subr.bf16.mxu1 %v13550_v48  ;;  %v13616_v32 = vld [vmem:[#allocation22 + $0x69c] ss:$24 sps:$4 sm:$0xff]   ;;  %v13611_v33 = vld [vmem:[#allocation22 + $0x690] ss:$24 sps:$4 sm:$0xff]  }
 0x9c8   :  { %v13614_v48 = vld [vmem:[#allocation22 + $0x698] ss:$24 sps:$4 sm:$0xff]  }
 0x9ca   :  { %10658 = vmatpush1.bf16.msra.mxu0 %v13545_v36  ;;  %10822 = vmatpush1.bf16.msra.mxu1 %v13548_v37  ;;  %v13619_v36 = vld [vmem:[#allocation22 + $0x6c4] ss:$24 sps:$4 sm:$0xff]  }
 0x9cb   :  { %10659 = vmatprep.subr.bf16.mxu0 %v13553_v49  ;;  %10823 = vmatprep.subr.bf16.mxu1 %v13556_v42  ;;  %v13622_v37 = vld [vmem:[#allocation22 + $0x6cc] ss:$24 sps:$4 sm:$0xff]   ;;  %v13617_v49 = vld [vmem:[#allocation22 + $0x6c0] ss:$24 sps:$4 sm:$0xff]  }
 0x9cc   :  { %v13620_v42 = vld [vmem:[#allocation22 + $0x6c8] ss:$24 sps:$4 sm:$0xff]  }
 0x9ce   :  { %10660 = vmatpush1.bf16.msra.mxu0 %v13551_v43  ;;  %10824 = vmatpush1.bf16.msra.mxu1 %v13554_v44  ;;  %v13625_v43 = vld [vmem:[#allocation22 + $0x6f4] ss:$24 sps:$4 sm:$0xff]  }
 0x9cf   :  { %10661 = vmatprep.subr.bf16.mxu0 %v13559_v45  ;;  %10825 = vmatprep.subr.bf16.mxu1 %v13562_v46  ;;  %v13628_v44 = vld [vmem:[#allocation22 + $0x6fc] ss:$24 sps:$4 sm:$0xff]   ;;  %v13623_v45 = vld [vmem:[#allocation22 + $0x6f0] ss:$24 sps:$4 sm:$0xff]  }
 0x9d0   :  { %v13626_v46 = vld [vmem:[#allocation22 + $0x6f8] ss:$24 sps:$4 sm:$0xff]  }
 0x9d2   :  { %10662 = vmatpush1.bf16.msra.mxu0 %v13557_v38  ;;  %10826 = vmatpush1.bf16.msra.mxu1 %v13560_v60  ;;  %v13631_v38 = vld [vmem:[#allocation22 + $0x724] ss:$24 sps:$4 sm:$0xff]  }
 0x9d3   :  { %10663 = vmatprep.subr.bf16.mxu0 %v13565_v52  ;;  %10827 = vmatprep.subr.bf16.mxu1 %v13568_v54  ;;  %v13634_v60 = vld [vmem:[#allocation22 + $0x72c] ss:$24 sps:$4 sm:$0xff]   ;;  %v13629_v52 = vld [vmem:[#allocation22 + $0x720] ss:$24 sps:$4 sm:$0xff]  }
 0x9d4   :  { %v13632_v54 = vld [vmem:[#allocation22 + $0x728] ss:$24 sps:$4 sm:$0xff]  }
 0x9d6   :  { %10664 = vmatpush1.bf16.msra.mxu0 %v13563_v56  ;;  %10828 = vmatpush1.bf16.msra.mxu1 %v13566_v57  ;;  %v13637_v56 = vld [vmem:[#allocation22 + $0x754] ss:$24 sps:$4 sm:$0xff]  }
 0x9d7   :  { %10665 = vmatprep.subr.bf16.mxu0 %v13571_v58  ;;  %10829 = vmatprep.subr.bf16.mxu1 %v13574_v61  ;;  %v13640_v57 = vld [vmem:[#allocation22 + $0x75c] ss:$24 sps:$4 sm:$0xff]   ;;  %v13635_v58 = vld [vmem:[#allocation22 + $0x750] ss:$24 sps:$4 sm:$0xff]  }
 0x9d8   :  { %v13638_v61 = vld [vmem:[#allocation22 + $0x758] ss:$24 sps:$4 sm:$0xff]  }
 0x9da   :  { %10666 = vmatpush1.bf16.msra.mxu0 %v13569_v62  ;;  %10830 = vmatpush1.bf16.msra.mxu1 %v13572_v51  ;;  %v13643_v62 = vld [vmem:[#allocation22 + $0x784] ss:$24 sps:$4 sm:$0xff]  }
 0x9db   :  { %10667 = vmatprep.subr.bf16.mxu0 %v13577_v63  ;;  %10831 = vmatprep.subr.bf16.mxu1 %v13580_v0  ;;  %v13646_v51 = vld [vmem:[#allocation22 + $0x78c] ss:$24 sps:$4 sm:$0xff]   ;;  %v13641_v63 = vld [vmem:[#allocation22 + $0x780] ss:$24 sps:$4 sm:$0xff]  }
 0x9dc   :  { %v13644_v0 = vld [vmem:[#allocation22 + $0x788] ss:$24 sps:$4 sm:$0xff]  }
 0x9de   :  { %10668 = vmatpush1.bf16.msra.mxu0 %v13575_v31  ;;  %10832 = vmatpush1.bf16.msra.mxu1 %v13578_v8  ;;  %v13652_v31 = vld [vmem:[#allocation22 + $0x7bc] ss:$24 sps:$4 sm:$0xff]   ;;  %v13647_v8 = vld [vmem:[#allocation22 + $0x7b0] ss:$24 sps:$4 sm:$0xff]  }
 0x9df   :  { %10669 = vmatprep.subr.bf16.mxu0 %v13583_v59  ;;  %10833 = vmatprep.subr.bf16.mxu1 %v13586_v15  ;;  %v13650_v59 = vld [vmem:[#allocation22 + $0x7b8] ss:$24 sps:$4 sm:$0xff]   ;;  %v13655_v15 = vld [vmem:[#allocation22 + $0x7e4] ss:$24 sps:$4 sm:$0xff]  }
 0x9e2   :  { %10670 = vmatpush1.bf16.msra.mxu0 %v13581_v3  ;;  %10834 = vmatpush1.bf16.msra.mxu1 %v13584_v17  ;;  %v13653_v3 = vld [vmem:[#allocation22 + $0x7e0] ss:$24 sps:$4 sm:$0xff]  }
 0x9e3   :  { %10671 = vmatprep.subr.bf16.mxu0 %v13589_v18  ;;  %10835 = vmatprep.subr.bf16.mxu1 %v13592_v19  ;;  %v13656_v17 = vld [vmem:[#allocation22 + $0x7e8] ss:$24 sps:$4 sm:$0xff]   ;;  %v13661_v18 = vld [vmem:[#allocation22 + $0x814] ss:$24 sps:$4 sm:$0xff]  }
 0x9e4   :  { %v13664_v19 = vld [vmem:[#allocation22 + $0x81c] ss:$24 sps:$4 sm:$0xff]  }
 0x9e6   :  { %10672 = vmatpush1.bf16.msra.mxu0 %v13587_v40  ;;  %10836 = vmatpush1.bf16.msra.mxu1 %v13590_v22  ;;  %v13662_v40 = vld [vmem:[#allocation22 + $0x818] ss:$24 sps:$4 sm:$0xff]   ;;  %v13667_v22 = vld [vmem:[#allocation22 + $0x844] ss:$24 sps:$4 sm:$0xff]  }
 0x9e7   :  { %10682 = vmatprep.subr.bf16.mxu0 %v13595_v23  ;;  %10846 = vmatprep.subr.bf16.mxu1 %v13598_v25  ;;  %v13670_v23 = vld [vmem:[#allocation22 + $0x84c] ss:$24 sps:$4 sm:$0xff]   ;;  %v13665_v25 = vld [vmem:[#allocation22 + $0x840] ss:$24 sps:$4 sm:$0xff]  }
 0x9e9   :  { %10674 = vmatmul.mubr.bf16.vlgmr.msra.gmra.mrb[28].mxu0 %v14959_v29  ;;  %10838 = vmatmul.mubr.bf16.vlgmr.msra.gmra.mrb[36].mxu1 %v14959_v29 }
 0x9ea   :  { %10683 = vmatpush1.bf16.msra.mxu0 %v13593_v41  ;;  %10847 = vmatpush1.bf16.msra.mxu1 %v13596_v27  ;;  %v13673_v41 = vld [vmem:[#allocation22 + $0x874] ss:$24 sps:$4 sm:$0xff]  }
 0x9eb   :  { %10684 = vmatprep.subr.bf16.mxu0 %v13601_v55  ;;  %10848 = vmatprep.subr.bf16.mxu1 %v13604_v35  ;;  %v13676_v27 = vld [vmem:[#allocation22 + $0x87c] ss:$24 sps:$4 sm:$0xff]   ;;  %v13671_v55 = vld [vmem:[#allocation22 + $0x870] ss:$24 sps:$4 sm:$0xff]  }
 0x9ec   :  { %v13674_v35 = vld [vmem:[#allocation22 + $0x878] ss:$24 sps:$4 sm:$0xff]  }
 0x9ee   :  { %10685 = vmatpush1.bf16.msra.mxu0 %v13599_v4  ;;  %10849 = vmatpush1.bf16.msra.mxu1 %v13602_v9  ;;  %v13679_v4 = vld [vmem:[#allocation22 + $0x8a4] ss:$24 sps:$4 sm:$0xff]  }
 0x9ef   :  { %10686 = vmatprep.subr.bf16.mxu0 %v13607_v10  ;;  %10850 = vmatprep.subr.bf16.mxu1 %v13610_v11  ;;  %v13682_v9 = vld [vmem:[#allocation22 + $0x8ac] ss:$24 sps:$4 sm:$0xff]   ;;  %v6603_v10 = vrot.slane %v14934_v34, %v14786_v2  ;;  %v6607_v11 = vrot.slane %v14934_v34, %v14757_v20 }
 0x9f2   :  { %10687 = vmatpush1.bf16.msra.mxu0 %v13605_v6  ;;  %10851 = vmatpush1.bf16.msra.mxu1 %v13608_v5  ;;  %v6615_v6 = vrot.slane %v14934_v34, %v663_v50  ;;  %v13677_v5 = vld [vmem:[#allocation22 + $0x8a0] ss:$24 sps:$4 sm:$0xff]  }
 0x9f3   :  { %10688 = vmatprep.subr.bf16.mxu0 %v13613_v30  ;;  %10852 = vmatprep.subr.bf16.mxu1 %v13616_v32  ;;  %v13680_v30 = vld [vmem:[#allocation22 + $0x8a8] ss:$24 sps:$4 sm:$0xff]  }
 0x9f6   :  { %10689 = vmatpush1.bf16.msra.mxu0 %v13611_v33  ;;  %10853 = vmatpush1.bf16.msra.mxu1 %v13614_v48  ;;  %v13685_v33 = vld [vmem:[#allocation22 + $0x8d4] ss:$24 sps:$4 sm:$0xff]  }
 0x9f7   :  { %10690 = vmatprep.subr.bf16.mxu0 %v13619_v36  ;;  %10854 = vmatprep.subr.bf16.mxu1 %v13622_v37  ;;  %v13688_v48 = vld [vmem:[#allocation22 + $0x8dc] ss:$24 sps:$4 sm:$0xff]  }
 0x9fa   :  { %10691 = vmatpush1.bf16.msra.mxu0 %v13617_v49  ;;  %10855 = vmatpush1.bf16.msra.mxu1 %v13620_v42  ;;  %v13683_v42 = vld [vmem:[#allocation22 + $0x8d0] ss:$24 sps:$4 sm:$0xff]  }
 0x9fb   :  { %10692 = vmatprep.subr.bf16.mxu0 %v13625_v43  ;;  %10856 = vmatprep.subr.bf16.mxu1 %v13628_v44 }
 0x9fe   :  { %10693 = vmatpush1.bf16.msra.mxu0 %v13623_v45  ;;  %10857 = vmatpush1.bf16.msra.mxu1 %v13626_v46  ;;  %v13686_v46 = vld [vmem:[#allocation22 + $0x8d8] ss:$24 sps:$4 sm:$0xff]  }
 0x9ff   :  { %10694 = vmatprep.subr.bf16.mxu0 %v13631_v38  ;;  %10858 = vmatprep.subr.bf16.mxu1 %v13634_v60  ;;  %v13691_v38 = vld [vmem:[#allocation22 + $0x904] ss:$24 sps:$4 sm:$0xff]  }
 0xa02   :  { %10695 = vmatpush1.bf16.msra.mxu0 %v13629_v52  ;;  %10859 = vmatpush1.bf16.msra.mxu1 %v13632_v54 }
 0xa03   :  { %10696 = vmatprep.subr.bf16.mxu0 %v13637_v56  ;;  %10860 = vmatprep.subr.bf16.mxu1 %v13640_v57  ;;  %v13694_v57 = vld [vmem:[#allocation22 + $0x90c] ss:$24 sps:$4 sm:$0xff]  }
 0xa06   :  { %10697 = vmatpush1.bf16.msra.mxu0 %v13635_v58  ;;  %10861 = vmatpush1.bf16.msra.mxu1 %v13638_v61 }
 0xa07   :  { %10698 = vmatprep.subr.bf16.mxu0 %v13643_v62  ;;  %10862 = vmatprep.subr.bf16.mxu1 %v13646_v51 }
 0xa0a   :  { %10699 = vmatpush1.bf16.msra.mxu0 %v13641_v63  ;;  %10863 = vmatpush1.bf16.msra.mxu1 %v13644_v0  ;;  %v13689_v0 = vld [vmem:[#allocation22 + $0x900] ss:$24 sps:$4 sm:$0xff]  }
 0xa0b   :  { %10700 = vmatprep.subr.bf16.mxu0 %v13649_v53  ;;  %10864 = vmatprep.subr.bf16.mxu1 %v13652_v31  ;;  %v13692_v53 = vld [vmem:[#allocation22 + $0x908] ss:$24 sps:$4 sm:$0xff]  }
 0xa0e   :  { %10701 = vmatpush1.bf16.msra.mxu0 %v13647_v8  ;;  %10865 = vmatpush1.bf16.msra.mxu1 %v13650_v59  ;;  %v13697_v59 = vld [vmem:[#allocation22 + $0x934] ss:$24 sps:$4 sm:$0xff]  }
 0xa0f   :  { %10702 = vmatprep.subr.bf16.mxu0 %v13655_v15  ;;  %10866 = vmatprep.subr.bf16.mxu1 %v13658_v16  ;;  %v13700_v15 = vld [vmem:[#allocation22 + $0x93c] ss:$24 sps:$4 sm:$0xff]  }
 0xa12   :  { %10703 = vmatpush1.bf16.msra.mxu0 %v13653_v3  ;;  %10867 = vmatpush1.bf16.msra.mxu1 %v13656_v17  ;;  %v13695_v3 = vld [vmem:[#allocation22 + $0x930] ss:$24 sps:$4 sm:$0xff]  }
 0xa13   :  { %10704 = vmatprep.subr.bf16.mxu0 %v13661_v18  ;;  %10868 = vmatprep.subr.bf16.mxu1 %v13664_v19  ;;  %v13698_v17 = vld [vmem:[#allocation22 + $0x938] ss:$24 sps:$4 sm:$0xff]   ;;  %v13703_v18 = vld [vmem:[#allocation22 + $0x964] ss:$24 sps:$4 sm:$0xff]  }
 0xa14   :  { %v13706_v19 = vld [vmem:[#allocation22 + $0x96c] ss:$24 sps:$4 sm:$0xff]  }
 0xa16   :  { %10705 = vmatpush1.bf16.msra.mxu0 %v13659_v21  ;;  %10869 = vmatpush1.bf16.msra.mxu1 %v13662_v40  ;;  %v13701_v21 = vld [vmem:[#allocation22 + $0x960] ss:$24 sps:$4 sm:$0xff]  }
 0xa17   :  { %10706 = vmatprep.subr.bf16.mxu0 %v13667_v22  ;;  %10870 = vmatprep.subr.bf16.mxu1 %v13670_v23  ;;  %v13704_v40 = vld [vmem:[#allocation22 + $0x968] ss:$24 sps:$4 sm:$0xff]   ;;  %v13709_v22 = vld [vmem:[#allocation22 + $0x994] ss:$24 sps:$4 sm:$0xff]  }
 0xa18   :  { %v13712_v23 = vld [vmem:[#allocation22 + $0x99c] ss:$24 sps:$4 sm:$0xff]  }
 0xa1a   :  { %10707 = vmatpush1.bf16.msra.mxu0 %v13665_v25  ;;  %10871 = vmatpush1.bf16.msra.mxu1 %v13668_v26  ;;  %v13707_v25 = vld [vmem:[#allocation22 + $0x990] ss:$24 sps:$4 sm:$0xff]  }
 0xa1b   :  { %10708 = vmatprep.subr.bf16.mxu0 %v13673_v41  ;;  %10872 = vmatprep.subr.bf16.mxu1 %v13676_v27  ;;  %v13710_v26 = vld [vmem:[#allocation22 + $0x998] ss:$24 sps:$4 sm:$0xff]   ;;  %v13715_v41 = vld [vmem:[#allocation22 + $0x9c4] ss:$24 sps:$4 sm:$0xff]  }
 0xa1c   :  { %v13718_v27 = vld [vmem:[#allocation22 + $0x9cc] ss:$24 sps:$4 sm:$0xff]  }
 0xa1e   :  { %10709 = vmatpush1.bf16.msra.mxu0 %v13671_v55  ;;  %10873 = vmatpush1.bf16.msra.mxu1 %v13674_v35  ;;  %v13713_v55 = vld [vmem:[#allocation22 + $0x9c0] ss:$24 sps:$4 sm:$0xff]  }
 0xa1f   :  { %v8143_v32 = vpop.f32.mrb[24].mxu0  ;;  %10710 = vmatprep.subr.bf16.mxu0 %v13679_v4  ;;  %10874 = vmatprep.subr.bf16.mxu1 %v13682_v9  ;;  %v13716_v35 = vld [vmem:[#allocation22 + $0x9c8] ss:$24 sps:$4 sm:$0xff]   ;;  %v13721_v4 = vld [vmem:[#allocation22 + $0x9f4] ss:$24 sps:$4 sm:$0xff]  }
 0xa20   :  { %v12658_v36 = vadd.f32 %v8143_v32, %v6603_v10  ;;  %v14970_v37 = vpop.f32.mrb[32].mxu1  ;;  %v8145_v49 = vpop.f32.mrb[25].mxu0  ;;  %v13724_v9 = vld [vmem:[#allocation22 + $0x9fc] ss:$24 sps:$4 sm:$0xff]   ;;  %v13719_v10 = vld [vmem:[#allocation22 + $0x9f0] ss:$24 sps:$4 sm:$0xff]  }
 0xa21   :  { %v12659_v43 = vadd.f32 %v8145_v49, %v6607_v11  ;;  %v8227_v44 = vpop.f32.mrb[33].mxu1  ;;  %v8147_v45 = vpop.f32.mrb[26].mxu0  ;;  %v13722_v11 = vld [vmem:[#allocation22 + $0x9f8] ss:$24 sps:$4 sm:$0xff]   ;;  %v13728_v32 = vld [vmem:[#allocation22 + $0xa28] ss:$24 sps:$4 sm:$0xff]  }
 0xa22   :  { %vm8236_vm8 = vcmp.gt.f32.partialorder %v12658_v36, 0.0  ;;  %v8244_v60 = vmul.f32 0.2, %v12658_v36  ;;  %v12661_v50 = vadd.f32 %v8227_v44, %v6615_v6  ;;  %v8229_v52 = vpop.f32.mrb[34].mxu1  ;;  %10711 = vmatpush1.bf16.msra.mxu0 %v13677_v5  ;;  %10875 = vmatpush1.bf16.msra.mxu1 %v13680_v30  ;;  %v8148_v54 = vpop.f32.mrb[27].mxu0 }
 0xa23   :  { %vm8237_vm9 = vcmp.gt.f32.partialorder %v12659_v43, 0.0  ;;  %v8245_v56 = vmul.f32 0.2, %v12659_v43  ;;  %10712 = vmatprep.subr.bf16.mxu0 %v13685_v33  ;;  %10876 = vmatprep.subr.bf16.mxu1 %v13688_v48  ;;  %v8230_v62 = vpop.f32.mrb[35].mxu1  ;;  %v13727_v6 = vld [vmem:[#allocation22 + $0xa24] ss:$24 sps:$4 sm:$0xff]  }
 0xa24   :  { %v8252_v58 = vsel %vm8236_vm8, %v12658_v36, %v8244_v60  ;;  %vm8239_vm10 = vcmp.gt.f32.partialorder %v12661_v50, 0.0  ;;  %v8247_v61 = vmul.f32 0.2, %v12661_v50  ;;  %v13730_v5 = vld [vmem:[#allocation22 + $0xa2c] ss:$24 sps:$4 sm:$0xff]  }
 0xa25   :  { %v8253_v51 = vsel %vm8237_vm9, %v12659_v43, %v8245_v56  ;;  %v14974_v8 = vpack.c.bf16 %v8252_v58, %v8252_v58  ;;  %v13725_v30 = vld [vmem:[#allocation22 + $0xa20] ss:$24 sps:$4 sm:$0xff]   ;;  %v13733_v33 = vld [vmem:[#allocation22 + $0xa54] ss:$24 sps:$4 sm:$0xff]   ;;  %v13731_v36 = vld [vmem:[#allocation22 + $0xa50] ss:$24 sps:$4 sm:$0xff]  }
 0xa26   :  { %10713 = vmatpush1.bf16.msra.mxu0 %v13683_v42  ;;  %10877 = vmatpush1.bf16.msra.mxu1 %v13686_v46  ;;  %v14972_v63 = vpack.c.bf16 %v8253_v51, %v8253_v51  ;;  %v8255_v31 = vsel %vm8239_vm10, %v12661_v50, %v8247_v61  ;;  %v13736_v48 = vld [vmem:[#allocation22 + $0xa5c] ss:$24 sps:$4 sm:$0xff]   ;;  %v13734_v49 = vld [vmem:[#allocation22 + $0xa58] ss:$24 sps:$4 sm:$0xff]   ;;  %v13742_v43 = vld [vmem:[#allocation22 + $0xa8c] ss:$24 sps:$4 sm:$0xff]  }
 0xa27   :  { %10723 = vmatprep.subr.bf16.mxu0 %v13691_v38  ;;  %10887 = vmatprep.subr.bf16.mxu1 %v13694_v57  ;;  %v14980_v16 = vpack.c.bf16 %v8255_v31, %v8255_v31  ;;  %v13739_v42 = vld [vmem:[#allocation22 + $0xa84] ss:$24 sps:$4 sm:$0xff]   ;;  %v13737_v44 = vld [vmem:[#allocation22 + $0xa80] ss:$24 sps:$4 sm:$0xff]   ;;  %v13745_v46 = vld [vmem:[#allocation22 + $0xab4] ss:$24 sps:$4 sm:$0xff]  }
 0xa28   :  { %10714 = vmatprep.mubr.bf16.mxu0 %v14972_v63  ;;  %10878 = vmatprep.mubr.bf16.mxu1 %v14972_v63  ;;  %v13740_v45 = vld [vmem:[#allocation22 + $0xa88] ss:$24 sps:$4 sm:$0xff]   ;;  %v13748_v38 = vld [vmem:[#allocation22 + $0xabc] ss:$24 sps:$4 sm:$0xff]   ;;  %v13746_v50 = vld [vmem:[#allocation22 + $0xab8] ss:$24 sps:$4 sm:$0xff]  }
 0xa29   :  { %10715 = vmatmul.mubr.bf16.vlgmr.msra.gmra.mrb[28].mxu0 %v14974_v8  ;;  %10879 = vmatmul.mubr.bf16.vlgmr.msra.gmra.mrb[36].mxu1 %v14974_v8  ;;  %v13743_v60 = vld [vmem:[#allocation22 + $0xab0] ss:$24 sps:$4 sm:$0xff]   ;;  %v13751_v52 = vld [vmem:[#allocation22 + $0xae4] ss:$24 sps:$4 sm:$0xff]   ;;  %v13749_v56 = vld [vmem:[#allocation22 + $0xae0] ss:$24 sps:$4 sm:$0xff]  }
 0xa2a   :  { %10724 = vmatpush1.bf16.msra.mxu0 %v13689_v0  ;;  %10888 = vmatpush1.bf16.msra.mxu1 %v13692_v53  ;;  %v13754_v54 = vld [vmem:[#allocation22 + $0xaec] ss:$24 sps:$4 sm:$0xff]   ;;  %v13752_v57 = vld [vmem:[#allocation22 + $0xae8] ss:$24 sps:$4 sm:$0xff]   ;;  %v13760_v61 = vld [vmem:[#allocation22 + $0xb1c] ss:$24 sps:$4 sm:$0xff]  }
 0xa2b   :  { %10755 = vmatprep.mubr.bf16.mxu0 %v14980_v16  ;;  %10919 = vmatprep.mubr.bf16.mxu1 %v14980_v16  ;;  %v13757_v58 = vld [vmem:[#allocation22 + $0xb14] ss:$24 sps:$4 sm:$0xff]   ;;  %v13755_v62 = vld [vmem:[#allocation22 + $0xb10] ss:$24 sps:$4 sm:$0xff]   ;;  %v13763_v0 = vld [vmem:[#allocation22 + $0xb44] ss:$24 sps:$4 sm:$0xff]  }
 0xa2c   :  { %10725 = vmatprep.subr.bf16.mxu0 %v13697_v59  ;;  %10889 = vmatprep.subr.bf16.mxu1 %v13700_v15  ;;  %v13758_v51 = vld [vmem:[#allocation22 + $0xb18] ss:$24 sps:$4 sm:$0xff]   ;;  %v13766_v53 = vld [vmem:[#allocation22 + $0xb4c] ss:$24 sps:$4 sm:$0xff]   ;;  %v13764_v59 = vld [vmem:[#allocation22 + $0xb48] ss:$24 sps:$4 sm:$0xff]  }
 0xa2d   :  { %v13761_v31 = vld [vmem:[#allocation22 + $0xb40] ss:$24 sps:$4 sm:$0xff]   ;;  %v13769_v15 = vld [vmem:[#allocation22 + $0xb74] ss:$24 sps:$4 sm:$0xff]  }
 0xa2e   :  { %10726 = vmatpush1.bf16.msra.mxu0 %v13695_v3  ;;  %10890 = vmatpush1.bf16.msra.mxu1 %v13698_v17  ;;  %v13772_v3 = vld [vmem:[#allocation22 + $0xb7c] ss:$24 sps:$4 sm:$0xff]   ;;  %v6611_v17 = vrot.slane %v14934_v34, %v659_v47  ;;  %v13779_v47 = vld [vmem:[#allocation22 + $0xbd0] ss:$24 sps:$4 sm:$0xff]  }
 0xa2f   :  { %10727 = vmatprep.subr.bf16.mxu0 %v13703_v18  ;;  %10891 = vmatprep.subr.bf16.mxu1 %v13706_v19  ;;  %v13767_v18 = vld [vmem:[#allocation22 + $0xb70] ss:$24 sps:$4 sm:$0xff]  }
 0xa30   :  { %v13770_v19 = vld [vmem:[#allocation22 + $0xb78] ss:$24 sps:$4 sm:$0xff]  }
 0xa31   :  { %v13782_v34 = vld [vmem:[#allocation22 + $0xbd8] ss:$24 sps:$4 sm:$0xff]  }
 0xa32   :  { %10728 = vmatpush1.bf16.msra.mxu0 %v13701_v21  ;;  %10892 = vmatpush1.bf16.msra.mxu1 %v13704_v40  ;;  %v13775_v21 = vld [vmem:[#allocation22 + $0xba4] ss:$24 sps:$4 sm:$0xff]  }
 0xa33   :  { %10729 = vmatprep.subr.bf16.mxu0 %v13709_v22  ;;  %10893 = vmatprep.subr.bf16.mxu1 %v13712_v23  ;;  %v13778_v40 = vld [vmem:[#allocation22 + $0xbac] ss:$24 sps:$4 sm:$0xff]   ;;  %v12660_v22 = vadd.f32 %v14970_v37, %v6611_v17  ;;  %v13773_v23 = vld [vmem:[#allocation22 + $0xba0] ss:$24 sps:$4 sm:$0xff]   ;;  %v13785_v37 = vld [vmem:[#allocation22 + $0x10] ss:$24 sps:$4 sm:$0xff]  }
 0xa34   :  { %v13841_v17 = vld [vmem:[#allocation22 + $0x374] ss:$24 sps:$4 sm:$0xff]  }
 0xa35   :  { %vm8238_vm11 = vcmp.gt.f32.partialorder %v12660_v22, 0.0 }
 0xa36   :  { %10730 = vmatpush1.bf16.msra.mxu0 %v13707_v25  ;;  %10894 = vmatpush1.bf16.msra.mxu1 %v13710_v26  ;;  %v13776_v25 = vld [vmem:[#allocation22 + $0xba8] ss:$24 sps:$4 sm:$0xff]   ;;  %v13781_v26 = vld [vmem:[#allocation22 + $0xbd4] ss:$24 sps:$4 sm:$0xff]  }
 0xa37   :  { %10731 = vmatprep.subr.bf16.mxu0 %v13715_v41  ;;  %10895 = vmatprep.subr.bf16.mxu1 %v13718_v27  ;;  %v13784_v41 = vld [vmem:[#allocation22 + $0xbdc] ss:$24 sps:$4 sm:$0xff]   ;;  %v8246_v27 = vmul.f32 0.2, %v12660_v22 }
 0xa3a   :  { %10732 = vmatpush1.bf16.msra.mxu0 %v13713_v55  ;;  %10896 = vmatpush1.bf16.msra.mxu1 %v13716_v35  ;;  %v13787_v55 = vld [vmem:[#allocation22 + $0x14] ss:$24 sps:$4 sm:$0xff]   ;;  %v8254_v35 = vsel %vm8238_vm11, %v12660_v22, %v8246_v27  ;;  %v13845_v22 = vld [vmem:[#allocation22 + $0x3d0] ss:$24 sps:$4 sm:$0xff]  }
 0xa3b   :  { %10733 = vmatprep.subr.bf16.mxu0 %v13721_v4  ;;  %10897 = vmatprep.subr.bf16.mxu1 %v13724_v9  ;;  %v14988_v4 = vpack.c.bf16 %v8254_v35, %v8254_v35  ;;  %v13790_v9 = vld [vmem:[#allocation22 + $0x44] ss:$24 sps:$4 sm:$0xff]   ;;  %v13859_v27 = vld [vmem:[#allocation22 + $0x494] ss:$24 sps:$4 sm:$0xff]  }
 0xa3c   :  { %v13865_v35 = vld [vmem:[#allocation22 + $0x4f4] ss:$24 sps:$4 sm:$0xff]  }
 0xa3e   :  { %10734 = vmatpush1.bf16.msra.mxu0 %v13719_v10  ;;  %10898 = vmatpush1.bf16.msra.mxu1 %v13722_v11  ;;  %v13788_v10 = vld [vmem:[#allocation22 + $0x40] ss:$24 sps:$4 sm:$0xff]   ;;  %v13793_v11 = vld [vmem:[#allocation22 + $0x74] ss:$24 sps:$4 sm:$0xff]  }
 0xa3f   :  { %10735 = vmatprep.subr.bf16.mxu0 %v13727_v6  ;;  %10899 = vmatprep.subr.bf16.mxu1 %v13730_v5  ;;  %v13791_v6 = vld [vmem:[#allocation22 + $0x70] ss:$24 sps:$4 sm:$0xff]   ;;  %v13796_v5 = vld [vmem:[#allocation22 + $0xa4] ss:$24 sps:$4 sm:$0xff]  }
 0xa42   :  { %10736 = vmatpush1.bf16.msra.mxu0 %v13725_v30  ;;  %10900 = vmatpush1.bf16.msra.mxu1 %v13728_v32  ;;  %v13794_v30 = vld [vmem:[#allocation22 + $0xa0] ss:$24 sps:$4 sm:$0xff]   ;;  %v13799_v32 = vld [vmem:[#allocation22 + $0xd4] ss:$24 sps:$4 sm:$0xff]  }
 0xa43   :  { %10737 = vmatprep.subr.bf16.mxu0 %v13733_v33  ;;  %10901 = vmatprep.subr.bf16.mxu1 %v13736_v48  ;;  %v13797_v33 = vld [vmem:[#allocation22 + $0xd0] ss:$24 sps:$4 sm:$0xff]   ;;  %v13802_v48 = vld [vmem:[#allocation22 + $0x104] ss:$24 sps:$4 sm:$0xff]  }
 0xa46   :  { %10738 = vmatpush1.bf16.msra.mxu0 %v13731_v36  ;;  %10902 = vmatpush1.bf16.msra.mxu1 %v13734_v49  ;;  %v13800_v36 = vld [vmem:[#allocation22 + $0x100] ss:$24 sps:$4 sm:$0xff]   ;;  %v13805_v49 = vld [vmem:[#allocation22 + $0x134] ss:$24 sps:$4 sm:$0xff]  }
 0xa47   :  { %10739 = vmatprep.subr.bf16.mxu0 %v13739_v42  ;;  %10903 = vmatprep.subr.bf16.mxu1 %v13742_v43  ;;  %v13808_v42 = vld [vmem:[#allocation22 + $0x164] ss:$24 sps:$4 sm:$0xff]   ;;  %v13806_v43 = vld [vmem:[#allocation22 + $0x160] ss:$24 sps:$4 sm:$0xff]  }
 0xa4a   :  { %10740 = vmatpush1.bf16.msra.mxu0 %v13737_v44  ;;  %10904 = vmatpush1.bf16.msra.mxu1 %v13740_v45  ;;  %v13811_v44 = vld [vmem:[#allocation22 + $0x194] ss:$24 sps:$4 sm:$0xff]   ;;  %v13809_v45 = vld [vmem:[#allocation22 + $0x190] ss:$24 sps:$4 sm:$0xff]  }
 0xa4b   :  { %10741 = vmatprep.subr.bf16.mxu0 %v13745_v46  ;;  %10905 = vmatprep.subr.bf16.mxu1 %v13748_v38  ;;  %v13814_v46 = vld [vmem:[#allocation22 + $0x1c4] ss:$24 sps:$4 sm:$0xff]   ;;  %v13812_v38 = vld [vmem:[#allocation22 + $0x1c0] ss:$24 sps:$4 sm:$0xff]  }
 0xa4e   :  { %10742 = vmatpush1.bf16.msra.mxu0 %v13743_v60  ;;  %10906 = vmatpush1.bf16.msra.mxu1 %v13746_v50  ;;  %v13817_v60 = vld [vmem:[#allocation22 + $0x1f4] ss:$24 sps:$4 sm:$0xff]   ;;  %v13815_v50 = vld [vmem:[#allocation22 + $0x1f0] ss:$24 sps:$4 sm:$0xff]  }
 0xa4f   :  { %10743 = vmatprep.subr.bf16.mxu0 %v13751_v52  ;;  %10907 = vmatprep.subr.bf16.mxu1 %v13754_v54  ;;  %v13820_v52 = vld [vmem:[#allocation22 + $0x224] ss:$24 sps:$4 sm:$0xff]   ;;  %v13818_v54 = vld [vmem:[#allocation22 + $0x220] ss:$24 sps:$4 sm:$0xff]  }
 0xa52   :  { %10744 = vmatpush1.bf16.msra.mxu0 %v13749_v56  ;;  %10908 = vmatpush1.bf16.msra.mxu1 %v13752_v57  ;;  %v13823_v56 = vld [vmem:[#allocation22 + $0x254] ss:$24 sps:$4 sm:$0xff]   ;;  %v13821_v57 = vld [vmem:[#allocation22 + $0x250] ss:$24 sps:$4 sm:$0xff]  }
 0xa53   :  { %10745 = vmatprep.subr.bf16.mxu0 %v13757_v58  ;;  %10909 = vmatprep.subr.bf16.mxu1 %v13760_v61  ;;  %v13826_v58 = vld [vmem:[#allocation22 + $0x284] ss:$24 sps:$4 sm:$0xff]   ;;  %v13824_v61 = vld [vmem:[#allocation22 + $0x280] ss:$24 sps:$4 sm:$0xff]  }
 0xa56   :  { %10746 = vmatpush1.bf16.msra.mxu0 %v13755_v62  ;;  %10910 = vmatpush1.bf16.msra.mxu1 %v13758_v51  ;;  %v13829_v62 = vld [vmem:[#allocation22 + $0x2b4] ss:$24 sps:$4 sm:$0xff]   ;;  %v13827_v51 = vld [vmem:[#allocation22 + $0x2b0] ss:$24 sps:$4 sm:$0xff]  }
 0xa57   :  { %10747 = vmatprep.subr.bf16.mxu0 %v13763_v0  ;;  %10911 = vmatprep.subr.bf16.mxu1 %v13766_v53  ;;  %v13832_v0 = vld [vmem:[#allocation22 + $0x2e4] ss:$24 sps:$4 sm:$0xff]   ;;  %v13830_v53 = vld [vmem:[#allocation22 + $0x2e0] ss:$24 sps:$4 sm:$0xff]  }
 0xa5a   :  { %10748 = vmatpush1.bf16.msra.mxu0 %v13761_v31  ;;  %10912 = vmatpush1.bf16.msra.mxu1 %v13764_v59  ;;  %v13835_v31 = vld [vmem:[#allocation22 + $0x314] ss:$24 sps:$4 sm:$0xff]   ;;  %v13833_v59 = vld [vmem:[#allocation22 + $0x310] ss:$24 sps:$4 sm:$0xff]  }
 0xa5b   :  { %10749 = vmatprep.subr.bf16.mxu0 %v13769_v15  ;;  %10913 = vmatprep.subr.bf16.mxu1 %v13772_v3  ;;  %v13838_v15 = vld [vmem:[#allocation22 + $0x344] ss:$24 sps:$4 sm:$0xff]   ;;  %v13836_v3 = vld [vmem:[#allocation22 + $0x340] ss:$24 sps:$4 sm:$0xff]  }
 0xa5e   :  { %10750 = vmatpush1.bf16.msra.mxu0 %v13767_v18  ;;  %10914 = vmatpush1.bf16.msra.mxu1 %v13770_v19  ;;  %v13839_v18 = vld [vmem:[#allocation22 + $0x370] ss:$24 sps:$4 sm:$0xff]   ;;  %v13844_v19 = vld [vmem:[#allocation22 + $0x3a4] ss:$24 sps:$4 sm:$0xff]  }
 0xa5f   :  { %10751 = vmatprep.subr.bf16.mxu0 %v13775_v21  ;;  %10915 = vmatprep.subr.bf16.mxu1 %v13778_v40  ;;  %v13842_v21 = vld [vmem:[#allocation22 + $0x3a0] ss:$24 sps:$4 sm:$0xff]   ;;  %v13847_v40 = vld [vmem:[#allocation22 + $0x3d4] ss:$24 sps:$4 sm:$0xff]  }
 0xa62   :  { %10752 = vmatpush1.bf16.msra.mxu0 %v13773_v23  ;;  %10916 = vmatpush1.bf16.msra.mxu1 %v13776_v25  ;;  %v13850_v23 = vld [vmem:[#allocation22 + $0x404] ss:$24 sps:$4 sm:$0xff]   ;;  %v13853_v25 = vld [vmem:[#allocation22 + $0x434] ss:$24 sps:$4 sm:$0xff]  }
 0xa63   :  { %10753 = vmatprep.subr.bf16.mxu0 %v13781_v26  ;;  %10917 = vmatprep.subr.bf16.mxu1 %v13784_v41  ;;  %v13856_v26 = vld [vmem:[#allocation22 + $0x464] ss:$24 sps:$4 sm:$0xff]   ;;  %v13854_v41 = vld [vmem:[#allocation22 + $0x460] ss:$24 sps:$4 sm:$0xff]  }
 0xa66   :  { %10754 = vmatpush1.bf16.msra.mxu0 %v13779_v47  ;;  %10918 = vmatpush1.bf16.msra.mxu1 %v13782_v34  ;;  %v13857_v47 = vld [vmem:[#allocation22 + $0x490] ss:$24 sps:$4 sm:$0xff]   ;;  %v13862_v34 = vld [vmem:[#allocation22 + $0x4c4] ss:$24 sps:$4 sm:$0xff]  }
 0xa67   :  { %10928 = vmatprep.subr.bf16.mxu0 %v13787_v55  ;;  %v13860_v55 = vld [vmem:[#allocation22 + $0x4c0] ss:$24 sps:$4 sm:$0xff]  }
 0xa69   :  { %10756 = vmatmul.mubr.bf16.vlgmr.msra.gmra.mrb[28].mxu0 %v14988_v4  ;;  %10920 = vmatmul.mubr.bf16.vlgmr.msra.gmra.mrb[36].mxu1 %v14988_v4 }
 0xa6a   :  { %10929 = vmatpush1.bf16.msra.mxu0 %v13785_v37  ;;  %10960 = vmatprep.mubr.bf16.mxu0 %v14944_v24  ;;  %v13803_v24 = vld [vmem:[#allocation22 + $0x130] ss:$24 sps:$4 sm:$0xff]  }
 0xa6b   :  { %10930 = vmatprep.subr.bf16.mxu0 %v13790_v9  ;;  %v13863_v37 = vld [vmem:[#allocation22 + $0x4f0] ss:$24 sps:$4 sm:$0xff]   ;;  %v13868_v9 = vld [vmem:[#allocation22 + $0x524] ss:$24 sps:$4 sm:$0xff]  }
 0xa6e   :  { %10931 = vmatpush1.bf16.msra.mxu0 %v13788_v10  ;;  %v13866_v10 = vld [vmem:[#allocation22 + $0x520] ss:$24 sps:$4 sm:$0xff]  }
 0xa6f   :  { %10932 = vmatprep.subr.bf16.mxu0 %v13793_v11  ;;  %v13871_v11 = vld [vmem:[#allocation22 + $0x554] ss:$24 sps:$4 sm:$0xff]  }
 0xa72   :  { %10933 = vmatpush1.bf16.msra.mxu0 %v13791_v6  ;;  %v13869_v6 = vld [vmem:[#allocation22 + $0x550] ss:$24 sps:$4 sm:$0xff]  }
 0xa73   :  { %10934 = vmatprep.subr.bf16.mxu0 %v13796_v5  ;;  %v13874_v5 = vld [vmem:[#allocation22 + $0x584] ss:$24 sps:$4 sm:$0xff]  }
 0xa76   :  { %10935 = vmatpush1.bf16.msra.mxu0 %v13794_v30  ;;  %v13872_v30 = vld [vmem:[#allocation22 + $0x580] ss:$24 sps:$4 sm:$0xff]  }
 0xa77   :  { %10936 = vmatprep.subr.bf16.mxu0 %v13799_v32  ;;  %v13877_v32 = vld [vmem:[#allocation22 + $0x5b4] ss:$24 sps:$4 sm:$0xff]  }
 0xa7a   :  { %10937 = vmatpush1.bf16.msra.mxu0 %v13797_v33  ;;  %v13875_v33 = vld [vmem:[#allocation22 + $0x5b0] ss:$24 sps:$4 sm:$0xff]  }
 0xa7b   :  { %10938 = vmatprep.subr.bf16.mxu0 %v13802_v48  ;;  %v13880_v48 = vld [vmem:[#allocation22 + $0x5e4] ss:$24 sps:$4 sm:$0xff]  }
 0xa7e   :  { %10939 = vmatpush1.bf16.msra.mxu0 %v13800_v36  ;;  %v13878_v36 = vld [vmem:[#allocation22 + $0x5e0] ss:$24 sps:$4 sm:$0xff]  }
 0xa7f   :  { %10940 = vmatprep.subr.bf16.mxu0 %v13805_v49  ;;  %v13883_v49 = vld [vmem:[#allocation22 + $0x614] ss:$24 sps:$4 sm:$0xff]  }
 0xa82   :  { %10941 = vmatpush1.bf16.msra.mxu0 %v13803_v24  ;;  %v13881_v24 = vld [vmem:[#allocation22 + $0x610] ss:$24 sps:$4 sm:$0xff]  }
 0xa83   :  { %10942 = vmatprep.subr.bf16.mxu0 %v13808_v42  ;;  %v13886_v42 = vld [vmem:[#allocation22 + $0x644] ss:$24 sps:$4 sm:$0xff]  }
 0xa86   :  { %10943 = vmatpush1.bf16.msra.mxu0 %v13806_v43  ;;  %v13884_v43 = vld [vmem:[#allocation22 + $0x640] ss:$24 sps:$4 sm:$0xff]  }
 0xa87   :  { %10944 = vmatprep.subr.bf16.mxu0 %v13811_v44  ;;  %v13889_v44 = vld [vmem:[#allocation22 + $0x674] ss:$24 sps:$4 sm:$0xff]  }
 0xa8a   :  { %10945 = vmatpush1.bf16.msra.mxu0 %v13809_v45  ;;  %v13887_v45 = vld [vmem:[#allocation22 + $0x670] ss:$24 sps:$4 sm:$0xff]  }
 0xa8b   :  { %10946 = vmatprep.subr.bf16.mxu0 %v13814_v46  ;;  %v13892_v46 = vld [vmem:[#allocation22 + $0x6a4] ss:$24 sps:$4 sm:$0xff]  }
 0xa8e   :  { %10947 = vmatpush1.bf16.msra.mxu0 %v13812_v38  ;;  %v13890_v38 = vld [vmem:[#allocation22 + $0x6a0] ss:$24 sps:$4 sm:$0xff]  }
 0xa8f   :  { %10948 = vmatprep.subr.bf16.mxu0 %v13817_v60  ;;  %v13895_v60 = vld [vmem:[#allocation22 + $0x6d4] ss:$24 sps:$4 sm:$0xff]  }
 0xa92   :  { %10949 = vmatpush1.bf16.msra.mxu0 %v13815_v50  ;;  %v13893_v50 = vld [vmem:[#allocation22 + $0x6d0] ss:$24 sps:$4 sm:$0xff]  }
 0xa93   :  { %10950 = vmatprep.subr.bf16.mxu0 %v13820_v52  ;;  %v13898_v52 = vld [vmem:[#allocation22 + $0x704] ss:$24 sps:$4 sm:$0xff]  }
 0xa96   :  { %10951 = vmatpush1.bf16.msra.mxu0 %v13818_v54  ;;  %v13901_v54 = vld [vmem:[#allocation22 + $0x734] ss:$24 sps:$4 sm:$0xff]  }
 0xa97   :  { %10952 = vmatprep.subr.bf16.mxu0 %v13823_v56  ;;  %v13904_v56 = vld [vmem:[#allocation22 + $0x764] ss:$24 sps:$4 sm:$0xff]  }
 0xa9a   :  { %10953 = vmatpush1.bf16.msra.mxu0 %v13821_v57  ;;  %v13902_v57 = vld [vmem:[#allocation22 + $0x760] ss:$24 sps:$4 sm:$0xff]  }
 0xa9b   :  { %10954 = vmatprep.subr.bf16.mxu0 %v13826_v58  ;;  %v13907_v58 = vld [vmem:[#allocation22 + $0x794] ss:$24 sps:$4 sm:$0xff]  }
 0xa9e   :  { %10955 = vmatpush1.bf16.msra.mxu0 %v13824_v61  ;;  %v13905_v61 = vld [vmem:[#allocation22 + $0x790] ss:$24 sps:$4 sm:$0xff]  }
 0xa9f   :  { %10956 = vmatprep.subr.bf16.mxu0 %v13829_v62  ;;  %v13910_v62 = vld [vmem:[#allocation22 + $0x7c4] ss:$24 sps:$4 sm:$0xff]  }
 0xaa2   :  { %10957 = vmatpush1.bf16.msra.mxu0 %v13827_v51  ;;  %v13908_v51 = vld [vmem:[#allocation22 + $0x7c0] ss:$24 sps:$4 sm:$0xff]  }
 0xaa3   :  { %10958 = vmatprep.subr.bf16.mxu0 %v13832_v0  ;;  %v13913_v0 = vld [vmem:[#allocation22 + $0x7f4] ss:$24 sps:$4 sm:$0xff]  }
 0xaa6   :  { %10959 = vmatpush1.bf16.msra.mxu0 %v13830_v53  ;;  %v13911_v53 = vld [vmem:[#allocation22 + $0x7f0] ss:$24 sps:$4 sm:$0xff]  }
 0xaa7   :  { %10969 = vmatprep.subr.bf16.mxu0 %v13835_v31  ;;  %v13916_v31 = vld [vmem:[#allocation22 + $0x824] ss:$24 sps:$4 sm:$0xff]  }
 0xaa9   :  { %10961 = vmatmul.mubr.bf16.vlgmr.msra.gmra.mrb[32].mxu0 %v14946_v1  ;;  %v13848_v1 = vld [vmem:[#allocation22 + $0x400] ss:$24 sps:$4 sm:$0xff]  }
 0xaaa   :  { %10970 = vmatpush1.bf16.msra.mxu0 %v13833_v59  ;;  %11001 = vmatprep.mubr.bf16.mxu0 %v14952_v7  ;;  %v13851_v7 = vld [vmem:[#allocation22 + $0x430] ss:$24 sps:$4 sm:$0xff]   ;;  %v13914_v59 = vld [vmem:[#allocation22 + $0x820] ss:$24 sps:$4 sm:$0xff]  }
 0xaab   :  { %10971 = vmatprep.subr.bf16.mxu0 %v13838_v15  ;;  %v13919_v15 = vld [vmem:[#allocation22 + $0x854] ss:$24 sps:$4 sm:$0xff]  }
 0xaae   :  { %10972 = vmatpush1.bf16.msra.mxu0 %v13836_v3  ;;  %v13917_v3 = vld [vmem:[#allocation22 + $0x850] ss:$24 sps:$4 sm:$0xff]  }
 0xaaf   :  { %10973 = vmatprep.subr.bf16.mxu0 %v13841_v17  ;;  %v13922_v17 = vld [vmem:[#allocation22 + $0x884] ss:$24 sps:$4 sm:$0xff]  }
 0xab2   :  { %10974 = vmatpush1.bf16.msra.mxu0 %v13839_v18  ;;  %v13920_v18 = vld [vmem:[#allocation22 + $0x880] ss:$24 sps:$4 sm:$0xff]  }
 0xab3   :  { %10975 = vmatprep.subr.bf16.mxu0 %v13844_v19  ;;  %v13925_v19 = vld [vmem:[#allocation22 + $0x8b4] ss:$24 sps:$4 sm:$0xff]  }
 0xab6   :  { %10976 = vmatpush1.bf16.msra.mxu0 %v13842_v21  ;;  %v13923_v21 = vld [vmem:[#allocation22 + $0x8b0] ss:$24 sps:$4 sm:$0xff]  }
 0xab7   :  { %10977 = vmatprep.subr.bf16.mxu0 %v13847_v40  ;;  %v13928_v40 = vld [vmem:[#allocation22 + $0x8e4] ss:$24 sps:$4 sm:$0xff]  }
 0xaba   :  { %10978 = vmatpush1.bf16.msra.mxu0 %v13845_v22  ;;  %v13926_v22 = vld [vmem:[#allocation22 + $0x8e0] ss:$24 sps:$4 sm:$0xff]  }
 0xabb   :  { %10979 = vmatprep.subr.bf16.mxu0 %v13850_v23  ;;  %v13931_v23 = vld [vmem:[#allocation22 + $0x914] ss:$24 sps:$4 sm:$0xff]  }
 0xabe   :  { %10980 = vmatpush1.bf16.msra.mxu0 %v13848_v1  ;;  %v13929_v1 = vld [vmem:[#allocation22 + $0x910] ss:$24 sps:$4 sm:$0xff]  }
 0xabf   :  { %10981 = vmatprep.subr.bf16.mxu0 %v13853_v25  ;;  %v13934_v25 = vld [vmem:[#allocation22 + $0x944] ss:$24 sps:$4 sm:$0xff]  }
 0xac2   :  { %10982 = vmatpush1.bf16.msra.mxu0 %v13851_v7  ;;  %v13932_v7 = vld [vmem:[#allocation22 + $0x940] ss:$24 sps:$4 sm:$0xff]  }
 0xac3   :  { %10983 = vmatprep.subr.bf16.mxu0 %v13856_v26  ;;  %v13937_v26 = vld [vmem:[#allocation22 + $0x974] ss:$24 sps:$4 sm:$0xff]  }
 0xac6   :  { %10984 = vmatpush1.bf16.msra.mxu0 %v13854_v41  ;;  %v13935_v41 = vld [vmem:[#allocation22 + $0x970] ss:$24 sps:$4 sm:$0xff]  }
 0xac7   :  { %10985 = vmatprep.subr.bf16.mxu0 %v13859_v27  ;;  %v13940_v27 = vld [vmem:[#allocation22 + $0x9a4] ss:$24 sps:$4 sm:$0xff]  }
 0xaca   :  { %10986 = vmatpush1.bf16.msra.mxu0 %v13857_v47  ;;  %v13938_v47 = vld [vmem:[#allocation22 + $0x9a0] ss:$24 sps:$4 sm:$0xff]  }
 0xacb   :  { %10987 = vmatprep.subr.bf16.mxu0 %v13862_v34  ;;  %v13943_v34 = vld [vmem:[#allocation22 + $0x9d4] ss:$24 sps:$4 sm:$0xff]  }
 0xace   :  { %10988 = vmatpush1.bf16.msra.mxu0 %v13860_v55  ;;  %v13941_v55 = vld [vmem:[#allocation22 + $0x9d0] ss:$24 sps:$4 sm:$0xff]  }
 0xacf   :  { %10989 = vmatprep.subr.bf16.mxu0 %v13865_v35  ;;  %v14999_v35 = vld [vmem:[#allocation24] sm:$0x3f] }
 0xad2   :  { %10990 = vmatpush1.bf16.msra.mxu0 %v13863_v37  ;;  %v8661_v37 = vrot.slane %v14999_v35, %v14760_v39 }
 0xad3   :  { %10991 = vmatprep.subr.bf16.mxu0 %v13868_v9  ;;  %v8657_v9 = vrot.slane %v14999_v35, %v14734_v14 }
 0xad6   :  { %10992 = vmatpush1.bf16.msra.mxu0 %v13866_v10  ;;  %v8665_v10 = vrot.slane %v14999_v35, %v14767_v12 }
 0xad7   :  { %10993 = vmatprep.subr.bf16.mxu0 %v13871_v11  ;;  %v13944_v11 = vld [vmem:[#allocation22 + $0xa00] ss:$24 sps:$4 sm:$0xff]  }
 0xada   :  { %10994 = vmatpush1.bf16.msra.mxu0 %v13869_v6  ;;  %v13949_v6 = vld [vmem:[#allocation22 + $0xa34] ss:$24 sps:$4 sm:$0xff]  }
 0xadb   :  { %10995 = vmatprep.subr.bf16.mxu0 %v13874_v5 }
 0xade   :  { %10996 = vmatpush1.bf16.msra.mxu0 %v13872_v30 }
 0xadf   :  { %10997 = vmatprep.subr.bf16.mxu0 %v13877_v32 }
 0xae2   :  { %10998 = vmatpush1.bf16.msra.mxu0 %v13875_v33 }
 0xae3   :  { %10999 = vmatprep.subr.bf16.mxu0 %v13880_v48 }
 0xae6   :  { %11000 = vmatpush1.bf16.msra.mxu0 %v13878_v36 }
 0xae7   :  { %11010 = vmatprep.subr.bf16.mxu0 %v13883_v49 }
 0xae9   :  { %11002 = vmatmul.mubr.bf16.vlgmr.msra.gmra.mrb[32].mxu0 %v14959_v29  ;;  %v13896_v29 = vld [vmem:[#allocation22 + $0x700] ss:$24 sps:$4 sm:$0xff]  }
 0xaea   :  { %11011 = vmatpush1.bf16.msra.mxu0 %v13881_v24  ;;  %11042 = vmatprep.mubr.bf16.mxu0 %v14972_v63  ;;  %v13899_v63 = vld [vmem:[#allocation22 + $0x730] ss:$24 sps:$4 sm:$0xff]  }
 0xaeb   :  { %11012 = vmatprep.subr.bf16.mxu0 %v13886_v42  ;;  %v13947_v42 = vld [vmem:[#allocation22 + $0xa30] ss:$24 sps:$4 sm:$0xff]  }
 0xaee   :  { %11013 = vmatpush1.bf16.msra.mxu0 %v13884_v43  ;;  %v13952_v43 = vld [vmem:[#allocation22 + $0xa64] ss:$24 sps:$4 sm:$0xff]  }
 0xaef   :  { %11014 = vmatprep.subr.bf16.mxu0 %v13889_v44 }
 0xaf2   :  { %11015 = vmatpush1.bf16.msra.mxu0 %v13887_v45 }
 0xaf3   :  { %11016 = vmatprep.subr.bf16.mxu0 %v13892_v46 }
 0xaf6   :  { %11017 = vmatpush1.bf16.msra.mxu0 %v13890_v38 }
 0xaf7   :  { %11018 = vmatprep.subr.bf16.mxu0 %v13895_v60  ;;  %v13950_v60 = vld [vmem:[#allocation22 + $0xa60] ss:$24 sps:$4 sm:$0xff]  }
 0xafa   :  { %11019 = vmatpush1.bf16.msra.mxu0 %v13893_v50  ;;  %v13955_v50 = vld [vmem:[#allocation22 + $0xa94] ss:$24 sps:$4 sm:$0xff]  }
 0xafb   :  { %11020 = vmatprep.subr.bf16.mxu0 %v13898_v52  ;;  %v13953_v52 = vld [vmem:[#allocation22 + $0xa90] ss:$24 sps:$4 sm:$0xff]  }
 0xafe   :  { %11021 = vmatpush1.bf16.msra.mxu0 %v13896_v29  ;;  %v13958_v29 = vld [vmem:[#allocation22 + $0xac4] ss:$24 sps:$4 sm:$0xff]  }
 0xaff   :  { %11022 = vmatprep.subr.bf16.mxu0 %v13901_v54  ;;  %v13956_v54 = vld [vmem:[#allocation22 + $0xac0] ss:$24 sps:$4 sm:$0xff]  }
 0xb02   :  { %11023 = vmatpush1.bf16.msra.mxu0 %v13899_v63 }
 0xb03   :  { %11024 = vmatprep.subr.bf16.mxu0 %v13904_v56  ;;  %v13961_v56 = vld [vmem:[#allocation22 + $0xaf4] ss:$24 sps:$4 sm:$0xff]  }
 0xb06   :  { %11025 = vmatpush1.bf16.msra.mxu0 %v13902_v57 }
 0xb07   :  { %11026 = vmatprep.subr.bf16.mxu0 %v13907_v58 }
 0xb0a   :  { %11027 = vmatpush1.bf16.msra.mxu0 %v13905_v61 }
 0xb0b   :  { %11028 = vmatprep.subr.bf16.mxu0 %v13910_v62 }
 0xb0e   :  { %11029 = vmatpush1.bf16.msra.mxu0 %v13908_v51 }
 0xb0f   :  { %11030 = vmatprep.subr.bf16.mxu0 %v13913_v0 }
 0xb12   :  { %11031 = vmatpush1.bf16.msra.mxu0 %v13911_v53  ;;  %v13959_v53 = vld [vmem:[#allocation22 + $0xaf0] ss:$24 sps:$4 sm:$0xff]  }
 0xb13   :  { %11032 = vmatprep.subr.bf16.mxu0 %v13916_v31 }
 0xb16   :  { %11033 = vmatpush1.bf16.msra.mxu0 %v13914_v59  ;;  %v13964_v59 = vld [vmem:[#allocation22 + $0xb24] ss:$24 sps:$4 sm:$0xff]  }
 0xb17   :  { %11034 = vmatprep.subr.bf16.mxu0 %v13919_v15  ;;  %v14373_v15 = vmov 1983009808  }
 0xb1a   :  { %11035 = vmatpush1.bf16.msra.mxu0 %v13917_v3  ;;  %v11137_v3 = vunpack.c.l.s4 %v14373_v15 }
 0xb1b   :  { %11036 = vmatprep.subr.bf16.mxu0 %v13922_v17  ;;  %v13962_v17 = vld [vmem:[#allocation22 + $0xb20] ss:$24 sps:$4 sm:$0xff]  }
 0xb1e   :  { %11037 = vmatpush1.bf16.msra.mxu0 %v13920_v18  ;;  %v13967_v18 = vld [vmem:[#allocation22 + $0xb54] ss:$24 sps:$4 sm:$0xff]  }
 0xb1f   :  { %11038 = vmatprep.subr.bf16.mxu0 %v13925_v19  ;;  %v11138_v19 = vunpack.c.0.s8 %v11137_v3 }
 0xb22   :  { %11039 = vmatpush1.bf16.msra.mxu0 %v13923_v21  ;;  %v13965_v21 = vld [vmem:[#allocation22 + $0xb50] ss:$24 sps:$4 sm:$0xff]  }
 0xb23   :  { %11040 = vmatprep.subr.bf16.mxu0 %v13928_v40  ;;  %v13970_v40 = vld [vmem:[#allocation22 + $0xb84] ss:$24 sps:$4 sm:$0xff]  }
 0xb26   :  { %11041 = vmatpush1.bf16.msra.mxu0 %v13926_v22 }
 0xb27   :  { %11051 = vmatprep.subr.bf16.mxu0 %v13931_v23 }
 0xb29   :  { %11043 = vmatmul.mubr.bf16.vlgmr.msra.gmra.mrb[32].mxu0 %v14974_v8  ;;  %v13946_v8 = vld [vmem:[#allocation22 + $0xa04] ss:$24 sps:$4 sm:$0xff]  }
 0xb2a   :  { %11052 = vmatpush1.bf16.msra.mxu0 %v13929_v1  ;;  %11083 = vmatprep.mubr.bf16.mxu0 %v14980_v16  ;;  %v8653_v16 = vrot.slane %v14999_v35, %v14731_v13  ;;  %v11141_v1 = vsub.s32 %v11138_v19, %v14667_v28  ;;  %v13974_v28 = vld [vmem:[#allocation22 + $0xbe0] ss:$24 sps:$4 sm:$0xff]  }
 0xb2b   :  { %11053 = vmatprep.subr.bf16.mxu0 %v13934_v25 }
 0xb2e   :  { %11054 = vmatpush1.bf16.msra.mxu0 %v13932_v7  ;;  %v13968_v7 = vld [vmem:[#allocation22 + $0xb80] ss:$24 sps:$4 sm:$0xff]  }
 0xb2f   :  { %11055 = vmatprep.subr.bf16.mxu0 %v13937_v26 }
 0xb32   :  { %11056 = vmatpush1.bf16.msra.mxu0 %v13935_v41 }
 0xb33   :  { %11057 = vmatprep.subr.bf16.mxu0 %v13940_v27  ;;  %v13973_v27 = vld [vmem:[#allocation22 + $0xbb4] ss:$24 sps:$4 sm:$0xff]  }
 0xb36   :  { %11058 = vmatpush1.bf16.msra.mxu0 %v13938_v47 }
 0xb37   :  { %11059 = vmatprep.subr.bf16.mxu0 %v13943_v34 }
 0xb3a   :  { %11060 = vmatpush1.bf16.msra.mxu0 %v13941_v55 }
 0xb3b   :  { %11061 = vmatprep.subr.bf16.mxu0 %v13946_v8  ;;  %v13971_v8 = vld [vmem:[#allocation22 + $0xbb0] ss:$24 sps:$4 sm:$0xff]  }
 0xb3c   :  { %v10757_v5 = vpop.f32.mrb[28].mxu0  ;;  %v10921_v30 = vpop.f32.mrb[36].mxu1 }
 0xb3d   :  { %v12662_v32 = vadd.f32 %v10757_v5, %v8653_v16  ;;  %v12664_v33 = vadd.f32 %v10921_v30, %v8661_v37  ;;  %v10759_v48 = vpop.f32.mrb[29].mxu0  ;;  %v10923_v36 = vpop.f32.mrb[37].mxu1  ;;  %v13976_v16 = vld [vmem:[#allocation22 + $0xbe4] ss:$24 sps:$4 sm:$0xff]  }
 0xb3e   :  { %v12663_v13 = vadd.f32 %v10759_v48, %v8657_v9  ;;  %v12665_v49 = vadd.f32 %v10923_v36, %v8665_v10  ;;  %v10761_v24 = vpop.f32.mrb[30].mxu0  ;;  %v10925_v39 = vpop.f32.mrb[38].mxu1  ;;  %11062 = vmatpush1.bf16.msra.mxu0 %v13944_v11  ;;  %v8669_v9 = vrot.slane %v14999_v35, %v14786_v2  ;;  %v8673_v10 = vrot.slane %v14999_v35, %v14757_v20 }
 0xb3f   :  { %v12609_v14 = vmul.f32 -1.442695, %v12662_v32  ;;  %v12611_v44 = vmul.f32 -1.442695, %v12664_v33  ;;  %v10762_v45 = vpop.f32.mrb[31].mxu0  ;;  %v10926_v12 = vpop.f32.mrb[39].mxu1  ;;  %11063 = vmatprep.subr.bf16.mxu0 %v13949_v6 }
 0xb40   :  { %v12610_v46 = vmul.f32 -1.442695, %v12663_v13  ;;  %v12612_v38 = vmul.f32 -1.442695, %v12665_v49 }
 0xb41   :  { %13977 = vpow2.f32 %v12609_v14 }
 0xb42   :  { %13979 = vpow2.f32 %v12611_v44  ;;  %11064 = vmatpush1.bf16.msra.mxu0 %v13947_v42 }
 0xb43   :  { %13981 = vpow2.f32 %v12610_v46  ;;  %11065 = vmatprep.subr.bf16.mxu0 %v13952_v43 }
 0xb44   :  { %13983 = vpow2.f32 %v12612_v38 }
 0xb46   :  { %11066 = vmatpush1.bf16.msra.mxu0 %v13950_v60 }
 0xb47   :  { %11067 = vmatprep.subr.bf16.mxu0 %v13955_v50 }
 0xb4a   :  { %11068 = vmatpush1.bf16.msra.mxu0 %v13953_v52 }
 0xb4b   :  { %v13978_v63 = vpop.eup %13977  ;;  %11069 = vmatprep.subr.bf16.mxu0 %v13958_v29 }
 0xb4c   :  { %v13980_v57 = vpop.eup %13979  ;;  %v11110_v58 = vadd.f32 1.0, %v13978_v63 }
 0xb4d   :  { %v13982_v61 = vpop.eup %13981  ;;  %v11112_v62 = vadd.f32 1.0, %v13980_v57 }
 0xb4e   :  { %v13984_v51 = vpop.eup %13983  ;;  %13985 = vrcp.f32 %v11110_v58  ;;  %v11111_v0 = vadd.f32 1.0, %v13982_v61  ;;  %11070 = vmatpush1.bf16.msra.mxu0 %v13956_v54 }
 0xb4f   :  { %13987 = vrcp.f32 %v11112_v62  ;;  %v11113_v31 = vadd.f32 1.0, %v13984_v51  ;;  %11071 = vmatprep.subr.bf16.mxu0 %v13961_v56 }
 0xb50   :  { %13989 = vrcp.f32 %v11111_v0 }
 0xb51   :  { %13991 = vrcp.f32 %v11113_v31 }
 0xb52   :  { %11072 = vmatpush1.bf16.msra.mxu0 %v13959_v53 }
 0xb53   :  { %11073 = vmatprep.subr.bf16.mxu0 %v13964_v59 }
 0xb56   :  { %11074 = vmatpush1.bf16.msra.mxu0 %v13962_v17 }
 0xb57   :  { %11075 = vmatprep.subr.bf16.mxu0 %v13967_v18 }
 0xb58   :  { %v13986_v22 = vpop.eup %13985 }
 0xb59   :  { %v13988_v23 = vpop.eup %13987 }
 0xb5a   :  { %v13990_v25 = vpop.eup %13989  ;;  %11076 = vmatpush1.bf16.msra.mxu0 %v13965_v21 }
 0xb5b   :  { %v13992_v26 = vpop.eup %13991  ;;  %v11134_v41 = vcombine.low %v13986_v22, %v13990_v25  ;;  %11077 = vmatprep.subr.bf16.mxu0 %v13970_v40 }
 0xb5c   :  { %v11135_v47 = vcombine.low %v13988_v23, %v13992_v26 }
 0xb5d   :  { %v11142_v34 = vrot.slane %v11134_v41, %v11141_v1 }
 0xb5e   :  { %v11149_v55 = vrot.slane %v11135_v47, %v11141_v1  ;;  %11078 = vmatpush1.bf16.msra.mxu0 %v13968_v7 }
 0xb5f   :  { %11079 = vmatprep.subr.bf16.mxu0 %v13973_v27 }
 0xb60   :  { %v11150_v37 = vcombine.low %v11142_v34, %v11149_v55 }
 0xb62   :  { %11161 = vst [vmem:[%s15038_s17] sm:$0xff] %v11150_v37  ;;  %11080 = vmatpush1.bf16.msra.mxu0 %v13971_v8 }
 0xb63   :  { %11081 = vmatprep.subr.bf16.mxu0 %v13976_v16 }
 0xb66   :  { %11082 = vmatpush1.bf16.msra.mxu0 %v13974_v28 }
 0xb69   :  { %11084 = vmatmul.mubr.bf16.vlgmr.msra.gmra.mrb[32].mxu0 %v14988_v4 }
 0xc3c   :  { %v11085_v11 = vpop.f32.mrb[32].mxu0 }
 0xc3d   :  { %v12666_v6 = vadd.f32 %v11085_v11, %v8669_v9  ;;  %v11087_v5 = vpop.f32.mrb[33].mxu0 }
 0xc3e   :  { %v12667_v30 = vadd.f32 %v11087_v5, %v8673_v10  ;;  %v11089_v32 = vpop.f32.mrb[34].mxu0 }
 0xc3f   :  { %v12613_v33 = vmul.f32 -1.442695, %v12666_v6  ;;  %v11090_v48 = vpop.f32.mrb[35].mxu0 }
 0xc40   :  { %v12614_v36 = vmul.f32 -1.442695, %v12667_v30 }
 0xc41   :  { %13993 = vpow2.f32 %v12613_v33 }
 0xc42   :  { %13995 = vpow2.f32 %v12614_v36 }
 0xc4b   :  { %v13994_v13 = vpop.eup %13993 }
 0xc4c   :  { %v13996_v49 = vpop.eup %13995  ;;  %v11114_v24 = vadd.f32 1.0, %v13994_v13 }
 0xc4d   :  { %v11115_v4 = vadd.f32 1.0, %v13996_v49 }
 0xc4e   :  { %13997 = vrcp.f32 %v11114_v24 }
 0xc4f   :  { %13999 = vrcp.f32 %v11115_v4 }
 0xc58   :  { %v13998_v2 = vpop.eup %13997 }
 0xc59   :  { %v14000_v39 = vpop.eup %13999 }
 0xc5a   :  { %v11151_v42 = vcombine.low %v13998_v2, %v14000_v39 }
 0xc5c   :  { %12615 = vst.sshfl [vmem:[%s15038_s17 + $0x8] sm:$0x33 pattern:$0x76325410] %v11151_v42 }
 0xc5d   :  { %11171 = vsyncpa [#allocation3], 1 }
 0xc5e   :  { %11172 = vsyncpa [#allocation5], 1 }
 0xc5f   :  { %11173 = vsyncpa [#allocation8], 1 }
 0xc60   :  { %11174 = vsyncpa [#allocation11], 1 }
 0xc61   :  { %11175 = vsyncpa [#allocation14], 1 }
 0xc62   :  { %11176 = vsyncpa [#allocation17], 1 }
 0xc63   :  { %11177 = vsyncpa [#allocation20], 1 }
 0xc64   :  { %11178 = vsyncpa [#allocation23], 1 }

</bundles_post_ra>
